<compile_context>
chip_gen: v7x
topology: tpu7x:2x2x1
jax: 0.10.0
libtpu: 0.0.40
codegen_flags: <defaults>
</compile_context>

<pallas_src>
import numpy as np
import jax
import jax.numpy as jnp
from jax.experimental import pallas as pl
from jax.experimental.pallas import tpu as pltpu

# Fixed architecture (input_shape=(70, 70), num_actions=4).
H0 = 70
K1, S1, C1 = 5, 2, 16      # conv1: 1 -> 16
K2, S2, C2 = 3, 2, 32      # conv2: 16 -> 32
K3, S3, C3 = 3, 2, 64      # conv3: 32 -> 64
H1 = (H0 - K1) // S1 + 1   # 33
H2 = (H1 - K2) // S2 + 1   # 16
H3 = (H2 - K3) // S3 + 1   # 7
L1, L2, L3 = H1 * H1, H2 * H2, H3 * H3   # 1089, 256, 49
FEAT = C3 * L3                           # 3136
FC1, FC2, NA = 256, 128, 4
K1P = 32                                 # conv1 contraction dim (25) padded to 32


# ----------------------------------------------------------------------------
# Fused forward kernel: one grid step == one sample.
# ----------------------------------------------------------------------------
def _policy_fwd_kernel(p1_ref, w1_ref, b1_ref, g2_ref, w2_ref, b2_ref,
                       g3_ref, w3_ref, b3_ref, wfc1_ref, bfc1_ref,
                       wfc2_ref, bfc2_ref, wlog_ref, blog_ref, out_ref):
    f32, bf16 = jnp.float32, jnp.bfloat16

    # conv1 as one lane-dense GEMM: (16, 32) @ (32, 1089) -> (16, 1089)
    z1 = jnp.dot(w1_ref[...], p1_ref[0], preferred_element_type=f32)
    y1 = jnp.maximum(z1 + b1_ref[...], 0.0).astype(bf16)

    # conv2: per-tap gather (selection matmul) + channel-mix matmul.
    z2 = jnp.zeros((C2, L2), f32)
    for t in range(K2 * K2):
        p2 = jnp.dot(y1, g2_ref[t], preferred_element_type=f32).astype(bf16)   # (16, 256)
        z2 = z2 + jnp.dot(w2_ref[t], p2, preferred_element_type=f32)           # (32, 256)
    y2 = jnp.maximum(z2 + b2_ref[...], 0.0).astype(bf16)

    # conv3 (same scheme).
    z3 = jnp.zeros((C3, L3), f32)
    for t in range(K3 * K3):
        p3 = jnp.dot(y2, g3_ref[t], preferred_element_type=f32).astype(bf16)   # (32, 49)
        z3 = z3 + jnp.dot(w3_ref[t], p3, preferred_element_type=f32)           # (64, 49)
    y3 = jnp.maximum(z3 + b3_ref[...], 0.0)                                     # (64, 49) f32

    # fc1: contract over (channel, spatial) without an in-kernel flatten.
    # Weight pre-arranged as (64, 49, 256); batched matmul over the 64 channels.
    y3b = y3.astype(bf16)[:, None, :]                                           # (64, 1, 49)
    t1 = jnp.einsum("cms,csn->cmn", y3b, wfc1_ref[...],
                    preferred_element_type=f32)                                 # (64, 1, 256)
    h1 = jnp.maximum(jnp.sum(t1, axis=0) + bfc1_ref[...], 0.0)                  # (1, 256)

    # fc2 + logits.
    h2 = jnp.maximum(
        jnp.dot(h1.astype(bf16), wfc2_ref[...], preferred_element_type=f32)
        + bfc2_ref[...], 0.0)                                                   # (1, 128)
    logit = (jnp.dot(h2.astype(bf16), wlog_ref[...], preferred_element_type=f32)
             + blog_ref[...])                                                   # (1, 4)

    # Write this sample's row of the resident (B, 4) output block.
    b = pl.program_id(0)
    for r in range(out_ref.shape[0]):
        @pl.when(b == r)
        def _write(r=r):
            out_ref[r:r + 1, :] = logit


# ----------------------------------------------------------------------------
# Constant preparation (done ONCE, outside the per-call path).
# ----------------------------------------------------------------------------
def _gather_mats(hw_in, k, stride, dtype=jnp.bfloat16):
    """0/1 matrices G[t] with (Y @ G[t])[c, m] = Y[c, (s*oh+i)*W + (s*ow+j)]."""
    hw_out = (hw_in - k) // stride + 1
    g = np.zeros((k * k, hw_in * hw_in, hw_out * hw_out), np.float32)
    oh, ow = np.meshgrid(np.arange(hw_out), np.arange(hw_out), indexing="ij")
    dst = (oh * hw_out + ow).ravel()
    for i in range(k):
        for j in range(k):
            src = ((stride * oh + i) * hw_in + (stride * ow + j)).ravel()
            g[i * k + j, src, dst] = 1.0
    return jnp.asarray(g, dtype)


def prepare_constants(params):
    bf16 = jnp.bfloat16
    c = {}
    w1 = params["conv1_w"].reshape(C1, K1 * K1)                    # (16, 25), (kh, kw) order
    c["w1"] = jnp.pad(w1, ((0, 0), (0, K1P - K1 * K1))).astype(bf16)   # (16, 32)
    c["b1"] = params["conv1_b"].reshape(C1, 1)
    c["w2"] = jnp.transpose(params["conv2_w"], (2, 3, 0, 1)).reshape(K2 * K2, C2, C1).astype(bf16)
    c["b2"] = params["conv2_b"].reshape(C2, 1)
    c["w3"] = jnp.transpose(params["conv3_w"], (2, 3, 0, 1)).reshape(K3 * K3, C3, C2).astype(bf16)
    c["b3"] = params["conv3_b"].reshape(C3, 1)
    c["g2"] = _gather_mats(H1, K2, S2)        # (9, 1089, 256)
    c["g3"] = _gather_mats(H2, K3, S3)        # (9, 256, 49)
    # fc1 weight (256, 3136) -> (64, 49, 256): wfc1[c, s, n] = fc1_w[n, c*49 + s]
    c["wfc1"] = jnp.transpose(params["fc1_w"].reshape(FC1, C3, L3), (1, 2, 0)).astype(bf16)
    c["bfc1"] = params["fc1_b"].reshape(1, FC1)
    c["wfc2"] = params["fc2_w"].T.astype(bf16)       # (256, 128)
    c["bfc2"] = params["fc2_b"].reshape(1, FC2)
    c["wlog"] = params["logits_w"].T.astype(bf16)    # (128, 4)
    c["blog"] = params["logits_b"].reshape(1, NA)
    return c


# ----------------------------------------------------------------------------
# Forward pass (matches PolicyNetworkDiscrete.forward)
# ----------------------------------------------------------------------------
def policy_forward(consts, state):
    """state: (B, 1, 70, 70) f32 -> (B, 4) f32 logits."""
    B = state.shape[0]
    # conv1 im2col on the raw observation (only per-call JAX glue).
    xs = state[:, 0]                                         # (B, 70, 70)
    span = S1 * (H1 - 1) + 1                                 # 65
    taps = [xs[:, i:i + span:S1, j:j + span:S1]
            for i in range(K1) for j in range(K1)]           # 25 x (B, 33, 33)
    p1 = jnp.stack(taps, axis=1).reshape(B, K1 * K1, L1)     # (B, 25, 1089)
    p1 = jnp.pad(p1, ((0, 0), (0, K1P - K1 * K1), (0, 0))).astype(jnp.bfloat16)

    def full_spec(a):
        n = a.ndim
        return pl.BlockSpec(a.shape, lambda b: (0,) * n)

    order = ("w1", "b1", "g2", "w2", "b2", "g3", "w3", "b3",
             "wfc1", "bfc1", "wfc2", "bfc2", "wlog", "blog")
    const_args = tuple(consts[k] for k in order)

    return pl.pallas_call(
        _policy_fwd_kernel,
        grid=(B,),
        in_specs=[pl.BlockSpec((1, K1P, L1), lambda b: (b, 0, 0))]
                 + [full_spec(a) for a in const_args],
        out_specs=pl.BlockSpec((B, NA), lambda b: (0, 0)),
        out_shape=jax.ShapeDtypeStruct((B, NA), jnp.float32),
        compiler_params=pltpu.CompilerParams(
            dimension_semantics=("arbitrary",),
            vmem_limit_bytes=48 * 1024 * 1024,
        ),
    )(p1, *const_args)


# ----------------------------------------------------------------------------
# Parameter init (PyTorch-default-style uniform(-1/sqrt(fan_in))) + reference
# ----------------------------------------------------------------------------
def _uniform(key, shape, bound):
    return jax.random.uniform(key, shape, jnp.float32, -bound, bound)


def init_params(key):
    ks = jax.random.split(key, 12)
    p = {}
    for idx, (name, cin, cout, k) in enumerate(
            [("conv1", 1, C1, K1), ("conv2", C1, C2, K2), ("conv3", C2, C3, K3)]):
        bound = 1.0 / (cin * k * k) ** 0.5
        p[name + "_w"] = _uniform(ks[2 * idx], (cout, cin, k, k), bound)
        p[name + "_b"] = _uniform(ks[2 * idx + 1], (cout,), bound)
    for idx, (name, fin, fout) in enumerate(
            [("fc1", FEAT, FC1), ("fc2", FC1, FC2), ("logits", FC2, NA)]):
        bound = 1.0 / fin ** 0.5
        p[name + "_w"] = _uniform(ks[6 + 2 * idx], (fout, fin), bound)
        p[name + "_b"] = _uniform(ks[7 + 2 * idx], (fout,), bound)
    return p


def reference_forward(params, state):
    x = state
    for name in ("conv1", "conv2", "conv3"):
        x = jax.lax.conv_general_dilated(
            x, params[name + "_w"], (2, 2), "VALID",
            dimension_numbers=("NCHW", "OIHW", "NCHW"))
        x = jax.nn.relu(x + params[name + "_b"][None, :, None, None])
    x = x.reshape(x.shape[0], -1)
    x = jax.nn.relu(x @ params["fc1_w"].T + params["fc1_b"])
    x = jax.nn.relu(x @ params["fc2_w"].T + params["fc2_b"])
    return x @ params["logits_w"].T + params["logits_b"]


if __name__ == "__main__":
    key = jax.random.PRNGKey(0)
    pkey, xkey = jax.random.split(key)
    params = init_params(pkey)
    consts = prepare_constants(params)

    # batch=2, single-channel 70x70 observation (the module's fixed input_shape)
    state = jax.random.normal(xkey, (2, 1, H0, H0), jnp.float32)

    fwd = jax.jit(policy_forward)
    logits = fwd(consts, state)
    jax.block_until_ready(logits)
    assert logits.shape == (2, NA) and logits.dtype == jnp.float32

    # Correctness check vs. pure-JAX f32 reference (bf16 operands => loose tol).
    ref = reference_forward(params, state)
    np.testing.assert_allclose(np.asarray(logits), np.asarray(ref),
                               rtol=5e-2, atol=5e-3)
    print("KERNEL_OK")
</pallas_src>

<mosaic_0001>
module attributes {stable_mosaic.version = 11 : i64} {
  func.func @_policy_fwd_kernel(%arg0: i32, %arg1: memref<1x32x1089xbf16, #tpu.memory_space<vmem>>, %arg2: memref<16x32xbf16, #tpu.memory_space<vmem>>, %arg3: memref<16x1xf32, #tpu.memory_space<vmem>>, %arg4: memref<9x1089x256xbf16, #tpu.memory_space<vmem>>, %arg5: memref<9x32x16xbf16, #tpu.memory_space<vmem>>, %arg6: memref<32x1xf32, #tpu.memory_space<vmem>>, %arg7: memref<9x256x49xbf16, #tpu.memory_space<vmem>>, %arg8: memref<9x64x32xbf16, #tpu.memory_space<vmem>>, %arg9: memref<64x1xf32, #tpu.memory_space<vmem>>, %arg10: memref<64x49x256xbf16, #tpu.memory_space<vmem>>, %arg11: memref<1x256xf32, #tpu.memory_space<vmem>>, %arg12: memref<256x128xbf16, #tpu.memory_space<vmem>>, %arg13: memref<1x128xf32, #tpu.memory_space<vmem>>, %arg14: memref<128x4xbf16, #tpu.memory_space<vmem>>, %arg15: memref<1x4xf32, #tpu.memory_space<vmem>>, %arg16: memref<2x4xf32, #tpu.memory_space<vmem>>) attributes {dimension_semantics = [#tpu.dimension_semantics<arbitrary>], iteration_bounds = array<i64: 2>, scalar_prefetch = 0 : i64, scratch_operands = 0 : i64, tpu.core_type = #tpu.core_type<tc>, window_params = [{transform_indices = @transform_0, window_bounds = array<i64: 1, 32, 1089>}, {pipeline_mode = #tpu.pipeline_mode<synchronous>, transform_indices = @transform_1, window_bounds = array<i64: 16, 32>}, {pipeline_mode = #tpu.pipeline_mode<synchronous>, transform_indices = @transform_2, window_bounds = array<i64: 16, 1>}, {pipeline_mode = #tpu.pipeline_mode<synchronous>, transform_indices = @transform_3, window_bounds = array<i64: 9, 1089, 256>}, {pipeline_mode = #tpu.pipeline_mode<synchronous>, transform_indices = @transform_4, window_bounds = array<i64: 9, 32, 16>}, {pipeline_mode = #tpu.pipeline_mode<synchronous>, transform_indices = @transform_5, window_bounds = array<i64: 32, 1>}, {pipeline_mode = #tpu.pipeline_mode<synchronous>, transform_indices = @transform_6, window_bounds = array<i64: 9, 256, 49>}, {pipeline_mode = #tpu.pipeline_mode<synchronous>, transform_indices = @transform_7, window_bounds = array<i64: 9, 64, 32>}, {pipeline_mode = #tpu.pipeline_mode<synchronous>, transform_indices = @transform_8, window_bounds = array<i64: 64, 1>}, {pipeline_mode = #tpu.pipeline_mode<synchronous>, transform_indices = @transform_9, window_bounds = array<i64: 64, 49, 256>}, {pipeline_mode = #tpu.pipeline_mode<synchronous>, transform_indices = @transform_10, window_bounds = array<i64: 1, 256>}, {pipeline_mode = #tpu.pipeline_mode<synchronous>, transform_indices = @transform_11, window_bounds = array<i64: 256, 128>}, {pipeline_mode = #tpu.pipeline_mode<synchronous>, transform_indices = @transform_12, window_bounds = array<i64: 1, 128>}, {pipeline_mode = #tpu.pipeline_mode<synchronous>, transform_indices = @transform_13, window_bounds = array<i64: 128, 4>}, {pipeline_mode = #tpu.pipeline_mode<synchronous>, transform_indices = @transform_14, window_bounds = array<i64: 1, 4>}, {pipeline_mode = #tpu.pipeline_mode<synchronous>, transform_indices = @transform_15, window_bounds = array<i64: 2, 4>}]} {
    %c0 = arith.constant 0 : index
    %c0_0 = arith.constant 0 : index
    %0 = vector.load %arg2[%c0, %c0_0] : memref<16x32xbf16, #tpu.memory_space<vmem>>, vector<16x32xbf16>
    %c0_1 = arith.constant 0 : index
    %c0_2 = arith.constant 0 : index
    %c0_3 = arith.constant 0 : index
    %1 = vector.load %arg1[%c0_1, %c0_2, %c0_3] : memref<1x32x1089xbf16, #tpu.memory_space<vmem>>, vector<1x32x1089xbf16>
    %2 = vector.shape_cast %1 : vector<1x32x1089xbf16> to vector<32x1089xbf16>
    %cst = arith.constant dense<0.000000e+00> : vector<16x1089xf32>
    %3 = tpu.matmul %0, %2, %cst {dimension_numbers = #tpu.dot_dimension_numbers<[1], [0], [0], [1], [0, 0, 1, 1], [], []>} : vector<16x32xbf16>, vector<32x1089xbf16>, vector<16x1089xf32> -> vector<16x1089xf32>
    %c0_4 = arith.constant 0 : index
    %c0_5 = arith.constant 0 : index
    %4 = vector.load %arg3[%c0_4, %c0_5] : memref<16x1xf32, #tpu.memory_space<vmem>>, vector<16x1xf32>
    %5 = vector.broadcast %4 : vector<16x1xf32> to vector<16x1089xf32>
    %6 = arith.addf %3, %5 : vector<16x1089xf32>
    %cst_6 = arith.constant 0.000000e+00 : f32
    %7 = vector.broadcast %cst_6 : f32 to vector<16x1089xf32>
    %8 = arith.maximumf %6, %7 : vector<16x1089xf32>
    %9 = arith.truncf %8 : vector<16x1089xf32> to vector<16x1089xbf16>
    %cst_7 = arith.constant 0.000000e+00 : f32
    %10 = vector.broadcast %cst_7 : f32 to vector<32x256xf32>
    %c0_8 = arith.constant 0 : index
    %c0_9 = arith.constant 0 : index
    %c0_10 = arith.constant 0 : index
    %11 = vector.load %arg4[%c0_8, %c0_9, %c0_10] : memref<9x1089x256xbf16, #tpu.memory_space<vmem>>, vector<1x1089x256xbf16>
    %12 = vector.shape_cast %11 : vector<1x1089x256xbf16> to vector<1089x256xbf16>
    %cst_11 = arith.constant dense<0.000000e+00> : vector<16x256xf32>
    %13 = tpu.matmul %9, %12, %cst_11 {dimension_numbers = #tpu.dot_dimension_numbers<[1], [0], [0], [1], [0, 0, 1, 1], [], []>} : vector<16x1089xbf16>, vector<1089x256xbf16>, vector<16x256xf32> -> vector<16x256xf32>
    %14 = arith.truncf %13 : vector<16x256xf32> to vector<16x256xbf16>
    %c0_12 = arith.constant 0 : index
    %c0_13 = arith.constant 0 : index
    %c0_14 = arith.constant 0 : index
    %15 = vector.load %arg5[%c0_12, %c0_13, %c0_14] : memref<9x32x16xbf16, #tpu.memory_space<vmem>>, vector<1x32x16xbf16>
    %16 = vector.shape_cast %15 : vector<1x32x16xbf16> to vector<32x16xbf16>
    %cst_15 = arith.constant dense<0.000000e+00> : vector<32x256xf32>
    %17 = tpu.matmul %16, %14, %cst_15 {dimension_numbers = #tpu.dot_dimension_numbers<[1], [0], [0], [1], [0, 0, 1, 1], [], []>} : vector<32x16xbf16>, vector<16x256xbf16>, vector<32x256xf32> -> vector<32x256xf32>
    %18 = arith.addf %10, %17 : vector<32x256xf32>
    %c1 = arith.constant 1 : index
    %c0_16 = arith.constant 0 : index
    %c0_17 = arith.constant 0 : index
    %19 = vector.load %arg4[%c1, %c0_16, %c0_17] : memref<9x1089x256xbf16, #tpu.memory_space<vmem>>, vector<1x1089x256xbf16>
    %20 = vector.shape_cast %19 : vector<1x1089x256xbf16> to vector<1089x256xbf16>
    %cst_18 = arith.constant dense<0.000000e+00> : vector<16x256xf32>
    %21 = tpu.matmul %9, %20, %cst_18 {dimension_numbers = #tpu.dot_dimension_numbers<[1], [0], [0], [1], [0, 0, 1, 1], [], []>} : vector<16x1089xbf16>, vector<1089x256xbf16>, vector<16x256xf32> -> vector<16x256xf32>
    %22 = arith.truncf %21 : vector<16x256xf32> to vector<16x256xbf16>
    %c1_19 = arith.constant 1 : index
    %c0_20 = arith.constant 0 : index
    %c0_21 = arith.constant 0 : index
    %23 = vector.load %arg5[%c1_19, %c0_20, %c0_21] : memref<9x32x16xbf16, #tpu.memory_space<vmem>>, vector<1x32x16xbf16>
    %24 = vector.shape_cast %23 : vector<1x32x16xbf16> to vector<32x16xbf16>
    %cst_22 = arith.constant dense<0.000000e+00> : vector<32x256xf32>
    %25 = tpu.matmul %24, %22, %cst_22 {dimension_numbers = #tpu.dot_dimension_numbers<[1], [0], [0], [1], [0, 0, 1, 1], [], []>} : vector<32x16xbf16>, vector<16x256xbf16>, vector<32x256xf32> -> vector<32x256xf32>
    %26 = arith.addf %18, %25 : vector<32x256xf32>
    %c2 = arith.constant 2 : index
    %c0_23 = arith.constant 0 : index
    %c0_24 = arith.constant 0 : index
    %27 = vector.load %arg4[%c2, %c0_23, %c0_24] : memref<9x1089x256xbf16, #tpu.memory_space<vmem>>, vector<1x1089x256xbf16>
    %28 = vector.shape_cast %27 : vector<1x1089x256xbf16> to vector<1089x256xbf16>
    %cst_25 = arith.constant dense<0.000000e+00> : vector<16x256xf32>
    %29 = tpu.matmul %9, %28, %cst_25 {dimension_numbers = #tpu.dot_dimension_numbers<[1], [0], [0], [1], [0, 0, 1, 1], [], []>} : vector<16x1089xbf16>, vector<1089x256xbf16>, vector<16x256xf32> -> vector<16x256xf32>
    %30 = arith.truncf %29 : vector<16x256xf32> to vector<16x256xbf16>
    %c2_26 = arith.constant 2 : index
    %c0_27 = arith.constant 0 : index
    %c0_28 = arith.constant 0 : index
    %31 = vector.load %arg5[%c2_26, %c0_27, %c0_28] : memref<9x32x16xbf16, #tpu.memory_space<vmem>>, vector<1x32x16xbf16>
    %32 = vector.shape_cast %31 : vector<1x32x16xbf16> to vector<32x16xbf16>
    %cst_29 = arith.constant dense<0.000000e+00> : vector<32x256xf32>
    %33 = tpu.matmul %32, %30, %cst_29 {dimension_numbers = #tpu.dot_dimension_numbers<[1], [0], [0], [1], [0, 0, 1, 1], [], []>} : vector<32x16xbf16>, vector<16x256xbf16>, vector<32x256xf32> -> vector<32x256xf32>
    %34 = arith.addf %26, %33 : vector<32x256xf32>
    %c3 = arith.constant 3 : index
    %c0_30 = arith.constant 0 : index
    %c0_31 = arith.constant 0 : index
    %35 = vector.load %arg4[%c3, %c0_30, %c0_31] : memref<9x1089x256xbf16, #tpu.memory_space<vmem>>, vector<1x1089x256xbf16>
    %36 = vector.shape_cast %35 : vector<1x1089x256xbf16> to vector<1089x256xbf16>
    %cst_32 = arith.constant dense<0.000000e+00> : vector<16x256xf32>
    %37 = tpu.matmul %9, %36, %cst_32 {dimension_numbers = #tpu.dot_dimension_numbers<[1], [0], [0], [1], [0, 0, 1, 1], [], []>} : vector<16x1089xbf16>, vector<1089x256xbf16>, vector<16x256xf32> -> vector<16x256xf32>
    %38 = arith.truncf %37 : vector<16x256xf32> to vector<16x256xbf16>
    %c3_33 = arith.constant 3 : index
    %c0_34 = arith.constant 0 : index
    %c0_35 = arith.constant 0 : index
    %39 = vector.load %arg5[%c3_33, %c0_34, %c0_35] : memref<9x32x16xbf16, #tpu.memory_space<vmem>>, vector<1x32x16xbf16>
    %40 = vector.shape_cast %39 : vector<1x32x16xbf16> to vector<32x16xbf16>
    %cst_36 = arith.constant dense<0.000000e+00> : vector<32x256xf32>
    %41 = tpu.matmul %40, %38, %cst_36 {dimension_numbers = #tpu.dot_dimension_numbers<[1], [0], [0], [1], [0, 0, 1, 1], [], []>} : vector<32x16xbf16>, vector<16x256xbf16>, vector<32x256xf32> -> vector<32x256xf32>
    %42 = arith.addf %34, %41 : vector<32x256xf32>
    %c4 = arith.constant 4 : index
    %c0_37 = arith.constant 0 : index
    %c0_38 = arith.constant 0 : index
    %43 = vector.load %arg4[%c4, %c0_37, %c0_38] : memref<9x1089x256xbf16, #tpu.memory_space<vmem>>, vector<1x1089x256xbf16>
    %44 = vector.shape_cast %43 : vector<1x1089x256xbf16> to vector<1089x256xbf16>
    %cst_39 = arith.constant dense<0.000000e+00> : vector<16x256xf32>
    %45 = tpu.matmul %9, %44, %cst_39 {dimension_numbers = #tpu.dot_dimension_numbers<[1], [0], [0], [1], [0, 0, 1, 1], [], []>} : vector<16x1089xbf16>, vector<1089x256xbf16>, vector<16x256xf32> -> vector<16x256xf32>
    %46 = arith.truncf %45 : vector<16x256xf32> to vector<16x256xbf16>
    %c4_40 = arith.constant 4 : index
    %c0_41 = arith.constant 0 : index
    %c0_42 = arith.constant 0 : index
    %47 = vector.load %arg5[%c4_40, %c0_41, %c0_42] : memref<9x32x16xbf16, #tpu.memory_space<vmem>>, vector<1x32x16xbf16>
    %48 = vector.shape_cast %47 : vector<1x32x16xbf16> to vector<32x16xbf16>
    %cst_43 = arith.constant dense<0.000000e+00> : vector<32x256xf32>
    %49 = tpu.matmul %48, %46, %cst_43 {dimension_numbers = #tpu.dot_dimension_numbers<[1], [0], [0], [1], [0, 0, 1, 1], [], []>} : vector<32x16xbf16>, vector<16x256xbf16>, vector<32x256xf32> -> vector<32x256xf32>
    %50 = arith.addf %42, %49 : vector<32x256xf32>
    %c5 = arith.constant 5 : index
    %c0_44 = arith.constant 0 : index
    %c0_45 = arith.constant 0 : index
    %51 = vector.load %arg4[%c5, %c0_44, %c0_45] : memref<9x1089x256xbf16, #tpu.memory_space<vmem>>, vector<1x1089x256xbf16>
    %52 = vector.shape_cast %51 : vector<1x1089x256xbf16> to vector<1089x256xbf16>
    %cst_46 = arith.constant dense<0.000000e+00> : vector<16x256xf32>
    %53 = tpu.matmul %9, %52, %cst_46 {dimension_numbers = #tpu.dot_dimension_numbers<[1], [0], [0], [1], [0, 0, 1, 1], [], []>} : vector<16x1089xbf16>, vector<1089x256xbf16>, vector<16x256xf32> -> vector<16x256xf32>
    %54 = arith.truncf %53 : vector<16x256xf32> to vector<16x256xbf16>
    %c5_47 = arith.constant 5 : index
    %c0_48 = arith.constant 0 : index
    %c0_49 = arith.constant 0 : index
    %55 = vector.load %arg5[%c5_47, %c0_48, %c0_49] : memref<9x32x16xbf16, #tpu.memory_space<vmem>>, vector<1x32x16xbf16>
    %56 = vector.shape_cast %55 : vector<1x32x16xbf16> to vector<32x16xbf16>
    %cst_50 = arith.constant dense<0.000000e+00> : vector<32x256xf32>
    %57 = tpu.matmul %56, %54, %cst_50 {dimension_numbers = #tpu.dot_dimension_numbers<[1], [0], [0], [1], [0, 0, 1, 1], [], []>} : vector<32x16xbf16>, vector<16x256xbf16>, vector<32x256xf32> -> vector<32x256xf32>
    %58 = arith.addf %50, %57 : vector<32x256xf32>
    %c6 = arith.constant 6 : index
    %c0_51 = arith.constant 0 : index
    %c0_52 = arith.constant 0 : index
    %59 = vector.load %arg4[%c6, %c0_51, %c0_52] : memref<9x1089x256xbf16, #tpu.memory_space<vmem>>, vector<1x1089x256xbf16>
    %60 = vector.shape_cast %59 : vector<1x1089x256xbf16> to vector<1089x256xbf16>
    %cst_53 = arith.constant dense<0.000000e+00> : vector<16x256xf32>
    %61 = tpu.matmul %9, %60, %cst_53 {dimension_numbers = #tpu.dot_dimension_numbers<[1], [0], [0], [1], [0, 0, 1, 1], [], []>} : vector<16x1089xbf16>, vector<1089x256xbf16>, vector<16x256xf32> -> vector<16x256xf32>
    %62 = arith.truncf %61 : vector<16x256xf32> to vector<16x256xbf16>
    %c6_54 = arith.constant 6 : index
    %c0_55 = arith.constant 0 : index
    %c0_56 = arith.constant 0 : index
    %63 = vector.load %arg5[%c6_54, %c0_55, %c0_56] : memref<9x32x16xbf16, #tpu.memory_space<vmem>>, vector<1x32x16xbf16>
    %64 = vector.shape_cast %63 : vector<1x32x16xbf16> to vector<32x16xbf16>
    %cst_57 = arith.constant dense<0.000000e+00> : vector<32x256xf32>
    %65 = tpu.matmul %64, %62, %cst_57 {dimension_numbers = #tpu.dot_dimension_numbers<[1], [0], [0], [1], [0, 0, 1, 1], [], []>} : vector<32x16xbf16>, vector<16x256xbf16>, vector<32x256xf32> -> vector<32x256xf32>
    %66 = arith.addf %58, %65 : vector<32x256xf32>
    %c7 = arith.constant 7 : index
    %c0_58 = arith.constant 0 : index
    %c0_59 = arith.constant 0 : index
    %67 = vector.load %arg4[%c7, %c0_58, %c0_59] : memref<9x1089x256xbf16, #tpu.memory_space<vmem>>, vector<1x1089x256xbf16>
    %68 = vector.shape_cast %67 : vector<1x1089x256xbf16> to vector<1089x256xbf16>
    %cst_60 = arith.constant dense<0.000000e+00> : vector<16x256xf32>
    %69 = tpu.matmul %9, %68, %cst_60 {dimension_numbers = #tpu.dot_dimension_numbers<[1], [0], [0], [1], [0, 0, 1, 1], [], []>} : vector<16x1089xbf16>, vector<1089x256xbf16>, vector<16x256xf32> -> vector<16x256xf32>
    %70 = arith.truncf %69 : vector<16x256xf32> to vector<16x256xbf16>
    %c7_61 = arith.constant 7 : index
    %c0_62 = arith.constant 0 : index
    %c0_63 = arith.constant 0 : index
    %71 = vector.load %arg5[%c7_61, %c0_62, %c0_63] : memref<9x32x16xbf16, #tpu.memory_space<vmem>>, vector<1x32x16xbf16>
    %72 = vector.shape_cast %71 : vector<1x32x16xbf16> to vector<32x16xbf16>
    %cst_64 = arith.constant dense<0.000000e+00> : vector<32x256xf32>
    %73 = tpu.matmul %72, %70, %cst_64 {dimension_numbers = #tpu.dot_dimension_numbers<[1], [0], [0], [1], [0, 0, 1, 1], [], []>} : vector<32x16xbf16>, vector<16x256xbf16>, vector<32x256xf32> -> vector<32x256xf32>
    %74 = arith.addf %66, %73 : vector<32x256xf32>
    %c8 = arith.constant 8 : index
    %c0_65 = arith.constant 0 : index
    %c0_66 = arith.constant 0 : index
    %75 = vector.load %arg4[%c8, %c0_65, %c0_66] : memref<9x1089x256xbf16, #tpu.memory_space<vmem>>, vector<1x1089x256xbf16>
    %76 = vector.shape_cast %75 : vector<1x1089x256xbf16> to vector<1089x256xbf16>
    %cst_67 = arith.constant dense<0.000000e+00> : vector<16x256xf32>
    %77 = tpu.matmul %9, %76, %cst_67 {dimension_numbers = #tpu.dot_dimension_numbers<[1], [0], [0], [1], [0, 0, 1, 1], [], []>} : vector<16x1089xbf16>, vector<1089x256xbf16>, vector<16x256xf32> -> vector<16x256xf32>
    %78 = arith.truncf %77 : vector<16x256xf32> to vector<16x256xbf16>
    %c8_68 = arith.constant 8 : index
    %c0_69 = arith.constant 0 : index
    %c0_70 = arith.constant 0 : index
    %79 = vector.load %arg5[%c8_68, %c0_69, %c0_70] : memref<9x32x16xbf16, #tpu.memory_space<vmem>>, vector<1x32x16xbf16>
    %80 = vector.shape_cast %79 : vector<1x32x16xbf16> to vector<32x16xbf16>
    %cst_71 = arith.constant dense<0.000000e+00> : vector<32x256xf32>
    %81 = tpu.matmul %80, %78, %cst_71 {dimension_numbers = #tpu.dot_dimension_numbers<[1], [0], [0], [1], [0, 0, 1, 1], [], []>} : vector<32x16xbf16>, vector<16x256xbf16>, vector<32x256xf32> -> vector<32x256xf32>
    %82 = arith.addf %74, %81 : vector<32x256xf32>
    %c0_72 = arith.constant 0 : index
    %c0_73 = arith.constant 0 : index
    %83 = vector.load %arg6[%c0_72, %c0_73] : memref<32x1xf32, #tpu.memory_space<vmem>>, vector<32x1xf32>
    %84 = vector.broadcast %83 : vector<32x1xf32> to vector<32x256xf32>
    %85 = arith.addf %82, %84 : vector<32x256xf32>
    %cst_74 = arith.constant 0.000000e+00 : f32
    %86 = vector.broadcast %cst_74 : f32 to vector<32x256xf32>
    %87 = arith.maximumf %85, %86 : vector<32x256xf32>
    %88 = arith.truncf %87 : vector<32x256xf32> to vector<32x256xbf16>
    %cst_75 = arith.constant 0.000000e+00 : f32
    %89 = vector.broadcast %cst_75 : f32 to vector<64x49xf32>
    %c0_76 = arith.constant 0 : index
    %c0_77 = arith.constant 0 : index
    %c0_78 = arith.constant 0 : index
    %90 = vector.load %arg7[%c0_76, %c0_77, %c0_78] : memref<9x256x49xbf16, #tpu.memory_space<vmem>>, vector<1x256x49xbf16>
    %91 = vector.shape_cast %90 : vector<1x256x49xbf16> to vector<256x49xbf16>
    %cst_79 = arith.constant dense<0.000000e+00> : vector<32x49xf32>
    %92 = tpu.matmul %88, %91, %cst_79 {dimension_numbers = #tpu.dot_dimension_numbers<[1], [0], [0], [1], [0, 0, 1, 1], [], []>} : vector<32x256xbf16>, vector<256x49xbf16>, vector<32x49xf32> -> vector<32x49xf32>
    %93 = arith.truncf %92 : vector<32x49xf32> to vector<32x49xbf16>
    %c0_80 = arith.constant 0 : index
    %c0_81 = arith.constant 0 : index
    %c0_82 = arith.constant 0 : index
    %94 = vector.load %arg8[%c0_80, %c0_81, %c0_82] : memref<9x64x32xbf16, #tpu.memory_space<vmem>>, vector<1x64x32xbf16>
    %95 = vector.shape_cast %94 : vector<1x64x32xbf16> to vector<64x32xbf16>
    %cst_83 = arith.constant dense<0.000000e+00> : vector<64x49xf32>
    %96 = tpu.matmul %95, %93, %cst_83 {dimension_numbers = #tpu.dot_dimension_numbers<[1], [0], [0], [1], [0, 0, 1, 1], [], []>} : vector<64x32xbf16>, vector<32x49xbf16>, vector<64x49xf32> -> vector<64x49xf32>
    %97 = arith.addf %89, %96 : vector<64x49xf32>
    %c1_84 = arith.constant 1 : index
    %c0_85 = arith.constant 0 : index
    %c0_86 = arith.constant 0 : index
    %98 = vector.load %arg7[%c1_84, %c0_85, %c0_86] : memref<9x256x49xbf16, #tpu.memory_space<vmem>>, vector<1x256x49xbf16>
    %99 = vector.shape_cast %98 : vector<1x256x49xbf16> to vector<256x49xbf16>
    %cst_87 = arith.constant dense<0.000000e+00> : vector<32x49xf32>
    %100 = tpu.matmul %88, %99, %cst_87 {dimension_numbers = #tpu.dot_dimension_numbers<[1], [0], [0], [1], [0, 0, 1, 1], [], []>} : vector<32x256xbf16>, vector<256x49xbf16>, vector<32x49xf32> -> vector<32x49xf32>
    %101 = arith.truncf %100 : vector<32x49xf32> to vector<32x49xbf16>
    %c1_88 = arith.constant 1 : index
    %c0_89 = arith.constant 0 : index
    %c0_90 = arith.constant 0 : index
    %102 = vector.load %arg8[%c1_88, %c0_89, %c0_90] : memref<9x64x32xbf16, #tpu.memory_space<vmem>>, vector<1x64x32xbf16>
    %103 = vector.shape_cast %102 : vector<1x64x32xbf16> to vector<64x32xbf16>
    %cst_91 = arith.constant dense<0.000000e+00> : vector<64x49xf32>
    %104 = tpu.matmul %103, %101, %cst_91 {dimension_numbers = #tpu.dot_dimension_numbers<[1], [0], [0], [1], [0, 0, 1, 1], [], []>} : vector<64x32xbf16>, vector<32x49xbf16>, vector<64x49xf32> -> vector<64x49xf32>
    %105 = arith.addf %97, %104 : vector<64x49xf32>
    %c2_92 = arith.constant 2 : index
    %c0_93 = arith.constant 0 : index
    %c0_94 = arith.constant 0 : index
    %106 = vector.load %arg7[%c2_92, %c0_93, %c0_94] : memref<9x256x49xbf16, #tpu.memory_space<vmem>>, vector<1x256x49xbf16>
    %107 = vector.shape_cast %106 : vector<1x256x49xbf16> to vector<256x49xbf16>
    %cst_95 = arith.constant dense<0.000000e+00> : vector<32x49xf32>
    %108 = tpu.matmul %88, %107, %cst_95 {dimension_numbers = #tpu.dot_dimension_numbers<[1], [0], [0], [1], [0, 0, 1, 1], [], []>} : vector<32x256xbf16>, vector<256x49xbf16>, vector<32x49xf32> -> vector<32x49xf32>
    %109 = arith.truncf %108 : vector<32x49xf32> to vector<32x49xbf16>
    %c2_96 = arith.constant 2 : index
    %c0_97 = arith.constant 0 : index
    %c0_98 = arith.constant 0 : index
    %110 = vector.load %arg8[%c2_96, %c0_97, %c0_98] : memref<9x64x32xbf16, #tpu.memory_space<vmem>>, vector<1x64x32xbf16>
    %111 = vector.shape_cast %110 : vector<1x64x32xbf16> to vector<64x32xbf16>
    %cst_99 = arith.constant dense<0.000000e+00> : vector<64x49xf32>
    %112 = tpu.matmul %111, %109, %cst_99 {dimension_numbers = #tpu.dot_dimension_numbers<[1], [0], [0], [1], [0, 0, 1, 1], [], []>} : vector<64x32xbf16>, vector<32x49xbf16>, vector<64x49xf32> -> vector<64x49xf32>
    %113 = arith.addf %105, %112 : vector<64x49xf32>
    %c3_100 = arith.constant 3 : index
    %c0_101 = arith.constant 0 : index
    %c0_102 = arith.constant 0 : index
    %114 = vector.load %arg7[%c3_100, %c0_101, %c0_102] : memref<9x256x49xbf16, #tpu.memory_space<vmem>>, vector<1x256x49xbf16>
    %115 = vector.shape_cast %114 : vector<1x256x49xbf16> to vector<256x49xbf16>
    %cst_103 = arith.constant dense<0.000000e+00> : vector<32x49xf32>
    %116 = tpu.matmul %88, %115, %cst_103 {dimension_numbers = #tpu.dot_dimension_numbers<[1], [0], [0], [1], [0, 0, 1, 1], [], []>} : vector<32x256xbf16>, vector<256x49xbf16>, vector<32x49xf32> -> vector<32x49xf32>
    %117 = arith.truncf %116 : vector<32x49xf32> to vector<32x49xbf16>
    %c3_104 = arith.constant 3 : index
    %c0_105 = arith.constant 0 : index
    %c0_106 = arith.constant 0 : index
    %118 = vector.load %arg8[%c3_104, %c0_105, %c0_106] : memref<9x64x32xbf16, #tpu.memory_space<vmem>>, vector<1x64x32xbf16>
    %119 = vector.shape_cast %118 : vector<1x64x32xbf16> to vector<64x32xbf16>
    %cst_107 = arith.constant dense<0.000000e+00> : vector<64x49xf32>
    %120 = tpu.matmul %119, %117, %cst_107 {dimension_numbers = #tpu.dot_dimension_numbers<[1], [0], [0], [1], [0, 0, 1, 1], [], []>} : vector<64x32xbf16>, vector<32x49xbf16>, vector<64x49xf32> -> vector<64x49xf32>
    %121 = arith.addf %113, %120 : vector<64x49xf32>
    %c4_108 = arith.constant 4 : index
    %c0_109 = arith.constant 0 : index
    %c0_110 = arith.constant 0 : index
    %122 = vector.load %arg7[%c4_108, %c0_109, %c0_110] : memref<9x256x49xbf16, #tpu.memory_space<vmem>>, vector<1x256x49xbf16>
    %123 = vector.shape_cast %122 : vector<1x256x49xbf16> to vector<256x49xbf16>
    %cst_111 = arith.constant dense<0.000000e+00> : vector<32x49xf32>
    %124 = tpu.matmul %88, %123, %cst_111 {dimension_numbers = #tpu.dot_dimension_numbers<[1], [0], [0], [1], [0, 0, 1, 1], [], []>} : vector<32x256xbf16>, vector<256x49xbf16>, vector<32x49xf32> -> vector<32x49xf32>
    %125 = arith.truncf %124 : vector<32x49xf32> to vector<32x49xbf16>
    %c4_112 = arith.constant 4 : index
    %c0_113 = arith.constant 0 : index
    %c0_114 = arith.constant 0 : index
    %126 = vector.load %arg8[%c4_112, %c0_113, %c0_114] : memref<9x64x32xbf16, #tpu.memory_space<vmem>>, vector<1x64x32xbf16>
    %127 = vector.shape_cast %126 : vector<1x64x32xbf16> to vector<64x32xbf16>
    %cst_115 = arith.constant dense<0.000000e+00> : vector<64x49xf32>
    %128 = tpu.matmul %127, %125, %cst_115 {dimension_numbers = #tpu.dot_dimension_numbers<[1], [0], [0], [1], [0, 0, 1, 1], [], []>} : vector<64x32xbf16>, vector<32x49xbf16>, vector<64x49xf32> -> vector<64x49xf32>
    %129 = arith.addf %121, %128 : vector<64x49xf32>
    %c5_116 = arith.constant 5 : index
    %c0_117 = arith.constant 0 : index
    %c0_118 = arith.constant 0 : index
    %130 = vector.load %arg7[%c5_116, %c0_117, %c0_118] : memref<9x256x49xbf16, #tpu.memory_space<vmem>>, vector<1x256x49xbf16>
    %131 = vector.shape_cast %130 : vector<1x256x49xbf16> to vector<256x49xbf16>
    %cst_119 = arith.constant dense<0.000000e+00> : vector<32x49xf32>
    %132 = tpu.matmul %88, %131, %cst_119 {dimension_numbers = #tpu.dot_dimension_numbers<[1], [0], [0], [1], [0, 0, 1, 1], [], []>} : vector<32x256xbf16>, vector<256x49xbf16>, vector<32x49xf32> -> vector<32x49xf32>
    %133 = arith.truncf %132 : vector<32x49xf32> to vector<32x49xbf16>
    %c5_120 = arith.constant 5 : index
    %c0_121 = arith.constant 0 : index
    %c0_122 = arith.constant 0 : index
    %134 = vector.load %arg8[%c5_120, %c0_121, %c0_122] : memref<9x64x32xbf16, #tpu.memory_space<vmem>>, vector<1x64x32xbf16>
    %135 = vector.shape_cast %134 : vector<1x64x32xbf16> to vector<64x32xbf16>
    %cst_123 = arith.constant dense<0.000000e+00> : vector<64x49xf32>
    %136 = tpu.matmul %135, %133, %cst_123 {dimension_numbers = #tpu.dot_dimension_numbers<[1], [0], [0], [1], [0, 0, 1, 1], [], []>} : vector<64x32xbf16>, vector<32x49xbf16>, vector<64x49xf32> -> vector<64x49xf32>
    %137 = arith.addf %129, %136 : vector<64x49xf32>
    %c6_124 = arith.constant 6 : index
    %c0_125 = arith.constant 0 : index
    %c0_126 = arith.constant 0 : index
    %138 = vector.load %arg7[%c6_124, %c0_125, %c0_126] : memref<9x256x49xbf16, #tpu.memory_space<vmem>>, vector<1x256x49xbf16>
    %139 = vector.shape_cast %138 : vector<1x256x49xbf16> to vector<256x49xbf16>
    %cst_127 = arith.constant dense<0.000000e+00> : vector<32x49xf32>
    %140 = tpu.matmul %88, %139, %cst_127 {dimension_numbers = #tpu.dot_dimension_numbers<[1], [0], [0], [1], [0, 0, 1, 1], [], []>} : vector<32x256xbf16>, vector<256x49xbf16>, vector<32x49xf32> -> vector<32x49xf32>
    %141 = arith.truncf %140 : vector<32x49xf32> to vector<32x49xbf16>
    %c6_128 = arith.constant 6 : index
    %c0_129 = arith.constant 0 : index
    %c0_130 = arith.constant 0 : index
    %142 = vector.load %arg8[%c6_128, %c0_129, %c0_130] : memref<9x64x32xbf16, #tpu.memory_space<vmem>>, vector<1x64x32xbf16>
    %143 = vector.shape_cast %142 : vector<1x64x32xbf16> to vector<64x32xbf16>
    %cst_131 = arith.constant dense<0.000000e+00> : vector<64x49xf32>
    %144 = tpu.matmul %143, %141, %cst_131 {dimension_numbers = #tpu.dot_dimension_numbers<[1], [0], [0], [1], [0, 0, 1, 1], [], []>} : vector<64x32xbf16>, vector<32x49xbf16>, vector<64x49xf32> -> vector<64x49xf32>
    %145 = arith.addf %137, %144 : vector<64x49xf32>
    %c7_132 = arith.constant 7 : index
    %c0_133 = arith.constant 0 : index
    %c0_134 = arith.constant 0 : index
    %146 = vector.load %arg7[%c7_132, %c0_133, %c0_134] : memref<9x256x49xbf16, #tpu.memory_space<vmem>>, vector<1x256x49xbf16>
    %147 = vector.shape_cast %146 : vector<1x256x49xbf16> to vector<256x49xbf16>
    %cst_135 = arith.constant dense<0.000000e+00> : vector<32x49xf32>
    %148 = tpu.matmul %88, %147, %cst_135 {dimension_numbers = #tpu.dot_dimension_numbers<[1], [0], [0], [1], [0, 0, 1, 1], [], []>} : vector<32x256xbf16>, vector<256x49xbf16>, vector<32x49xf32> -> vector<32x49xf32>
    %149 = arith.truncf %148 : vector<32x49xf32> to vector<32x49xbf16>
    %c7_136 = arith.constant 7 : index
    %c0_137 = arith.constant 0 : index
    %c0_138 = arith.constant 0 : index
    %150 = vector.load %arg8[%c7_136, %c0_137, %c0_138] : memref<9x64x32xbf16, #tpu.memory_space<vmem>>, vector<1x64x32xbf16>
    %151 = vector.shape_cast %150 : vector<1x64x32xbf16> to vector<64x32xbf16>
    %cst_139 = arith.constant dense<0.000000e+00> : vector<64x49xf32>
    %152 = tpu.matmul %151, %149, %cst_139 {dimension_numbers = #tpu.dot_dimension_numbers<[1], [0], [0], [1], [0, 0, 1, 1], [], []>} : vector<64x32xbf16>, vector<32x49xbf16>, vector<64x49xf32> -> vector<64x49xf32>
    %153 = arith.addf %145, %152 : vector<64x49xf32>
    %c8_140 = arith.constant 8 : index
    %c0_141 = arith.constant 0 : index
    %c0_142 = arith.constant 0 : index
    %154 = vector.load %arg7[%c8_140, %c0_141, %c0_142] : memref<9x256x49xbf16, #tpu.memory_space<vmem>>, vector<1x256x49xbf16>
    %155 = vector.shape_cast %154 : vector<1x256x49xbf16> to vector<256x49xbf16>
    %cst_143 = arith.constant dense<0.000000e+00> : vector<32x49xf32>
    %156 = tpu.matmul %88, %155, %cst_143 {dimension_numbers = #tpu.dot_dimension_numbers<[1], [0], [0], [1], [0, 0, 1, 1], [], []>} : vector<32x256xbf16>, vector<256x49xbf16>, vector<32x49xf32> -> vector<32x49xf32>
    %157 = arith.truncf %156 : vector<32x49xf32> to vector<32x49xbf16>
    %c8_144 = arith.constant 8 : index
    %c0_145 = arith.constant 0 : index
    %c0_146 = arith.constant 0 : index
    %158 = vector.load %arg8[%c8_144, %c0_145, %c0_146] : memref<9x64x32xbf16, #tpu.memory_space<vmem>>, vector<1x64x32xbf16>
    %159 = vector.shape_cast %158 : vector<1x64x32xbf16> to vector<64x32xbf16>
    %cst_147 = arith.constant dense<0.000000e+00> : vector<64x49xf32>
    %160 = tpu.matmul %159, %157, %cst_147 {dimension_numbers = #tpu.dot_dimension_numbers<[1], [0], [0], [1], [0, 0, 1, 1], [], []>} : vector<64x32xbf16>, vector<32x49xbf16>, vector<64x49xf32> -> vector<64x49xf32>
    %161 = arith.addf %153, %160 : vector<64x49xf32>
    %c0_148 = arith.constant 0 : index
    %c0_149 = arith.constant 0 : index
    %162 = vector.load %arg9[%c0_148, %c0_149] : memref<64x1xf32, #tpu.memory_space<vmem>>, vector<64x1xf32>
    %163 = vector.broadcast %162 : vector<64x1xf32> to vector<64x49xf32>
    %164 = arith.addf %161, %163 : vector<64x49xf32>
    %cst_150 = arith.constant 0.000000e+00 : f32
    %165 = vector.broadcast %cst_150 : f32 to vector<64x49xf32>
    %166 = arith.maximumf %164, %165 : vector<64x49xf32>
    %167 = arith.truncf %166 : vector<64x49xf32> to vector<64x49xbf16>
    %168 = vector.shape_cast %167 : vector<64x49xbf16> to vector<64x1x49xbf16>
    %c0_151 = arith.constant 0 : index
    %c0_152 = arith.constant 0 : index
    %c0_153 = arith.constant 0 : index
    %169 = vector.load %arg10[%c0_151, %c0_152, %c0_153] : memref<64x49x256xbf16, #tpu.memory_space<vmem>>, vector<64x49x256xbf16>
    "tpu.trace_start"() <{level = 10 : i32, message = "cms,csn->cmn"}> : () -> ()
    %cst_154 = arith.constant dense<0.000000e+00> : vector<64x1x256xf32>
    %170 = tpu.matmul %168, %169, %cst_154 {dimension_numbers = #tpu.dot_dimension_numbers<[2], [1], [1], [2], [0, 0, 0, 1, 1, 2], [0], [0]>} : vector<64x1x49xbf16>, vector<64x49x256xbf16>, vector<64x1x256xf32> -> vector<64x1x256xf32>
    "tpu.trace_stop"() : () -> ()
    %cst_155 = arith.constant dense<0.000000e+00> : vector<1x256xf32>
    %171 = vector.multi_reduction <add>, %170, %cst_155 [0] : vector<64x1x256xf32> to vector<1x256xf32>
    %c0_156 = arith.constant 0 : index
    %c0_157 = arith.constant 0 : index
    %172 = vector.load %arg11[%c0_156, %c0_157] : memref<1x256xf32, #tpu.memory_space<vmem>>, vector<1x256xf32>
    %173 = arith.addf %171, %172 : vector<1x256xf32>
    %cst_158 = arith.constant 0.000000e+00 : f32
    %174 = vector.broadcast %cst_158 : f32 to vector<1x256xf32>
    %175 = arith.maximumf %173, %174 : vector<1x256xf32>
    %176 = arith.truncf %175 : vector<1x256xf32> to vector<1x256xbf16>
    %c0_159 = arith.constant 0 : index
    %c0_160 = arith.constant 0 : index
    %177 = vector.load %arg12[%c0_159, %c0_160] : memref<256x128xbf16, #tpu.memory_space<vmem>>, vector<256x128xbf16>
    %cst_161 = arith.constant dense<0.000000e+00> : vector<1x128xf32>
    %178 = tpu.matmul %176, %177, %cst_161 {dimension_numbers = #tpu.dot_dimension_numbers<[1], [0], [0], [1], [0, 0, 1, 1], [], []>} : vector<1x256xbf16>, vector<256x128xbf16>, vector<1x128xf32> -> vector<1x128xf32>
    %c0_162 = arith.constant 0 : index
    %c0_163 = arith.constant 0 : index
    %179 = vector.load %arg13[%c0_162, %c0_163] : memref<1x128xf32, #tpu.memory_space<vmem>>, vector<1x128xf32>
    %180 = arith.addf %178, %179 : vector<1x128xf32>
    %cst_164 = arith.constant 0.000000e+00 : f32
    %181 = vector.broadcast %cst_164 : f32 to vector<1x128xf32>
    %182 = arith.maximumf %180, %181 : vector<1x128xf32>
    %183 = arith.truncf %182 : vector<1x128xf32> to vector<1x128xbf16>
    %c0_165 = arith.constant 0 : index
    %c0_166 = arith.constant 0 : index
    %184 = vector.load %arg14[%c0_165, %c0_166] : memref<128x4xbf16, #tpu.memory_space<vmem>>, vector<128x4xbf16>
    %cst_167 = arith.constant dense<0.000000e+00> : vector<1x4xf32>
    %185 = tpu.matmul %183, %184, %cst_167 {dimension_numbers = #tpu.dot_dimension_numbers<[1], [0], [0], [1], [0, 0, 1, 1], [], []>} : vector<1x128xbf16>, vector<128x4xbf16>, vector<1x4xf32> -> vector<1x4xf32>
    %c0_168 = arith.constant 0 : index
    %c0_169 = arith.constant 0 : index
    %186 = vector.load %arg15[%c0_168, %c0_169] : memref<1x4xf32, #tpu.memory_space<vmem>>, vector<1x4xf32>
    %187 = arith.addf %185, %186 : vector<1x4xf32>
    %c0_i32 = arith.constant 0 : i32
    %188 = arith.cmpi eq, %arg0, %c0_i32 : i32
    %189 = arith.extui %188 : i1 to i32
    %c0_i32_170 = arith.constant 0 : i32
    %190 = arith.cmpi ne, %189, %c0_i32_170 : i32
    scf.if %190 {
      %c0_172 = arith.constant 0 : index
      %c0_173 = arith.constant 0 : index
      %194 = vector.load %arg16[%c0_172, %c0_173] : memref<2x4xf32, #tpu.memory_space<vmem>>, vector<1x4xf32>
      tpu.vector_store %arg16[%c0_172, %c0_173], %187 {strides = array<i32>} : memref<2x4xf32, #tpu.memory_space<vmem>>, vector<1x4xf32>,
    } else {
    }
    %c1_i32 = arith.constant 1 : i32
    %191 = arith.cmpi eq, %arg0, %c1_i32 : i32
    %192 = arith.extui %191 : i1 to i32
    %c0_i32_171 = arith.constant 0 : i32
    %193 = arith.cmpi ne, %192, %c0_i32_171 : i32
    scf.if %193 {
      %c1_172 = arith.constant 1 : index
      %c0_173 = arith.constant 0 : index
      %194 = vector.load %arg16[%c1_172, %c0_173] : memref<2x4xf32, #tpu.memory_space<vmem>>, vector<1x4xf32>
      tpu.vector_store %arg16[%c1_172, %c0_173], %187 {strides = array<i32>} : memref<2x4xf32, #tpu.memory_space<vmem>>, vector<1x4xf32>,
    } else {
    }
    return
  }
  func.func @transform_0(%arg0: i32) -> (i32, i32, i32) {
    %c0_i32 = arith.constant 0 : i32
    %c0_i32_0 = arith.constant 0 : i32
    %c0_i32_1 = arith.constant 0 : i32
    return %arg0, %c0_i32, %c0_i32_0 : i32, i32, i32
  }
  func.func @transform_1(%arg0: i32) -> (i32, i32) {
    %c0_i32 = arith.constant 0 : i32
    %c0_i32_0 = arith.constant 0 : i32
    %c0_i32_1 = arith.constant 0 : i32
    return %c0_i32, %c0_i32_0 : i32, i32
  }
  func.func @transform_2(%arg0: i32) -> (i32, i32) {
    %c0_i32 = arith.constant 0 : i32
    %c0_i32_0 = arith.constant 0 : i32
    %c0_i32_1 = arith.constant 0 : i32
    return %c0_i32, %c0_i32_0 : i32, i32
  }
  func.func @transform_3(%arg0: i32) -> (i32, i32, i32) {
    %c0_i32 = arith.constant 0 : i32
    %c0_i32_0 = arith.constant 0 : i32
    %c0_i32_1 = arith.constant 0 : i32
    %c0_i32_2 = arith.constant 0 : i32
    return %c0_i32, %c0_i32_0, %c0_i32_1 : i32, i32, i32
  }
  func.func @transform_4(%arg0: i32) -> (i32, i32, i32) {
    %c0_i32 = arith.constant 0 : i32
    %c0_i32_0 = arith.constant 0 : i32
    %c0_i32_1 = arith.constant 0 : i32
    %c0_i32_2 = arith.constant 0 : i32
    return %c0_i32, %c0_i32_0, %c0_i32_1 : i32, i32, i32
  }
  func.func @transform_5(%arg0: i32) -> (i32, i32) {
    %c0_i32 = arith.constant 0 : i32
    %c0_i32_0 = arith.constant 0 : i32
    %c0_i32_1 = arith.constant 0 : i32
    return %c0_i32, %c0_i32_0 : i32, i32
  }
  func.func @transform_6(%arg0: i32) -> (i32, i32, i32) {
    %c0_i32 = arith.constant 0 : i32
    %c0_i32_0 = arith.constant 0 : i32
    %c0_i32_1 = arith.constant 0 : i32
    %c0_i32_2 = arith.constant 0 : i32
    return %c0_i32, %c0_i32_0, %c0_i32_1 : i32, i32, i32
  }
  func.func @transform_7(%arg0: i32) -> (i32, i32, i32) {
    %c0_i32 = arith.constant 0 : i32
    %c0_i32_0 = arith.constant 0 : i32
    %c0_i32_1 = arith.constant 0 : i32
    %c0_i32_2 = arith.constant 0 : i32
    return %c0_i32, %c0_i32_0, %c0_i32_1 : i32, i32, i32
  }
  func.func @transform_8(%arg0: i32) -> (i32, i32) {
    %c0_i32 = arith.constant 0 : i32
    %c0_i32_0 = arith.constant 0 : i32
    %c0_i32_1 = arith.constant 0 : i32
    return %c0_i32, %c0_i32_0 : i32, i32
  }
  func.func @transform_9(%arg0: i32) -> (i32, i32, i32) {
    %c0_i32 = arith.constant 0 : i32
    %c0_i32_0 = arith.constant 0 : i32
    %c0_i32_1 = arith.constant 0 : i32
    %c0_i32_2 = arith.constant 0 : i32
    return %c0_i32, %c0_i32_0, %c0_i32_1 : i32, i32, i32
  }
  func.func @transform_10(%arg0: i32) -> (i32, i32) {
    %c0_i32 = arith.constant 0 : i32
    %c0_i32_0 = arith.constant 0 : i32
    %c0_i32_1 = arith.constant 0 : i32
    return %c0_i32, %c0_i32_0 : i32, i32
  }
  func.func @transform_11(%arg0: i32) -> (i32, i32) {
    %c0_i32 = arith.constant 0 : i32
    %c0_i32_0 = arith.constant 0 : i32
    %c0_i32_1 = arith.constant 0 : i32
    return %c0_i32, %c0_i32_0 : i32, i32
  }
  func.func @transform_12(%arg0: i32) -> (i32, i32) {
    %c0_i32 = arith.constant 0 : i32
    %c0_i32_0 = arith.constant 0 : i32
    %c0_i32_1 = arith.constant 0 : i32
    return %c0_i32, %c0_i32_0 : i32, i32
  }
  func.func @transform_13(%arg0: i32) -> (i32, i32) {
    %c0_i32 = arith.constant 0 : i32
    %c0_i32_0 = arith.constant 0 : i32
    %c0_i32_1 = arith.constant 0 : i32
    return %c0_i32, %c0_i32_0 : i32, i32
  }
  func.func @transform_14(%arg0: i32) -> (i32, i32) {
    %c0_i32 = arith.constant 0 : i32
    %c0_i32_0 = arith.constant 0 : i32
    %c0_i32_1 = arith.constant 0 : i32
    return %c0_i32, %c0_i32_0 : i32, i32
  }
  func.func @transform_15(%arg0: i32) -> (i32, i32) {
    %c0_i32 = arith.constant 0 : i32
    %c0_i32_0 = arith.constant 0 : i32
    %c0_i32_1 = arith.constant 0 : i32
    return %c0_i32, %c0_i32_0 : i32, i32
  }
}

</mosaic_0001>

<bundles_post_ra>
// kernel: policy_forward.1
= control target key start
LH: loop header
LB: loop body
LE: loop exit
PB: predicated region body
PF: predicated region fallthrough
CT: control target
= control target key end

     0   :  { %20 = vsyncpa [#allocation3], 0  ;;  %s28140_s18 = smov 0   ;;  %s34948_s0 = inlined_call_operand.vmem [shape: bf16[2,32,1089], index: 0, kind: input, shape index: {}]   ;;  %s34949_s1 = inlined_call_operand.vmem [shape: bf16[16,32], index: 1, kind: input, shape index: {}]   ;;  %s34950_s2 = inlined_call_operand.vmem [shape: f32[16,1], index: 2, kind: input, shape index: {}]   ;;  %s34951_s3 = inlined_call_operand.vmem [shape: bf16[9,1089,256], index: 3, kind: input, shape index: {}]   ;;  %s34952_s4 = inlined_call_operand.vmem [shape: bf16[9,32,16], index: 4, kind: input, shape index: {}]   ;;  %s34953_s5 = inlined_call_operand.vmem [shape: f32[32,1], index: 5, kind: input, shape index: {}]   ;;  %s34954_s6 = inlined_call_operand.vmem [shape: bf16[9,256,49], index: 6, kind: input, shape index: {}]   ;;  %s34955_s7 = inlined_call_operand.vmem [shape: bf16[9,64,32], index: 7, kind: input, shape index: {}]   ;;  %s34956_s8 = inlined_call_operand.vmem [shape: f32[64,1], index: 8, kind: input, shape index: {}]   ;;  %s34957_s9 = inlined_call_operand.vmem [shape: bf16[64,49,256], index: 9, kind: input, shape index: {}]   ;;  %s34958_s10 = inlined_call_operand.vmem [shape: f32[1,256], index: 10, kind: input, shape index: {}]   ;;  %s34959_s11 = inlined_call_operand.vmem [shape: bf16[256,128], index: 11, kind: input, shape index: {}]   ;;  %s34960_s12 = inlined_call_operand.vmem [shape: f32[1,128], index: 12, kind: input, shape index: {}]   ;;  %s34961_s13 = inlined_call_operand.vmem [shape: bf16[128,4], index: 13, kind: input, shape index: {}]   ;;  %s34962_s14 = inlined_call_operand.vmem [shape: f32[1,4], index: 14, kind: input, shape index: {}]   ;;  %s34963_s15 = inlined_call_operand.hbm [shape: f32[2,4], index: 15, kind: output, shape index: {}]  }
   0x1 LB: > { %s28146_s19 = sadd.s32 4294967295, %s28053_s18   ;;  %p20821_p0 = scmp.ge.s32.totalorder %s28053_s18, 1  ;;  %s28053_s18 = sphi %s28140_s18, %s26_s18  }
   0x2   : > { %p433_p1 = scmp.lt.s32.totalorder %s28053_s18, 3 }
   0x4   : > { %p434_p2 = pnand %p20821_p0, %p433_p1 }
   0x5   : > { %p476_p3 = scmp.lt.s32.totalorder (!%p434_p2), %s28146_s19, 1  ;;  %v28055_v0 = vmov (!%p434_p2), 0   ;;  %v504_v1 = vld [vmem:[%s34950_s2] sm:$0xff] (!%p434_p2)  ;;  %v505_v2 = vld [vmem:[%s34950_s2 + $0x8] sm:$0xff] (!%p434_p2)  ;;  %v11001_v4 = vld [vmem:[%s34953_s5 + $0x10] sm:$0xff] (!%p434_p2)  ;;  %vm613_vm0 = vcmask (!%p434_p2), 261120  }
   0x6   : > { %437 = sbr.rel (%p434_p2) target bundleno = 5272 (0x1498), region = 80  ;;  %649 = vmatprep.mubr.bf16.mxu0 (!%p434_p2), %v28055_v0  ;;  %692 = vmatprep.mubr.bf16.mxu1 (!%p434_p2), %v28055_v0  ;;  %v25222_v12 = vld [vmem:[%s34949_s1] sm:$0xff] (!%p434_p2)   ;;  %v13673_v20 = vld [vmem:[%s34956_s8 + $0x10] sm:$0xff] (!%p434_p2)  ;;  %v28056_v25 = vmov (!%p434_p2), 0.0   ;;  %vm28057_vm1 = vmmov (!%p434_p2), 0   ;;  %vm1683_vm2 = vcmask (!%p434_p2), 1040384  }
   0x7   : > { %25208 = vset.pattern.permute.xlu0 (!%p434_p2), %v28055_v0  ;;  %25209 = vset.pattern.permute.xlu1 (!%p434_p2), %v28055_v0  ;;  %v13671_v14 = vld [vmem:[%s34956_s8] sm:$0xff] (!%p434_p2)  ;;  %v25245_v28 = vld [vmem:[%s34951_s3 + $0x14] ss:$8 sps:$4 sm:$0xff] (!%p434_p2)   ;;  %v25243_v32 = vld [vmem:[%s34951_s3 + $0x10] ss:$8 sps:$4 sm:$0xff] (!%p434_p2)   ;;  %vm1679_vm3 = vcmask (!%p434_p2), 531456  }
   0x8   : > { %508 = vperm.xlu0 (!%p434_p2), %25208, %v504_v1   ;;  %v25239_v23 = vld [vmem:[%s34951_s3 + $0x4] ss:$8 sps:$4 sm:$0xff] (!%p434_p2)   ;;  %v25237_v27 = vld [vmem:[%s34951_s3] ss:$8 sps:$4 sm:$0xff] (!%p434_p2)   ;;  %v13677_v31 = vld [vmem:[%s34956_s8 + $0x30] sm:$0xff] (!%p434_p2)  ;;  %vm2974_vm4 = vcmask (!%p434_p2), 130048  }
   0x9   : > { %v13675_v26 = vld [vmem:[%s34956_s8 + $0x20] sm:$0xff] (!%p434_p2)  ;;  %v25242_v30 = vld [vmem:[%s34951_s3 + $0x44c] ss:$8 sps:$4 sm:$0xff] (!%p434_p2)   ;;  %v25240_v34 = vld [vmem:[%s34951_s3 + $0x448] ss:$8 sps:$4 sm:$0xff] (!%p434_p2)   ;;  %vm14491_vm5 = vcmask (!%p434_p2), 400384  }
   0xa   : > { %v25251_v33 = vld [vmem:[%s34951_s3 + $0x24] ss:$8 sps:$4 sm:$0xff] (!%p434_p2)   ;;  %v25249_v36 = vld [vmem:[%s34951_s3 + $0x20] ss:$8 sps:$4 sm:$0xff] (!%p434_p2)   ;;  %v25257_v37 = vld [vmem:[%s34951_s3 + $0x34] ss:$8 sps:$4 sm:$0xff] (!%p434_p2)  }
   0xb   : > { %v25248_v35 = vld [vmem:[%s34951_s3 + $0x45c] ss:$8 sps:$4 sm:$0xff] (!%p434_p2)   ;;  %v25246_v38 = vld [vmem:[%s34951_s3 + $0x458] ss:$8 sps:$4 sm:$0xff] (!%p434_p2)   ;;  %v25254_v39 = vld [vmem:[%s34951_s3 + $0x46c] ss:$8 sps:$4 sm:$0xff] (!%p434_p2)  }
   0xc   : > { %513 = vperm.xlu0 (!%p434_p2), %25208, %v505_v2   ;;  %v25255_v40 = vld [vmem:[%s34951_s3 + $0x30] ss:$8 sps:$4 sm:$0xff] (!%p434_p2)   ;;  %v25263_v41 = vld [vmem:[%s34951_s3 + $0x44] ss:$8 sps:$4 sm:$0xff] (!%p434_p2)   ;;  %v25261_v44 = vld [vmem:[%s34951_s3 + $0x40] ss:$8 sps:$4 sm:$0xff] (!%p434_p2)  }
   0xd   : > { %s477_s22 = scalar_select %p476_p3, %s28146_s19, 1  ;;  %v25252_v42 = vld [vmem:[%s34951_s3 + $0x468] ss:$8 sps:$4 sm:$0xff]   ;;  %v25260_v43 = vld [vmem:[%s34951_s3 + $0x47c] ss:$8 sps:$4 sm:$0xff]  }
   0xe   : > { %v25269_v45 = vld [vmem:[%s34951_s3 + $0x54] ss:$8 sps:$4 sm:$0xff]   ;;  %v25258_v46 = vld [vmem:[%s34951_s3 + $0x478] ss:$8 sps:$4 sm:$0xff]   ;;  %v25275_v49 = vld [vmem:[%s34951_s3 + $0x64] ss:$8 sps:$4 sm:$0xff]  }
   0xf   : > { %s25188_s23 = smul.u32 144, %s477_s22  ;;  %v25266_v47 = vld [vmem:[%s34951_s3 + $0x48c] ss:$8 sps:$4 sm:$0xff]   ;;  %v25267_v48 = vld [vmem:[%s34951_s3 + $0x50] ss:$8 sps:$4 sm:$0xff]   ;;  %p24434_p4 = scmp.ne.s32.totalorder %s28146_s19, 0 }
  0x10   : > { %11015 = vperm.xlu0 %25208, %v11001_v4   ;;  %v25264_v50 = vld [vmem:[%s34951_s3 + $0x488] ss:$8 sps:$4 sm:$0xff]   ;;  %v25272_v51 = vld [vmem:[%s34951_s3 + $0x49c] ss:$8 sps:$4 sm:$0xff]   ;;  %v25270_v54 = vld [vmem:[%s34951_s3 + $0x498] ss:$8 sps:$4 sm:$0xff]  }
  0x11   : > { %s28165_s28 = scalar_lea.vmem %s34948_s0, %s25188_s23  ;;  %v25273_v52 = vld [vmem:[%s34951_s3 + $0x60] ss:$8 sps:$4 sm:$0xff]   ;;  %v25281_v53 = vld [vmem:[%s34951_s3 + $0x74] ss:$8 sps:$4 sm:$0xff]   ;;  %v25279_v57 = vld [vmem:[%s34951_s3 + $0x70] ss:$8 sps:$4 sm:$0xff]  }
  0x12   : > { %v25210_v3 = vld [vmem:[%s28165_s28 + $0x4] ss:$36 sps:$4 sm:$0xff]   ;;  %v25212_v5 = vld [vmem:[%s28165_s28 + $0xc] ss:$36 sps:$4 sm:$0xff]   ;;  %v25218_v9 = vld [vmem:[%s28165_s28 + $0x54] ss:$36 sps:$4 sm:$0xff]  }
  0x13   : > { %617 = vmatprep.subr.bf16.mxu0 %v25210_v3  ;;  %v25214_v6 = vld [vmem:[%s28165_s28] ss:$36 sps:$4 sm:$0xff]   ;;  %v25215_v7 = vld [vmem:[%s28165_s28 + $0x8] ss:$36 sps:$4 sm:$0xff]   ;;  %660 = vmatprep.subr.bf16.mxu1 %v25212_v5  ;;  %v25221_v11 = vld [vmem:[%s28165_s28 + $0x50] ss:$36 sps:$4 sm:$0xff]  }
  0x14   : > { %v25216_v8 = vld [vmem:[%s28165_s28 + $0x4c] ss:$36 sps:$4 sm:$0xff]   ;;  %618 = vmatpush1.bf16.msra.mxu0 %v25214_v6  ;;  %661 = vmatpush1.bf16.msra.mxu1 %v25215_v7  ;;  %v25225_v13 = vld [vmem:[%s28165_s28 + $0x14] ss:$36 sps:$4 sm:$0xff]   ;;  %v25228_v16 = vld [vmem:[%s28165_s28 + $0x1c] ss:$36 sps:$4 sm:$0xff]  }
  0x15   : > { %v25220_v10 = vld [vmem:[%s28165_s28 + $0x48] ss:$36 sps:$4 sm:$0xff]   ;;  %619 = vmatprep.subr.bf16.mxu0 %v25216_v8  ;;  %662 = vmatprep.subr.bf16.mxu1 %v25218_v9  ;;  %v25223_v15 = vld [vmem:[%s28165_s28 + $0x10] ss:$36 sps:$4 sm:$0xff]   ;;  %v25226_v17 = vld [vmem:[%s28165_s28 + $0x18] ss:$36 sps:$4 sm:$0xff]  }
  0x16   : > { %v25231_v18 = vld [vmem:[%s28165_s28 + $0x5c] ss:$36 sps:$4 sm:$0xff]   ;;  %v25234_v19 = vld [vmem:[%s28165_s28 + $0x64] ss:$36 sps:$4 sm:$0xff]   ;;  %13681 = vperm.xlu0 %25208, %v13671_v14   ;;  %v25278_v55 = vld [vmem:[%s34951_s3 + $0x4ac] ss:$8 sps:$4 sm:$0xff]  }
  0x17   : > { %v25229_v21 = vld [vmem:[%s28165_s28 + $0x58] ss:$36 sps:$4 sm:$0xff]   ;;  %v25232_v22 = vld [vmem:[%s28165_s28 + $0x60] ss:$36 sps:$4 sm:$0xff]   ;;  %v25236_v29 = vld [vmem:[%s28165_s28 + $0x68] ss:$36 sps:$4 sm:$0xff]  }
  0x18   : > { %620 = vmatpush1.bf16.msra.mxu0 %v25220_v10  ;;  %663 = vmatpush1.bf16.msra.mxu1 %v25221_v11  ;;  %v25235_v24 = vld [vmem:[%s28165_s28 + $0x20] ss:$36 sps:$4 sm:$0xff]   ;;  %v25276_v56 = vld [vmem:[%s34951_s3 + $0x4a8] ss:$8 sps:$4 sm:$0xff]   ;;  %v25293_v61 = vld [vmem:[%s34951_s3 + $0x94] ss:$8 sps:$4 sm:$0xff]  }
  0x19   : > { %703 = vmatprep.subr.bf16.mxu0 %v25225_v13  ;;  %746 = vmatprep.subr.bf16.mxu1 %v25228_v16  ;;  %v25287_v58 = vld [vmem:[%s34951_s3 + $0x84] ss:$8 sps:$4 sm:$0xff]   ;;  %v25285_v60 = vld [vmem:[%s34951_s3 + $0x80] ss:$8 sps:$4 sm:$0xff]   ;;  %v25291_v1 = vld [vmem:[%s34951_s3 + $0x90] ss:$8 sps:$4 sm:$0xff]  }
  0x1a   : > { %13691 = vperm.xlu0 %25208, %v13673_v20   ;;  %v25284_v59 = vld [vmem:[%s34951_s3 + $0x4bc] ss:$8 sps:$4 sm:$0xff]   ;;  %v25282_v62 = vld [vmem:[%s34951_s3 + $0x4b8] ss:$8 sps:$4 sm:$0xff]   ;;  %v25290_v63 = vld [vmem:[%s34951_s3 + $0x4cc] ss:$8 sps:$4 sm:$0xff]  }
  0x1b   : > { %20842 = vmatmul.mubr.msk.bf16.vlgmr.msra.gmra.mrb[0].mxu0 %vm613_vm0, %v25222_v12  ;;  %20843 = vmatmul.mubr.msk.bf16.vlgmr.msra.gmra.mrb[0].mxu1 %vm613_vm0, %v25222_v12  ;;  %v25299_v2 = vld [vmem:[%s34951_s3 + $0xa4] ss:$8 sps:$4 sm:$0xff]   ;;  %v25288_v3 = vld [vmem:[%s34951_s3 + $0x4c8] ss:$8 sps:$4 sm:$0xff]   ;;  %v25305_v6 = vld [vmem:[%s34951_s3 + $0xb4] ss:$8 sps:$4 sm:$0xff]  }
  0x1c   : > { %704 = vmatpush1.bf16.msra.mxu0 %v25223_v15  ;;  %747 = vmatpush1.bf16.msra.mxu1 %v25226_v17  ;;  %v25296_v4 = vld [vmem:[%s34951_s3 + $0x4dc] ss:$8 sps:$4 sm:$0xff]   ;;  %v25297_v5 = vld [vmem:[%s34951_s3 + $0xa0] ss:$8 sps:$4 sm:$0xff]   ;;  %v25302_v8 = vld [vmem:[%s34951_s3 + $0x4ec] ss:$8 sps:$4 sm:$0xff]  }
  0x1d   : > { %705 = vmatprep.subr.bf16.mxu0 %v25231_v18  ;;  %748 = vmatprep.subr.bf16.mxu1 %v25234_v19  ;;  %v25294_v7 = vld [vmem:[%s34951_s3 + $0x4d8] ss:$8 sps:$4 sm:$0xff]   ;;  %v25311_v10 = vld [vmem:[%s34951_s3 + $0xc4] ss:$8 sps:$4 sm:$0xff]   ;;  %v25300_v11 = vld [vmem:[%s34951_s3 + $0x4e8] ss:$8 sps:$4 sm:$0xff]  }
  0x1e   : > { %735 = vmatprep.mubr.bf16.mxu0 %v28055_v0  ;;  %778 = vmatprep.mubr.bf16.mxu1 %v28055_v0  ;;  %v25303_v9 = vld [vmem:[%s34951_s3 + $0xb0] ss:$8 sps:$4 sm:$0xff]   ;;  %v25309_v13 = vld [vmem:[%s34951_s3 + $0xc0] ss:$8 sps:$4 sm:$0xff]   ;;  %v25317_v14 = vld [vmem:[%s34951_s3 + $0xd4] ss:$8 sps:$4 sm:$0xff]  }
  0x1f   : > { %13701 = vperm.xlu0 %25208, %v13675_v26   ;;  %v25306_v15 = vld [vmem:[%s34951_s3 + $0x4f8] ss:$8 sps:$4 sm:$0xff]   ;;  %v25314_v16 = vld [vmem:[%s34951_s3 + $0x50c] ss:$8 sps:$4 sm:$0xff]   ;;  %v25312_v18 = vld [vmem:[%s34951_s3 + $0x508] ss:$8 sps:$4 sm:$0xff]  }
  0x20   : > { %706 = vmatpush1.bf16.msra.mxu0 %v25229_v21  ;;  %749 = vmatpush1.bf16.msra.mxu1 %v25232_v22  ;;  %v25315_v17 = vld [vmem:[%s34951_s3 + $0xd0] ss:$8 sps:$4 sm:$0xff]   ;;  %v25320_v19 = vld [vmem:[%s34951_s3 + $0x51c] ss:$8 sps:$4 sm:$0xff]   ;;  %v25326_v22 = vld [vmem:[%s34951_s3 + $0x52c] ss:$8 sps:$4 sm:$0xff]  }
  0x21   : > { %24780 = vmatprep.subr.bf16.mxu0 %v28056_v25  ;;  %1692 = vmatprep.subr.bf16.mxu1 %v25239_v23  ;;  %v25318_v20 = vld [vmem:[%s34951_s3 + $0x518] ss:$8 sps:$4 sm:$0xff]   ;;  %v25323_v21 = vld [vmem:[%s34951_s3 + $0xe4] ss:$8 sps:$4 sm:$0xff]   ;;  %v25329_v26 = vld [vmem:[%s34951_s3 + $0xf4] ss:$8 sps:$4 sm:$0xff]  }
  0x22   : > { %v25321_v23 = vld [vmem:[%s34951_s3 + $0xe0] ss:$8 sps:$4 sm:$0xff]   ;;  %vm20764_vm6 = vcmask (!%p24434_p4), 24576  }
  0x23   : > { %20844 = vmatmul.mubr.msk.bf16.vlgmr.msra.gmra.mrb[4].mxu0 %vm613_vm0, %v25222_v12  ;;  %20845 = vmatmul.mubr.msk.bf16.vlgmr.msra.gmra.mrb[4].mxu1 %vm613_vm0, %v25222_v12 }
  0x24   : > { %24781 = vmatpush3.bf16.msra.mxu0 %v25235_v24  ;;  %24784 = vmatprep.mubr.msk.bf16.mxu0 %vm28057_vm1, %v28056_v25  ;;  %v25324_v24 = vld [vmem:[%s34951_s3 + $0x528] ss:$8 sps:$4 sm:$0xff]  }
  0x25   : > { %24782 = vmatprep.subr.bf16.mxu0 %v28056_v25  ;;  %1693 = vmatpush1.bf16.msra.mxu1 %v25237_v27  ;;  %v25332_v27 = vld [vmem:[%s34951_s3 + $0x53c] ss:$8 sps:$4 sm:$0xff]  }
  0x26   : > { %1694 = vmatprep.subr.bf16.mxu1 %v25245_v28  ;;  %13711 = vperm.xlu0 %25208, %v13677_v31   ;;  %v25327_v28 = vld [vmem:[%s34951_s3 + $0xf0] ss:$8 sps:$4 sm:$0xff]   ;;  %v25338_v31 = vld [vmem:[%s34951_s3 + $0x54c] ss:$8 sps:$4 sm:$0xff]  }
  0x28   : > { %24783 = vmatpush3.bf16.msra.mxu0 %v25236_v29  ;;  %v25330_v29 = vld [vmem:[%s34951_s3 + $0x538] ss:$8 sps:$4 sm:$0xff]  }
  0x29   : > { %2742 = vmatprep.subr.bf16.mxu0 %v25242_v30  ;;  %1695 = vmatpush1.bf16.msra.mxu1 %v25243_v32  ;;  %v25335_v30 = vld [vmem:[%s34951_s3 + $0x104] ss:$8 sps:$4 sm:$0xff]  }
  0x2a   : > { %1696 = vmatprep.subr.bf16.mxu1 %v25251_v33 }
  0x2b   : > { %24785 = vmatmul.mubr.msk.bf16.vlgmr.msra.gmra.mrb[8].mxu0 %vm613_vm0, %v25222_v12  ;;  %v25308_v12 = vld [vmem:[%s34951_s3 + $0x4fc] ss:$8 sps:$4 sm:$0xff]  }
  0x2c   : > { %2743 = vmatpush1.bf16.msra.mxu0 %v25240_v34 }
  0x2d   : > { %2744 = vmatprep.subr.bf16.mxu0 %v25248_v35  ;;  %1697 = vmatpush1.bf16.msra.mxu1 %v25249_v36 }
  0x2e   : > { %1698 = vmatprep.subr.bf16.mxu1 %v25257_v37 }
  0x30   : > { %2745 = vmatpush1.bf16.msra.mxu0 %v25246_v38 }
  0x31   : > { %2746 = vmatprep.subr.bf16.mxu0 %v25254_v39  ;;  %1699 = vmatpush1.bf16.msra.mxu1 %v25255_v40 }
  0x32   : > { %1700 = vmatprep.subr.bf16.mxu1 %v25263_v41 }
  0x34   : > { %2747 = vmatpush1.bf16.msra.mxu0 %v25252_v42 }
  0x35   : > { %2748 = vmatprep.subr.bf16.mxu0 %v25260_v43  ;;  %1701 = vmatpush1.bf16.msra.mxu1 %v25261_v44 }
  0x36   : > { %1702 = vmatprep.subr.bf16.mxu1 %v25269_v45 }
  0x38   : > { %2749 = vmatpush1.bf16.msra.mxu0 %v25258_v46 }
  0x39   : > { %2750 = vmatprep.subr.bf16.mxu0 %v25266_v47  ;;  %1703 = vmatpush1.bf16.msra.mxu1 %v25267_v48 }
  0x3a   : > { %1704 = vmatprep.subr.bf16.mxu1 %v25275_v49 }
  0x3c   : > { %2751 = vmatpush1.bf16.msra.mxu0 %v25264_v50 }
  0x3d   : > { %2752 = vmatprep.subr.bf16.mxu0 %v25272_v51  ;;  %1705 = vmatpush1.bf16.msra.mxu1 %v25273_v52 }
  0x3e   : > { %1706 = vmatprep.subr.bf16.mxu1 %v25281_v53 }
  0x40   : > { %2753 = vmatpush1.bf16.msra.mxu0 %v25270_v54 }
  0x41   : > { %2754 = vmatprep.subr.bf16.mxu0 %v25278_v55  ;;  %1707 = vmatpush1.bf16.msra.mxu1 %v25279_v57 }
  0x42   : > { %1708 = vmatprep.subr.bf16.mxu1 %v25287_v58  ;;  %v25333_v58 = vld [vmem:[%s34951_s3 + $0x100] ss:$8 sps:$4 sm:$0xff]  }
  0x44   : > { %2755 = vmatpush1.bf16.msra.mxu0 %v25276_v56 }
  0x45   : > { %2756 = vmatprep.subr.bf16.mxu0 %v25284_v59  ;;  %1709 = vmatpush1.bf16.msra.mxu1 %v25285_v60  ;;  %v25336_v59 = vld [vmem:[%s34951_s3 + $0x548] ss:$8 sps:$4 sm:$0xff]  }
  0x46   : > { %1710 = vmatprep.subr.bf16.mxu1 %v25293_v61 }
  0x48   : > { %2757 = vmatpush1.bf16.msra.mxu0 %v25282_v62 }
  0x49   : > { %2758 = vmatprep.subr.bf16.mxu0 %v25290_v63  ;;  %1711 = vmatpush1.bf16.msra.mxu1 %v25291_v1 }
  0x4a   : > { %1712 = vmatprep.subr.bf16.mxu1 %v25299_v2 }
  0x4c   : > { %2759 = vmatpush1.bf16.msra.mxu0 %v25288_v3  ;;  %v25341_v3 = vld [vmem:[%s34951_s3 + $0x114] ss:$8 sps:$4 sm:$0xff]  }
  0x4d   : > { %2760 = vmatprep.subr.bf16.mxu0 %v25296_v4  ;;  %1713 = vmatpush1.bf16.msra.mxu1 %v25297_v5 }
  0x4e   : > { %1714 = vmatprep.subr.bf16.mxu1 %v25305_v6 }
  0x50   : > { %2761 = vmatpush1.bf16.msra.mxu0 %v25294_v7 }
  0x51   : > { %2762 = vmatprep.subr.bf16.mxu0 %v25302_v8  ;;  %1715 = vmatpush1.bf16.msra.mxu1 %v25303_v9 }
  0x52   : > { %1716 = vmatprep.subr.bf16.mxu1 %v25311_v10 }
  0x54   : > { %2763 = vmatpush1.bf16.msra.mxu0 %v25300_v11 }
  0x55   : > { %2764 = vmatprep.subr.bf16.mxu0 %v25308_v12  ;;  %1717 = vmatpush1.bf16.msra.mxu1 %v25309_v13  ;;  %v25339_v12 = vld [vmem:[%s34951_s3 + $0x110] ss:$8 sps:$4 sm:$0xff]   ;;  %v25344_v13 = vld [vmem:[%s34951_s3 + $0x55c] ss:$8 sps:$4 sm:$0xff]  }
  0x56   : > { %1718 = vmatprep.subr.bf16.mxu1 %v25317_v14 }
  0x58   : > { %2765 = vmatpush1.bf16.msra.mxu0 %v25306_v15 }
  0x59   : > { %2766 = vmatprep.subr.bf16.mxu0 %v25314_v16  ;;  %1719 = vmatpush1.bf16.msra.mxu1 %v25315_v17 }
  0x5a   : > { %1720 = vmatprep.subr.bf16.mxu1 %v25323_v21 }
  0x5c   : > { %2767 = vmatpush1.bf16.msra.mxu0 %v25312_v18  ;;  %v25342_v18 = vld [vmem:[%s34951_s3 + $0x558] ss:$8 sps:$4 sm:$0xff]  }
  0x5d   : > { %2768 = vmatprep.subr.bf16.mxu0 %v25320_v19  ;;  %1721 = vmatpush1.bf16.msra.mxu1 %v25321_v23  ;;  %v25347_v19 = vld [vmem:[%s34951_s3 + $0x124] ss:$8 sps:$4 sm:$0xff]  }
  0x5e   : > { %1722 = vmatprep.subr.bf16.mxu1 %v25329_v26  ;;  %v25350_v23 = vld [vmem:[%s34951_s3 + $0x56c] ss:$8 sps:$4 sm:$0xff]  }
  0x60   : > { %2769 = vmatpush1.bf16.msra.mxu0 %v25318_v20 }
  0x61   : > { %2770 = vmatprep.subr.bf16.mxu0 %v25326_v22  ;;  %1723 = vmatpush1.bf16.msra.mxu1 %v25327_v28 }
  0x62   : > { %1735 = vmatprep.subr.bf16.mxu1 %v25335_v30 }
  0x64   : > { %2771 = vmatpush1.bf16.msra.mxu0 %v25324_v24 }
  0x65   : > { %2772 = vmatprep.subr.bf16.mxu0 %v25332_v27 }
  0x68   : > { %2773 = vmatpush1.bf16.msra.mxu0 %v25330_v29 }
  0x69   : > { %2785 = vmatprep.subr.bf16.mxu0 %v25338_v31 }
  0x87   : > { %v28412_v32 = vpop.permute.xlu0 %508 }
  0x8b   : > { %v28414_v33 = vpop.permute.xlu0 %513 }
  0xee   : > { %v651_v34 = vpop.f32.mrb[0].mxu0  ;;  %v694_v35 = vpop.f32.mrb[0].mxu1 }
  0xef   : > { %v652_v36 = vadd.f32 %v651_v34, %v28412_v32  ;;  %v695_v37 = vadd.f32 %v694_v35, %v28412_v32  ;;  %v653_v38 = vpop.f32.mrb[1].mxu0  ;;  %v696_v39 = vpop.f32.mrb[1].mxu1 }
  0xf0   : > { %v654_v40 = vadd.f32 %v653_v38, %v28412_v32  ;;  %v697_v41 = vadd.f32 %v696_v39, %v28412_v32  ;;  %v655_v42 = vpop.f32.mrb[2].mxu0  ;;  %v698_v43 = vpop.f32.mrb[2].mxu1 }
  0xf1   : > { %v656_v44 = vadd.f32 %v655_v42, %v28414_v33  ;;  %v699_v45 = vadd.f32 %v698_v43, %v28414_v33  ;;  %v657_v46 = vpop.f32.mrb[3].mxu0  ;;  %v700_v47 = vpop.f32.mrb[3].mxu1  ;;  %v830_v50 = vmax.f32 %v652_v36, 0.0  ;;  %v832_v51 = vmax.f32 %v695_v37, 0.0  ;;  %v25345_v36 = vld [vmem:[%s34951_s3 + $0x120] ss:$8 sps:$4 sm:$0xff]  }
  0xf2   : > { %v658_v48 = vadd.f32 %v657_v46, %v28414_v33  ;;  %v701_v49 = vadd.f32 %v700_v47, %v28414_v33  ;;  %v831_v54 = vmax.f32 %v654_v40, 0.0  ;;  %v833_v55 = vmax.f32 %v697_v41, 0.0  ;;  %v25348_v37 = vld [vmem:[%s34951_s3 + $0x568] ss:$8 sps:$4 sm:$0xff]   ;;  %v25353_v43 = vld [vmem:[%s34951_s3 + $0x134] ss:$8 sps:$4 sm:$0xff]  }
  0xf3   : > { %v839_v52 = vmax.f32 %v656_v44, 0.0  ;;  %v841_v53 = vmax.f32 %v699_v45, 0.0  ;;  %v25356_v44 = vld [vmem:[%s34951_s3 + $0x57c] ss:$8 sps:$4 sm:$0xff]   ;;  %v25351_v46 = vld [vmem:[%s34951_s3 + $0x130] ss:$8 sps:$4 sm:$0xff]  }
  0xf4   : > { %v840_v56 = vmax.f32 %v658_v48, 0.0  ;;  %v842_v57 = vmax.f32 %v701_v49, 0.0  ;;  %v25359_v48 = vld [vmem:[%s34951_s3 + $0x144] ss:$8 sps:$4 sm:$0xff]  }
  0xf5   : > { %v28430_v60 = vpack.c.bf16 %v839_v52, %v830_v50  ;;  %v28432_v61 = vpack.c.bf16 %v841_v53, %v832_v51  ;;  %v25362_v52 = vld [vmem:[%s34951_s3 + $0x58c] ss:$8 sps:$4 sm:$0xff]   ;;  %v25357_v53 = vld [vmem:[%s34951_s3 + $0x140] ss:$8 sps:$4 sm:$0xff]  }
  0xf6   : > { %v28434_v62 = vpack.c.bf16 %v840_v56, %v831_v54  ;;  %v28436_v63 = vpack.c.bf16 %v842_v57, %v833_v55  ;;  %v737_v1 = vpop.f32.mrb[4].mxu0  ;;  %v780_v2 = vpop.f32.mrb[4].mxu1  ;;  %v25365_v55 = vld [vmem:[%s34951_s3 + $0x154] ss:$8 sps:$4 sm:$0xff]   ;;  %v25363_v57 = vld [vmem:[%s34951_s3 + $0x150] ss:$8 sps:$4 sm:$0xff]  }
  0xf7   : > { %v738_v4 = vadd.f32 %v737_v1, %v28412_v32  ;;  %v781_v5 = vadd.f32 %v780_v2, %v28412_v32  ;;  %v739_v6 = vpop.f32.mrb[5].mxu0  ;;  %v782_v7 = vpop.f32.mrb[5].mxu1  ;;  %v25368_v56 = vld [vmem:[%s34951_s3 + $0x59c] ss:$8 sps:$4 sm:$0xff]   ;;  %v25374_v1 = vld [vmem:[%s34951_s3 + $0x5ac] ss:$8 sps:$4 sm:$0xff]  }
  0xf8   : > { %v740_v8 = vadd.f32 %v739_v6, %v28412_v32  ;;  %v783_v9 = vadd.f32 %v782_v7, %v28412_v32  ;;  %v741_v10 = vpop.f32.mrb[6].mxu0  ;;  %v784_v11 = vpop.f32.mrb[6].mxu1  ;;  %1724 = vmatprep.mubr.bf16.mxu1 %v28434_v62  ;;  %2774 = vmatprep.mubr.bf16.mxu0 %v28434_v62  ;;  %v25369_v2 = vld [vmem:[%s34951_s3 + $0x160] ss:$8 sps:$4 sm:$0xff]   ;;  %v25375_v6 = vld [vmem:[%s34951_s3 + $0x170] ss:$8 sps:$4 sm:$0xff]  }
  0xf9   : > { %v742_v14 = vadd.f32 %v741_v10, %v28414_v33  ;;  %v785_v15 = vadd.f32 %v784_v11, %v28414_v33  ;;  %v743_v16 = vpop.f32.mrb[7].mxu0  ;;  %v786_v17 = vpop.f32.mrb[7].mxu1  ;;  %1725 = vmatmul.mubr.bf16.vlgmr.msra.gmra.mrb[8].mxu1 %v28430_v60  ;;  %2775 = vmatmul.mubr.bf16.vlgmr.msra.gmra.mrb[12].mxu0 %v28430_v60  ;;  %v834_v20 = vmax.f32 %v738_v4, 0.0  ;;  %v836_v24 = vmax.f32 %v781_v5, 0.0  ;;  %v25377_v4 = vld [vmem:[%s34951_s3 + $0x174] ss:$8 sps:$4 sm:$0xff]  }
  0xfa   : > { %v744_v21 = vadd.f32 %v743_v16, %v28414_v33  ;;  %v787_v22 = vadd.f32 %v786_v17, %v28414_v33  ;;  %1736 = vmatpush1.bf16.msra.mxu1 %v25333_v58  ;;  %2786 = vmatpush1.bf16.msra.mxu0 %v25336_v59  ;;  %v835_v28 = vmax.f32 %v740_v8, 0.0  ;;  %v837_v29 = vmax.f32 %v783_v9, 0.0  ;;  %v25366_v58 = vld [vmem:[%s34951_s3 + $0x598] ss:$8 sps:$4 sm:$0xff]   ;;  %v25371_v59 = vld [vmem:[%s34951_s3 + $0x164] ss:$8 sps:$4 sm:$0xff]  }
  0xfb   : > { %v843_v26 = vmax.f32 %v742_v14, 0.0  ;;  %v845_v27 = vmax.f32 %v785_v15, 0.0  ;;  %1767 = vmatprep.mubr.bf16.mxu1 %v28436_v63  ;;  %2817 = vmatprep.mubr.bf16.mxu0 %v28436_v63  ;;  %v25380_v5 = vld [vmem:[%s34951_s3 + $0x5bc] ss:$8 sps:$4 sm:$0xff]   ;;  %v25378_v7 = vld [vmem:[%s34951_s3 + $0x5b8] ss:$8 sps:$4 sm:$0xff]  }
  0xfc   : > { %v844_v30 = vmax.f32 %v744_v21, 0.0  ;;  %v846_v31 = vmax.f32 %v787_v22, 0.0  ;;  %1737 = vmatprep.subr.bf16.mxu1 %v25341_v3  ;;  %2787 = vmatprep.subr.bf16.mxu0 %v25344_v13  ;;  %v25372_v3 = vld [vmem:[%s34951_s3 + $0x5a8] ss:$8 sps:$4 sm:$0xff]   ;;  %v25383_v8 = vld [vmem:[%s34951_s3 + $0x184] ss:$8 sps:$4 sm:$0xff]  }
  0xfd   : > { %v28470_v34 = vpack.c.bf16 %v843_v26, %v834_v20  ;;  %v28472_v35 = vpack.c.bf16 %v845_v27, %v836_v24  ;;  %v25386_v9 = vld [vmem:[%s34951_s3 + $0x5cc] ss:$8 sps:$4 sm:$0xff]   ;;  %v25381_v10 = vld [vmem:[%s34951_s3 + $0x180] ss:$8 sps:$4 sm:$0xff]   ;;  %v25392_v13 = vld [vmem:[%s34951_s3 + $0x5dc] ss:$8 sps:$4 sm:$0xff]  }
  0xfe   : > { %v28480_v38 = vpack.c.bf16 %v844_v30, %v835_v28  ;;  %v28482_v39 = vpack.c.bf16 %v846_v31, %v837_v29  ;;  %1738 = vmatpush1.bf16.msra.mxu1 %v25339_v12  ;;  %2788 = vmatpush1.bf16.msra.mxu0 %v25342_v18  ;;  %v823_v40 = vpop.f32.mrb[8].mxu0  ;;  %v25384_v11 = vld [vmem:[%s34951_s3 + $0x5c8] ss:$8 sps:$4 sm:$0xff]   ;;  %v25389_v12 = vld [vmem:[%s34951_s3 + $0x194] ss:$8 sps:$4 sm:$0xff]  }
  0xff   : > { %v824_v41 = vadd.f32 %v823_v40, %v28412_v32  ;;  %v24786_v42 = vpop.f32.mrb[9].mxu0  ;;  %1739 = vmatprep.subr.bf16.mxu1 %v25347_v19  ;;  %2789 = vmatprep.subr.bf16.mxu0 %v25350_v23  ;;  %v25354_v32 = vld [vmem:[%s34951_s3 + $0x578] ss:$8 sps:$4 sm:$0xff]   ;;  %v25395_v16 = vld [vmem:[%s34951_s3 + $0x1a4] ss:$8 sps:$4 sm:$0xff]  }
 0x100   : > { %v826_v45 = vpop.f32.mrb[10].mxu0  ;;  %v25387_v14 = vld [vmem:[%s34951_s3 + $0x190] ss:$8 sps:$4 sm:$0xff]   ;;  %v25398_v17 = vld [vmem:[%s34951_s3 + $0x5ec] ss:$8 sps:$4 sm:$0xff]  }
 0x101   : > { %v827_v47 = vadd.f32 %v826_v45, %v28414_v33  ;;  %v24787_v49 = vpop.f32.mrb[11].mxu0  ;;  %v838_v50 = vmax.f32 %v824_v41, 0.0  ;;  %v25360_v33 = vld [vmem:[%s34951_s3 + $0x588] ss:$8 sps:$4 sm:$0xff]   ;;  %v25390_v15 = vld [vmem:[%s34951_s3 + $0x5d8] ss:$8 sps:$4 sm:$0xff]  }
 0x102   : > { %1740 = vmatpush1.bf16.msra.mxu1 %v25345_v36  ;;  %2790 = vmatpush1.bf16.msra.mxu0 %v25348_v37  ;;  %v25393_v18 = vld [vmem:[%s34951_s3 + $0x1a0] ss:$8 sps:$4 sm:$0xff]   ;;  %v25401_v20 = vld [vmem:[%s34951_s3 + $0x1b4] ss:$8 sps:$4 sm:$0xff]   ;;  %v25399_v22 = vld [vmem:[%s34951_s3 + $0x1b0] ss:$8 sps:$4 sm:$0xff]  }
 0x103   : > { %v847_v51 = vmax.f32 %v827_v47, 0.0  ;;  %1741 = vmatprep.subr.bf16.mxu1 %v25353_v43  ;;  %2791 = vmatprep.subr.bf16.mxu0 %v25356_v44  ;;  %v25396_v19 = vld [vmem:[%s34951_s3 + $0x5e8] ss:$8 sps:$4 sm:$0xff]   ;;  %v25404_v21 = vld [vmem:[%s34951_s3 + $0x5fc] ss:$8 sps:$4 sm:$0xff]  }
 0x104   : > { %v25402_v23 = vld [vmem:[%s34951_s3 + $0x5f8] ss:$8 sps:$4 sm:$0xff]   ;;  %v25407_v24 = vld [vmem:[%s34951_s3 + $0x1c4] ss:$8 sps:$4 sm:$0xff]   ;;  %v25408_v28 = vld [vmem:[%s34951_s3 + $0x608] ss:$8 sps:$4 sm:$0xff]  }
 0x105   : > { %v28510_v54 = vpack.c.bf16 %v847_v51, %v838_v50  ;;  %v25410_v26 = vld [vmem:[%s34951_s3 + $0x60c] ss:$8 sps:$4 sm:$0xff]   ;;  %v25405_v27 = vld [vmem:[%s34951_s3 + $0x1c0] ss:$8 sps:$4 sm:$0xff]   ;;  %v25416_v30 = vld [vmem:[%s34951_s3 + $0x61c] ss:$8 sps:$4 sm:$0xff]  }
 0x106   : > { %1742 = vmatpush1.bf16.msra.mxu1 %v25351_v46  ;;  %2792 = vmatpush1.bf16.msra.mxu0 %v25354_v32  ;;  %v25413_v29 = vld [vmem:[%s34951_s3 + $0x1d4] ss:$8 sps:$4 sm:$0xff]   ;;  %v25411_v31 = vld [vmem:[%s34951_s3 + $0x1d0] ss:$8 sps:$4 sm:$0xff]   ;;  %v25419_v37 = vld [vmem:[%s34951_s3 + $0x1e4] ss:$8 sps:$4 sm:$0xff]  }
 0x107   : > { %1743 = vmatprep.subr.bf16.mxu1 %v25359_v48  ;;  %2793 = vmatprep.subr.bf16.mxu0 %v25362_v52  ;;  %v25414_v36 = vld [vmem:[%s34951_s3 + $0x618] ss:$8 sps:$4 sm:$0xff]   ;;  %v25422_v40 = vld [vmem:[%s34951_s3 + $0x62c] ss:$8 sps:$4 sm:$0xff]   ;;  %v25420_v42 = vld [vmem:[%s34951_s3 + $0x628] ss:$8 sps:$4 sm:$0xff]  }
 0x108   : > { %v25417_v41 = vld [vmem:[%s34951_s3 + $0x1e0] ss:$8 sps:$4 sm:$0xff]   ;;  %v25425_v43 = vld [vmem:[%s34951_s3 + $0x1f4] ss:$8 sps:$4 sm:$0xff]   ;;  %v25423_v45 = vld [vmem:[%s34951_s3 + $0x1f0] ss:$8 sps:$4 sm:$0xff]  }
 0x109   : > { %v25428_v44 = vld [vmem:[%s34951_s3 + $0x63c] ss:$8 sps:$4 sm:$0xff]   ;;  %v25426_v46 = vld [vmem:[%s34951_s3 + $0x638] ss:$8 sps:$4 sm:$0xff]   ;;  %v25434_v47 = vld [vmem:[%s34951_s3 + $0x64c] ss:$8 sps:$4 sm:$0xff]  }
 0x10a   : > { %1744 = vmatpush1.bf16.msra.mxu1 %v25357_v53  ;;  %2794 = vmatpush1.bf16.msra.mxu0 %v25360_v33  ;;  %v25431_v32 = vld [vmem:[%s34951_s3 + $0x204] ss:$8 sps:$4 sm:$0xff]   ;;  %v25429_v48 = vld [vmem:[%s34951_s3 + $0x200] ss:$8 sps:$4 sm:$0xff]   ;;  %v25437_v50 = vld [vmem:[%s34951_s3 + $0x214] ss:$8 sps:$4 sm:$0xff]  }
 0x10b   : > { %1745 = vmatprep.subr.bf16.mxu1 %v25365_v55  ;;  %2795 = vmatprep.subr.bf16.mxu0 %v25368_v56  ;;  %v25432_v49 = vld [vmem:[%s34951_s3 + $0x648] ss:$8 sps:$4 sm:$0xff]   ;;  %v25440_v51 = vld [vmem:[%s34951_s3 + $0x65c] ss:$8 sps:$4 sm:$0xff]   ;;  %v25438_v53 = vld [vmem:[%s34951_s3 + $0x658] ss:$8 sps:$4 sm:$0xff]  }
 0x10c   : > { %v25435_v52 = vld [vmem:[%s34951_s3 + $0x210] ss:$8 sps:$4 sm:$0xff]   ;;  %v25443_v33 = vld [vmem:[%s34951_s3 + $0x224] ss:$8 sps:$4 sm:$0xff]   ;;  %v25441_v55 = vld [vmem:[%s34951_s3 + $0x220] ss:$8 sps:$4 sm:$0xff]  }
 0x10d   : > { %v25446_v56 = vld [vmem:[%s34951_s3 + $0x66c] ss:$8 sps:$4 sm:$0xff]  }
 0x10e   : > { %1746 = vmatpush1.bf16.msra.mxu1 %v25363_v57  ;;  %2796 = vmatpush1.bf16.msra.mxu0 %v25366_v58  ;;  %v25444_v57 = vld [vmem:[%s34951_s3 + $0x668] ss:$8 sps:$4 sm:$0xff]   ;;  %v25449_v58 = vld [vmem:[%s34951_s3 + $0x234] ss:$8 sps:$4 sm:$0xff]  }
 0x10f   : > { %1747 = vmatprep.subr.bf16.mxu1 %v25371_v59  ;;  %2797 = vmatprep.subr.bf16.mxu0 %v25374_v1  ;;  %v25447_v59 = vld [vmem:[%s34951_s3 + $0x230] ss:$8 sps:$4 sm:$0xff]   ;;  %v25452_v1 = vld [vmem:[%s34951_s3 + $0x67c] ss:$8 sps:$4 sm:$0xff]  }
 0x112   : > { %1748 = vmatpush1.bf16.msra.mxu1 %v25369_v2  ;;  %2798 = vmatpush1.bf16.msra.mxu0 %v25372_v3  ;;  %v25450_v2 = vld [vmem:[%s34951_s3 + $0x678] ss:$8 sps:$4 sm:$0xff]   ;;  %v25455_v3 = vld [vmem:[%s34951_s3 + $0x244] ss:$8 sps:$4 sm:$0xff]  }
 0x113   : > { %1749 = vmatprep.subr.bf16.mxu1 %v25377_v4  ;;  %2799 = vmatprep.subr.bf16.mxu0 %v25380_v5  ;;  %v25453_v4 = vld [vmem:[%s34951_s3 + $0x240] ss:$8 sps:$4 sm:$0xff]   ;;  %v25458_v5 = vld [vmem:[%s34951_s3 + $0x68c] ss:$8 sps:$4 sm:$0xff]  }
 0x116   : > { %1750 = vmatpush1.bf16.msra.mxu1 %v25375_v6  ;;  %2800 = vmatpush1.bf16.msra.mxu0 %v25378_v7  ;;  %v25456_v6 = vld [vmem:[%s34951_s3 + $0x688] ss:$8 sps:$4 sm:$0xff]   ;;  %v25461_v7 = vld [vmem:[%s34951_s3 + $0x254] ss:$8 sps:$4 sm:$0xff]  }
 0x117   : > { %1751 = vmatprep.subr.bf16.mxu1 %v25383_v8  ;;  %2801 = vmatprep.subr.bf16.mxu0 %v25386_v9  ;;  %v25464_v8 = vld [vmem:[%s34951_s3 + $0x69c] ss:$8 sps:$4 sm:$0xff]   ;;  %v25459_v9 = vld [vmem:[%s34951_s3 + $0x250] ss:$8 sps:$4 sm:$0xff]  }
 0x11a   : > { %1752 = vmatpush1.bf16.msra.mxu1 %v25381_v10  ;;  %2802 = vmatpush1.bf16.msra.mxu0 %v25384_v11  ;;  %v25462_v10 = vld [vmem:[%s34951_s3 + $0x698] ss:$8 sps:$4 sm:$0xff]   ;;  %v25467_v11 = vld [vmem:[%s34951_s3 + $0x264] ss:$8 sps:$4 sm:$0xff]  }
 0x11b   : > { %1753 = vmatprep.subr.bf16.mxu1 %v25389_v12  ;;  %2803 = vmatprep.subr.bf16.mxu0 %v25392_v13  ;;  %v25470_v12 = vld [vmem:[%s34951_s3 + $0x6ac] ss:$8 sps:$4 sm:$0xff]   ;;  %v25465_v13 = vld [vmem:[%s34951_s3 + $0x260] ss:$8 sps:$4 sm:$0xff]  }
 0x11e   : > { %1754 = vmatpush1.bf16.msra.mxu1 %v25387_v14  ;;  %2804 = vmatpush1.bf16.msra.mxu0 %v25390_v15  ;;  %v25468_v14 = vld [vmem:[%s34951_s3 + $0x6a8] ss:$8 sps:$4 sm:$0xff]   ;;  %v25473_v15 = vld [vmem:[%s34951_s3 + $0x274] ss:$8 sps:$4 sm:$0xff]  }
 0x11f   : > { %1755 = vmatprep.subr.bf16.mxu1 %v25395_v16  ;;  %2805 = vmatprep.subr.bf16.mxu0 %v25398_v17  ;;  %v25476_v16 = vld [vmem:[%s34951_s3 + $0x6bc] ss:$8 sps:$4 sm:$0xff]   ;;  %v25471_v17 = vld [vmem:[%s34951_s3 + $0x270] ss:$8 sps:$4 sm:$0xff]  }
 0x122   : > { %1756 = vmatpush1.bf16.msra.mxu1 %v25393_v18  ;;  %2806 = vmatpush1.bf16.msra.mxu0 %v25396_v19  ;;  %v25474_v18 = vld [vmem:[%s34951_s3 + $0x6b8] ss:$8 sps:$4 sm:$0xff]   ;;  %v25479_v19 = vld [vmem:[%s34951_s3 + $0x284] ss:$8 sps:$4 sm:$0xff]  }
 0x123   : > { %1757 = vmatprep.subr.bf16.mxu1 %v25401_v20  ;;  %2807 = vmatprep.subr.bf16.mxu0 %v25404_v21  ;;  %v25482_v20 = vld [vmem:[%s34951_s3 + $0x6cc] ss:$8 sps:$4 sm:$0xff]   ;;  %v25477_v21 = vld [vmem:[%s34951_s3 + $0x280] ss:$8 sps:$4 sm:$0xff]  }
 0x126   : > { %1758 = vmatpush1.bf16.msra.mxu1 %v25399_v22  ;;  %2808 = vmatpush1.bf16.msra.mxu0 %v25402_v23  ;;  %v25480_v22 = vld [vmem:[%s34951_s3 + $0x6c8] ss:$8 sps:$4 sm:$0xff]   ;;  %v25485_v23 = vld [vmem:[%s34951_s3 + $0x294] ss:$8 sps:$4 sm:$0xff]  }
 0x127   : > { %1759 = vmatprep.subr.bf16.mxu1 %v25407_v24  ;;  %2809 = vmatprep.subr.bf16.mxu0 %v25410_v26  ;;  %v25488_v24 = vld [vmem:[%s34951_s3 + $0x6dc] ss:$8 sps:$4 sm:$0xff]   ;;  %v25483_v26 = vld [vmem:[%s34951_s3 + $0x290] ss:$8 sps:$4 sm:$0xff]  }
 0x12a   : > { %1760 = vmatpush1.bf16.msra.mxu1 %v25405_v27  ;;  %2810 = vmatpush1.bf16.msra.mxu0 %v25408_v28  ;;  %v25486_v27 = vld [vmem:[%s34951_s3 + $0x6d8] ss:$8 sps:$4 sm:$0xff]   ;;  %v25491_v28 = vld [vmem:[%s34951_s3 + $0x2a4] ss:$8 sps:$4 sm:$0xff]  }
 0x12b   : > { %1761 = vmatprep.subr.bf16.mxu1 %v25413_v29  ;;  %2811 = vmatprep.subr.bf16.mxu0 %v25416_v30  ;;  %v25494_v29 = vld [vmem:[%s34951_s3 + $0x6ec] ss:$8 sps:$4 sm:$0xff]   ;;  %v25489_v30 = vld [vmem:[%s34951_s3 + $0x2a0] ss:$8 sps:$4 sm:$0xff]  }
 0x12e   : > { %1762 = vmatpush1.bf16.msra.mxu1 %v25411_v31  ;;  %2812 = vmatpush1.bf16.msra.mxu0 %v25414_v36  ;;  %v25492_v31 = vld [vmem:[%s34951_s3 + $0x6e8] ss:$8 sps:$4 sm:$0xff]   ;;  %v25497_v36 = vld [vmem:[%s34951_s3 + $0x2b4] ss:$8 sps:$4 sm:$0xff]  }
 0x12f   : > { %1763 = vmatprep.subr.bf16.mxu1 %v25419_v37  ;;  %2813 = vmatprep.subr.bf16.mxu0 %v25422_v40  ;;  %v25500_v37 = vld [vmem:[%s34951_s3 + $0x6fc] ss:$8 sps:$4 sm:$0xff]   ;;  %v25495_v40 = vld [vmem:[%s34951_s3 + $0x2b0] ss:$8 sps:$4 sm:$0xff]  }
 0x132   : > { %1764 = vmatpush1.bf16.msra.mxu1 %v25417_v41  ;;  %2814 = vmatpush1.bf16.msra.mxu0 %v25420_v42  ;;  %v25498_v41 = vld [vmem:[%s34951_s3 + $0x6f8] ss:$8 sps:$4 sm:$0xff]   ;;  %v25503_v42 = vld [vmem:[%s34951_s3 + $0x2c4] ss:$8 sps:$4 sm:$0xff]  }
 0x133   : > { %1765 = vmatprep.subr.bf16.mxu1 %v25425_v43  ;;  %2815 = vmatprep.subr.bf16.mxu0 %v25428_v44  ;;  %v25506_v43 = vld [vmem:[%s34951_s3 + $0x70c] ss:$8 sps:$4 sm:$0xff]   ;;  %v25501_v44 = vld [vmem:[%s34951_s3 + $0x2c0] ss:$8 sps:$4 sm:$0xff]  }
 0x136   : > { %1766 = vmatpush1.bf16.msra.mxu1 %v25423_v45  ;;  %2816 = vmatpush1.bf16.msra.mxu0 %v25426_v46  ;;  %v25504_v45 = vld [vmem:[%s34951_s3 + $0x708] ss:$8 sps:$4 sm:$0xff]   ;;  %v25509_v46 = vld [vmem:[%s34951_s3 + $0x2d4] ss:$8 sps:$4 sm:$0xff]  }
 0x137   : > { %1778 = vmatprep.subr.bf16.mxu1 %v25431_v32  ;;  %2828 = vmatprep.subr.bf16.mxu0 %v25434_v47  ;;  %v25512_v32 = vld [vmem:[%s34951_s3 + $0x71c] ss:$8 sps:$4 sm:$0xff]   ;;  %v25507_v47 = vld [vmem:[%s34951_s3 + $0x2d0] ss:$8 sps:$4 sm:$0xff]  }
 0x139   : > { %1768 = vmatmul.mubr.bf16.vlgmr.msra.gmra.mrb[8].mxu1 %v28432_v61  ;;  %2818 = vmatmul.mubr.bf16.vlgmr.msra.gmra.mrb[12].mxu0 %v28432_v61 }
 0x13a   : > { %1779 = vmatpush1.bf16.msra.mxu1 %v25429_v48  ;;  %1810 = vmatprep.mubr.bf16.mxu1 %v28480_v38  ;;  %v25510_v48 = vld [vmem:[%s34951_s3 + $0x718] ss:$8 sps:$4 sm:$0xff]  }
 0x13b   : > { %2829 = vmatpush1.bf16.msra.mxu0 %v25432_v49  ;;  %2860 = vmatprep.mubr.bf16.mxu0 %v28480_v38  ;;  %v25515_v49 = vld [vmem:[%s34951_s3 + $0x2e4] ss:$8 sps:$4 sm:$0xff]  }
 0x13c   : > { %1780 = vmatprep.subr.bf16.mxu1 %v25437_v50  ;;  %2830 = vmatprep.subr.bf16.mxu0 %v25440_v51  ;;  %v25518_v50 = vld [vmem:[%s34951_s3 + $0x72c] ss:$8 sps:$4 sm:$0xff]   ;;  %v25513_v51 = vld [vmem:[%s34951_s3 + $0x2e0] ss:$8 sps:$4 sm:$0xff]  }
 0x13e   : > { %1781 = vmatpush1.bf16.msra.mxu1 %v25435_v52  ;;  %v25516_v52 = vld [vmem:[%s34951_s3 + $0x728] ss:$8 sps:$4 sm:$0xff]  }
 0x13f   : > { %2831 = vmatpush1.bf16.msra.mxu0 %v25438_v53  ;;  %1782 = vmatprep.subr.bf16.mxu1 %v25443_v33  ;;  %v25521_v53 = vld [vmem:[%s34951_s3 + $0x2f4] ss:$8 sps:$4 sm:$0xff]  }
 0x140   : > { %2832 = vmatprep.subr.bf16.mxu0 %v25446_v56  ;;  %v25524_v33 = vld [vmem:[%s34951_s3 + $0x73c] ss:$8 sps:$4 sm:$0xff]   ;;  %v25522_v56 = vld [vmem:[%s34951_s3 + $0x738] ss:$8 sps:$4 sm:$0xff]  }
 0x142   : > { %1783 = vmatpush1.bf16.msra.mxu1 %v25441_v55  ;;  %v25519_v55 = vld [vmem:[%s34951_s3 + $0x2f0] ss:$8 sps:$4 sm:$0xff]  }
 0x143   : > { %2833 = vmatpush1.bf16.msra.mxu0 %v25444_v57  ;;  %1784 = vmatprep.subr.bf16.mxu1 %v25449_v58  ;;  %v25527_v57 = vld [vmem:[%s34951_s3 + $0x304] ss:$8 sps:$4 sm:$0xff]  }
 0x144   : > { %2834 = vmatprep.subr.bf16.mxu0 %v25452_v1  ;;  %v25530_v58 = vld [vmem:[%s34951_s3 + $0x74c] ss:$8 sps:$4 sm:$0xff]   ;;  %v25528_v1 = vld [vmem:[%s34951_s3 + $0x748] ss:$8 sps:$4 sm:$0xff]  }
 0x146   : > { %1785 = vmatpush1.bf16.msra.mxu1 %v25447_v59  ;;  %v25525_v59 = vld [vmem:[%s34951_s3 + $0x300] ss:$8 sps:$4 sm:$0xff]  }
 0x147   : > { %2835 = vmatpush1.bf16.msra.mxu0 %v25450_v2  ;;  %1786 = vmatprep.subr.bf16.mxu1 %v25455_v3  ;;  %v25533_v2 = vld [vmem:[%s34951_s3 + $0x314] ss:$8 sps:$4 sm:$0xff]  }
 0x148   : > { %2836 = vmatprep.subr.bf16.mxu0 %v25458_v5  ;;  %v25536_v3 = vld [vmem:[%s34951_s3 + $0x75c] ss:$8 sps:$4 sm:$0xff]   ;;  %v25534_v5 = vld [vmem:[%s34951_s3 + $0x758] ss:$8 sps:$4 sm:$0xff]  }
 0x14a   : > { %1787 = vmatpush1.bf16.msra.mxu1 %v25453_v4  ;;  %v25531_v4 = vld [vmem:[%s34951_s3 + $0x310] ss:$8 sps:$4 sm:$0xff]  }
 0x14b   : > { %2837 = vmatpush1.bf16.msra.mxu0 %v25456_v6  ;;  %1788 = vmatprep.subr.bf16.mxu1 %v25461_v7  ;;  %v25539_v6 = vld [vmem:[%s34951_s3 + $0x324] ss:$8 sps:$4 sm:$0xff]  }
 0x14c   : > { %2838 = vmatprep.subr.bf16.mxu0 %v25464_v8  ;;  %v25542_v7 = vld [vmem:[%s34951_s3 + $0x76c] ss:$8 sps:$4 sm:$0xff]   ;;  %v25537_v8 = vld [vmem:[%s34951_s3 + $0x320] ss:$8 sps:$4 sm:$0xff]  }
 0x14e   : > { %1789 = vmatpush1.bf16.msra.mxu1 %v25459_v9  ;;  %v25540_v9 = vld [vmem:[%s34951_s3 + $0x768] ss:$8 sps:$4 sm:$0xff]  }
 0x14f   : > { %2839 = vmatpush1.bf16.msra.mxu0 %v25462_v10  ;;  %1790 = vmatprep.subr.bf16.mxu1 %v25467_v11  ;;  %v25545_v10 = vld [vmem:[%s34951_s3 + $0x334] ss:$8 sps:$4 sm:$0xff]  }
 0x150   : > { %2840 = vmatprep.subr.bf16.mxu0 %v25470_v12  ;;  %v25548_v11 = vld [vmem:[%s34951_s3 + $0x77c] ss:$8 sps:$4 sm:$0xff]   ;;  %v25543_v12 = vld [vmem:[%s34951_s3 + $0x330] ss:$8 sps:$4 sm:$0xff]  }
 0x152   : > { %1791 = vmatpush1.bf16.msra.mxu1 %v25465_v13  ;;  %v25546_v13 = vld [vmem:[%s34951_s3 + $0x778] ss:$8 sps:$4 sm:$0xff]  }
 0x153   : > { %2841 = vmatpush1.bf16.msra.mxu0 %v25468_v14  ;;  %1792 = vmatprep.subr.bf16.mxu1 %v25473_v15  ;;  %v25551_v14 = vld [vmem:[%s34951_s3 + $0x344] ss:$8 sps:$4 sm:$0xff]  }
 0x154   : > { %2842 = vmatprep.subr.bf16.mxu0 %v25476_v16  ;;  %v25554_v15 = vld [vmem:[%s34951_s3 + $0x78c] ss:$8 sps:$4 sm:$0xff]   ;;  %v25549_v16 = vld [vmem:[%s34951_s3 + $0x340] ss:$8 sps:$4 sm:$0xff]  }
 0x156   : > { %1793 = vmatpush1.bf16.msra.mxu1 %v25471_v17  ;;  %v25552_v17 = vld [vmem:[%s34951_s3 + $0x788] ss:$8 sps:$4 sm:$0xff]  }
 0x157   : > { %2843 = vmatpush1.bf16.msra.mxu0 %v25474_v18  ;;  %1794 = vmatprep.subr.bf16.mxu1 %v25479_v19  ;;  %v25557_v18 = vld [vmem:[%s34951_s3 + $0x354] ss:$8 sps:$4 sm:$0xff]  }
 0x158   : > { %2844 = vmatprep.subr.bf16.mxu0 %v25482_v20  ;;  %v25560_v19 = vld [vmem:[%s34951_s3 + $0x79c] ss:$8 sps:$4 sm:$0xff]   ;;  %v25555_v20 = vld [vmem:[%s34951_s3 + $0x350] ss:$8 sps:$4 sm:$0xff]  }
 0x15a   : > { %1795 = vmatpush1.bf16.msra.mxu1 %v25477_v21  ;;  %v25558_v21 = vld [vmem:[%s34951_s3 + $0x798] ss:$8 sps:$4 sm:$0xff]  }
 0x15b   : > { %2845 = vmatpush1.bf16.msra.mxu0 %v25480_v22  ;;  %1796 = vmatprep.subr.bf16.mxu1 %v25485_v23  ;;  %v25563_v22 = vld [vmem:[%s34951_s3 + $0x364] ss:$8 sps:$4 sm:$0xff]  }
 0x15c   : > { %2846 = vmatprep.subr.bf16.mxu0 %v25488_v24  ;;  %v25566_v23 = vld [vmem:[%s34951_s3 + $0x7ac] ss:$8 sps:$4 sm:$0xff]   ;;  %v25561_v24 = vld [vmem:[%s34951_s3 + $0x360] ss:$8 sps:$4 sm:$0xff]  }
 0x15e   : > { %1797 = vmatpush1.bf16.msra.mxu1 %v25483_v26  ;;  %v25564_v26 = vld [vmem:[%s34951_s3 + $0x7a8] ss:$8 sps:$4 sm:$0xff]  }
 0x15f   : > { %2847 = vmatpush1.bf16.msra.mxu0 %v25486_v27  ;;  %1798 = vmatprep.subr.bf16.mxu1 %v25491_v28  ;;  %v25569_v27 = vld [vmem:[%s34951_s3 + $0x374] ss:$8 sps:$4 sm:$0xff]  }
 0x160   : > { %2848 = vmatprep.subr.bf16.mxu0 %v25494_v29  ;;  %v25572_v28 = vld [vmem:[%s34951_s3 + $0x7bc] ss:$8 sps:$4 sm:$0xff]   ;;  %v25567_v29 = vld [vmem:[%s34951_s3 + $0x370] ss:$8 sps:$4 sm:$0xff]  }
 0x162   : > { %1799 = vmatpush1.bf16.msra.mxu1 %v25489_v30  ;;  %v25570_v30 = vld [vmem:[%s34951_s3 + $0x7b8] ss:$8 sps:$4 sm:$0xff]  }
 0x163   : > { %2849 = vmatpush1.bf16.msra.mxu0 %v25492_v31  ;;  %1800 = vmatprep.subr.bf16.mxu1 %v25497_v36  ;;  %v25575_v31 = vld [vmem:[%s34951_s3 + $0x384] ss:$8 sps:$4 sm:$0xff]  }
 0x164   : > { %2850 = vmatprep.subr.bf16.mxu0 %v25500_v37  ;;  %v25578_v36 = vld [vmem:[%s34951_s3 + $0x7cc] ss:$8 sps:$4 sm:$0xff]   ;;  %v25573_v37 = vld [vmem:[%s34951_s3 + $0x380] ss:$8 sps:$4 sm:$0xff]  }
 0x166   : > { %1801 = vmatpush1.bf16.msra.mxu1 %v25495_v40  ;;  %v25576_v40 = vld [vmem:[%s34951_s3 + $0x7c8] ss:$8 sps:$4 sm:$0xff]  }
 0x167   : > { %2851 = vmatpush1.bf16.msra.mxu0 %v25498_v41  ;;  %1802 = vmatprep.subr.bf16.mxu1 %v25503_v42  ;;  %v25581_v41 = vld [vmem:[%s34951_s3 + $0x394] ss:$8 sps:$4 sm:$0xff]  }
 0x168   : > { %2852 = vmatprep.subr.bf16.mxu0 %v25506_v43  ;;  %v25584_v42 = vld [vmem:[%s34951_s3 + $0x7dc] ss:$8 sps:$4 sm:$0xff]   ;;  %v25579_v43 = vld [vmem:[%s34951_s3 + $0x390] ss:$8 sps:$4 sm:$0xff]  }
 0x16a   : > { %1803 = vmatpush1.bf16.msra.mxu1 %v25501_v44  ;;  %v25582_v44 = vld [vmem:[%s34951_s3 + $0x7d8] ss:$8 sps:$4 sm:$0xff]  }
 0x16b   : > { %2853 = vmatpush1.bf16.msra.mxu0 %v25504_v45  ;;  %1804 = vmatprep.subr.bf16.mxu1 %v25509_v46  ;;  %v25587_v45 = vld [vmem:[%s34951_s3 + $0x3a4] ss:$8 sps:$4 sm:$0xff]  }
 0x16c   : > { %2854 = vmatprep.subr.bf16.mxu0 %v25512_v32  ;;  %v25590_v46 = vld [vmem:[%s34951_s3 + $0x7ec] ss:$8 sps:$4 sm:$0xff]   ;;  %v25585_v32 = vld [vmem:[%s34951_s3 + $0x3a0] ss:$8 sps:$4 sm:$0xff]  }
 0x16e   : > { %1805 = vmatpush1.bf16.msra.mxu1 %v25507_v47  ;;  %v25588_v47 = vld [vmem:[%s34951_s3 + $0x7e8] ss:$8 sps:$4 sm:$0xff]  }
 0x16f   : > { %2855 = vmatpush1.bf16.msra.mxu0 %v25510_v48  ;;  %1806 = vmatprep.subr.bf16.mxu1 %v25515_v49  ;;  %v25593_v48 = vld [vmem:[%s34951_s3 + $0x3b4] ss:$8 sps:$4 sm:$0xff]  }
 0x170   : > { %2856 = vmatprep.subr.bf16.mxu0 %v25518_v50  ;;  %v25596_v49 = vld [vmem:[%s34951_s3 + $0x7fc] ss:$8 sps:$4 sm:$0xff]   ;;  %v25591_v50 = vld [vmem:[%s34951_s3 + $0x3b0] ss:$8 sps:$4 sm:$0xff]  }
 0x172   : > { %1807 = vmatpush1.bf16.msra.mxu1 %v25513_v51  ;;  %v25594_v51 = vld [vmem:[%s34951_s3 + $0x7f8] ss:$8 sps:$4 sm:$0xff]  }
 0x173   : > { %2857 = vmatpush1.bf16.msra.mxu0 %v25516_v52  ;;  %1808 = vmatprep.subr.bf16.mxu1 %v25521_v53  ;;  %v25599_v52 = vld [vmem:[%s34951_s3 + $0x3c4] ss:$8 sps:$4 sm:$0xff]  }
 0x174   : > { %2858 = vmatprep.subr.bf16.mxu0 %v25524_v33  ;;  %v25602_v53 = vld [vmem:[%s34951_s3 + $0x80c] ss:$8 sps:$4 sm:$0xff]   ;;  %v25597_v33 = vld [vmem:[%s34951_s3 + $0x3c0] ss:$8 sps:$4 sm:$0xff]  }
 0x176   : > { %1809 = vmatpush1.bf16.msra.mxu1 %v25519_v55  ;;  %v25600_v55 = vld [vmem:[%s34951_s3 + $0x808] ss:$8 sps:$4 sm:$0xff]  }
 0x177   : > { %2859 = vmatpush1.bf16.msra.mxu0 %v25522_v56  ;;  %1821 = vmatprep.subr.bf16.mxu1 %v25527_v57  ;;  %v25605_v56 = vld [vmem:[%s34951_s3 + $0x3d4] ss:$8 sps:$4 sm:$0xff]  }
 0x178   : > { %2871 = vmatprep.subr.bf16.mxu0 %v25530_v58  ;;  %v25608_v57 = vld [vmem:[%s34951_s3 + $0x81c] ss:$8 sps:$4 sm:$0xff]   ;;  %v25603_v58 = vld [vmem:[%s34951_s3 + $0x3d0] ss:$8 sps:$4 sm:$0xff]  }
 0x179   : > { %1811 = vmatmul.mubr.bf16.vlgmr.msra.gmra.mrb[8].mxu1 %v28470_v34 }
 0x17a   : > { %2861 = vmatmul.mubr.bf16.vlgmr.msra.gmra.mrb[12].mxu0 %v28470_v34  ;;  %1822 = vmatpush1.bf16.msra.mxu1 %v25525_v59  ;;  %v25606_v59 = vld [vmem:[%s34951_s3 + $0x818] ss:$8 sps:$4 sm:$0xff]  }
 0x17b   : > { %1853 = vmatprep.mubr.bf16.mxu1 %v28482_v39  ;;  %2872 = vmatpush1.bf16.msra.mxu0 %v25528_v1  ;;  %v25611_v1 = vld [vmem:[%s34951_s3 + $0x3e4] ss:$8 sps:$4 sm:$0xff]  }
 0x17c   : > { %2903 = vmatprep.mubr.bf16.mxu0 %v28482_v39  ;;  %1823 = vmatprep.subr.bf16.mxu1 %v25533_v2  ;;  %v25614_v2 = vld [vmem:[%s34951_s3 + $0x82c] ss:$8 sps:$4 sm:$0xff]  }
 0x17d   : > { %2873 = vmatprep.subr.bf16.mxu0 %v25536_v3  ;;  %v25609_v3 = vld [vmem:[%s34951_s3 + $0x3e0] ss:$8 sps:$4 sm:$0xff]  }
 0x17e   : > { %1824 = vmatpush1.bf16.msra.mxu1 %v25531_v4  ;;  %v25612_v4 = vld [vmem:[%s34951_s3 + $0x828] ss:$8 sps:$4 sm:$0xff]  }
 0x17f   : > { %2874 = vmatpush1.bf16.msra.mxu0 %v25534_v5  ;;  %1825 = vmatprep.subr.bf16.mxu1 %v25539_v6  ;;  %v25617_v5 = vld [vmem:[%s34951_s3 + $0x3f4] ss:$8 sps:$4 sm:$0xff]  }
 0x180   : > { %2875 = vmatprep.subr.bf16.mxu0 %v25542_v7  ;;  %v25620_v6 = vld [vmem:[%s34951_s3 + $0x83c] ss:$8 sps:$4 sm:$0xff]   ;;  %v25615_v7 = vld [vmem:[%s34951_s3 + $0x3f0] ss:$8 sps:$4 sm:$0xff]  }
 0x182   : > { %1826 = vmatpush1.bf16.msra.mxu1 %v25537_v8  ;;  %v25618_v8 = vld [vmem:[%s34951_s3 + $0x838] ss:$8 sps:$4 sm:$0xff]  }
 0x183   : > { %2876 = vmatpush1.bf16.msra.mxu0 %v25540_v9  ;;  %1827 = vmatprep.subr.bf16.mxu1 %v25545_v10  ;;  %v25623_v9 = vld [vmem:[%s34951_s3 + $0x404] ss:$8 sps:$4 sm:$0xff]  }
 0x184   : > { %2877 = vmatprep.subr.bf16.mxu0 %v25548_v11  ;;  %v25626_v10 = vld [vmem:[%s34951_s3 + $0x84c] ss:$8 sps:$4 sm:$0xff]   ;;  %v25621_v11 = vld [vmem:[%s34951_s3 + $0x400] ss:$8 sps:$4 sm:$0xff]  }
 0x186   : > { %1828 = vmatpush1.bf16.msra.mxu1 %v25543_v12  ;;  %v25624_v12 = vld [vmem:[%s34951_s3 + $0x848] ss:$8 sps:$4 sm:$0xff]  }
 0x187   : > { %2878 = vmatpush1.bf16.msra.mxu0 %v25546_v13  ;;  %1829 = vmatprep.subr.bf16.mxu1 %v25551_v14  ;;  %v25629_v13 = vld [vmem:[%s34951_s3 + $0x414] ss:$8 sps:$4 sm:$0xff]  }
 0x188   : > { %2879 = vmatprep.subr.bf16.mxu0 %v25554_v15  ;;  %v25632_v14 = vld [vmem:[%s34951_s3 + $0x85c] ss:$8 sps:$4 sm:$0xff]   ;;  %v25627_v15 = vld [vmem:[%s34951_s3 + $0x410] ss:$8 sps:$4 sm:$0xff]  }
 0x18a   : > { %1830 = vmatpush1.bf16.msra.mxu1 %v25549_v16  ;;  %v25630_v16 = vld [vmem:[%s34951_s3 + $0x858] ss:$8 sps:$4 sm:$0xff]  }
 0x18b   : > { %2880 = vmatpush1.bf16.msra.mxu0 %v25552_v17  ;;  %1831 = vmatprep.subr.bf16.mxu1 %v25557_v18  ;;  %v25635_v17 = vld [vmem:[%s34951_s3 + $0x424] ss:$8 sps:$4 sm:$0xff]  }
 0x18c   : > { %2881 = vmatprep.subr.bf16.mxu0 %v25560_v19  ;;  %v25638_v18 = vld [vmem:[%s34951_s3 + $0x86c] ss:$8 sps:$4 sm:$0xff]   ;;  %v993_v19 = vld [vmem:[%s34951_s3 + $0x440] sm:$0x11] }
 0x18e   : > { %1832 = vmatpush1.bf16.msra.mxu1 %v25555_v20  ;;  %v21122_v20 = vld [vmem:[%s34951_s3 + $0x888] sm:$0x11] }
 0x18f   : > { %2882 = vmatpush1.bf16.msra.mxu0 %v25558_v21  ;;  %1833 = vmatprep.subr.bf16.mxu1 %v25563_v22  ;;  %v25633_v21 = vld [vmem:[%s34951_s3 + $0x420] ss:$8 sps:$4 sm:$0xff]  }
 0x190   : > { %2883 = vmatprep.subr.bf16.mxu0 %v25566_v23  ;;  %v25636_v22 = vld [vmem:[%s34951_s3 + $0x868] ss:$8 sps:$4 sm:$0xff]   ;;  %v25641_v23 = vld [vmem:[%s34951_s3 + $0x434] ss:$8 sps:$4 sm:$0xff]  }
 0x192   : > { %1834 = vmatpush1.bf16.msra.mxu1 %v25561_v24  ;;  %v25644_v24 = vld [vmem:[%s34951_s3 + $0x87c] ss:$8 sps:$4 sm:$0xff]  }
 0x193   : > { %2884 = vmatpush1.bf16.msra.mxu0 %v25564_v26  ;;  %1835 = vmatprep.subr.bf16.mxu1 %v25569_v27  ;;  %v20984_v26 = vcombine.high %v993_v19, %v993_v19  ;;  %v25639_v27 = vld [vmem:[%s34951_s3 + $0x430] ss:$8 sps:$4 sm:$0xff]  }
 0x194   : > { %2885 = vmatprep.subr.bf16.mxu0 %v25572_v28  ;;  %v29093_v28 = vsel %vm1683_vm2, 65535, %v28055_v0 }
 0x196   : > { %1836 = vmatpush1.bf16.msra.mxu1 %v25567_v29  ;;  %v21260_v29 = vcombine.high %v21122_v20, %v21122_v20 }
 0x197   : > { %2886 = vmatpush1.bf16.msra.mxu0 %v25570_v30  ;;  %1837 = vmatprep.subr.bf16.mxu1 %v25575_v31  ;;  %v20983_v30 = vcombine.low %v993_v19, %v993_v19  ;;  %v25642_v31 = vld [vmem:[%s34951_s3 + $0x878] ss:$8 sps:$4 sm:$0xff]   ;;  %v25705_v19 = vld [vmem:[%s34951_s3 + $0x9b4] ss:$8 sps:$4 sm:$0xff]  }
 0x198   : > { %2887 = vmatprep.subr.bf16.mxu0 %v25578_v36  ;;  %v1690_v36 = vand.u32 %v20984_v26, %v29093_v28  ;;  %v25714_v26 = vld [vmem:[%s34951_s3 + $0x9e4] ss:$8 sps:$4 sm:$0xff]  }
 0x19a   : > { %1838 = vmatpush1.bf16.msra.mxu1 %v25573_v37  ;;  %v21259_v37 = vcombine.low %v21122_v20, %v21122_v20  ;;  %v25703_v20 = vld [vmem:[%s34951_s3 + $0x9b0] ss:$8 sps:$4 sm:$0xff]  }
 0x19b   : > { %2888 = vmatpush1.bf16.msra.mxu0 %v25576_v40  ;;  %1839 = vmatprep.subr.bf16.mxu1 %v25581_v41  ;;  %v2740_v40 = vand.u32 %v21260_v29, %v29093_v28  ;;  %v1687_v41 = vand.u32 %v20983_v30, %v29093_v28  ;;  %v25717_v29 = vld [vmem:[%s34951_s3 + $0x9f4] ss:$8 sps:$4 sm:$0xff]   ;;  %v25715_v30 = vld [vmem:[%s34951_s3 + $0x9f0] ss:$8 sps:$4 sm:$0xff]  }
 0x19c   : > { %2889 = vmatprep.subr.bf16.mxu0 %v25584_v42  ;;  %v2737_v42 = vand.u32 %v21259_v37, %v29093_v28  ;;  %v25723_v37 = vld [vmem:[%s34951_s3 + $0xa14] ss:$8 sps:$4 sm:$0xff]  }
 0x19e   : > { %1840 = vmatpush1.bf16.msra.mxu1 %v25579_v43  ;;  %v25651_v43 = vld [vmem:[%s34951_s3 + $0x894] ss:$8 sps:$4 sm:$0xff]  }
 0x19f   : > { %2890 = vmatpush1.bf16.msra.mxu0 %v25582_v44  ;;  %1841 = vmatprep.subr.bf16.mxu1 %v25587_v45  ;;  %v25649_v44 = vld [vmem:[%s34951_s3 + $0x890] ss:$8 sps:$4 sm:$0xff]   ;;  %v25654_v45 = vld [vmem:[%s34951_s3 + $0x8a4] ss:$8 sps:$4 sm:$0xff]  }
 0x1a0   : > { %2891 = vmatprep.subr.bf16.mxu0 %v25590_v46  ;;  %v25652_v46 = vld [vmem:[%s34951_s3 + $0x8a0] ss:$8 sps:$4 sm:$0xff]  }
 0x1a2   : > { %1842 = vmatpush1.bf16.msra.mxu1 %v25585_v32  ;;  %v25657_v32 = vld [vmem:[%s34951_s3 + $0x8b4] ss:$8 sps:$4 sm:$0xff]  }
 0x1a3   : > { %2892 = vmatpush1.bf16.msra.mxu0 %v25588_v47  ;;  %1843 = vmatprep.subr.bf16.mxu1 %v25593_v48  ;;  %v25655_v47 = vld [vmem:[%s34951_s3 + $0x8b0] ss:$8 sps:$4 sm:$0xff]   ;;  %v25660_v48 = vld [vmem:[%s34951_s3 + $0x8c4] ss:$8 sps:$4 sm:$0xff]  }
 0x1a4   : > { %2893 = vmatprep.subr.bf16.mxu0 %v25596_v49  ;;  %v25658_v49 = vld [vmem:[%s34951_s3 + $0x8c0] ss:$8 sps:$4 sm:$0xff]  }
 0x1a6   : > { %1844 = vmatpush1.bf16.msra.mxu1 %v25591_v50  ;;  %v25663_v50 = vld [vmem:[%s34951_s3 + $0x8d4] ss:$8 sps:$4 sm:$0xff]  }
 0x1a7   : > { %2894 = vmatpush1.bf16.msra.mxu0 %v25594_v51  ;;  %1845 = vmatprep.subr.bf16.mxu1 %v25599_v52  ;;  %v25661_v51 = vld [vmem:[%s34951_s3 + $0x8d0] ss:$8 sps:$4 sm:$0xff]   ;;  %v25666_v52 = vld [vmem:[%s34951_s3 + $0x8e4] ss:$8 sps:$4 sm:$0xff]  }
 0x1a8   : > { %2895 = vmatprep.subr.bf16.mxu0 %v25602_v53  ;;  %v25664_v53 = vld [vmem:[%s34951_s3 + $0x8e0] ss:$8 sps:$4 sm:$0xff]  }
 0x1aa   : > { %1846 = vmatpush1.bf16.msra.mxu1 %v25597_v33  ;;  %v25669_v33 = vld [vmem:[%s34951_s3 + $0x8f4] ss:$8 sps:$4 sm:$0xff]  }
 0x1ab   : > { %2896 = vmatpush1.bf16.msra.mxu0 %v25600_v55  ;;  %1847 = vmatprep.subr.bf16.mxu1 %v25605_v56  ;;  %v25667_v55 = vld [vmem:[%s34951_s3 + $0x8f0] ss:$8 sps:$4 sm:$0xff]   ;;  %v25672_v56 = vld [vmem:[%s34951_s3 + $0x904] ss:$8 sps:$4 sm:$0xff]  }
 0x1ac   : > { %2897 = vmatprep.subr.bf16.mxu0 %v25608_v57  ;;  %v25670_v57 = vld [vmem:[%s34951_s3 + $0x900] ss:$8 sps:$4 sm:$0xff]  }
 0x1ae   : > { %1848 = vmatpush1.bf16.msra.mxu1 %v25603_v58  ;;  %v25675_v58 = vld [vmem:[%s34951_s3 + $0x914] ss:$8 sps:$4 sm:$0xff]  }
 0x1af   : > { %2898 = vmatpush1.bf16.msra.mxu0 %v25606_v59  ;;  %1849 = vmatprep.subr.bf16.mxu1 %v25611_v1  ;;  %v25673_v59 = vld [vmem:[%s34951_s3 + $0x910] ss:$8 sps:$4 sm:$0xff]   ;;  %v25678_v1 = vld [vmem:[%s34951_s3 + $0x924] ss:$8 sps:$4 sm:$0xff]  }
 0x1b0   : > { %2899 = vmatprep.subr.bf16.mxu0 %v25614_v2  ;;  %v25676_v2 = vld [vmem:[%s34951_s3 + $0x920] ss:$8 sps:$4 sm:$0xff]  }
 0x1b2   : > { %1850 = vmatpush1.bf16.msra.mxu1 %v25609_v3  ;;  %v25681_v3 = vld [vmem:[%s34951_s3 + $0x934] ss:$8 sps:$4 sm:$0xff]  }
 0x1b3   : > { %2900 = vmatpush1.bf16.msra.mxu0 %v25612_v4  ;;  %1851 = vmatprep.subr.bf16.mxu1 %v25617_v5  ;;  %v25679_v4 = vld [vmem:[%s34951_s3 + $0x930] ss:$8 sps:$4 sm:$0xff]   ;;  %v25684_v5 = vld [vmem:[%s34951_s3 + $0x944] ss:$8 sps:$4 sm:$0xff]  }
 0x1b4   : > { %2901 = vmatprep.subr.bf16.mxu0 %v25620_v6  ;;  %v25682_v6 = vld [vmem:[%s34951_s3 + $0x940] ss:$8 sps:$4 sm:$0xff]  }
 0x1b6   : > { %1852 = vmatpush1.bf16.msra.mxu1 %v25615_v7  ;;  %v25687_v7 = vld [vmem:[%s34951_s3 + $0x954] ss:$8 sps:$4 sm:$0xff]  }
 0x1b7   : > { %2902 = vmatpush1.bf16.msra.mxu0 %v25618_v8  ;;  %1864 = vmatprep.subr.bf16.mxu1 %v25623_v9  ;;  %v25685_v8 = vld [vmem:[%s34951_s3 + $0x950] ss:$8 sps:$4 sm:$0xff]   ;;  %v25690_v9 = vld [vmem:[%s34951_s3 + $0x964] ss:$8 sps:$4 sm:$0xff]  }
 0x1b8   : > { %2914 = vmatprep.subr.bf16.mxu0 %v25626_v10  ;;  %v25688_v10 = vld [vmem:[%s34951_s3 + $0x960] ss:$8 sps:$4 sm:$0xff]  }
 0x1b9   : > { %1854 = vmatmul.mubr.bf16.vlgmr.msra.gmra.mrb[8].mxu1 %v28472_v35 }
 0x1ba   : > { %2904 = vmatmul.mubr.bf16.vlgmr.msra.gmra.mrb[12].mxu0 %v28472_v35  ;;  %1865 = vmatpush1.bf16.msra.mxu1 %v25621_v11  ;;  %v25693_v11 = vld [vmem:[%s34951_s3 + $0x974] ss:$8 sps:$4 sm:$0xff]  }
 0x1bb   : > { %2915 = vmatpush1.bf16.msra.mxu0 %v25624_v12  ;;  %1866 = vmatprep.subr.bf16.mxu1 %v25629_v13  ;;  %v25691_v12 = vld [vmem:[%s34951_s3 + $0x970] ss:$8 sps:$4 sm:$0xff]   ;;  %v25696_v13 = vld [vmem:[%s34951_s3 + $0x984] ss:$8 sps:$4 sm:$0xff]  }
 0x1bc   : > { %2916 = vmatprep.subr.bf16.mxu0 %v25632_v14  ;;  %1896 = vmatprep.mubr.bf16.mxu1 %v28055_v0  ;;  %v25694_v14 = vld [vmem:[%s34951_s3 + $0x980] ss:$8 sps:$4 sm:$0xff]  }
 0x1bd   : > { %2946 = vmatprep.mubr.bf16.mxu0 %v28055_v0 }
 0x1be   : > { %1867 = vmatpush1.bf16.msra.mxu1 %v25627_v15  ;;  %v25699_v15 = vld [vmem:[%s34951_s3 + $0x994] ss:$8 sps:$4 sm:$0xff]  }
 0x1bf   : > { %2917 = vmatpush1.bf16.msra.mxu0 %v25630_v16  ;;  %1868 = vmatprep.subr.bf16.mxu1 %v25635_v17  ;;  %v25697_v16 = vld [vmem:[%s34951_s3 + $0x990] ss:$8 sps:$4 sm:$0xff]   ;;  %v25702_v17 = vld [vmem:[%s34951_s3 + $0x9a4] ss:$8 sps:$4 sm:$0xff]  }
 0x1c0   : > { %2918 = vmatprep.subr.bf16.mxu0 %v25638_v18  ;;  %v25700_v18 = vld [vmem:[%s34951_s3 + $0x9a0] ss:$8 sps:$4 sm:$0xff]  }
 0x1c2   : > { %1869 = vmatpush1.bf16.msra.mxu1 %v25633_v21  ;;  %v25708_v21 = vld [vmem:[%s34951_s3 + $0x9c4] ss:$8 sps:$4 sm:$0xff]  }
 0x1c3   : > { %2919 = vmatpush1.bf16.msra.mxu0 %v25636_v22  ;;  %1870 = vmatprep.subr.bf16.mxu1 %v25641_v23  ;;  %v25706_v22 = vld [vmem:[%s34951_s3 + $0x9c0] ss:$8 sps:$4 sm:$0xff]   ;;  %v25711_v23 = vld [vmem:[%s34951_s3 + $0x9d4] ss:$8 sps:$4 sm:$0xff]  }
 0x1c4   : > { %2920 = vmatprep.subr.bf16.mxu0 %v25644_v24  ;;  %v25709_v24 = vld [vmem:[%s34951_s3 + $0x9d0] ss:$8 sps:$4 sm:$0xff]  }
 0x1c6   : > { %1871 = vmatpush1.bf16.msra.mxu1 %v25639_v27  ;;  %v25712_v27 = vld [vmem:[%s34951_s3 + $0x9e0] ss:$8 sps:$4 sm:$0xff]  }
 0x1c7   : > { %2921 = vmatpush1.bf16.msra.mxu0 %v25642_v31  ;;  %1872 = vmatprep.subr.bf16.mxu1 %v1690_v36  ;;  %v25720_v31 = vld [vmem:[%s34951_s3 + $0xa04] ss:$8 sps:$4 sm:$0xff]   ;;  %v25718_v36 = vld [vmem:[%s34951_s3 + $0xa00] ss:$8 sps:$4 sm:$0xff]  }
 0x1c8   : > { %2922 = vmatprep.subr.bf16.mxu0 %v2740_v40  ;;  %v25721_v40 = vld [vmem:[%s34951_s3 + $0xa10] ss:$8 sps:$4 sm:$0xff]  }
 0x1ca   : > { %1873 = vmatpush1.bf16.msra.mxu1 %v1687_v41  ;;  %v25726_v41 = vld [vmem:[%s34951_s3 + $0xa24] ss:$8 sps:$4 sm:$0xff]  }
 0x1cb   : > { %2923 = vmatpush1.bf16.msra.mxu0 %v2737_v42  ;;  %v25724_v42 = vld [vmem:[%s34951_s3 + $0xa20] ss:$8 sps:$4 sm:$0xff]  }
 0x1cc   : > { %3932 = vmatprep.subr.bf16.mxu0 %v25651_v43  ;;  %v25729_v43 = vld [vmem:[%s34951_s3 + $0xa34] ss:$8 sps:$4 sm:$0xff]  }
 0x1cd   : > { %20985 = vmatmul.mubr.msk.bf16.vlgmr.msra.gmra.mrb[8].mxu1 %vm1679_vm3, %v28510_v54 }
 0x1ce   : > { %21261 = vmatmul.mubr.msk.bf16.vlgmr.msra.gmra.mrb[12].mxu0 %vm1679_vm3, %v28510_v54  ;;  %3013 = vmatprep.mubr.bf16.mxu1 %v28055_v0 }
 0x1cf   : > { %3933 = vmatpush1.bf16.msra.mxu0 %v25649_v44  ;;  %3964 = vmatprep.mubr.bf16.mxu0 %v28434_v62  ;;  %v25727_v44 = vld [vmem:[%s34951_s3 + $0xa30] ss:$8 sps:$4 sm:$0xff]  }
 0x1d0   : > { %3934 = vmatprep.subr.bf16.mxu0 %v25654_v45  ;;  %v25732_v45 = vld [vmem:[%s34951_s3 + $0xa44] ss:$8 sps:$4 sm:$0xff]  }
 0x1d3   : > { %3935 = vmatpush1.bf16.msra.mxu0 %v25652_v46  ;;  %v25730_v46 = vld [vmem:[%s34951_s3 + $0xa40] ss:$8 sps:$4 sm:$0xff]  }
 0x1d4   : > { %3936 = vmatprep.subr.bf16.mxu0 %v25657_v32  ;;  %v25735_v32 = vld [vmem:[%s34951_s3 + $0xa54] ss:$8 sps:$4 sm:$0xff]  }
 0x1d7   : > { %3937 = vmatpush1.bf16.msra.mxu0 %v25655_v47  ;;  %v25733_v47 = vld [vmem:[%s34951_s3 + $0xa50] ss:$8 sps:$4 sm:$0xff]  }
 0x1d8   : > { %3938 = vmatprep.subr.bf16.mxu0 %v25660_v48  ;;  %v25738_v48 = vld [vmem:[%s34951_s3 + $0xa64] ss:$8 sps:$4 sm:$0xff]  }
 0x1db   : > { %3939 = vmatpush1.bf16.msra.mxu0 %v25658_v49  ;;  %v25736_v49 = vld [vmem:[%s34951_s3 + $0xa60] ss:$8 sps:$4 sm:$0xff]  }
 0x1dc   : > { %3940 = vmatprep.subr.bf16.mxu0 %v25663_v50  ;;  %v25741_v50 = vld [vmem:[%s34951_s3 + $0xa74] ss:$8 sps:$4 sm:$0xff]  }
 0x1df   : > { %3941 = vmatpush1.bf16.msra.mxu0 %v25661_v51  ;;  %v25739_v51 = vld [vmem:[%s34951_s3 + $0xa70] ss:$8 sps:$4 sm:$0xff]  }
 0x1e0   : > { %3942 = vmatprep.subr.bf16.mxu0 %v25666_v52  ;;  %v25744_v52 = vld [vmem:[%s34951_s3 + $0xa84] ss:$8 sps:$4 sm:$0xff]  }
 0x1e3   : > { %3943 = vmatpush1.bf16.msra.mxu0 %v25664_v53  ;;  %v25742_v53 = vld [vmem:[%s34951_s3 + $0xa80] ss:$8 sps:$4 sm:$0xff]  }
 0x1e4   : > { %3944 = vmatprep.subr.bf16.mxu0 %v25669_v33  ;;  %v25747_v33 = vld [vmem:[%s34951_s3 + $0xa94] ss:$8 sps:$4 sm:$0xff]  }
 0x1e7   : > { %3945 = vmatpush1.bf16.msra.mxu0 %v25667_v55  ;;  %v25745_v55 = vld [vmem:[%s34951_s3 + $0xa90] ss:$8 sps:$4 sm:$0xff]  }
 0x1e8   : > { %3946 = vmatprep.subr.bf16.mxu0 %v25672_v56  ;;  %v25750_v56 = vld [vmem:[%s34951_s3 + $0xaa4] ss:$8 sps:$4 sm:$0xff]  }
 0x1eb   : > { %3947 = vmatpush1.bf16.msra.mxu0 %v25670_v57  ;;  %v25748_v57 = vld [vmem:[%s34951_s3 + $0xaa0] ss:$8 sps:$4 sm:$0xff]  }
 0x1ec   : > { %3948 = vmatprep.subr.bf16.mxu0 %v25675_v58  ;;  %v25753_v58 = vld [vmem:[%s34951_s3 + $0xab4] ss:$8 sps:$4 sm:$0xff]  }
 0x1ef   : > { %3949 = vmatpush1.bf16.msra.mxu0 %v25673_v59  ;;  %v25751_v59 = vld [vmem:[%s34951_s3 + $0xab0] ss:$8 sps:$4 sm:$0xff]  }
 0x1f0   : > { %3950 = vmatprep.subr.bf16.mxu0 %v25678_v1  ;;  %v25756_v1 = vld [vmem:[%s34951_s3 + $0xac4] ss:$8 sps:$4 sm:$0xff]  }
 0x1f3   : > { %3951 = vmatpush1.bf16.msra.mxu0 %v25676_v2  ;;  %v25754_v2 = vld [vmem:[%s34951_s3 + $0xac0] ss:$8 sps:$4 sm:$0xff]  }
 0x1f4   : > { %3952 = vmatprep.subr.bf16.mxu0 %v25681_v3  ;;  %v25759_v3 = vld [vmem:[%s34951_s3 + $0xad4] ss:$8 sps:$4 sm:$0xff]  }
 0x1f7   : > { %3953 = vmatpush1.bf16.msra.mxu0 %v25679_v4  ;;  %v25757_v4 = vld [vmem:[%s34951_s3 + $0xad0] ss:$8 sps:$4 sm:$0xff]  }
 0x1f8   : > { %3954 = vmatprep.subr.bf16.mxu0 %v25684_v5  ;;  %v25762_v5 = vld [vmem:[%s34951_s3 + $0xae4] ss:$8 sps:$4 sm:$0xff]  }
 0x1fb   : > { %3955 = vmatpush1.bf16.msra.mxu0 %v25682_v6  ;;  %v25760_v6 = vld [vmem:[%s34951_s3 + $0xae0] ss:$8 sps:$4 sm:$0xff]  }
 0x1fc   : > { %3956 = vmatprep.subr.bf16.mxu0 %v25687_v7  ;;  %v25765_v7 = vld [vmem:[%s34951_s3 + $0xaf4] ss:$8 sps:$4 sm:$0xff]  }
 0x1ff   : > { %3957 = vmatpush1.bf16.msra.mxu0 %v25685_v8  ;;  %v25763_v8 = vld [vmem:[%s34951_s3 + $0xaf0] ss:$8 sps:$4 sm:$0xff]  }
 0x200   : > { %3958 = vmatprep.subr.bf16.mxu0 %v25690_v9  ;;  %v25768_v9 = vld [vmem:[%s34951_s3 + $0xb04] ss:$8 sps:$4 sm:$0xff]  }
 0x203   : > { %3959 = vmatpush1.bf16.msra.mxu0 %v25688_v10  ;;  %v25766_v10 = vld [vmem:[%s34951_s3 + $0xb00] ss:$8 sps:$4 sm:$0xff]  }
 0x204   : > { %3960 = vmatprep.subr.bf16.mxu0 %v25693_v11  ;;  %v25771_v11 = vld [vmem:[%s34951_s3 + $0xb14] ss:$8 sps:$4 sm:$0xff]  }
 0x207   : > { %3961 = vmatpush1.bf16.msra.mxu0 %v25691_v12  ;;  %v25769_v12 = vld [vmem:[%s34951_s3 + $0xb10] ss:$8 sps:$4 sm:$0xff]  }
 0x208   : > { %3962 = vmatprep.subr.bf16.mxu0 %v25696_v13  ;;  %v25774_v13 = vld [vmem:[%s34951_s3 + $0xb24] ss:$8 sps:$4 sm:$0xff]  }
 0x20b   : > { %3963 = vmatpush1.bf16.msra.mxu0 %v25694_v14  ;;  %v25772_v14 = vld [vmem:[%s34951_s3 + $0xb20] ss:$8 sps:$4 sm:$0xff]  }
 0x20c   : > { %3975 = vmatprep.subr.bf16.mxu0 %v25699_v15  ;;  %v25777_v15 = vld [vmem:[%s34951_s3 + $0xb34] ss:$8 sps:$4 sm:$0xff]  }
 0x20e   : > { %3965 = vmatmul.mubr.bf16.vlgmr.msra.gmra.mrb[16].mxu0 %v28430_v60 }
 0x20f   : > { %3976 = vmatpush1.bf16.msra.mxu0 %v25697_v16  ;;  %4007 = vmatprep.mubr.bf16.mxu0 %v28436_v63  ;;  %v25775_v16 = vld [vmem:[%s34951_s3 + $0xb30] ss:$8 sps:$4 sm:$0xff]  }
 0x210   : > { %3977 = vmatprep.subr.bf16.mxu0 %v25702_v17  ;;  %v25780_v17 = vld [vmem:[%s34951_s3 + $0xb44] ss:$8 sps:$4 sm:$0xff]  }
 0x213   : > { %3978 = vmatpush1.bf16.msra.mxu0 %v25700_v18  ;;  %v25778_v18 = vld [vmem:[%s34951_s3 + $0xb40] ss:$8 sps:$4 sm:$0xff]  }
 0x214   : > { %3979 = vmatprep.subr.bf16.mxu0 %v25705_v19  ;;  %v25783_v19 = vld [vmem:[%s34951_s3 + $0xb54] ss:$8 sps:$4 sm:$0xff]  }
 0x217   : > { %3980 = vmatpush1.bf16.msra.mxu0 %v25703_v20  ;;  %v25781_v20 = vld [vmem:[%s34951_s3 + $0xb50] ss:$8 sps:$4 sm:$0xff]  }
 0x218   : > { %3981 = vmatprep.subr.bf16.mxu0 %v25708_v21  ;;  %v25786_v21 = vld [vmem:[%s34951_s3 + $0xb64] ss:$8 sps:$4 sm:$0xff]  }
 0x21b   : > { %3982 = vmatpush1.bf16.msra.mxu0 %v25706_v22  ;;  %v25784_v22 = vld [vmem:[%s34951_s3 + $0xb60] ss:$8 sps:$4 sm:$0xff]  }
 0x21c   : > { %3983 = vmatprep.subr.bf16.mxu0 %v25711_v23  ;;  %v25789_v23 = vld [vmem:[%s34951_s3 + $0xb74] ss:$8 sps:$4 sm:$0xff]  }
 0x21f   : > { %3984 = vmatpush1.bf16.msra.mxu0 %v25709_v24  ;;  %v25787_v24 = vld [vmem:[%s34951_s3 + $0xb70] ss:$8 sps:$4 sm:$0xff]  }
 0x220   : > { %3985 = vmatprep.subr.bf16.mxu0 %v25714_v26  ;;  %v25792_v26 = vld [vmem:[%s34951_s3 + $0xb84] ss:$8 sps:$4 sm:$0xff]  }
 0x223   : > { %3986 = vmatpush1.bf16.msra.mxu0 %v25712_v27  ;;  %v25790_v27 = vld [vmem:[%s34951_s3 + $0xb80] ss:$8 sps:$4 sm:$0xff]  }
 0x224   : > { %3987 = vmatprep.subr.bf16.mxu0 %v25717_v29  ;;  %v25795_v29 = vld [vmem:[%s34951_s3 + $0xb94] ss:$8 sps:$4 sm:$0xff]  }
 0x227   : > { %3988 = vmatpush1.bf16.msra.mxu0 %v25715_v30  ;;  %v25793_v30 = vld [vmem:[%s34951_s3 + $0xb90] ss:$8 sps:$4 sm:$0xff]  }
 0x228   : > { %3989 = vmatprep.subr.bf16.mxu0 %v25720_v31  ;;  %v25798_v31 = vld [vmem:[%s34951_s3 + $0xba4] ss:$8 sps:$4 sm:$0xff]  }
 0x22b   : > { %3990 = vmatpush1.bf16.msra.mxu0 %v25718_v36  ;;  %v25796_v36 = vld [vmem:[%s34951_s3 + $0xba0] ss:$8 sps:$4 sm:$0xff]  }
 0x22c   : > { %3991 = vmatprep.subr.bf16.mxu0 %v25723_v37  ;;  %v25801_v37 = vld [vmem:[%s34951_s3 + $0xbb4] ss:$8 sps:$4 sm:$0xff]  }
 0x22f   : > { %3992 = vmatpush1.bf16.msra.mxu0 %v25721_v40  ;;  %v25799_v40 = vld [vmem:[%s34951_s3 + $0xbb0] ss:$8 sps:$4 sm:$0xff]  }
 0x230   : > { %3993 = vmatprep.subr.bf16.mxu0 %v25726_v41  ;;  %v25804_v41 = vld [vmem:[%s34951_s3 + $0xbc4] ss:$8 sps:$4 sm:$0xff]  }
 0x233   : > { %3994 = vmatpush1.bf16.msra.mxu0 %v25724_v42  ;;  %v25802_v42 = vld [vmem:[%s34951_s3 + $0xbc0] ss:$8 sps:$4 sm:$0xff]  }
 0x234   : > { %3995 = vmatprep.subr.bf16.mxu0 %v25729_v43  ;;  %v25807_v43 = vld [vmem:[%s34951_s3 + $0xbd4] ss:$8 sps:$4 sm:$0xff]  }
 0x237   : > { %3996 = vmatpush1.bf16.msra.mxu0 %v25727_v44  ;;  %v25805_v44 = vld [vmem:[%s34951_s3 + $0xbd0] ss:$8 sps:$4 sm:$0xff]  }
 0x238   : > { %3997 = vmatprep.subr.bf16.mxu0 %v25732_v45  ;;  %v25810_v45 = vld [vmem:[%s34951_s3 + $0xbe4] ss:$8 sps:$4 sm:$0xff]  }
 0x23b   : > { %3998 = vmatpush1.bf16.msra.mxu0 %v25730_v46  ;;  %v25808_v46 = vld [vmem:[%s34951_s3 + $0xbe0] ss:$8 sps:$4 sm:$0xff]  }
 0x23c   : > { %3999 = vmatprep.subr.bf16.mxu0 %v25735_v32  ;;  %v25813_v32 = vld [vmem:[%s34951_s3 + $0xbf4] ss:$8 sps:$4 sm:$0xff]  }
 0x23f   : > { %4000 = vmatpush1.bf16.msra.mxu0 %v25733_v47 }
 0x240   : > { %4001 = vmatprep.subr.bf16.mxu0 %v25738_v48 }
 0x243   : > { %4002 = vmatpush1.bf16.msra.mxu0 %v25736_v49 }
 0x244   : > { %4003 = vmatprep.subr.bf16.mxu0 %v25741_v50 }
 0x247   : > { %4004 = vmatpush1.bf16.msra.mxu0 %v25739_v51 }
 0x248   : > { %4005 = vmatprep.subr.bf16.mxu0 %v25744_v52 }
 0x24b   : > { %4006 = vmatpush1.bf16.msra.mxu0 %v25742_v53 }
 0x24c   : > { %4018 = vmatprep.subr.bf16.mxu0 %v25747_v33 }
 0x24e   : > { %4008 = vmatmul.mubr.bf16.vlgmr.msra.gmra.mrb[16].mxu0 %v28432_v61 }
 0x24f   : > { %4019 = vmatpush1.bf16.msra.mxu0 %v25745_v55  ;;  %4050 = vmatprep.mubr.bf16.mxu0 %v28480_v38  ;;  %v25811_v55 = vld [vmem:[%s34951_s3 + $0xbf0] ss:$8 sps:$4 sm:$0xff]  }
 0x250   : > { %4020 = vmatprep.subr.bf16.mxu0 %v25750_v56  ;;  %v25816_v56 = vld [vmem:[%s34951_s3 + $0xc04] ss:$8 sps:$4 sm:$0xff]  }
 0x253   : > { %4021 = vmatpush1.bf16.msra.mxu0 %v25748_v57 }
 0x254   : > { %4022 = vmatprep.subr.bf16.mxu0 %v25753_v58 }
 0x257   : > { %4023 = vmatpush1.bf16.msra.mxu0 %v25751_v59 }
 0x258   : > { %4024 = vmatprep.subr.bf16.mxu0 %v25756_v1 }
 0x25b   : > { %4025 = vmatpush1.bf16.msra.mxu0 %v25754_v2  ;;  %v25814_v2 = vld [vmem:[%s34951_s3 + $0xc00] ss:$8 sps:$4 sm:$0xff]  }
 0x25c   : > { %4026 = vmatprep.subr.bf16.mxu0 %v25759_v3  ;;  %v25817_v3 = vld [vmem:[%s34952_s4 + $0x10] sm:$0xff]  }
 0x25f   : > { %4027 = vmatpush1.bf16.msra.mxu0 %v25757_v4  ;;  %v25820_v4 = vld [vmem:[%s34951_s3 + $0xc14] ss:$8 sps:$4 sm:$0xff]  }
 0x260   : > { %4028 = vmatprep.subr.bf16.mxu0 %v25762_v5  ;;  %v25818_v5 = vld [vmem:[%s34951_s3 + $0xc10] ss:$8 sps:$4 sm:$0xff]  }
 0x263   : > { %4029 = vmatpush1.bf16.msra.mxu0 %v25760_v6  ;;  %v25823_v6 = vld [vmem:[%s34951_s3 + $0xc24] ss:$8 sps:$4 sm:$0xff]  }
 0x264   : > { %4030 = vmatprep.subr.bf16.mxu0 %v25765_v7  ;;  %v25821_v7 = vld [vmem:[%s34951_s3 + $0xc20] ss:$8 sps:$4 sm:$0xff]  }
 0x267   : > { %4031 = vmatpush1.bf16.msra.mxu0 %v25763_v8  ;;  %v25826_v8 = vld [vmem:[%s34951_s3 + $0xc34] ss:$8 sps:$4 sm:$0xff]  }
 0x268   : > { %4032 = vmatprep.subr.bf16.mxu0 %v25768_v9  ;;  %v25824_v9 = vld [vmem:[%s34951_s3 + $0xc30] ss:$8 sps:$4 sm:$0xff]  }
 0x26b   : > { %4033 = vmatpush1.bf16.msra.mxu0 %v25766_v10  ;;  %v25829_v10 = vld [vmem:[%s34951_s3 + $0xc44] ss:$8 sps:$4 sm:$0xff]  }
 0x26c   : > { %4034 = vmatprep.subr.bf16.mxu0 %v25771_v11  ;;  %v25827_v11 = vld [vmem:[%s34951_s3 + $0xc40] ss:$8 sps:$4 sm:$0xff]  }
 0x26f   : > { %4035 = vmatpush1.bf16.msra.mxu0 %v25769_v12  ;;  %v25832_v12 = vld [vmem:[%s34951_s3 + $0xc54] ss:$8 sps:$4 sm:$0xff]  }
 0x270   : > { %4036 = vmatprep.subr.bf16.mxu0 %v25774_v13  ;;  %v25830_v13 = vld [vmem:[%s34951_s3 + $0xc50] ss:$8 sps:$4 sm:$0xff]  }
 0x273   : > { %4037 = vmatpush1.bf16.msra.mxu0 %v25772_v14  ;;  %v25835_v14 = vld [vmem:[%s34951_s3 + $0xc64] ss:$8 sps:$4 sm:$0xff]  }
 0x274   : > { %4038 = vmatprep.subr.bf16.mxu0 %v25777_v15  ;;  %v25833_v15 = vld [vmem:[%s34951_s3 + $0xc60] ss:$8 sps:$4 sm:$0xff]  }
 0x277   : > { %4039 = vmatpush1.bf16.msra.mxu0 %v25775_v16  ;;  %v25838_v16 = vld [vmem:[%s34951_s3 + $0xc74] ss:$8 sps:$4 sm:$0xff]  }
 0x278   : > { %4040 = vmatprep.subr.bf16.mxu0 %v25780_v17  ;;  %v25836_v17 = vld [vmem:[%s34951_s3 + $0xc70] ss:$8 sps:$4 sm:$0xff]  }
 0x27b   : > { %4041 = vmatpush1.bf16.msra.mxu0 %v25778_v18  ;;  %v25841_v18 = vld [vmem:[%s34951_s3 + $0xc84] ss:$8 sps:$4 sm:$0xff]  }
 0x27c   : > { %4042 = vmatprep.subr.bf16.mxu0 %v25783_v19  ;;  %v25839_v19 = vld [vmem:[%s34951_s3 + $0xc80] ss:$8 sps:$4 sm:$0xff]  }
 0x27f   : > { %4043 = vmatpush1.bf16.msra.mxu0 %v25781_v20  ;;  %v25844_v20 = vld [vmem:[%s34951_s3 + $0xc94] ss:$8 sps:$4 sm:$0xff]  }
 0x280   : > { %4044 = vmatprep.subr.bf16.mxu0 %v25786_v21  ;;  %v25842_v21 = vld [vmem:[%s34951_s3 + $0xc90] ss:$8 sps:$4 sm:$0xff]  }
 0x283   : > { %4045 = vmatpush1.bf16.msra.mxu0 %v25784_v22  ;;  %v25847_v22 = vld [vmem:[%s34951_s3 + $0xca4] ss:$8 sps:$4 sm:$0xff]  }
 0x284   : > { %4046 = vmatprep.subr.bf16.mxu0 %v25789_v23  ;;  %v25845_v23 = vld [vmem:[%s34951_s3 + $0xca0] ss:$8 sps:$4 sm:$0xff]  }
 0x287   : > { %4047 = vmatpush1.bf16.msra.mxu0 %v25787_v24  ;;  %v25850_v24 = vld [vmem:[%s34951_s3 + $0xcb4] ss:$8 sps:$4 sm:$0xff]  }
 0x288   : > { %4048 = vmatprep.subr.bf16.mxu0 %v25792_v26  ;;  %v21410_v26 = vld [vmem:[%s34951_s3 + $0xcd0] sm:$0x11] }
 0x28b   : > { %4049 = vmatpush1.bf16.msra.mxu0 %v25790_v27  ;;  %v25848_v27 = vld [vmem:[%s34951_s3 + $0xcb0] ss:$8 sps:$4 sm:$0xff]  }
 0x28c   : > { %4061 = vmatprep.subr.bf16.mxu0 %v25795_v29  ;;  %v25853_v29 = vld [vmem:[%s34951_s3 + $0xcc4] ss:$8 sps:$4 sm:$0xff]  }
 0x28e   : > { %4051 = vmatmul.mubr.bf16.vlgmr.msra.gmra.mrb[16].mxu0 %v28470_v34 }
 0x28f   : > { %4062 = vmatpush1.bf16.msra.mxu0 %v25793_v30  ;;  %4093 = vmatprep.mubr.bf16.mxu0 %v28482_v39  ;;  %v21548_v30 = vcombine.high %v21410_v26, %v21410_v26 }
 0x290   : > { %4063 = vmatprep.subr.bf16.mxu0 %v25798_v31  ;;  %v25851_v31 = vld [vmem:[%s34951_s3 + $0xcc0] ss:$8 sps:$4 sm:$0xff]  }
 0x293   : > { %4064 = vmatpush1.bf16.msra.mxu0 %v25796_v36  ;;  %v21547_v36 = vcombine.low %v21410_v26, %v21410_v26  ;;  %v25921_v26 = vld [vmem:[%s34951_s3 + $0x1274] ss:$8 sps:$4 sm:$0xff]  }
 0x294   : > { %4065 = vmatprep.subr.bf16.mxu0 %v25801_v37  ;;  %v3930_v37 = vand.u32 %v21548_v30, %v29093_v28  ;;  %v25922_v30 = vld [vmem:[%s34951_s3 + $0x1280] ss:$8 sps:$4 sm:$0xff]  }
 0x297   : > { %4066 = vmatpush1.bf16.msra.mxu0 %v25799_v40  ;;  %v3927_v40 = vand.u32 %v21547_v36, %v29093_v28  ;;  %v26020_v36 = vld [vmem:[%s34952_s4 + $0x8] sm:$0xff]  }
 0x298   : > { %4067 = vmatprep.subr.bf16.mxu0 %v25804_v41  ;;  %v25858_v41 = vld [vmem:[%s34951_s3 + $0x1124] ss:$8 sps:$4 sm:$0xff]  }
 0x29b   : > { %4068 = vmatpush1.bf16.msra.mxu0 %v25802_v42  ;;  %v25856_v42 = vld [vmem:[%s34951_s3 + $0x1120] ss:$8 sps:$4 sm:$0xff]  }
 0x29c   : > { %4069 = vmatprep.subr.bf16.mxu0 %v25807_v43  ;;  %v25861_v43 = vld [vmem:[%s34951_s3 + $0x1134] ss:$8 sps:$4 sm:$0xff]  }
 0x29f   : > { %4070 = vmatpush1.bf16.msra.mxu0 %v25805_v44  ;;  %v25859_v44 = vld [vmem:[%s34951_s3 + $0x1130] ss:$8 sps:$4 sm:$0xff]  }
 0x2a0   : > { %v1898_v47 = vpop.f32.mrb[8].mxu1  ;;  %4071 = vmatprep.subr.bf16.mxu0 %v25810_v45  ;;  %v25864_v45 = vld [vmem:[%s34951_s3 + $0x1144] ss:$8 sps:$4 sm:$0xff]  }
 0x2a1   : > { %v2948_v48 = vpop.f32.mrb[12].mxu0  ;;  %v1900_v49 = vpop.f32.mrb[9].mxu1 }
 0x2a2   : > { %v2950_v50 = vpop.f32.mrb[13].mxu0  ;;  %v1902_v51 = vpop.f32.mrb[10].mxu1 }
 0x2a3   : > { %v1907_v52 = vpack.c.bf16 %v1902_v51, %v1898_v47  ;;  %v2952_v53 = vpop.f32.mrb[14].mxu0  ;;  %4072 = vmatpush1.bf16.msra.mxu0 %v25808_v46  ;;  %v1904_v33 = vpop.f32.mrb[11].mxu1  ;;  %v25862_v46 = vld [vmem:[%s34951_s3 + $0x1140] ss:$8 sps:$4 sm:$0xff]   ;;  %v25865_v47 = vld [vmem:[%s34951_s3 + $0x1150] ss:$8 sps:$4 sm:$0xff]  }
 0x2a4   : > { %v2957_v57 = vpack.c.bf16 %v2952_v53, %v2948_v48  ;;  %v1908_v58 = vpack.c.bf16 %v1904_v33, %v1900_v49  ;;  %v2954_v59 = vpop.f32.mrb[15].mxu0  ;;  %4073 = vmatprep.subr.bf16.mxu0 %v25813_v32  ;;  %v25867_v32 = vld [vmem:[%s34951_s3 + $0x1154] ss:$8 sps:$4 sm:$0xff]   ;;  %v25870_v48 = vld [vmem:[%s34951_s3 + $0x1164] ss:$8 sps:$4 sm:$0xff]  }
 0x2a5   : > { %v2958_v1 = vpack.c.bf16 %v2954_v59, %v2950_v50  ;;  %v25868_v49 = vld [vmem:[%s34951_s3 + $0x1160] ss:$8 sps:$4 sm:$0xff]   ;;  %v25873_v50 = vld [vmem:[%s34951_s3 + $0x1174] ss:$8 sps:$4 sm:$0xff]   ;;  %v25871_v51 = vld [vmem:[%s34951_s3 + $0x1170] ss:$8 sps:$4 sm:$0xff]  }
 0x2a6   : > { %v25874_v53 = vld [vmem:[%s34951_s3 + $0x1180] ss:$8 sps:$4 sm:$0xff]   ;;  %v25879_v33 = vld [vmem:[%s34951_s3 + $0x1194] ss:$8 sps:$4 sm:$0xff]   ;;  %v25883_v59 = vld [vmem:[%s34951_s3 + $0x11b0] ss:$8 sps:$4 sm:$0xff]  }
 0x2a7   : > { %2981 = vmatprep.subr.bf16.mxu1 %v2958_v1  ;;  %4074 = vmatpush1.bf16.msra.mxu0 %v25811_v55  ;;  %v25877_v55 = vld [vmem:[%s34951_s3 + $0x1190] ss:$8 sps:$4 sm:$0xff]   ;;  %v25888_v1 = vld [vmem:[%s34951_s3 + $0x11c4] ss:$8 sps:$4 sm:$0xff]  }
 0x2a8   : > { %2982 = vmatpush1.bf16.msra.mxu1 %v2957_v57  ;;  %4075 = vmatprep.subr.bf16.mxu0 %v25816_v56  ;;  %v25882_v56 = vld [vmem:[%s34951_s3 + $0x11a4] ss:$8 sps:$4 sm:$0xff]   ;;  %v25880_v57 = vld [vmem:[%s34951_s3 + $0x11a0] ss:$8 sps:$4 sm:$0xff]  }
 0x2a9   : > { %3050 = vmatprep.subr.bf16.mxu1 %v1908_v58  ;;  %v25885_v58 = vld [vmem:[%s34951_s3 + $0x11b4] ss:$8 sps:$4 sm:$0xff]  }
 0x2ab   : > { %4076 = vmatpush1.bf16.msra.mxu0 %v25814_v2  ;;  %21268 = vmatmul.mubr.msk.bf16.vlgmr.msra.gmra.mrb[12].mxu1 %vm2974_vm4, %v25817_v3  ;;  %v25886_v2 = vld [vmem:[%s34951_s3 + $0x11c0] ss:$8 sps:$4 sm:$0xff]   ;;  %v25891_v3 = vld [vmem:[%s34951_s3 + $0x11d4] ss:$8 sps:$4 sm:$0xff]  }
 0x2ac   : > { %3051 = vmatpush1.bf16.msra.mxu1 %v1907_v52  ;;  %4077 = vmatprep.subr.bf16.mxu0 %v25820_v4  ;;  %v25876_v52 = vld [vmem:[%s34951_s3 + $0x1184] ss:$8 sps:$4 sm:$0xff]   ;;  %v25889_v4 = vld [vmem:[%s34951_s3 + $0x11d0] ss:$8 sps:$4 sm:$0xff]  }
 0x2ad   : > { %3023 = vmatprep.mubr.bf16.mxu1 %v28055_v0 }
 0x2af   : > { %4078 = vmatpush1.bf16.msra.mxu0 %v25818_v5  ;;  %v25894_v5 = vld [vmem:[%s34951_s3 + $0x11e4] ss:$8 sps:$4 sm:$0xff]  }
 0x2b0   : > { %4079 = vmatprep.subr.bf16.mxu0 %v25823_v6  ;;  %v25892_v6 = vld [vmem:[%s34951_s3 + $0x11e0] ss:$8 sps:$4 sm:$0xff]  }
 0x2b3   : > { %4080 = vmatpush1.bf16.msra.mxu0 %v25821_v7  ;;  %v25897_v7 = vld [vmem:[%s34951_s3 + $0x11f4] ss:$8 sps:$4 sm:$0xff]  }
 0x2b4   : > { %4081 = vmatprep.subr.bf16.mxu0 %v25826_v8  ;;  %v25895_v8 = vld [vmem:[%s34951_s3 + $0x11f0] ss:$8 sps:$4 sm:$0xff]  }
 0x2b7   : > { %4082 = vmatpush1.bf16.msra.mxu0 %v25824_v9  ;;  %v25900_v9 = vld [vmem:[%s34951_s3 + $0x1204] ss:$8 sps:$4 sm:$0xff]  }
 0x2b8   : > { %4083 = vmatprep.subr.bf16.mxu0 %v25829_v10  ;;  %v25898_v10 = vld [vmem:[%s34951_s3 + $0x1200] ss:$8 sps:$4 sm:$0xff]  }
 0x2bb   : > { %4084 = vmatpush1.bf16.msra.mxu0 %v25827_v11  ;;  %v25903_v11 = vld [vmem:[%s34951_s3 + $0x1214] ss:$8 sps:$4 sm:$0xff]  }
 0x2bc   : > { %4085 = vmatprep.subr.bf16.mxu0 %v25832_v12  ;;  %v25901_v12 = vld [vmem:[%s34951_s3 + $0x1210] ss:$8 sps:$4 sm:$0xff]  }
 0x2bf   : > { %4086 = vmatpush1.bf16.msra.mxu0 %v25830_v13  ;;  %v25906_v13 = vld [vmem:[%s34951_s3 + $0x1224] ss:$8 sps:$4 sm:$0xff]  }
 0x2c0   : > { %4087 = vmatprep.subr.bf16.mxu0 %v25835_v14  ;;  %v25904_v14 = vld [vmem:[%s34951_s3 + $0x1220] ss:$8 sps:$4 sm:$0xff]  }
 0x2c3   : > { %4088 = vmatpush1.bf16.msra.mxu0 %v25833_v15  ;;  %v25909_v15 = vld [vmem:[%s34951_s3 + $0x1234] ss:$8 sps:$4 sm:$0xff]  }
 0x2c4   : > { %4089 = vmatprep.subr.bf16.mxu0 %v25838_v16  ;;  %v25907_v16 = vld [vmem:[%s34951_s3 + $0x1230] ss:$8 sps:$4 sm:$0xff]  }
 0x2c7   : > { %4090 = vmatpush1.bf16.msra.mxu0 %v25836_v17  ;;  %v25912_v17 = vld [vmem:[%s34951_s3 + $0x1244] ss:$8 sps:$4 sm:$0xff]  }
 0x2c8   : > { %4091 = vmatprep.subr.bf16.mxu0 %v25841_v18  ;;  %v26006_v18 = vld [vmem:[%s34952_s4 + $0x18] sm:$0xff]  }
 0x2c9   : > { %21269 = vmatmul.mubr.msk.bf16.gmra.mrb[16].mxu1 %vm2974_vm4, %v26006_v18  ;;  %v25987_v18 = vld [vmem:[%s34951_s3 + $0x13d4] ss:$8 sps:$4 sm:$0xff]  }
 0x2ca   : > { %3082 = vmatprep.mubr.bf16.mxu1 %v28055_v0 }
 0x2cb   : > { %4092 = vmatpush1.bf16.msra.mxu0 %v25839_v19  ;;  %v25910_v19 = vld [vmem:[%s34951_s3 + $0x1240] ss:$8 sps:$4 sm:$0xff]  }
 0x2cc   : > { %4104 = vmatprep.subr.bf16.mxu0 %v25844_v20  ;;  %v25915_v20 = vld [vmem:[%s34951_s3 + $0x1254] ss:$8 sps:$4 sm:$0xff]  }
 0x2ce   : > { %4094 = vmatmul.mubr.bf16.vlgmr.msra.gmra.mrb[16].mxu0 %v28472_v35 }
 0x2cf   : > { %4105 = vmatpush1.bf16.msra.mxu0 %v25842_v21  ;;  %4136 = vmatprep.mubr.bf16.mxu0 %v28055_v0  ;;  %v25913_v21 = vld [vmem:[%s34951_s3 + $0x1250] ss:$8 sps:$4 sm:$0xff]  }
 0x2d0   : > { %4106 = vmatprep.subr.bf16.mxu0 %v25847_v22  ;;  %v25918_v22 = vld [vmem:[%s34951_s3 + $0x1264] ss:$8 sps:$4 sm:$0xff]  }
 0x2d3   : > { %4107 = vmatpush1.bf16.msra.mxu0 %v25845_v23  ;;  %v26013_v23 = vld [vmem:[%s34952_s4] sm:$0xff]  }
 0x2d4   : > { %4108 = vmatprep.subr.bf16.mxu0 %v25850_v24  ;;  %21272 = vmatmul.mubr.msk.bf16.vlgmr.msra.gmra.mrb[12].mxu1 %vm2974_vm4, %v26013_v23  ;;  %v25916_v24 = vld [vmem:[%s34951_s3 + $0x1260] ss:$8 sps:$4 sm:$0xff]   ;;  %v25991_v23 = vld [vmem:[%s34951_s3 + $0x13f0] ss:$8 sps:$4 sm:$0xff]  }
 0x2d5   : > { %3092 = vmatprep.mubr.bf16.mxu1 %v28055_v0 }
 0x2d7   : > { %4109 = vmatpush1.bf16.msra.mxu0 %v25848_v27  ;;  %v25919_v27 = vld [vmem:[%s34951_s3 + $0x1270] ss:$8 sps:$4 sm:$0xff]  }
 0x2d8   : > { %4110 = vmatprep.subr.bf16.mxu0 %v25853_v29  ;;  %v25924_v29 = vld [vmem:[%s34951_s3 + $0x1284] ss:$8 sps:$4 sm:$0xff]  }
 0x2db   : > { %4111 = vmatpush1.bf16.msra.mxu0 %v25851_v31  ;;  %v25927_v31 = vld [vmem:[%s34951_s3 + $0x1294] ss:$8 sps:$4 sm:$0xff]  }
 0x2dc   : > { %4112 = vmatprep.subr.bf16.mxu0 %v3930_v37  ;;  %21273 = vmatmul.mubr.msk.bf16.gmra.mrb[16].mxu1 %vm2974_vm4, %v26020_v36  ;;  %v25925_v37 = vld [vmem:[%s34951_s3 + $0x1290] ss:$8 sps:$4 sm:$0xff]   ;;  %v26005_v36 = vld [vmem:[%s34951_s3 + $0x1434] ss:$8 sps:$4 sm:$0xff]  }
 0x2dd   : > { %4202 = vmatprep.mubr.bf16.mxu1 %v28055_v0 }
 0x2df   : > { %4113 = vmatpush1.bf16.msra.mxu0 %v3927_v40  ;;  %v25930_v40 = vld [vmem:[%s34951_s3 + $0x12a4] ss:$8 sps:$4 sm:$0xff]  }
 0x2e0   : > { %6188 = vmatprep.subr.bf16.mxu0 %v25858_v41  ;;  %v25928_v41 = vld [vmem:[%s34951_s3 + $0x12a0] ss:$8 sps:$4 sm:$0xff]  }
 0x2e2   : > { %21549 = vmatmul.mubr.msk.bf16.vlgmr.msra.gmra.mrb[16].mxu0 %vm1679_vm3, %v28510_v54 }
 0x2e3   : > { %6189 = vmatpush1.bf16.msra.mxu0 %v25856_v42  ;;  %6220 = vmatprep.mubr.bf16.mxu0 %v28434_v62  ;;  %v25933_v42 = vld [vmem:[%s34951_s3 + $0x12b4] ss:$8 sps:$4 sm:$0xff]  }
 0x2e4   : > { %6190 = vmatprep.subr.bf16.mxu0 %v25861_v43  ;;  %v25931_v43 = vld [vmem:[%s34951_s3 + $0x12b0] ss:$8 sps:$4 sm:$0xff]  }
 0x2e7   : > { %6191 = vmatpush1.bf16.msra.mxu0 %v25859_v44  ;;  %v25936_v44 = vld [vmem:[%s34951_s3 + $0x12c4] ss:$8 sps:$4 sm:$0xff]  }
 0x2e8   : > { %6192 = vmatprep.subr.bf16.mxu0 %v25864_v45  ;;  %v25934_v45 = vld [vmem:[%s34951_s3 + $0x12c0] ss:$8 sps:$4 sm:$0xff]  }
 0x2eb   : > { %6193 = vmatpush1.bf16.msra.mxu0 %v25862_v46  ;;  %v25939_v46 = vld [vmem:[%s34951_s3 + $0x12d4] ss:$8 sps:$4 sm:$0xff]  }
 0x2ec   : > { %6194 = vmatprep.subr.bf16.mxu0 %v25867_v32  ;;  %v25937_v32 = vld [vmem:[%s34951_s3 + $0x12d0] ss:$8 sps:$4 sm:$0xff]  }
 0x2ef   : > { %6195 = vmatpush1.bf16.msra.mxu0 %v25865_v47  ;;  %v25942_v47 = vld [vmem:[%s34951_s3 + $0x12e4] ss:$8 sps:$4 sm:$0xff]  }
 0x2f0   : > { %6196 = vmatprep.subr.bf16.mxu0 %v25870_v48  ;;  %v25940_v48 = vld [vmem:[%s34951_s3 + $0x12e0] ss:$8 sps:$4 sm:$0xff]  }
 0x2f3   : > { %6197 = vmatpush1.bf16.msra.mxu0 %v25868_v49  ;;  %v25945_v49 = vld [vmem:[%s34951_s3 + $0x12f4] ss:$8 sps:$4 sm:$0xff]  }
 0x2f4   : > { %6198 = vmatprep.subr.bf16.mxu0 %v25873_v50  ;;  %v25943_v50 = vld [vmem:[%s34951_s3 + $0x12f0] ss:$8 sps:$4 sm:$0xff]  }
 0x2f7   : > { %6199 = vmatpush1.bf16.msra.mxu0 %v25871_v51  ;;  %v25948_v51 = vld [vmem:[%s34951_s3 + $0x1304] ss:$8 sps:$4 sm:$0xff]  }
 0x2f8   : > { %6200 = vmatprep.subr.bf16.mxu0 %v25876_v52  ;;  %v25946_v52 = vld [vmem:[%s34951_s3 + $0x1300] ss:$8 sps:$4 sm:$0xff]  }
 0x2fb   : > { %6201 = vmatpush1.bf16.msra.mxu0 %v25874_v53  ;;  %v25951_v53 = vld [vmem:[%s34951_s3 + $0x1314] ss:$8 sps:$4 sm:$0xff]  }
 0x2fc   : > { %6202 = vmatprep.subr.bf16.mxu0 %v25879_v33  ;;  %v25949_v33 = vld [vmem:[%s34951_s3 + $0x1310] ss:$8 sps:$4 sm:$0xff]  }
 0x2ff   : > { %6203 = vmatpush1.bf16.msra.mxu0 %v25877_v55  ;;  %v25954_v55 = vld [vmem:[%s34951_s3 + $0x1324] ss:$8 sps:$4 sm:$0xff]  }
 0x300   : > { %6204 = vmatprep.subr.bf16.mxu0 %v25882_v56  ;;  %v25952_v56 = vld [vmem:[%s34951_s3 + $0x1320] ss:$8 sps:$4 sm:$0xff]  }
 0x303   : > { %6205 = vmatpush1.bf16.msra.mxu0 %v25880_v57  ;;  %v25957_v57 = vld [vmem:[%s34951_s3 + $0x1334] ss:$8 sps:$4 sm:$0xff]  }
 0x304   : > { %6206 = vmatprep.subr.bf16.mxu0 %v25885_v58  ;;  %v25955_v58 = vld [vmem:[%s34951_s3 + $0x1330] ss:$8 sps:$4 sm:$0xff]  }
 0x307   : > { %6207 = vmatpush1.bf16.msra.mxu0 %v25883_v59  ;;  %v25960_v59 = vld [vmem:[%s34951_s3 + $0x1344] ss:$8 sps:$4 sm:$0xff]  }
 0x308   : > { %6208 = vmatprep.subr.bf16.mxu0 %v25888_v1  ;;  %v25958_v1 = vld [vmem:[%s34951_s3 + $0x1340] ss:$8 sps:$4 sm:$0xff]  }
 0x30b   : > { %6209 = vmatpush1.bf16.msra.mxu0 %v25886_v2  ;;  %v25963_v2 = vld [vmem:[%s34951_s3 + $0x1354] ss:$8 sps:$4 sm:$0xff]  }
 0x30c   : > { %6210 = vmatprep.subr.bf16.mxu0 %v25891_v3  ;;  %v25961_v3 = vld [vmem:[%s34951_s3 + $0x1350] ss:$8 sps:$4 sm:$0xff]  }
 0x30f   : > { %6211 = vmatpush1.bf16.msra.mxu0 %v25889_v4  ;;  %v25966_v4 = vld [vmem:[%s34951_s3 + $0x1364] ss:$8 sps:$4 sm:$0xff]  }
 0x310   : > { %6212 = vmatprep.subr.bf16.mxu0 %v25894_v5  ;;  %v25964_v5 = vld [vmem:[%s34951_s3 + $0x1360] ss:$8 sps:$4 sm:$0xff]  }
 0x313   : > { %6213 = vmatpush1.bf16.msra.mxu0 %v25892_v6  ;;  %v25969_v6 = vld [vmem:[%s34951_s3 + $0x1374] ss:$8 sps:$4 sm:$0xff]  }
 0x314   : > { %6214 = vmatprep.subr.bf16.mxu0 %v25897_v7  ;;  %v25967_v7 = vld [vmem:[%s34951_s3 + $0x1370] ss:$8 sps:$4 sm:$0xff]  }
 0x317   : > { %6215 = vmatpush1.bf16.msra.mxu0 %v25895_v8  ;;  %v25972_v8 = vld [vmem:[%s34951_s3 + $0x1384] ss:$8 sps:$4 sm:$0xff]  }
 0x318   : > { %6216 = vmatprep.subr.bf16.mxu0 %v25900_v9  ;;  %v25970_v9 = vld [vmem:[%s34951_s3 + $0x1380] ss:$8 sps:$4 sm:$0xff]  }
 0x31b   : > { %6217 = vmatpush1.bf16.msra.mxu0 %v25898_v10  ;;  %v25975_v10 = vld [vmem:[%s34951_s3 + $0x1394] ss:$8 sps:$4 sm:$0xff]  }
 0x31c   : > { %6218 = vmatprep.subr.bf16.mxu0 %v25903_v11  ;;  %v25973_v11 = vld [vmem:[%s34951_s3 + $0x1390] ss:$8 sps:$4 sm:$0xff]  }
 0x31f   : > { %6219 = vmatpush1.bf16.msra.mxu0 %v25901_v12  ;;  %v25978_v12 = vld [vmem:[%s34951_s3 + $0x13a4] ss:$8 sps:$4 sm:$0xff]  }
 0x320   : > { %6231 = vmatprep.subr.bf16.mxu0 %v25906_v13  ;;  %v25976_v13 = vld [vmem:[%s34951_s3 + $0x13a0] ss:$8 sps:$4 sm:$0xff]  }
 0x322   : > { %6221 = vmatmul.mubr.bf16.vlgmr.msra.gmra.mrb[20].mxu0 %v28430_v60 }
 0x323   : > { %6232 = vmatpush1.bf16.msra.mxu0 %v25904_v14  ;;  %6263 = vmatprep.mubr.bf16.mxu0 %v28436_v63  ;;  %v25981_v14 = vld [vmem:[%s34951_s3 + $0x13b4] ss:$8 sps:$4 sm:$0xff]  }
 0x324   : > { %6233 = vmatprep.subr.bf16.mxu0 %v25909_v15  ;;  %v25979_v15 = vld [vmem:[%s34951_s3 + $0x13b0] ss:$8 sps:$4 sm:$0xff]  }
 0x327   : > { %6234 = vmatpush1.bf16.msra.mxu0 %v25907_v16  ;;  %v25984_v16 = vld [vmem:[%s34951_s3 + $0x13c4] ss:$8 sps:$4 sm:$0xff]  }
 0x328   : > { %6235 = vmatprep.subr.bf16.mxu0 %v25912_v17  ;;  %v25982_v17 = vld [vmem:[%s34951_s3 + $0x13c0] ss:$8 sps:$4 sm:$0xff]  }
 0x32b   : > { %6236 = vmatpush1.bf16.msra.mxu0 %v25910_v19  ;;  %v25985_v19 = vld [vmem:[%s34951_s3 + $0x13d0] ss:$8 sps:$4 sm:$0xff]  }
 0x32c   : > { %6237 = vmatprep.subr.bf16.mxu0 %v25915_v20  ;;  %v25990_v20 = vld [vmem:[%s34951_s3 + $0x13e4] ss:$8 sps:$4 sm:$0xff]  }
 0x32f   : > { %6238 = vmatpush1.bf16.msra.mxu0 %v25913_v21  ;;  %v25988_v21 = vld [vmem:[%s34951_s3 + $0x13e0] ss:$8 sps:$4 sm:$0xff]  }
 0x330   : > { %6239 = vmatprep.subr.bf16.mxu0 %v25918_v22  ;;  %v25993_v22 = vld [vmem:[%s34951_s3 + $0x13f4] ss:$8 sps:$4 sm:$0xff]  }
 0x333   : > { %6240 = vmatpush1.bf16.msra.mxu0 %v25916_v24  ;;  %v25996_v24 = vld [vmem:[%s34951_s3 + $0x1404] ss:$8 sps:$4 sm:$0xff]  }
 0x334   : > { %6241 = vmatprep.subr.bf16.mxu0 %v25921_v26  ;;  %v25994_v26 = vld [vmem:[%s34951_s3 + $0x1400] ss:$8 sps:$4 sm:$0xff]  }
 0x337   : > { %6242 = vmatpush1.bf16.msra.mxu0 %v25919_v27  ;;  %v25999_v27 = vld [vmem:[%s34951_s3 + $0x1414] ss:$8 sps:$4 sm:$0xff]  }
 0x338   : > { %6243 = vmatprep.subr.bf16.mxu0 %v25924_v29  ;;  %v25997_v29 = vld [vmem:[%s34951_s3 + $0x1410] ss:$8 sps:$4 sm:$0xff]  }
 0x33b   : > { %6244 = vmatpush1.bf16.msra.mxu0 %v25922_v30  ;;  %v26002_v30 = vld [vmem:[%s34951_s3 + $0x1424] ss:$8 sps:$4 sm:$0xff]  }
 0x33c   : > { %6245 = vmatprep.subr.bf16.mxu0 %v25927_v31  ;;  %v26000_v31 = vld [vmem:[%s34951_s3 + $0x1420] ss:$8 sps:$4 sm:$0xff]  }
 0x33f   : > { %6246 = vmatpush1.bf16.msra.mxu0 %v25925_v37  ;;  %v26003_v37 = vld [vmem:[%s34951_s3 + $0x1430] ss:$8 sps:$4 sm:$0xff]  }
 0x340   : > { %6247 = vmatprep.subr.bf16.mxu0 %v25930_v40  ;;  %v26009_v40 = vld [vmem:[%s34951_s3 + $0x1444] ss:$8 sps:$4 sm:$0xff]  }
 0x343   : > { %6248 = vmatpush1.bf16.msra.mxu0 %v25928_v41  ;;  %v26007_v41 = vld [vmem:[%s34951_s3 + $0x1440] ss:$8 sps:$4 sm:$0xff]  }
 0x344   : > { %6249 = vmatprep.subr.bf16.mxu0 %v25933_v42  ;;  %v26012_v42 = vld [vmem:[%s34951_s3 + $0x1454] ss:$8 sps:$4 sm:$0xff]  }
 0x347   : > { %6250 = vmatpush1.bf16.msra.mxu0 %v25931_v43  ;;  %v26010_v43 = vld [vmem:[%s34951_s3 + $0x1450] ss:$8 sps:$4 sm:$0xff]  }
 0x348   : > { %6251 = vmatprep.subr.bf16.mxu0 %v25936_v44  ;;  %v26016_v44 = vld [vmem:[%s34951_s3 + $0x1464] ss:$8 sps:$4 sm:$0xff]  }
 0x34b   : > { %6252 = vmatpush1.bf16.msra.mxu0 %v25934_v45  ;;  %v26014_v45 = vld [vmem:[%s34951_s3 + $0x1460] ss:$8 sps:$4 sm:$0xff]  }
 0x34c   : > { %6253 = vmatprep.subr.bf16.mxu0 %v25939_v46  ;;  %v26019_v46 = vld [vmem:[%s34951_s3 + $0x1474] ss:$8 sps:$4 sm:$0xff]  }
 0x34f   : > { %6254 = vmatpush1.bf16.msra.mxu0 %v25937_v32  ;;  %v26017_v32 = vld [vmem:[%s34951_s3 + $0x1470] ss:$8 sps:$4 sm:$0xff]  }
 0x350   : > { %6255 = vmatprep.subr.bf16.mxu0 %v25942_v47  ;;  %v26023_v47 = vld [vmem:[%s34951_s3 + $0x1484] ss:$8 sps:$4 sm:$0xff]  }
 0x353   : > { %6256 = vmatpush1.bf16.msra.mxu0 %v25940_v48 }
 0x354   : > { %6257 = vmatprep.subr.bf16.mxu0 %v25945_v49 }
 0x357   : > { %6258 = vmatpush1.bf16.msra.mxu0 %v25943_v50 }
 0x358   : > { %6259 = vmatprep.subr.bf16.mxu0 %v25948_v51  ;;  %v26021_v51 = vld [vmem:[%s34951_s3 + $0x1480] ss:$8 sps:$4 sm:$0xff]  }
 0x35b   : > { %6260 = vmatpush1.bf16.msra.mxu0 %v25946_v52 }
 0x35c   : > { %6261 = vmatprep.subr.bf16.mxu0 %v25951_v53 }
 0x35f   : > { %6262 = vmatpush1.bf16.msra.mxu0 %v25949_v33  ;;  %v26026_v33 = vld [vmem:[%s34951_s3 + $0x1494] ss:$8 sps:$4 sm:$0xff]  }
 0x360   : > { %6274 = vmatprep.subr.bf16.mxu0 %v25954_v55 }
 0x362   : > { %6264 = vmatmul.mubr.bf16.vlgmr.msra.gmra.mrb[20].mxu0 %v28432_v61 }
 0x363   : > { %6275 = vmatpush1.bf16.msra.mxu0 %v25952_v56  ;;  %6306 = vmatprep.mubr.bf16.mxu0 %v28480_v38  ;;  %v26030_v56 = vld [vmem:[%s34951_s3 + $0xcdc] ss:$8 sps:$4 sm:$0xff]  }
 0x364   : > { %6276 = vmatprep.subr.bf16.mxu0 %v25957_v57  ;;  %v26024_v57 = vld [vmem:[%s34951_s3 + $0x1490] ss:$8 sps:$4 sm:$0xff]  }
 0x367   : > { %6277 = vmatpush1.bf16.msra.mxu0 %v25955_v58  ;;  %v26027_v58 = vld [vmem:[%s34952_s4 + $0x20] sm:$0xff]  }
 0x368   : > { %6278 = vmatprep.subr.bf16.mxu0 %v25960_v59  ;;  %v26028_v59 = vld [vmem:[%s34951_s3 + $0xcd8] ss:$8 sps:$4 sm:$0xff]  }
 0x36b   : > { %6279 = vmatpush1.bf16.msra.mxu0 %v25958_v1  ;;  %v26033_v1 = vld [vmem:[%s34951_s3 + $0x14a4] ss:$8 sps:$4 sm:$0xff]  }
 0x36c   : > { %6280 = vmatprep.subr.bf16.mxu0 %v25963_v2  ;;  %v26036_v2 = vld [vmem:[%s34951_s3 + $0xcec] ss:$8 sps:$4 sm:$0xff]  }
 0x36f   : > { %6281 = vmatpush1.bf16.msra.mxu0 %v25961_v3  ;;  %v26031_v3 = vld [vmem:[%s34951_s3 + $0x14a0] ss:$8 sps:$4 sm:$0xff]  }
 0x370   : > { %6282 = vmatprep.subr.bf16.mxu0 %v25966_v4  ;;  %v26034_v4 = vld [vmem:[%s34951_s3 + $0xce8] ss:$8 sps:$4 sm:$0xff]  }
 0x373   : > { %6283 = vmatpush1.bf16.msra.mxu0 %v25964_v5  ;;  %v26039_v5 = vld [vmem:[%s34951_s3 + $0x14b4] ss:$8 sps:$4 sm:$0xff]  }
 0x374   : > { %6284 = vmatprep.subr.bf16.mxu0 %v25969_v6  ;;  %v26043_v6 = vld [vmem:[%s34951_s3 + $0xcfc] ss:$8 sps:$4 sm:$0xff]  }
 0x377   : > { %6285 = vmatpush1.bf16.msra.mxu0 %v25967_v7  ;;  %v26037_v7 = vld [vmem:[%s34951_s3 + $0x14b0] ss:$8 sps:$4 sm:$0xff]  }
 0x378   : > { %6286 = vmatprep.subr.bf16.mxu0 %v25972_v8  ;;  %v26040_v8 = vld [vmem:[%s34952_s4 + $0x28] sm:$0xff]  }
 0x37b   : > { %6287 = vmatpush1.bf16.msra.mxu0 %v25970_v9  ;;  %v26041_v9 = vld [vmem:[%s34951_s3 + $0xcf8] ss:$8 sps:$4 sm:$0xff]  }
 0x37c   : > { %6288 = vmatprep.subr.bf16.mxu0 %v25975_v10  ;;  %v26046_v10 = vld [vmem:[%s34951_s3 + $0x14c4] ss:$8 sps:$4 sm:$0xff]  }
 0x37f   : > { %6289 = vmatpush1.bf16.msra.mxu0 %v25973_v11  ;;  %v26049_v11 = vld [vmem:[%s34951_s3 + $0xd0c] ss:$8 sps:$4 sm:$0xff]  }
 0x380   : > { %6290 = vmatprep.subr.bf16.mxu0 %v25978_v12  ;;  %v26044_v12 = vld [vmem:[%s34951_s3 + $0x14c0] ss:$8 sps:$4 sm:$0xff]  }
 0x383   : > { %6291 = vmatpush1.bf16.msra.mxu0 %v25976_v13  ;;  %v26047_v13 = vld [vmem:[%s34951_s3 + $0xd08] ss:$8 sps:$4 sm:$0xff]  }
 0x384   : > { %6292 = vmatprep.subr.bf16.mxu0 %v25981_v14  ;;  %v26052_v14 = vld [vmem:[%s34951_s3 + $0x14d4] ss:$8 sps:$4 sm:$0xff]  }
 0x387   : > { %6293 = vmatpush1.bf16.msra.mxu0 %v25979_v15  ;;  %v26055_v15 = vld [vmem:[%s34951_s3 + $0xd1c] ss:$8 sps:$4 sm:$0xff]  }
 0x388   : > { %6294 = vmatprep.subr.bf16.mxu0 %v25984_v16  ;;  %v26050_v16 = vld [vmem:[%s34951_s3 + $0x14d0] ss:$8 sps:$4 sm:$0xff]  }
 0x38b   : > { %6295 = vmatpush1.bf16.msra.mxu0 %v25982_v17  ;;  %v26053_v17 = vld [vmem:[%s34951_s3 + $0xd18] ss:$8 sps:$4 sm:$0xff]  }
 0x38c   : > { %6296 = vmatprep.subr.bf16.mxu0 %v25987_v18  ;;  %v26058_v18 = vld [vmem:[%s34951_s3 + $0x14e4] ss:$8 sps:$4 sm:$0xff]  }
 0x38f   : > { %6297 = vmatpush1.bf16.msra.mxu0 %v25985_v19  ;;  %v26061_v19 = vld [vmem:[%s34951_s3 + $0xd2c] ss:$8 sps:$4 sm:$0xff]  }
 0x390   : > { %6298 = vmatprep.subr.bf16.mxu0 %v25990_v20  ;;  %v26056_v20 = vld [vmem:[%s34951_s3 + $0x14e0] ss:$8 sps:$4 sm:$0xff]  }
 0x393   : > { %6299 = vmatpush1.bf16.msra.mxu0 %v25988_v21  ;;  %v26059_v21 = vld [vmem:[%s34951_s3 + $0xd28] ss:$8 sps:$4 sm:$0xff]  }
 0x394   : > { %6300 = vmatprep.subr.bf16.mxu0 %v25993_v22  ;;  %v26064_v22 = vld [vmem:[%s34951_s3 + $0x14f4] ss:$8 sps:$4 sm:$0xff]  }
 0x397   : > { %6301 = vmatpush1.bf16.msra.mxu0 %v25991_v23  ;;  %v26067_v23 = vld [vmem:[%s34951_s3 + $0xd3c] ss:$8 sps:$4 sm:$0xff]  }
 0x398   : > { %6302 = vmatprep.subr.bf16.mxu0 %v25996_v24  ;;  %v26062_v24 = vld [vmem:[%s34951_s3 + $0x14f0] ss:$8 sps:$4 sm:$0xff]  }
 0x39b   : > { %6303 = vmatpush1.bf16.msra.mxu0 %v25994_v26  ;;  %v26065_v26 = vld [vmem:[%s34951_s3 + $0xd38] ss:$8 sps:$4 sm:$0xff]  }
 0x39c   : > { %6304 = vmatprep.subr.bf16.mxu0 %v25999_v27  ;;  %v26070_v27 = vld [vmem:[%s34951_s3 + $0x1504] ss:$8 sps:$4 sm:$0xff]  }
 0x39f   : > { %6305 = vmatpush1.bf16.msra.mxu0 %v25997_v29  ;;  %v26073_v29 = vld [vmem:[%s34951_s3 + $0xd4c] ss:$8 sps:$4 sm:$0xff]  }
 0x3a0   : > { %6317 = vmatprep.subr.bf16.mxu0 %v26002_v30  ;;  %v26068_v30 = vld [vmem:[%s34951_s3 + $0x1500] ss:$8 sps:$4 sm:$0xff]  }
 0x3a2   : > { %6307 = vmatmul.mubr.bf16.vlgmr.msra.gmra.mrb[20].mxu0 %v28470_v34 }
 0x3a3   : > { %6318 = vmatpush1.bf16.msra.mxu0 %v26000_v31  ;;  %6349 = vmatprep.mubr.bf16.mxu0 %v28482_v39  ;;  %v26071_v31 = vld [vmem:[%s34951_s3 + $0xd48] ss:$8 sps:$4 sm:$0xff]  }
 0x3a4   : > { %6319 = vmatprep.subr.bf16.mxu0 %v26005_v36  ;;  %v26076_v36 = vld [vmem:[%s34951_s3 + $0x1514] ss:$8 sps:$4 sm:$0xff]  }
 0x3a7   : > { %6320 = vmatpush1.bf16.msra.mxu0 %v26003_v37  ;;  %v26079_v37 = vld [vmem:[%s34951_s3 + $0xd5c] ss:$8 sps:$4 sm:$0xff]  }
 0x3a8   : > { %6321 = vmatprep.subr.bf16.mxu0 %v26009_v40  ;;  %v26074_v40 = vld [vmem:[%s34951_s3 + $0x1510] ss:$8 sps:$4 sm:$0xff]  }
 0x3ab   : > { %6322 = vmatpush1.bf16.msra.mxu0 %v26007_v41  ;;  %v26077_v41 = vld [vmem:[%s34951_s3 + $0xd58] ss:$8 sps:$4 sm:$0xff]  }
 0x3ac   : > { %6323 = vmatprep.subr.bf16.mxu0 %v26012_v42  ;;  %v26082_v42 = vld [vmem:[%s34951_s3 + $0x1524] ss:$8 sps:$4 sm:$0xff]  }
 0x3af   : > { %6324 = vmatpush1.bf16.msra.mxu0 %v26010_v43  ;;  %v26085_v43 = vld [vmem:[%s34951_s3 + $0xd6c] ss:$8 sps:$4 sm:$0xff]  }
 0x3b0   : > { %6325 = vmatprep.subr.bf16.mxu0 %v26016_v44  ;;  %v26080_v44 = vld [vmem:[%s34951_s3 + $0x1520] ss:$8 sps:$4 sm:$0xff]  }
 0x3b3   : > { %6326 = vmatpush1.bf16.msra.mxu0 %v26014_v45  ;;  %v26083_v45 = vld [vmem:[%s34951_s3 + $0xd68] ss:$8 sps:$4 sm:$0xff]  }
 0x3b4   : > { %6327 = vmatprep.subr.bf16.mxu0 %v26019_v46  ;;  %v26088_v46 = vld [vmem:[%s34951_s3 + $0x1534] ss:$8 sps:$4 sm:$0xff]  }
 0x3b5   : > { %v4138_v48 = vpop.f32.mrb[16].mxu0 }
 0x3b6   : > { %v4140_v49 = vpop.f32.mrb[17].mxu0 }
 0x3b7   : > { %v4142_v50 = vpop.f32.mrb[18].mxu0  ;;  %6328 = vmatpush1.bf16.msra.mxu0 %v26017_v32  ;;  %v26091_v32 = vld [vmem:[%s34951_s3 + $0xd7c] ss:$8 sps:$4 sm:$0xff]  }
 0x3b8   : > { %v4147_v52 = vpack.c.bf16 %v4142_v50, %v4138_v48  ;;  %v4144_v53 = vpop.f32.mrb[19].mxu0  ;;  %6329 = vmatprep.subr.bf16.mxu0 %v26023_v47  ;;  %v26086_v47 = vld [vmem:[%s34951_s3 + $0x1530] ss:$8 sps:$4 sm:$0xff]   ;;  %v26097_v50 = vld [vmem:[%s34951_s3 + $0xd8c] ss:$8 sps:$4 sm:$0xff]  }
 0x3b9   : > { %v4148_v55 = vpack.c.bf16 %v4144_v53, %v4140_v49  ;;  %v26089_v48 = vld [vmem:[%s34951_s3 + $0xd78] ss:$8 sps:$4 sm:$0xff]   ;;  %v26094_v49 = vld [vmem:[%s34951_s3 + $0x1544] ss:$8 sps:$4 sm:$0xff]   ;;  %v26095_v53 = vld [vmem:[%s34951_s3 + $0xd88] ss:$8 sps:$4 sm:$0xff]  }
 0x3bb   : > { %4170 = vmatprep.subr.bf16.mxu1 %v4148_v55  ;;  %6330 = vmatpush1.bf16.msra.mxu0 %v26021_v51  ;;  %v21978_v51 = vld [vmem:[%s34951_s3 + $0x1560] sm:$0x11] }
 0x3bc   : > { %4171 = vmatpush1.bf16.msra.mxu1 %v4147_v52  ;;  %6331 = vmatprep.subr.bf16.mxu0 %v26026_v33  ;;  %v26092_v52 = vld [vmem:[%s34951_s3 + $0x1540] ss:$8 sps:$4 sm:$0xff]   ;;  %v26100_v33 = vld [vmem:[%s34951_s3 + $0x1554] ss:$8 sps:$4 sm:$0xff]   ;;  %v22116_v55 = vcombine.high %v21978_v51, %v21978_v51 }
 0x3bd   : > { %5060 = vmatprep.subr.bf16.mxu1 %v26030_v56  ;;  %v26103_v56 = vld [vmem:[%s34951_s3 + $0xd9c] ss:$8 sps:$4 sm:$0xff]  }
 0x3bf   : > { %21556 = vmatmul.mubr.msk.bf16.vlgmr.msra.gmra.mrb[12].mxu1 %vm2974_vm4, %v26027_v58  ;;  %6332 = vmatpush1.bf16.msra.mxu0 %v26024_v57  ;;  %v26098_v57 = vld [vmem:[%s34951_s3 + $0x1550] ss:$8 sps:$4 sm:$0xff]   ;;  %v22115_v58 = vcombine.low %v21978_v51, %v21978_v51 }
 0x3c0   : > { %5061 = vmatpush1.bf16.msra.mxu1 %v26028_v59  ;;  %6333 = vmatprep.subr.bf16.mxu0 %v26033_v1  ;;  %v26101_v59 = vld [vmem:[%s34951_s3 + $0xd98] ss:$8 sps:$4 sm:$0xff]   ;;  %v6186_v1 = vand.u32 %v22116_v55, %v29093_v28  ;;  %v26166_v51 = vld [vmem:[%s34951_s3 + $0xe48] ss:$8 sps:$4 sm:$0xff]  }
 0x3c1   : > { %5062 = vmatprep.subr.bf16.mxu1 %v26036_v2  ;;  %4212 = vmatprep.mubr.bf16.mxu1 %v28055_v0  ;;  %v26108_v2 = vld [vmem:[%s34951_s3 + $0xdac] ss:$8 sps:$4 sm:$0xff]   ;;  %v26172_v55 = vld [vmem:[%s34951_s3 + $0xe58] ss:$8 sps:$4 sm:$0xff]  }
 0x3c3   : > { %6334 = vmatpush1.bf16.msra.mxu0 %v26031_v3  ;;  %v6183_v3 = vand.u32 %v22115_v58, %v29093_v28  ;;  %v26175_v58 = vld [vmem:[%s34951_s3 + $0x1a60] ss:$8 sps:$4 sm:$0xff]  }
 0x3c4   : > { %5063 = vmatpush1.bf16.msra.mxu1 %v26034_v4  ;;  %6335 = vmatprep.subr.bf16.mxu0 %v26039_v5  ;;  %v26106_v4 = vld [vmem:[%s34951_s3 + $0xda8] ss:$8 sps:$4 sm:$0xff]   ;;  %v26111_v5 = vld [vmem:[%s34951_s3 + $0x19b4] ss:$8 sps:$4 sm:$0xff]  }
 0x3c5   : > { %5064 = vmatprep.subr.bf16.mxu1 %v26043_v6  ;;  %v26114_v6 = vld [vmem:[%s34951_s3 + $0xdbc] ss:$8 sps:$4 sm:$0xff]  }
 0x3c7   : > { %21557 = vmatmul.mubr.msk.bf16.gmra.mrb[16].mxu1 %vm2974_vm4, %v26040_v8  ;;  %6336 = vmatpush1.bf16.msra.mxu0 %v26037_v7  ;;  %v26109_v7 = vld [vmem:[%s34951_s3 + $0x19b0] ss:$8 sps:$4 sm:$0xff]  }
 0x3c8   : > { %5065 = vmatpush1.bf16.msra.mxu1 %v26041_v9  ;;  %5092 = vmatprep.mubr.bf16.mxu1 %v28434_v62  ;;  %v26112_v8 = vld [vmem:[%s34951_s3 + $0xdb8] ss:$8 sps:$4 sm:$0xff]   ;;  %v26117_v9 = vld [vmem:[%s34951_s3 + $0x19c4] ss:$8 sps:$4 sm:$0xff]  }
 0x3c9   : > { %6337 = vmatprep.subr.bf16.mxu0 %v26046_v10  ;;  %5066 = vmatprep.subr.bf16.mxu1 %v26049_v11  ;;  %v26120_v10 = vld [vmem:[%s34951_s3 + $0xdcc] ss:$8 sps:$4 sm:$0xff]   ;;  %v26115_v11 = vld [vmem:[%s34951_s3 + $0x19c0] ss:$8 sps:$4 sm:$0xff]  }
 0x3cb   : > { %6338 = vmatpush1.bf16.msra.mxu0 %v26044_v12  ;;  %v26118_v12 = vld [vmem:[%s34951_s3 + $0xdc8] ss:$8 sps:$4 sm:$0xff]  }
 0x3cc   : > { %5067 = vmatpush1.bf16.msra.mxu1 %v26047_v13  ;;  %6339 = vmatprep.subr.bf16.mxu0 %v26052_v14  ;;  %v26123_v13 = vld [vmem:[%s34951_s3 + $0x19d4] ss:$8 sps:$4 sm:$0xff]  }
 0x3cd   : > { %5068 = vmatprep.subr.bf16.mxu1 %v26055_v15  ;;  %v26126_v14 = vld [vmem:[%s34951_s3 + $0xddc] ss:$8 sps:$4 sm:$0xff]   ;;  %v26121_v15 = vld [vmem:[%s34951_s3 + $0x19d0] ss:$8 sps:$4 sm:$0xff]  }
 0x3cf   : > { %6340 = vmatpush1.bf16.msra.mxu0 %v26050_v16  ;;  %v26124_v16 = vld [vmem:[%s34951_s3 + $0xdd8] ss:$8 sps:$4 sm:$0xff]  }
 0x3d0   : > { %5069 = vmatpush1.bf16.msra.mxu1 %v26053_v17  ;;  %6341 = vmatprep.subr.bf16.mxu0 %v26058_v18  ;;  %v26129_v17 = vld [vmem:[%s34951_s3 + $0x19e4] ss:$8 sps:$4 sm:$0xff]  }
 0x3d1   : > { %5070 = vmatprep.subr.bf16.mxu1 %v26061_v19  ;;  %v26132_v18 = vld [vmem:[%s34951_s3 + $0xdec] ss:$8 sps:$4 sm:$0xff]   ;;  %v26127_v19 = vld [vmem:[%s34951_s3 + $0x19e0] ss:$8 sps:$4 sm:$0xff]  }
 0x3d3   : > { %6342 = vmatpush1.bf16.msra.mxu0 %v26056_v20  ;;  %v26130_v20 = vld [vmem:[%s34951_s3 + $0xde8] ss:$8 sps:$4 sm:$0xff]  }
 0x3d4   : > { %5071 = vmatpush1.bf16.msra.mxu1 %v26059_v21  ;;  %6343 = vmatprep.subr.bf16.mxu0 %v26064_v22  ;;  %v26135_v21 = vld [vmem:[%s34951_s3 + $0x19f4] ss:$8 sps:$4 sm:$0xff]  }
 0x3d5   : > { %5072 = vmatprep.subr.bf16.mxu1 %v26067_v23  ;;  %v26138_v22 = vld [vmem:[%s34951_s3 + $0xdfc] ss:$8 sps:$4 sm:$0xff]   ;;  %v26133_v23 = vld [vmem:[%s34951_s3 + $0x19f0] ss:$8 sps:$4 sm:$0xff]  }
 0x3d7   : > { %6344 = vmatpush1.bf16.msra.mxu0 %v26062_v24  ;;  %v26136_v24 = vld [vmem:[%s34951_s3 + $0xdf8] ss:$8 sps:$4 sm:$0xff]  }
 0x3d8   : > { %5073 = vmatpush1.bf16.msra.mxu1 %v26065_v26  ;;  %6345 = vmatprep.subr.bf16.mxu0 %v26070_v27  ;;  %v26141_v26 = vld [vmem:[%s34951_s3 + $0x1a04] ss:$8 sps:$4 sm:$0xff]  }
 0x3d9   : > { %5074 = vmatprep.subr.bf16.mxu1 %v26073_v29  ;;  %v26144_v27 = vld [vmem:[%s34951_s3 + $0xe0c] ss:$8 sps:$4 sm:$0xff]   ;;  %v26139_v29 = vld [vmem:[%s34951_s3 + $0x1a00] ss:$8 sps:$4 sm:$0xff]  }
 0x3db   : > { %6346 = vmatpush1.bf16.msra.mxu0 %v26068_v30  ;;  %v26142_v30 = vld [vmem:[%s34951_s3 + $0xe08] ss:$8 sps:$4 sm:$0xff]  }
 0x3dc   : > { %5075 = vmatpush1.bf16.msra.mxu1 %v26071_v31  ;;  %6347 = vmatprep.subr.bf16.mxu0 %v26076_v36  ;;  %v26147_v31 = vld [vmem:[%s34951_s3 + $0x1a14] ss:$8 sps:$4 sm:$0xff]  }
 0x3dd   : > { %5076 = vmatprep.subr.bf16.mxu1 %v26079_v37  ;;  %v26150_v36 = vld [vmem:[%s34951_s3 + $0xe1c] ss:$8 sps:$4 sm:$0xff]   ;;  %v26145_v37 = vld [vmem:[%s34951_s3 + $0x1a10] ss:$8 sps:$4 sm:$0xff]  }
 0x3df   : > { %6348 = vmatpush1.bf16.msra.mxu0 %v26074_v40  ;;  %v26148_v40 = vld [vmem:[%s34951_s3 + $0xe18] ss:$8 sps:$4 sm:$0xff]  }
 0x3e0   : > { %5077 = vmatpush1.bf16.msra.mxu1 %v26077_v41  ;;  %6360 = vmatprep.subr.bf16.mxu0 %v26082_v42  ;;  %v26153_v41 = vld [vmem:[%s34951_s3 + $0x1a24] ss:$8 sps:$4 sm:$0xff]  }
 0x3e1   : > { %5078 = vmatprep.subr.bf16.mxu1 %v26085_v43  ;;  %v26156_v42 = vld [vmem:[%s34951_s3 + $0xe2c] ss:$8 sps:$4 sm:$0xff]   ;;  %v26151_v43 = vld [vmem:[%s34951_s3 + $0x1a20] ss:$8 sps:$4 sm:$0xff]  }
 0x3e2   : > { %6350 = vmatmul.mubr.bf16.vlgmr.msra.gmra.mrb[20].mxu0 %v28472_v35 }
 0x3e3   : > { %6361 = vmatpush1.bf16.msra.mxu0 %v26080_v44  ;;  %6392 = vmatprep.mubr.bf16.mxu0 %v28055_v0  ;;  %v26154_v44 = vld [vmem:[%s34951_s3 + $0xe28] ss:$8 sps:$4 sm:$0xff]  }
 0x3e4   : > { %5079 = vmatpush1.bf16.msra.mxu1 %v26083_v45  ;;  %6362 = vmatprep.subr.bf16.mxu0 %v26088_v46  ;;  %v26159_v45 = vld [vmem:[%s34951_s3 + $0x1a34] ss:$8 sps:$4 sm:$0xff]  }
 0x3e5   : > { %5080 = vmatprep.subr.bf16.mxu1 %v26091_v32  ;;  %v26162_v46 = vld [vmem:[%s34951_s3 + $0xe3c] ss:$8 sps:$4 sm:$0xff]   ;;  %v26157_v32 = vld [vmem:[%s34951_s3 + $0x1a30] ss:$8 sps:$4 sm:$0xff]  }
 0x3e7   : > { %6363 = vmatpush1.bf16.msra.mxu0 %v26086_v47  ;;  %v26160_v47 = vld [vmem:[%s34951_s3 + $0xe38] ss:$8 sps:$4 sm:$0xff]  }
 0x3e8   : > { %5081 = vmatpush1.bf16.msra.mxu1 %v26089_v48  ;;  %6364 = vmatprep.subr.bf16.mxu0 %v26094_v49  ;;  %v26165_v48 = vld [vmem:[%s34951_s3 + $0x1a44] ss:$8 sps:$4 sm:$0xff]  }
 0x3e9   : > { %5082 = vmatprep.subr.bf16.mxu1 %v26097_v50  ;;  %v26168_v49 = vld [vmem:[%s34951_s3 + $0xe4c] ss:$8 sps:$4 sm:$0xff]   ;;  %v26163_v50 = vld [vmem:[%s34951_s3 + $0x1a40] ss:$8 sps:$4 sm:$0xff]  }
 0x3eb   : > { %6365 = vmatpush1.bf16.msra.mxu0 %v26092_v52  ;;  %v26171_v52 = vld [vmem:[%s34951_s3 + $0x1a54] ss:$8 sps:$4 sm:$0xff]  }
 0x3ec   : > { %5083 = vmatpush1.bf16.msra.mxu1 %v26095_v53  ;;  %6366 = vmatprep.subr.bf16.mxu0 %v26100_v33  ;;  %v26174_v53 = vld [vmem:[%s34951_s3 + $0xe5c] ss:$8 sps:$4 sm:$0xff]   ;;  %v26169_v33 = vld [vmem:[%s34951_s3 + $0x1a50] ss:$8 sps:$4 sm:$0xff]  }
 0x3ed   : > { %5084 = vmatprep.subr.bf16.mxu1 %v26103_v56  ;;  %v26177_v56 = vld [vmem:[%s34951_s3 + $0x1a64] ss:$8 sps:$4 sm:$0xff]  }
 0x3ef   : > { %6367 = vmatpush1.bf16.msra.mxu0 %v26098_v57  ;;  %v26180_v57 = vld [vmem:[%s34951_s3 + $0xe6c] ss:$8 sps:$4 sm:$0xff]  }
 0x3f0   : > { %5085 = vmatpush1.bf16.msra.mxu1 %v26101_v59  ;;  %6368 = vmatprep.subr.bf16.mxu0 %v6186_v1  ;;  %v26178_v59 = vld [vmem:[%s34951_s3 + $0xe68] ss:$8 sps:$4 sm:$0xff]   ;;  %v26183_v1 = vld [vmem:[%s34951_s3 + $0x1a74] ss:$8 sps:$4 sm:$0xff]  }
 0x3f1   : > { %5086 = vmatprep.subr.bf16.mxu1 %v26108_v2  ;;  %v26186_v2 = vld [vmem:[%s34951_s3 + $0xe7c] ss:$8 sps:$4 sm:$0xff]  }
 0x3f3   : > { %6369 = vmatpush1.bf16.msra.mxu0 %v6183_v3  ;;  %v26181_v3 = vld [vmem:[%s34951_s3 + $0x1a70] ss:$8 sps:$4 sm:$0xff]  }
 0x3f4   : > { %5087 = vmatpush1.bf16.msra.mxu1 %v26106_v4  ;;  %8444 = vmatprep.subr.bf16.mxu0 %v26111_v5  ;;  %v26184_v4 = vld [vmem:[%s34951_s3 + $0xe78] ss:$8 sps:$4 sm:$0xff]   ;;  %v26189_v5 = vld [vmem:[%s34951_s3 + $0x1a84] ss:$8 sps:$4 sm:$0xff]  }
 0x3f5   : > { %5088 = vmatprep.subr.bf16.mxu1 %v26114_v6  ;;  %v26192_v6 = vld [vmem:[%s34951_s3 + $0xe8c] ss:$8 sps:$4 sm:$0xff]  }
 0x3f6   : > { %22117 = vmatmul.mubr.msk.bf16.vlgmr.msra.gmra.mrb[20].mxu0 %vm1679_vm3, %v28510_v54 }
 0x3f7   : > { %8445 = vmatpush1.bf16.msra.mxu0 %v26109_v7  ;;  %8476 = vmatprep.mubr.bf16.mxu0 %v28434_v62  ;;  %v26187_v7 = vld [vmem:[%s34951_s3 + $0x1a80] ss:$8 sps:$4 sm:$0xff]  }
 0x3f8   : > { %5089 = vmatpush1.bf16.msra.mxu1 %v26112_v8  ;;  %8446 = vmatprep.subr.bf16.mxu0 %v26117_v9  ;;  %v26190_v8 = vld [vmem:[%s34951_s3 + $0xe88] ss:$8 sps:$4 sm:$0xff]   ;;  %v26195_v9 = vld [vmem:[%s34951_s3 + $0x1a94] ss:$8 sps:$4 sm:$0xff]  }
 0x3f9   : > { %5090 = vmatprep.subr.bf16.mxu1 %v26120_v10  ;;  %v26198_v10 = vld [vmem:[%s34951_s3 + $0xe9c] ss:$8 sps:$4 sm:$0xff]  }
 0x3fb   : > { %8447 = vmatpush1.bf16.msra.mxu0 %v26115_v11  ;;  %v26193_v11 = vld [vmem:[%s34951_s3 + $0x1a90] ss:$8 sps:$4 sm:$0xff]  }
 0x3fc   : > { %5091 = vmatpush1.bf16.msra.mxu1 %v26118_v12  ;;  %8448 = vmatprep.subr.bf16.mxu0 %v26123_v13  ;;  %v26196_v12 = vld [vmem:[%s34951_s3 + $0xe98] ss:$8 sps:$4 sm:$0xff]   ;;  %v26201_v13 = vld [vmem:[%s34951_s3 + $0x1aa4] ss:$8 sps:$4 sm:$0xff]  }
 0x3fd   : > { %5103 = vmatprep.subr.bf16.mxu1 %v26126_v14  ;;  %v26204_v14 = vld [vmem:[%s34951_s3 + $0xeac] ss:$8 sps:$4 sm:$0xff]  }
 0x3ff   : > { %5093 = vmatmul.mubr.bf16.vlgmr.msra.gmra.mrb[20].mxu1 %v28430_v60  ;;  %8449 = vmatpush1.bf16.msra.mxu0 %v26121_v15  ;;  %v26199_v15 = vld [vmem:[%s34951_s3 + $0x1aa0] ss:$8 sps:$4 sm:$0xff]  }
 0x400   : > { %5104 = vmatpush1.bf16.msra.mxu1 %v26124_v16  ;;  %5135 = vmatprep.mubr.bf16.mxu1 %v28436_v63  ;;  %v26202_v16 = vld [vmem:[%s34951_s3 + $0xea8] ss:$8 sps:$4 sm:$0xff]  }
 0x401   : > { %8450 = vmatprep.subr.bf16.mxu0 %v26129_v17  ;;  %5105 = vmatprep.subr.bf16.mxu1 %v26132_v18  ;;  %v26207_v17 = vld [vmem:[%s34951_s3 + $0x1ab4] ss:$8 sps:$4 sm:$0xff]  }
 0x402   : > { %v26210_v18 = vld [vmem:[%s34951_s3 + $0xebc] ss:$8 sps:$4 sm:$0xff]  }
 0x403   : > { %8451 = vmatpush1.bf16.msra.mxu0 %v26127_v19  ;;  %v26205_v19 = vld [vmem:[%s34951_s3 + $0x1ab0] ss:$8 sps:$4 sm:$0xff]  }
 0x404   : > { %5106 = vmatpush1.bf16.msra.mxu1 %v26130_v20  ;;  %8452 = vmatprep.subr.bf16.mxu0 %v26135_v21  ;;  %v26208_v20 = vld [vmem:[%s34951_s3 + $0xeb8] ss:$8 sps:$4 sm:$0xff]   ;;  %v26213_v21 = vld [vmem:[%s34951_s3 + $0x1ac4] ss:$8 sps:$4 sm:$0xff]  }
 0x405   : > { %5107 = vmatprep.subr.bf16.mxu1 %v26138_v22  ;;  %v26216_v22 = vld [vmem:[%s34951_s3 + $0xecc] ss:$8 sps:$4 sm:$0xff]  }
 0x407   : > { %8453 = vmatpush1.bf16.msra.mxu0 %v26133_v23  ;;  %v26211_v23 = vld [vmem:[%s34951_s3 + $0x1ac0] ss:$8 sps:$4 sm:$0xff]  }
 0x408   : > { %5108 = vmatpush1.bf16.msra.mxu1 %v26136_v24  ;;  %8454 = vmatprep.subr.bf16.mxu0 %v26141_v26  ;;  %v26214_v24 = vld [vmem:[%s34951_s3 + $0xec8] ss:$8 sps:$4 sm:$0xff]   ;;  %v26219_v26 = vld [vmem:[%s34951_s3 + $0x1ad4] ss:$8 sps:$4 sm:$0xff]  }
 0x409   : > { %5109 = vmatprep.subr.bf16.mxu1 %v26144_v27  ;;  %v26222_v27 = vld [vmem:[%s34951_s3 + $0xedc] ss:$8 sps:$4 sm:$0xff]  }
 0x40b   : > { %8455 = vmatpush1.bf16.msra.mxu0 %v26139_v29  ;;  %v26217_v29 = vld [vmem:[%s34951_s3 + $0x1ad0] ss:$8 sps:$4 sm:$0xff]  }
 0x40c   : > { %5110 = vmatpush1.bf16.msra.mxu1 %v26142_v30  ;;  %8456 = vmatprep.subr.bf16.mxu0 %v26147_v31  ;;  %v26220_v30 = vld [vmem:[%s34951_s3 + $0xed8] ss:$8 sps:$4 sm:$0xff]   ;;  %v26225_v31 = vld [vmem:[%s34951_s3 + $0x1ae4] ss:$8 sps:$4 sm:$0xff]  }
 0x40d   : > { %5111 = vmatprep.subr.bf16.mxu1 %v26150_v36  ;;  %v26228_v36 = vld [vmem:[%s34951_s3 + $0xeec] ss:$8 sps:$4 sm:$0xff]  }
 0x40f   : > { %8457 = vmatpush1.bf16.msra.mxu0 %v26145_v37  ;;  %v26223_v37 = vld [vmem:[%s34951_s3 + $0x1ae0] ss:$8 sps:$4 sm:$0xff]  }
 0x410   : > { %5112 = vmatpush1.bf16.msra.mxu1 %v26148_v40  ;;  %8458 = vmatprep.subr.bf16.mxu0 %v26153_v41  ;;  %v26226_v40 = vld [vmem:[%s34951_s3 + $0xee8] ss:$8 sps:$4 sm:$0xff]   ;;  %v26231_v41 = vld [vmem:[%s34951_s3 + $0x1af4] ss:$8 sps:$4 sm:$0xff]  }
 0x411   : > { %5113 = vmatprep.subr.bf16.mxu1 %v26156_v42  ;;  %v26234_v42 = vld [vmem:[%s34951_s3 + $0xefc] ss:$8 sps:$4 sm:$0xff]  }
 0x413   : > { %8459 = vmatpush1.bf16.msra.mxu0 %v26151_v43  ;;  %v26229_v43 = vld [vmem:[%s34951_s3 + $0x1af0] ss:$8 sps:$4 sm:$0xff]  }
 0x414   : > { %5114 = vmatpush1.bf16.msra.mxu1 %v26154_v44  ;;  %8460 = vmatprep.subr.bf16.mxu0 %v26159_v45  ;;  %v26232_v44 = vld [vmem:[%s34951_s3 + $0xef8] ss:$8 sps:$4 sm:$0xff]   ;;  %v26237_v45 = vld [vmem:[%s34951_s3 + $0x1b04] ss:$8 sps:$4 sm:$0xff]  }
 0x415   : > { %5115 = vmatprep.subr.bf16.mxu1 %v26162_v46  ;;  %v26240_v46 = vld [vmem:[%s34951_s3 + $0xf0c] ss:$8 sps:$4 sm:$0xff]  }
 0x417   : > { %8461 = vmatpush1.bf16.msra.mxu0 %v26157_v32  ;;  %v26235_v32 = vld [vmem:[%s34951_s3 + $0x1b00] ss:$8 sps:$4 sm:$0xff]  }
 0x418   : > { %5116 = vmatpush1.bf16.msra.mxu1 %v26160_v47  ;;  %8462 = vmatprep.subr.bf16.mxu0 %v26165_v48  ;;  %v26238_v47 = vld [vmem:[%s34951_s3 + $0xf08] ss:$8 sps:$4 sm:$0xff]   ;;  %v26243_v48 = vld [vmem:[%s34951_s3 + $0x1b14] ss:$8 sps:$4 sm:$0xff]  }
 0x419   : > { %5117 = vmatprep.subr.bf16.mxu1 %v26168_v49  ;;  %v26246_v49 = vld [vmem:[%s34951_s3 + $0xf1c] ss:$8 sps:$4 sm:$0xff]  }
 0x41b   : > { %8463 = vmatpush1.bf16.msra.mxu0 %v26163_v50  ;;  %v26241_v50 = vld [vmem:[%s34951_s3 + $0x1b10] ss:$8 sps:$4 sm:$0xff]  }
 0x41c   : > { %5118 = vmatpush1.bf16.msra.mxu1 %v26166_v51  ;;  %8464 = vmatprep.subr.bf16.mxu0 %v26171_v52  ;;  %v26244_v51 = vld [vmem:[%s34951_s3 + $0xf18] ss:$8 sps:$4 sm:$0xff]   ;;  %v26249_v52 = vld [vmem:[%s34951_s3 + $0x1b24] ss:$8 sps:$4 sm:$0xff]  }
 0x41d   : > { %5119 = vmatprep.subr.bf16.mxu1 %v26174_v53  ;;  %v26252_v53 = vld [vmem:[%s34951_s3 + $0xf2c] ss:$8 sps:$4 sm:$0xff]  }
 0x41f   : > { %8465 = vmatpush1.bf16.msra.mxu0 %v26169_v33  ;;  %v26247_v33 = vld [vmem:[%s34951_s3 + $0x1b20] ss:$8 sps:$4 sm:$0xff]  }
 0x420   : > { %5120 = vmatpush1.bf16.msra.mxu1 %v26172_v55  ;;  %8466 = vmatprep.subr.bf16.mxu0 %v26177_v56  ;;  %v26250_v55 = vld [vmem:[%s34951_s3 + $0xf28] ss:$8 sps:$4 sm:$0xff]   ;;  %v26255_v56 = vld [vmem:[%s34951_s3 + $0x1b34] ss:$8 sps:$4 sm:$0xff]  }
 0x421   : > { %5121 = vmatprep.subr.bf16.mxu1 %v26180_v57  ;;  %v26258_v57 = vld [vmem:[%s34951_s3 + $0xf3c] ss:$8 sps:$4 sm:$0xff]  }
 0x423   : > { %8467 = vmatpush1.bf16.msra.mxu0 %v26175_v58  ;;  %v26253_v58 = vld [vmem:[%s34951_s3 + $0x1b30] ss:$8 sps:$4 sm:$0xff]  }
 0x424   : > { %5122 = vmatpush1.bf16.msra.mxu1 %v26178_v59  ;;  %8468 = vmatprep.subr.bf16.mxu0 %v26183_v1  ;;  %v26256_v59 = vld [vmem:[%s34951_s3 + $0xf38] ss:$8 sps:$4 sm:$0xff]   ;;  %v26261_v1 = vld [vmem:[%s34951_s3 + $0x1b44] ss:$8 sps:$4 sm:$0xff]  }
 0x425   : > { %5123 = vmatprep.subr.bf16.mxu1 %v26186_v2  ;;  %v26264_v2 = vld [vmem:[%s34951_s3 + $0xf4c] ss:$8 sps:$4 sm:$0xff]  }
 0x427   : > { %8469 = vmatpush1.bf16.msra.mxu0 %v26181_v3  ;;  %v26259_v3 = vld [vmem:[%s34951_s3 + $0x1b40] ss:$8 sps:$4 sm:$0xff]  }
 0x428   : > { %5124 = vmatpush1.bf16.msra.mxu1 %v26184_v4  ;;  %8470 = vmatprep.subr.bf16.mxu0 %v26189_v5  ;;  %v26262_v4 = vld [vmem:[%s34951_s3 + $0xf48] ss:$8 sps:$4 sm:$0xff]   ;;  %v26267_v5 = vld [vmem:[%s34951_s3 + $0x1b54] ss:$8 sps:$4 sm:$0xff]  }
 0x429   : > { %5125 = vmatprep.subr.bf16.mxu1 %v26192_v6  ;;  %v26270_v6 = vld [vmem:[%s34951_s3 + $0xf5c] ss:$8 sps:$4 sm:$0xff]  }
 0x42b   : > { %8471 = vmatpush1.bf16.msra.mxu0 %v26187_v7  ;;  %v26265_v7 = vld [vmem:[%s34951_s3 + $0x1b50] ss:$8 sps:$4 sm:$0xff]  }
 0x42c   : > { %5126 = vmatpush1.bf16.msra.mxu1 %v26190_v8  ;;  %8472 = vmatprep.subr.bf16.mxu0 %v26195_v9  ;;  %v26268_v8 = vld [vmem:[%s34951_s3 + $0xf58] ss:$8 sps:$4 sm:$0xff]   ;;  %v26273_v9 = vld [vmem:[%s34951_s3 + $0x1b64] ss:$8 sps:$4 sm:$0xff]  }
 0x42d   : > { %5127 = vmatprep.subr.bf16.mxu1 %v26198_v10  ;;  %v26276_v10 = vld [vmem:[%s34951_s3 + $0xf6c] ss:$8 sps:$4 sm:$0xff]  }
 0x42f   : > { %8473 = vmatpush1.bf16.msra.mxu0 %v26193_v11  ;;  %v26271_v11 = vld [vmem:[%s34951_s3 + $0x1b60] ss:$8 sps:$4 sm:$0xff]  }
 0x430   : > { %5128 = vmatpush1.bf16.msra.mxu1 %v26196_v12  ;;  %8474 = vmatprep.subr.bf16.mxu0 %v26201_v13  ;;  %v26274_v12 = vld [vmem:[%s34951_s3 + $0xf68] ss:$8 sps:$4 sm:$0xff]   ;;  %v26279_v13 = vld [vmem:[%s34951_s3 + $0x1b74] ss:$8 sps:$4 sm:$0xff]  }
 0x431   : > { %5129 = vmatprep.subr.bf16.mxu1 %v26204_v14  ;;  %v26282_v14 = vld [vmem:[%s34951_s3 + $0xf7c] ss:$8 sps:$4 sm:$0xff]  }
 0x433   : > { %8475 = vmatpush1.bf16.msra.mxu0 %v26199_v15  ;;  %v26277_v15 = vld [vmem:[%s34951_s3 + $0x1b70] ss:$8 sps:$4 sm:$0xff]  }
 0x434   : > { %5130 = vmatpush1.bf16.msra.mxu1 %v26202_v16  ;;  %8487 = vmatprep.subr.bf16.mxu0 %v26207_v17  ;;  %v26280_v16 = vld [vmem:[%s34951_s3 + $0xf78] ss:$8 sps:$4 sm:$0xff]   ;;  %v26285_v17 = vld [vmem:[%s34951_s3 + $0x1b84] ss:$8 sps:$4 sm:$0xff]  }
 0x435   : > { %5131 = vmatprep.subr.bf16.mxu1 %v26210_v18  ;;  %v26288_v18 = vld [vmem:[%s34951_s3 + $0xf8c] ss:$8 sps:$4 sm:$0xff]  }
 0x436   : > { %8477 = vmatmul.mubr.bf16.vlgmr.msra.gmra.mrb[24].mxu0 %v28430_v60 }
 0x437   : > { %8488 = vmatpush1.bf16.msra.mxu0 %v26205_v19  ;;  %8519 = vmatprep.mubr.bf16.mxu0 %v28436_v63  ;;  %v26283_v19 = vld [vmem:[%s34951_s3 + $0x1b80] ss:$8 sps:$4 sm:$0xff]  }
 0x438   : > { %5132 = vmatpush1.bf16.msra.mxu1 %v26208_v20  ;;  %8489 = vmatprep.subr.bf16.mxu0 %v26213_v21  ;;  %v26286_v20 = vld [vmem:[%s34951_s3 + $0xf88] ss:$8 sps:$4 sm:$0xff]   ;;  %v26291_v21 = vld [vmem:[%s34951_s3 + $0x1b94] ss:$8 sps:$4 sm:$0xff]  }
 0x439   : > { %5133 = vmatprep.subr.bf16.mxu1 %v26216_v22  ;;  %v26294_v22 = vld [vmem:[%s34951_s3 + $0xf9c] ss:$8 sps:$4 sm:$0xff]  }
 0x43b   : > { %8490 = vmatpush1.bf16.msra.mxu0 %v26211_v23  ;;  %v26289_v23 = vld [vmem:[%s34951_s3 + $0x1b90] ss:$8 sps:$4 sm:$0xff]  }
 0x43c   : > { %5134 = vmatpush1.bf16.msra.mxu1 %v26214_v24  ;;  %8491 = vmatprep.subr.bf16.mxu0 %v26219_v26  ;;  %v26292_v24 = vld [vmem:[%s34951_s3 + $0xf98] ss:$8 sps:$4 sm:$0xff]   ;;  %v26297_v26 = vld [vmem:[%s34951_s3 + $0x1ba4] ss:$8 sps:$4 sm:$0xff]  }
 0x43d   : > { %5146 = vmatprep.subr.bf16.mxu1 %v26222_v27  ;;  %v26300_v27 = vld [vmem:[%s34951_s3 + $0xfac] ss:$8 sps:$4 sm:$0xff]  }
 0x43f   : > { %5136 = vmatmul.mubr.bf16.vlgmr.msra.gmra.mrb[20].mxu1 %v28432_v61  ;;  %8492 = vmatpush1.bf16.msra.mxu0 %v26217_v29  ;;  %v26295_v29 = vld [vmem:[%s34951_s3 + $0x1ba0] ss:$8 sps:$4 sm:$0xff]  }
 0x440   : > { %5147 = vmatpush1.bf16.msra.mxu1 %v26220_v30  ;;  %5178 = vmatprep.mubr.bf16.mxu1 %v28480_v38  ;;  %v26298_v30 = vld [vmem:[%s34951_s3 + $0xfa8] ss:$8 sps:$4 sm:$0xff]  }
 0x441   : > { %8493 = vmatprep.subr.bf16.mxu0 %v26225_v31  ;;  %5148 = vmatprep.subr.bf16.mxu1 %v26228_v36  ;;  %v26303_v31 = vld [vmem:[%s34951_s3 + $0x1bb4] ss:$8 sps:$4 sm:$0xff]  }
 0x442   : > { %v26306_v36 = vld [vmem:[%s34951_s3 + $0xfbc] ss:$8 sps:$4 sm:$0xff]  }
 0x443   : > { %8494 = vmatpush1.bf16.msra.mxu0 %v26223_v37  ;;  %v26301_v37 = vld [vmem:[%s34951_s3 + $0x1bb0] ss:$8 sps:$4 sm:$0xff]  }
 0x444   : > { %5149 = vmatpush1.bf16.msra.mxu1 %v26226_v40  ;;  %8495 = vmatprep.subr.bf16.mxu0 %v26231_v41  ;;  %v26304_v40 = vld [vmem:[%s34951_s3 + $0xfb8] ss:$8 sps:$4 sm:$0xff]   ;;  %v26309_v41 = vld [vmem:[%s34951_s3 + $0x1bc4] ss:$8 sps:$4 sm:$0xff]  }
 0x445   : > { %5150 = vmatprep.subr.bf16.mxu1 %v26234_v42  ;;  %v26312_v42 = vld [vmem:[%s34951_s3 + $0xfcc] ss:$8 sps:$4 sm:$0xff]  }
 0x447   : > { %8496 = vmatpush1.bf16.msra.mxu0 %v26229_v43  ;;  %v26307_v43 = vld [vmem:[%s34951_s3 + $0x1bc0] ss:$8 sps:$4 sm:$0xff]  }
 0x448   : > { %5151 = vmatpush1.bf16.msra.mxu1 %v26232_v44  ;;  %8497 = vmatprep.subr.bf16.mxu0 %v26237_v45  ;;  %v26310_v44 = vld [vmem:[%s34951_s3 + $0xfc8] ss:$8 sps:$4 sm:$0xff]   ;;  %v26315_v45 = vld [vmem:[%s34951_s3 + $0x1bd4] ss:$8 sps:$4 sm:$0xff]  }
 0x449   : > { %5152 = vmatprep.subr.bf16.mxu1 %v26240_v46  ;;  %v26318_v46 = vld [vmem:[%s34951_s3 + $0xfdc] ss:$8 sps:$4 sm:$0xff]  }
 0x44b   : > { %8498 = vmatpush1.bf16.msra.mxu0 %v26235_v32  ;;  %v26313_v32 = vld [vmem:[%s34951_s3 + $0x1bd0] ss:$8 sps:$4 sm:$0xff]  }
 0x44c   : > { %5153 = vmatpush1.bf16.msra.mxu1 %v26238_v47  ;;  %8499 = vmatprep.subr.bf16.mxu0 %v26243_v48  ;;  %v26316_v47 = vld [vmem:[%s34951_s3 + $0xfd8] ss:$8 sps:$4 sm:$0xff]   ;;  %v26321_v48 = vld [vmem:[%s34951_s3 + $0x1be4] ss:$8 sps:$4 sm:$0xff]  }
 0x44d   : > { %5154 = vmatprep.subr.bf16.mxu1 %v26246_v49  ;;  %v26324_v49 = vld [vmem:[%s34951_s3 + $0xfec] ss:$8 sps:$4 sm:$0xff]  }
 0x44f   : > { %8500 = vmatpush1.bf16.msra.mxu0 %v26241_v50  ;;  %v26319_v50 = vld [vmem:[%s34951_s3 + $0x1be0] ss:$8 sps:$4 sm:$0xff]  }
 0x450   : > { %5155 = vmatpush1.bf16.msra.mxu1 %v26244_v51  ;;  %8501 = vmatprep.subr.bf16.mxu0 %v26249_v52  ;;  %v26322_v51 = vld [vmem:[%s34951_s3 + $0xfe8] ss:$8 sps:$4 sm:$0xff]   ;;  %v26327_v52 = vld [vmem:[%s34951_s3 + $0x1bf4] ss:$8 sps:$4 sm:$0xff]  }
 0x451   : > { %5156 = vmatprep.subr.bf16.mxu1 %v26252_v53  ;;  %v26330_v53 = vld [vmem:[%s34951_s3 + $0xffc] ss:$8 sps:$4 sm:$0xff]  }
 0x453   : > { %8502 = vmatpush1.bf16.msra.mxu0 %v26247_v33  ;;  %v26325_v33 = vld [vmem:[%s34951_s3 + $0x1bf0] ss:$8 sps:$4 sm:$0xff]  }
 0x454   : > { %5157 = vmatpush1.bf16.msra.mxu1 %v26250_v55  ;;  %8503 = vmatprep.subr.bf16.mxu0 %v26255_v56  ;;  %v26328_v55 = vld [vmem:[%s34951_s3 + $0xff8] ss:$8 sps:$4 sm:$0xff]   ;;  %v26333_v56 = vld [vmem:[%s34951_s3 + $0x1c04] ss:$8 sps:$4 sm:$0xff]  }
 0x455   : > { %5158 = vmatprep.subr.bf16.mxu1 %v26258_v57  ;;  %v26336_v57 = vld [vmem:[%s34951_s3 + $0x100c] ss:$8 sps:$4 sm:$0xff]  }
 0x457   : > { %8504 = vmatpush1.bf16.msra.mxu0 %v26253_v58  ;;  %v26331_v58 = vld [vmem:[%s34951_s3 + $0x1c00] ss:$8 sps:$4 sm:$0xff]  }
 0x458   : > { %5159 = vmatpush1.bf16.msra.mxu1 %v26256_v59  ;;  %8505 = vmatprep.subr.bf16.mxu0 %v26261_v1  ;;  %v26334_v59 = vld [vmem:[%s34951_s3 + $0x1008] ss:$8 sps:$4 sm:$0xff]   ;;  %v26339_v1 = vld [vmem:[%s34951_s3 + $0x1c14] ss:$8 sps:$4 sm:$0xff]  }
 0x459   : > { %5160 = vmatprep.subr.bf16.mxu1 %v26264_v2  ;;  %v26342_v2 = vld [vmem:[%s34951_s3 + $0x101c] ss:$8 sps:$4 sm:$0xff]  }
 0x45b   : > { %8506 = vmatpush1.bf16.msra.mxu0 %v26259_v3  ;;  %v26337_v3 = vld [vmem:[%s34951_s3 + $0x1c10] ss:$8 sps:$4 sm:$0xff]  }
 0x45c   : > { %5161 = vmatpush1.bf16.msra.mxu1 %v26262_v4  ;;  %8507 = vmatprep.subr.bf16.mxu0 %v26267_v5  ;;  %v26340_v4 = vld [vmem:[%s34951_s3 + $0x1018] ss:$8 sps:$4 sm:$0xff]   ;;  %v26345_v5 = vld [vmem:[%s34951_s3 + $0x1c24] ss:$8 sps:$4 sm:$0xff]  }
 0x45d   : > { %5162 = vmatprep.subr.bf16.mxu1 %v26270_v6  ;;  %v26348_v6 = vld [vmem:[%s34951_s3 + $0x102c] ss:$8 sps:$4 sm:$0xff]  }
 0x45f   : > { %8508 = vmatpush1.bf16.msra.mxu0 %v26265_v7  ;;  %v26343_v7 = vld [vmem:[%s34951_s3 + $0x1c20] ss:$8 sps:$4 sm:$0xff]  }
 0x460   : > { %5163 = vmatpush1.bf16.msra.mxu1 %v26268_v8  ;;  %8509 = vmatprep.subr.bf16.mxu0 %v26273_v9  ;;  %v26346_v8 = vld [vmem:[%s34951_s3 + $0x1028] ss:$8 sps:$4 sm:$0xff]   ;;  %v26351_v9 = vld [vmem:[%s34951_s3 + $0x1c34] ss:$8 sps:$4 sm:$0xff]  }
 0x461   : > { %5164 = vmatprep.subr.bf16.mxu1 %v26276_v10  ;;  %v26354_v10 = vld [vmem:[%s34951_s3 + $0x103c] ss:$8 sps:$4 sm:$0xff]  }
 0x463   : > { %8510 = vmatpush1.bf16.msra.mxu0 %v26271_v11  ;;  %v26349_v11 = vld [vmem:[%s34951_s3 + $0x1c30] ss:$8 sps:$4 sm:$0xff]  }
 0x464   : > { %5165 = vmatpush1.bf16.msra.mxu1 %v26274_v12  ;;  %8511 = vmatprep.subr.bf16.mxu0 %v26279_v13  ;;  %v26352_v12 = vld [vmem:[%s34951_s3 + $0x1038] ss:$8 sps:$4 sm:$0xff]   ;;  %v26357_v13 = vld [vmem:[%s34951_s3 + $0x1c44] ss:$8 sps:$4 sm:$0xff]  }
 0x465   : > { %5166 = vmatprep.subr.bf16.mxu1 %v26282_v14  ;;  %v26360_v14 = vld [vmem:[%s34951_s3 + $0x104c] ss:$8 sps:$4 sm:$0xff]  }
 0x467   : > { %8512 = vmatpush1.bf16.msra.mxu0 %v26277_v15  ;;  %v26355_v15 = vld [vmem:[%s34951_s3 + $0x1c40] ss:$8 sps:$4 sm:$0xff]  }
 0x468   : > { %5167 = vmatpush1.bf16.msra.mxu1 %v26280_v16  ;;  %8513 = vmatprep.subr.bf16.mxu0 %v26285_v17  ;;  %v26358_v16 = vld [vmem:[%s34951_s3 + $0x1048] ss:$8 sps:$4 sm:$0xff]   ;;  %v26363_v17 = vld [vmem:[%s34951_s3 + $0x1c54] ss:$8 sps:$4 sm:$0xff]  }
 0x469   : > { %5168 = vmatprep.subr.bf16.mxu1 %v26288_v18  ;;  %v26366_v18 = vld [vmem:[%s34951_s3 + $0x105c] ss:$8 sps:$4 sm:$0xff]  }
 0x46b   : > { %8514 = vmatpush1.bf16.msra.mxu0 %v26283_v19  ;;  %v26361_v19 = vld [vmem:[%s34951_s3 + $0x1c50] ss:$8 sps:$4 sm:$0xff]  }
 0x46c   : > { %5169 = vmatpush1.bf16.msra.mxu1 %v26286_v20  ;;  %8515 = vmatprep.subr.bf16.mxu0 %v26291_v21  ;;  %v26364_v20 = vld [vmem:[%s34951_s3 + $0x1058] ss:$8 sps:$4 sm:$0xff]   ;;  %v26369_v21 = vld [vmem:[%s34951_s3 + $0x1c64] ss:$8 sps:$4 sm:$0xff]  }
 0x46d   : > { %5170 = vmatprep.subr.bf16.mxu1 %v26294_v22  ;;  %v26372_v22 = vld [vmem:[%s34951_s3 + $0x106c] ss:$8 sps:$4 sm:$0xff]  }
 0x46f   : > { %8516 = vmatpush1.bf16.msra.mxu0 %v26289_v23  ;;  %v26367_v23 = vld [vmem:[%s34951_s3 + $0x1c60] ss:$8 sps:$4 sm:$0xff]  }
 0x470   : > { %5171 = vmatpush1.bf16.msra.mxu1 %v26292_v24  ;;  %8517 = vmatprep.subr.bf16.mxu0 %v26297_v26  ;;  %v26370_v24 = vld [vmem:[%s34951_s3 + $0x1068] ss:$8 sps:$4 sm:$0xff]   ;;  %v26375_v26 = vld [vmem:[%s34951_s3 + $0x1c74] ss:$8 sps:$4 sm:$0xff]  }
 0x471   : > { %5172 = vmatprep.subr.bf16.mxu1 %v26300_v27  ;;  %v26378_v27 = vld [vmem:[%s34951_s3 + $0x107c] ss:$8 sps:$4 sm:$0xff]  }
 0x473   : > { %8518 = vmatpush1.bf16.msra.mxu0 %v26295_v29  ;;  %v26373_v29 = vld [vmem:[%s34951_s3 + $0x1c70] ss:$8 sps:$4 sm:$0xff]  }
 0x474   : > { %5173 = vmatpush1.bf16.msra.mxu1 %v26298_v30  ;;  %8530 = vmatprep.subr.bf16.mxu0 %v26303_v31  ;;  %v26376_v30 = vld [vmem:[%s34951_s3 + $0x1078] ss:$8 sps:$4 sm:$0xff]   ;;  %v26381_v31 = vld [vmem:[%s34951_s3 + $0x1c84] ss:$8 sps:$4 sm:$0xff]  }
 0x475   : > { %5174 = vmatprep.subr.bf16.mxu1 %v26306_v36  ;;  %v26384_v36 = vld [vmem:[%s34951_s3 + $0x108c] ss:$8 sps:$4 sm:$0xff]  }
 0x476   : > { %8520 = vmatmul.mubr.bf16.vlgmr.msra.gmra.mrb[24].mxu0 %v28432_v61 }
 0x477   : > { %8531 = vmatpush1.bf16.msra.mxu0 %v26301_v37  ;;  %8562 = vmatprep.mubr.bf16.mxu0 %v28480_v38  ;;  %v26379_v37 = vld [vmem:[%s34951_s3 + $0x1c80] ss:$8 sps:$4 sm:$0xff]  }
 0x478   : > { %5175 = vmatpush1.bf16.msra.mxu1 %v26304_v40  ;;  %8532 = vmatprep.subr.bf16.mxu0 %v26309_v41  ;;  %v26382_v40 = vld [vmem:[%s34951_s3 + $0x1088] ss:$8 sps:$4 sm:$0xff]   ;;  %v26387_v41 = vld [vmem:[%s34951_s3 + $0x1c94] ss:$8 sps:$4 sm:$0xff]  }
 0x479   : > { %5176 = vmatprep.subr.bf16.mxu1 %v26312_v42  ;;  %v26390_v42 = vld [vmem:[%s34951_s3 + $0x109c] ss:$8 sps:$4 sm:$0xff]  }
 0x47b   : > { %8533 = vmatpush1.bf16.msra.mxu0 %v26307_v43  ;;  %v26385_v43 = vld [vmem:[%s34951_s3 + $0x1c90] ss:$8 sps:$4 sm:$0xff]  }
 0x47c   : > { %5177 = vmatpush1.bf16.msra.mxu1 %v26310_v44  ;;  %8534 = vmatprep.subr.bf16.mxu0 %v26315_v45  ;;  %v26388_v44 = vld [vmem:[%s34951_s3 + $0x1098] ss:$8 sps:$4 sm:$0xff]   ;;  %v26393_v45 = vld [vmem:[%s34951_s3 + $0x1ca4] ss:$8 sps:$4 sm:$0xff]  }
 0x47d   : > { %5189 = vmatprep.subr.bf16.mxu1 %v26318_v46  ;;  %v26396_v46 = vld [vmem:[%s34951_s3 + $0x10ac] ss:$8 sps:$4 sm:$0xff]  }
 0x47f   : > { %5179 = vmatmul.mubr.bf16.vlgmr.msra.gmra.mrb[20].mxu1 %v28470_v34  ;;  %8535 = vmatpush1.bf16.msra.mxu0 %v26313_v32  ;;  %v26391_v32 = vld [vmem:[%s34951_s3 + $0x1ca0] ss:$8 sps:$4 sm:$0xff]  }
 0x480   : > { %5190 = vmatpush1.bf16.msra.mxu1 %v26316_v47  ;;  %5221 = vmatprep.mubr.bf16.mxu1 %v28482_v39  ;;  %v26394_v47 = vld [vmem:[%s34951_s3 + $0x10a8] ss:$8 sps:$4 sm:$0xff]  }
 0x481   : > { %8536 = vmatprep.subr.bf16.mxu0 %v26321_v48  ;;  %5191 = vmatprep.subr.bf16.mxu1 %v26324_v49  ;;  %v26399_v48 = vld [vmem:[%s34951_s3 + $0x1cb4] ss:$8 sps:$4 sm:$0xff]  }
 0x482   : > { %v26402_v49 = vld [vmem:[%s34951_s3 + $0x10bc] ss:$8 sps:$4 sm:$0xff]  }
 0x483   : > { %8537 = vmatpush1.bf16.msra.mxu0 %v26319_v50  ;;  %v26397_v50 = vld [vmem:[%s34951_s3 + $0x1cb0] ss:$8 sps:$4 sm:$0xff]  }
 0x484   : > { %5192 = vmatpush1.bf16.msra.mxu1 %v26322_v51  ;;  %8538 = vmatprep.subr.bf16.mxu0 %v26327_v52  ;;  %v26400_v51 = vld [vmem:[%s34951_s3 + $0x10b8] ss:$8 sps:$4 sm:$0xff]   ;;  %v26405_v52 = vld [vmem:[%s34951_s3 + $0x1cc4] ss:$8 sps:$4 sm:$0xff]  }
 0x485   : > { %5193 = vmatprep.subr.bf16.mxu1 %v26330_v53  ;;  %v26408_v53 = vld [vmem:[%s34951_s3 + $0x10cc] ss:$8 sps:$4 sm:$0xff]  }
 0x487   : > { %8539 = vmatpush1.bf16.msra.mxu0 %v26325_v33  ;;  %v26403_v33 = vld [vmem:[%s34951_s3 + $0x1cc0] ss:$8 sps:$4 sm:$0xff]  }
 0x488   : > { %5194 = vmatpush1.bf16.msra.mxu1 %v26328_v55  ;;  %8540 = vmatprep.subr.bf16.mxu0 %v26333_v56  ;;  %v26406_v55 = vld [vmem:[%s34951_s3 + $0x10c8] ss:$8 sps:$4 sm:$0xff]   ;;  %v26411_v56 = vld [vmem:[%s34951_s3 + $0x1cd4] ss:$8 sps:$4 sm:$0xff]  }
 0x489   : > { %5195 = vmatprep.subr.bf16.mxu1 %v26336_v57  ;;  %v26414_v57 = vld [vmem:[%s34951_s3 + $0x10dc] ss:$8 sps:$4 sm:$0xff]  }
 0x48b   : > { %8541 = vmatpush1.bf16.msra.mxu0 %v26331_v58  ;;  %v26409_v58 = vld [vmem:[%s34951_s3 + $0x1cd0] ss:$8 sps:$4 sm:$0xff]  }
 0x48c   : > { %5196 = vmatpush1.bf16.msra.mxu1 %v26334_v59  ;;  %8542 = vmatprep.subr.bf16.mxu0 %v26339_v1  ;;  %v26412_v59 = vld [vmem:[%s34951_s3 + $0x10d8] ss:$8 sps:$4 sm:$0xff]   ;;  %v26417_v1 = vld [vmem:[%s34951_s3 + $0x1ce4] ss:$8 sps:$4 sm:$0xff]  }
 0x48d   : > { %5197 = vmatprep.subr.bf16.mxu1 %v26342_v2  ;;  %v26420_v2 = vld [vmem:[%s34951_s3 + $0x10ec] ss:$8 sps:$4 sm:$0xff]  }
 0x48f   : > { %8543 = vmatpush1.bf16.msra.mxu0 %v26337_v3  ;;  %v26415_v3 = vld [vmem:[%s34951_s3 + $0x1ce0] ss:$8 sps:$4 sm:$0xff]  }
 0x490   : > { %5198 = vmatpush1.bf16.msra.mxu1 %v26340_v4  ;;  %8544 = vmatprep.subr.bf16.mxu0 %v26345_v5  ;;  %v26418_v4 = vld [vmem:[%s34951_s3 + $0x10e8] ss:$8 sps:$4 sm:$0xff]   ;;  %v26423_v5 = vld [vmem:[%s34951_s3 + $0x1cf4] ss:$8 sps:$4 sm:$0xff]  }
 0x491   : > { %5199 = vmatprep.subr.bf16.mxu1 %v26348_v6  ;;  %v26426_v6 = vld [vmem:[%s34951_s3 + $0x10fc] ss:$8 sps:$4 sm:$0xff]  }
 0x493   : > { %8545 = vmatpush1.bf16.msra.mxu0 %v26343_v7  ;;  %v21694_v7 = vld [vmem:[%s34951_s3 + $0x1118] sm:$0x11] }
 0x494   : > { %5200 = vmatpush1.bf16.msra.mxu1 %v26346_v8  ;;  %8546 = vmatprep.subr.bf16.mxu0 %v26351_v9  ;;  %v26421_v8 = vld [vmem:[%s34951_s3 + $0x1cf0] ss:$8 sps:$4 sm:$0xff]  }
 0x495   : > { %5201 = vmatprep.subr.bf16.mxu1 %v26354_v10  ;;  %v26424_v9 = vld [vmem:[%s34951_s3 + $0x10f8] ss:$8 sps:$4 sm:$0xff]   ;;  %v26429_v10 = vld [vmem:[%s34951_s3 + $0x1d04] ss:$8 sps:$4 sm:$0xff]  }
 0x497   : > { %8547 = vmatpush1.bf16.msra.mxu0 %v26349_v11  ;;  %v26432_v11 = vld [vmem:[%s34951_s3 + $0x110c] ss:$8 sps:$4 sm:$0xff]  }
 0x498   : > { %5202 = vmatpush1.bf16.msra.mxu1 %v26352_v12  ;;  %8548 = vmatprep.subr.bf16.mxu0 %v26357_v13  ;;  %v21832_v12 = vcombine.high %v21694_v7, %v21694_v7  ;;  %v26427_v13 = vld [vmem:[%s34951_s3 + $0x1d00] ss:$8 sps:$4 sm:$0xff]  }
 0x499   : > { %5203 = vmatprep.subr.bf16.mxu1 %v26360_v14  ;;  %v26430_v14 = vld [vmem:[%s34951_s3 + $0x1108] ss:$8 sps:$4 sm:$0xff]  }
 0x49b   : > { %8549 = vmatpush1.bf16.msra.mxu0 %v26355_v15  ;;  %v26435_v15 = vld [vmem:[%s34951_s3 + $0x1d14] ss:$8 sps:$4 sm:$0xff]  }
 0x49c   : > { %5204 = vmatpush1.bf16.msra.mxu1 %v26358_v16  ;;  %8550 = vmatprep.subr.bf16.mxu0 %v26363_v17  ;;  %v21831_v16 = vcombine.low %v21694_v7, %v21694_v7  ;;  %v26484_v7 = vld [vmem:[%s34951_s3 + $0x2254] ss:$8 sps:$4 sm:$0xff]  }
 0x49d   : > { %5205 = vmatprep.subr.bf16.mxu1 %v26366_v18  ;;  %v5058_v18 = vand.u32 %v21832_v12, %v29093_v28  ;;  %v26488_v12 = vld [vmem:[%s34951_s3 + $0x2270] ss:$8 sps:$4 sm:$0xff]  }
 0x49f   : > { %8551 = vmatpush1.bf16.msra.mxu0 %v26361_v19 }
 0x4a0   : > { %5206 = vmatpush1.bf16.msra.mxu1 %v26364_v20  ;;  %8552 = vmatprep.subr.bf16.mxu0 %v26369_v21  ;;  %v26433_v21 = vld [vmem:[%s34951_s3 + $0x1d10] ss:$8 sps:$4 sm:$0xff]  }
 0x4a1   : > { %5207 = vmatprep.subr.bf16.mxu1 %v26372_v22 }
 0x4a3   : > { %8553 = vmatpush1.bf16.msra.mxu0 %v26367_v23 }
 0x4a4   : > { %5208 = vmatpush1.bf16.msra.mxu1 %v26370_v24  ;;  %8554 = vmatprep.subr.bf16.mxu0 %v26375_v26  ;;  %v5055_v24 = vand.u32 %v21831_v16, %v29093_v28  ;;  %v26440_v26 = vld [vmem:[%s34951_s3 + $0x1d24] ss:$8 sps:$4 sm:$0xff]   ;;  %v26494_v16 = vld [vmem:[%s34951_s3 + $0x2290] ss:$8 sps:$4 sm:$0xff]  }
 0x4a5   : > { %5209 = vmatprep.subr.bf16.mxu1 %v26378_v27 }
 0x4a7   : > { %8555 = vmatpush1.bf16.msra.mxu0 %v26373_v29  ;;  %v26438_v29 = vld [vmem:[%s34951_s3 + $0x1d20] ss:$8 sps:$4 sm:$0xff]  }
 0x4a8   : > { %5210 = vmatpush1.bf16.msra.mxu1 %v26376_v30  ;;  %8556 = vmatprep.subr.bf16.mxu0 %v26381_v31  ;;  %v26443_v30 = vld [vmem:[%s34951_s3 + $0x1d34] ss:$8 sps:$4 sm:$0xff]   ;;  %v26441_v31 = vld [vmem:[%s34951_s3 + $0x1d30] ss:$8 sps:$4 sm:$0xff]  }
 0x4a9   : > { %5211 = vmatprep.subr.bf16.mxu1 %v26384_v36  ;;  %v26446_v36 = vld [vmem:[%s34951_s3 + $0x1d44] ss:$8 sps:$4 sm:$0xff]  }
 0x4ab   : > { %8557 = vmatpush1.bf16.msra.mxu0 %v26379_v37  ;;  %v26444_v37 = vld [vmem:[%s34951_s3 + $0x1d40] ss:$8 sps:$4 sm:$0xff]  }
 0x4ac   : > { %5212 = vmatpush1.bf16.msra.mxu1 %v26382_v40  ;;  %8558 = vmatprep.subr.bf16.mxu0 %v26387_v41  ;;  %v26449_v40 = vld [vmem:[%s34951_s3 + $0x1d54] ss:$8 sps:$4 sm:$0xff]   ;;  %v26447_v41 = vld [vmem:[%s34951_s3 + $0x1d50] ss:$8 sps:$4 sm:$0xff]  }
 0x4ad   : > { %5213 = vmatprep.subr.bf16.mxu1 %v26390_v42  ;;  %v26452_v42 = vld [vmem:[%s34951_s3 + $0x1d64] ss:$8 sps:$4 sm:$0xff]  }
 0x4af   : > { %8559 = vmatpush1.bf16.msra.mxu0 %v26385_v43  ;;  %v26450_v43 = vld [vmem:[%s34951_s3 + $0x1d60] ss:$8 sps:$4 sm:$0xff]  }
 0x4b0   : > { %5214 = vmatpush1.bf16.msra.mxu1 %v26388_v44  ;;  %8560 = vmatprep.subr.bf16.mxu0 %v26393_v45  ;;  %v26455_v44 = vld [vmem:[%s34951_s3 + $0x1d74] ss:$8 sps:$4 sm:$0xff]   ;;  %v26453_v45 = vld [vmem:[%s34951_s3 + $0x1d70] ss:$8 sps:$4 sm:$0xff]  }
 0x4b1   : > { %5215 = vmatprep.subr.bf16.mxu1 %v26396_v46  ;;  %v26458_v46 = vld [vmem:[%s34951_s3 + $0x1d84] ss:$8 sps:$4 sm:$0xff]  }
 0x4b3   : > { %8561 = vmatpush1.bf16.msra.mxu0 %v26391_v32  ;;  %v26456_v32 = vld [vmem:[%s34951_s3 + $0x1d80] ss:$8 sps:$4 sm:$0xff]  }
 0x4b4   : > { %5216 = vmatpush1.bf16.msra.mxu1 %v26394_v47  ;;  %8573 = vmatprep.subr.bf16.mxu0 %v26399_v48  ;;  %v26461_v47 = vld [vmem:[%s34951_s3 + $0x1d94] ss:$8 sps:$4 sm:$0xff]   ;;  %v26459_v48 = vld [vmem:[%s34951_s3 + $0x1d90] ss:$8 sps:$4 sm:$0xff]  }
 0x4b5   : > { %5217 = vmatprep.subr.bf16.mxu1 %v26402_v49  ;;  %v26464_v49 = vld [vmem:[%s34951_s3 + $0x1da4] ss:$8 sps:$4 sm:$0xff]  }
 0x4b6   : > { %8563 = vmatmul.mubr.bf16.vlgmr.msra.gmra.mrb[24].mxu0 %v28470_v34 }
 0x4b7   : > { %8574 = vmatpush1.bf16.msra.mxu0 %v26397_v50  ;;  %8605 = vmatprep.mubr.bf16.mxu0 %v28482_v39  ;;  %v26462_v50 = vld [vmem:[%s34951_s3 + $0x1da0] ss:$8 sps:$4 sm:$0xff]  }
 0x4b8   : > { %5218 = vmatpush1.bf16.msra.mxu1 %v26400_v51  ;;  %8575 = vmatprep.subr.bf16.mxu0 %v26405_v52  ;;  %v26467_v51 = vld [vmem:[%s34951_s3 + $0x1db4] ss:$8 sps:$4 sm:$0xff]   ;;  %v26465_v52 = vld [vmem:[%s34951_s3 + $0x1db0] ss:$8 sps:$4 sm:$0xff]  }
 0x4b9   : > { %5219 = vmatprep.subr.bf16.mxu1 %v26408_v53  ;;  %v26470_v53 = vld [vmem:[%s34951_s3 + $0x1dc4] ss:$8 sps:$4 sm:$0xff]  }
 0x4bb   : > { %8576 = vmatpush1.bf16.msra.mxu0 %v26403_v33  ;;  %v26468_v33 = vld [vmem:[%s34951_s3 + $0x1dc0] ss:$8 sps:$4 sm:$0xff]  }
 0x4bc   : > { %5220 = vmatpush1.bf16.msra.mxu1 %v26406_v55  ;;  %8577 = vmatprep.subr.bf16.mxu0 %v26411_v56  ;;  %v26473_v55 = vld [vmem:[%s34951_s3 + $0x1dd4] ss:$8 sps:$4 sm:$0xff]  }
 0x4bd   : > { %5232 = vmatprep.subr.bf16.mxu1 %v26414_v57  ;;  %v22546_v56 = vld [vmem:[%s34951_s3 + $0x1df0] sm:$0x11] }
 0x4be   : > { %v26471_v57 = vld [vmem:[%s34951_s3 + $0x1dd0] ss:$8 sps:$4 sm:$0xff]  }
 0x4bf   : > { %5222 = vmatmul.mubr.bf16.vlgmr.msra.gmra.mrb[20].mxu1 %v28472_v35  ;;  %8578 = vmatpush1.bf16.msra.mxu0 %v26409_v58  ;;  %v26476_v58 = vld [vmem:[%s34951_s3 + $0x1de4] ss:$8 sps:$4 sm:$0xff]  }
 0x4c0   : > { %5233 = vmatpush1.bf16.msra.mxu1 %v26412_v59  ;;  %8579 = vmatprep.subr.bf16.mxu0 %v26417_v1  ;;  %v22684_v59 = vcombine.high %v22546_v56, %v22546_v56  ;;  %v26474_v1 = vld [vmem:[%s34951_s3 + $0x1de0] ss:$8 sps:$4 sm:$0xff]  }
 0x4c1   : > { %5234 = vmatprep.subr.bf16.mxu1 %v26420_v2  ;;  %5264 = vmatprep.mubr.bf16.mxu1 %v28055_v0  ;;  %v22683_v2 = vcombine.low %v22546_v56, %v22546_v56  ;;  %v26538_v56 = vld [vmem:[%s34951_s3 + $0x2374] ss:$8 sps:$4 sm:$0xff]  }
 0x4c3   : > { %8580 = vmatpush1.bf16.msra.mxu0 %v26415_v3  ;;  %v8442_v3 = vand.u32 %v22684_v59, %v29093_v28  ;;  %v26539_v59 = vld [vmem:[%s34951_s3 + $0x2380] ss:$8 sps:$4 sm:$0xff]  }
 0x4c4   : > { %5235 = vmatpush1.bf16.msra.mxu1 %v26418_v4  ;;  %8581 = vmatprep.subr.bf16.mxu0 %v26423_v5  ;;  %v8439_v4 = vand.u32 %v22683_v2, %v29093_v28  ;;  %v26481_v5 = vld [vmem:[%s34951_s3 + $0x2244] ss:$8 sps:$4 sm:$0xff]   ;;  %v26542_v2 = vld [vmem:[%s34951_s3 + $0x2390] ss:$8 sps:$4 sm:$0xff]  }
 0x4c5   : > { %5236 = vmatprep.subr.bf16.mxu1 %v26426_v6  ;;  %v26479_v6 = vld [vmem:[%s34951_s3 + $0x2240] ss:$8 sps:$4 sm:$0xff]  }
 0x4c7   : > { %8582 = vmatpush1.bf16.msra.mxu0 %v26421_v8  ;;  %v26482_v8 = vld [vmem:[%s34951_s3 + $0x2250] ss:$8 sps:$4 sm:$0xff]  }
 0x4c8   : > { %5237 = vmatpush1.bf16.msra.mxu1 %v26424_v9  ;;  %8583 = vmatprep.subr.bf16.mxu0 %v26429_v10  ;;  %v26487_v9 = vld [vmem:[%s34951_s3 + $0x2264] ss:$8 sps:$4 sm:$0xff]   ;;  %v26485_v10 = vld [vmem:[%s34951_s3 + $0x2260] ss:$8 sps:$4 sm:$0xff]  }
 0x4c9   : > { %v30738_v17 = vpop.f32.mrb[20].mxu0  ;;  %5238 = vmatprep.subr.bf16.mxu1 %v26432_v11  ;;  %v26490_v11 = vld [vmem:[%s34951_s3 + $0x2274] ss:$8 sps:$4 sm:$0xff]  }
 0x4ca   : > { %v30741_v19 = vpop.f32.mrb[21].mxu0 }
 0x4cb   : > { %v30743_v20 = vpop.f32.mrb[22].mxu0  ;;  %8584 = vmatpush1.bf16.msra.mxu0 %v26427_v13  ;;  %v26493_v13 = vld [vmem:[%s34951_s3 + $0x2284] ss:$8 sps:$4 sm:$0xff]  }
 0x4cc   : > { %v6403_v22 = vpack.c.bf16 %v30743_v20, %v30738_v17  ;;  %5239 = vmatpush1.bf16.msra.mxu1 %v26430_v14  ;;  %v30750_v23 = vpop.f32.mrb[23].mxu0  ;;  %8585 = vmatprep.subr.bf16.mxu0 %v26435_v15  ;;  %v26491_v14 = vld [vmem:[%s34951_s3 + $0x2280] ss:$8 sps:$4 sm:$0xff]   ;;  %v26496_v15 = vld [vmem:[%s34951_s3 + $0x2294] ss:$8 sps:$4 sm:$0xff]  }
 0x4cd   : > { %v6404_v27 = vpack.c.bf16 %v30750_v23, %v30741_v19  ;;  %5240 = vmatprep.subr.bf16.mxu1 %v5058_v18  ;;  %v26499_v18 = vld [vmem:[%s34951_s3 + $0x22a4] ss:$8 sps:$4 sm:$0xff]   ;;  %v26609_v19 = vld [vmem:[%s34951_s3 + $0x24f0] ss:$8 sps:$4 sm:$0xff]   ;;  %v26613_v17 = vld [vmem:[%s34951_s3 + $0x2500] ss:$8 sps:$4 sm:$0xff]  }
 0x4ce   : > { %v26612_v23 = vld [vmem:[%s34952_s4 + $0x38] sm:$0xff]  }
 0x4cf   : > { %8586 = vmatpush1.bf16.msra.mxu0 %v26433_v21  ;;  %v26497_v21 = vld [vmem:[%s34951_s3 + $0x22a0] ss:$8 sps:$4 sm:$0xff]   ;;  %v26618_v20 = vld [vmem:[%s34951_s3 + $0x2514] ss:$8 sps:$4 sm:$0xff]  }
 0x4d0   : > { %5241 = vmatpush1.bf16.msra.mxu1 %v5055_v24  ;;  %8587 = vmatprep.subr.bf16.mxu0 %v26440_v26  ;;  %v26502_v24 = vld [vmem:[%s34951_s3 + $0x22b4] ss:$8 sps:$4 sm:$0xff]   ;;  %v26500_v26 = vld [vmem:[%s34951_s3 + $0x22b0] ss:$8 sps:$4 sm:$0xff]  }
 0x4d3   : > { %21833 = vmatmul.mubr.msk.bf16.vlgmr.msra.gmra.mrb[20].mxu1 %vm1679_vm3, %v28510_v54  ;;  %8588 = vmatpush1.bf16.msra.mxu0 %v26438_v29  ;;  %v26505_v29 = vld [vmem:[%s34951_s3 + $0x22c4] ss:$8 sps:$4 sm:$0xff]  }
 0x4d4   : > { %8589 = vmatprep.subr.bf16.mxu0 %v26443_v30  ;;  %5330 = vmatprep.mubr.bf16.mxu1 %v28055_v0  ;;  %v26503_v30 = vld [vmem:[%s34951_s3 + $0x22c0] ss:$8 sps:$4 sm:$0xff]  }
 0x4d7   : > { %8590 = vmatpush1.bf16.msra.mxu0 %v26441_v31  ;;  %v26508_v31 = vld [vmem:[%s34951_s3 + $0x22d4] ss:$8 sps:$4 sm:$0xff]  }
 0x4d8   : > { %8591 = vmatprep.subr.bf16.mxu0 %v26446_v36  ;;  %v26506_v36 = vld [vmem:[%s34951_s3 + $0x22d0] ss:$8 sps:$4 sm:$0xff]  }
 0x4db   : > { %8592 = vmatpush1.bf16.msra.mxu0 %v26444_v37  ;;  %v26511_v37 = vld [vmem:[%s34951_s3 + $0x22e4] ss:$8 sps:$4 sm:$0xff]  }
 0x4dc   : > { %8593 = vmatprep.subr.bf16.mxu0 %v26449_v40  ;;  %v26509_v40 = vld [vmem:[%s34951_s3 + $0x22e0] ss:$8 sps:$4 sm:$0xff]  }
 0x4df   : > { %8594 = vmatpush1.bf16.msra.mxu0 %v26447_v41  ;;  %v26514_v41 = vld [vmem:[%s34951_s3 + $0x22f4] ss:$8 sps:$4 sm:$0xff]  }
 0x4e0   : > { %8595 = vmatprep.subr.bf16.mxu0 %v26452_v42  ;;  %v26512_v42 = vld [vmem:[%s34951_s3 + $0x22f0] ss:$8 sps:$4 sm:$0xff]  }
 0x4e3   : > { %8596 = vmatpush1.bf16.msra.mxu0 %v26450_v43  ;;  %v26517_v43 = vld [vmem:[%s34951_s3 + $0x2304] ss:$8 sps:$4 sm:$0xff]  }
 0x4e4   : > { %8597 = vmatprep.subr.bf16.mxu0 %v26455_v44  ;;  %v26515_v44 = vld [vmem:[%s34951_s3 + $0x2300] ss:$8 sps:$4 sm:$0xff]  }
 0x4e7   : > { %8598 = vmatpush1.bf16.msra.mxu0 %v26453_v45  ;;  %v26520_v45 = vld [vmem:[%s34951_s3 + $0x2314] ss:$8 sps:$4 sm:$0xff]  }
 0x4e8   : > { %8599 = vmatprep.subr.bf16.mxu0 %v26458_v46  ;;  %v26518_v46 = vld [vmem:[%s34951_s3 + $0x2310] ss:$8 sps:$4 sm:$0xff]  }
 0x4eb   : > { %8600 = vmatpush1.bf16.msra.mxu0 %v26456_v32  ;;  %v26523_v32 = vld [vmem:[%s34951_s3 + $0x2324] ss:$8 sps:$4 sm:$0xff]  }
 0x4ec   : > { %8601 = vmatprep.subr.bf16.mxu0 %v26461_v47  ;;  %v26521_v47 = vld [vmem:[%s34951_s3 + $0x2320] ss:$8 sps:$4 sm:$0xff]  }
 0x4ef   : > { %8602 = vmatpush1.bf16.msra.mxu0 %v26459_v48  ;;  %v26526_v48 = vld [vmem:[%s34951_s3 + $0x2334] ss:$8 sps:$4 sm:$0xff]  }
 0x4f0   : > { %8603 = vmatprep.subr.bf16.mxu0 %v26464_v49  ;;  %v26524_v49 = vld [vmem:[%s34951_s3 + $0x2330] ss:$8 sps:$4 sm:$0xff]  }
 0x4f3   : > { %8604 = vmatpush1.bf16.msra.mxu0 %v26462_v50  ;;  %v26529_v50 = vld [vmem:[%s34951_s3 + $0x2344] ss:$8 sps:$4 sm:$0xff]  }
 0x4f4   : > { %8616 = vmatprep.subr.bf16.mxu0 %v26467_v51  ;;  %v26527_v51 = vld [vmem:[%s34951_s3 + $0x2340] ss:$8 sps:$4 sm:$0xff]  }
 0x4f6   : > { %8606 = vmatmul.mubr.bf16.vlgmr.msra.gmra.mrb[24].mxu0 %v28472_v35 }
 0x4f7   : > { %8617 = vmatpush1.bf16.msra.mxu0 %v26465_v52  ;;  %8648 = vmatprep.mubr.bf16.mxu0 %v28055_v0  ;;  %v26532_v52 = vld [vmem:[%s34951_s3 + $0x2354] ss:$8 sps:$4 sm:$0xff]  }
 0x4f8   : > { %8618 = vmatprep.subr.bf16.mxu0 %v26470_v53  ;;  %v26530_v53 = vld [vmem:[%s34951_s3 + $0x2350] ss:$8 sps:$4 sm:$0xff]  }
 0x4fb   : > { %8619 = vmatpush1.bf16.msra.mxu0 %v26468_v33  ;;  %v26535_v33 = vld [vmem:[%s34951_s3 + $0x2364] ss:$8 sps:$4 sm:$0xff]  }
 0x4fc   : > { %8620 = vmatprep.subr.bf16.mxu0 %v26473_v55  ;;  %v26533_v55 = vld [vmem:[%s34951_s3 + $0x2360] ss:$8 sps:$4 sm:$0xff]  }
 0x4ff   : > { %8621 = vmatpush1.bf16.msra.mxu0 %v26471_v57  ;;  %v26536_v57 = vld [vmem:[%s34951_s3 + $0x2370] ss:$8 sps:$4 sm:$0xff]  }
 0x500   : > { %8622 = vmatprep.subr.bf16.mxu0 %v26476_v58  ;;  %v26541_v58 = vld [vmem:[%s34951_s3 + $0x2384] ss:$8 sps:$4 sm:$0xff]  }
 0x503   : > { %8623 = vmatpush1.bf16.msra.mxu0 %v26474_v1  ;;  %v26544_v1 = vld [vmem:[%s34951_s3 + $0x2394] ss:$8 sps:$4 sm:$0xff]  }
 0x504   : > { %8624 = vmatprep.subr.bf16.mxu0 %v8442_v3  ;;  %v26547_v3 = vld [vmem:[%s34951_s3 + $0x23a4] ss:$8 sps:$4 sm:$0xff]  }
 0x507   : > { %8625 = vmatpush1.bf16.msra.mxu0 %v8439_v4  ;;  %v26545_v4 = vld [vmem:[%s34951_s3 + $0x23a0] ss:$8 sps:$4 sm:$0xff]  }
 0x508   : > { %10700 = vmatprep.subr.bf16.mxu0 %v26481_v5  ;;  %v26550_v5 = vld [vmem:[%s34951_s3 + $0x23b4] ss:$8 sps:$4 sm:$0xff]  }
 0x50a   : > { %22685 = vmatmul.mubr.msk.bf16.vlgmr.msra.gmra.mrb[24].mxu0 %vm1679_vm3, %v28510_v54 }
 0x50b   : > { %10701 = vmatpush1.bf16.msra.mxu0 %v26479_v6  ;;  %10732 = vmatprep.mubr.bf16.mxu0 %v28434_v62  ;;  %v26548_v6 = vld [vmem:[%s34951_s3 + $0x23b0] ss:$8 sps:$4 sm:$0xff]  }
 0x50c   : > { %10702 = vmatprep.subr.bf16.mxu0 %v26484_v7  ;;  %v26553_v7 = vld [vmem:[%s34951_s3 + $0x23c4] ss:$8 sps:$4 sm:$0xff]  }
 0x50f   : > { %10703 = vmatpush1.bf16.msra.mxu0 %v26482_v8  ;;  %v26551_v8 = vld [vmem:[%s34951_s3 + $0x23c0] ss:$8 sps:$4 sm:$0xff]  }
 0x510   : > { %10704 = vmatprep.subr.bf16.mxu0 %v26487_v9  ;;  %v26556_v9 = vld [vmem:[%s34951_s3 + $0x23d4] ss:$8 sps:$4 sm:$0xff]  }
 0x513   : > { %10705 = vmatpush1.bf16.msra.mxu0 %v26485_v10  ;;  %v26554_v10 = vld [vmem:[%s34951_s3 + $0x23d0] ss:$8 sps:$4 sm:$0xff]  }
 0x514   : > { %10706 = vmatprep.subr.bf16.mxu0 %v26490_v11  ;;  %v26559_v11 = vld [vmem:[%s34951_s3 + $0x23e4] ss:$8 sps:$4 sm:$0xff]  }
 0x517   : > { %10707 = vmatpush1.bf16.msra.mxu0 %v26488_v12  ;;  %v26557_v12 = vld [vmem:[%s34951_s3 + $0x23e0] ss:$8 sps:$4 sm:$0xff]  }
 0x518   : > { %10708 = vmatprep.subr.bf16.mxu0 %v26493_v13  ;;  %v26562_v13 = vld [vmem:[%s34951_s3 + $0x23f4] ss:$8 sps:$4 sm:$0xff]  }
 0x51b   : > { %10709 = vmatpush1.bf16.msra.mxu0 %v26491_v14  ;;  %v26560_v14 = vld [vmem:[%s34951_s3 + $0x23f0] ss:$8 sps:$4 sm:$0xff]  }
 0x51c   : > { %10710 = vmatprep.subr.bf16.mxu0 %v26496_v15  ;;  %v26565_v15 = vld [vmem:[%s34951_s3 + $0x2404] ss:$8 sps:$4 sm:$0xff]  }
 0x51f   : > { %10711 = vmatpush1.bf16.msra.mxu0 %v26494_v16  ;;  %v26563_v16 = vld [vmem:[%s34951_s3 + $0x2400] ss:$8 sps:$4 sm:$0xff]  }
 0x520   : > { %10712 = vmatprep.subr.bf16.mxu0 %v26499_v18  ;;  %v26568_v18 = vld [vmem:[%s34951_s3 + $0x2414] ss:$8 sps:$4 sm:$0xff]  }
 0x523   : > { %10713 = vmatpush1.bf16.msra.mxu0 %v26497_v21  ;;  %v26566_v21 = vld [vmem:[%s34951_s3 + $0x2410] ss:$8 sps:$4 sm:$0xff]  }
 0x524   : > { %10714 = vmatprep.subr.bf16.mxu0 %v26502_v24  ;;  %v26571_v24 = vld [vmem:[%s34951_s3 + $0x2424] ss:$8 sps:$4 sm:$0xff]  }
 0x527   : > { %10715 = vmatpush1.bf16.msra.mxu0 %v26500_v26  ;;  %v26569_v26 = vld [vmem:[%s34951_s3 + $0x2420] ss:$8 sps:$4 sm:$0xff]  }
 0x528   : > { %10716 = vmatprep.subr.bf16.mxu0 %v26505_v29  ;;  %v26574_v29 = vld [vmem:[%s34951_s3 + $0x2434] ss:$8 sps:$4 sm:$0xff]  }
 0x52b   : > { %10717 = vmatpush1.bf16.msra.mxu0 %v26503_v30  ;;  %v26572_v30 = vld [vmem:[%s34951_s3 + $0x2430] ss:$8 sps:$4 sm:$0xff]  }
 0x52c   : > { %10718 = vmatprep.subr.bf16.mxu0 %v26508_v31  ;;  %v26577_v31 = vld [vmem:[%s34951_s3 + $0x2444] ss:$8 sps:$4 sm:$0xff]  }
 0x52f   : > { %10719 = vmatpush1.bf16.msra.mxu0 %v26506_v36  ;;  %v26575_v36 = vld [vmem:[%s34951_s3 + $0x2440] ss:$8 sps:$4 sm:$0xff]  }
 0x530   : > { %10720 = vmatprep.subr.bf16.mxu0 %v26511_v37  ;;  %v26580_v37 = vld [vmem:[%s34951_s3 + $0x2454] ss:$8 sps:$4 sm:$0xff]  }
 0x533   : > { %10721 = vmatpush1.bf16.msra.mxu0 %v26509_v40  ;;  %v26578_v40 = vld [vmem:[%s34951_s3 + $0x2450] ss:$8 sps:$4 sm:$0xff]  }
 0x534   : > { %10722 = vmatprep.subr.bf16.mxu0 %v26514_v41  ;;  %v26583_v41 = vld [vmem:[%s34951_s3 + $0x2464] ss:$8 sps:$4 sm:$0xff]  }
 0x537   : > { %10723 = vmatpush1.bf16.msra.mxu0 %v26512_v42  ;;  %v26581_v42 = vld [vmem:[%s34951_s3 + $0x2460] ss:$8 sps:$4 sm:$0xff]  }
 0x538   : > { %10724 = vmatprep.subr.bf16.mxu0 %v26517_v43  ;;  %v26586_v43 = vld [vmem:[%s34951_s3 + $0x2474] ss:$8 sps:$4 sm:$0xff]  }
 0x53b   : > { %10725 = vmatpush1.bf16.msra.mxu0 %v26515_v44  ;;  %v26584_v44 = vld [vmem:[%s34951_s3 + $0x2470] ss:$8 sps:$4 sm:$0xff]  }
 0x53c   : > { %10726 = vmatprep.subr.bf16.mxu0 %v26520_v45  ;;  %v26589_v45 = vld [vmem:[%s34951_s3 + $0x2484] ss:$8 sps:$4 sm:$0xff]  }
 0x53f   : > { %10727 = vmatpush1.bf16.msra.mxu0 %v26518_v46  ;;  %v26587_v46 = vld [vmem:[%s34951_s3 + $0x2480] ss:$8 sps:$4 sm:$0xff]  }
 0x540   : > { %10728 = vmatprep.subr.bf16.mxu0 %v26523_v32  ;;  %v26592_v32 = vld [vmem:[%s34951_s3 + $0x2494] ss:$8 sps:$4 sm:$0xff]  }
 0x543   : > { %10729 = vmatpush1.bf16.msra.mxu0 %v26521_v47  ;;  %v26590_v47 = vld [vmem:[%s34951_s3 + $0x2490] ss:$8 sps:$4 sm:$0xff]  }
 0x544   : > { %10730 = vmatprep.subr.bf16.mxu0 %v26526_v48  ;;  %v26595_v48 = vld [vmem:[%s34951_s3 + $0x24a4] ss:$8 sps:$4 sm:$0xff]  }
 0x547   : > { %10731 = vmatpush1.bf16.msra.mxu0 %v26524_v49  ;;  %v26593_v49 = vld [vmem:[%s34951_s3 + $0x24a0] ss:$8 sps:$4 sm:$0xff]  }
 0x548   : > { %10743 = vmatprep.subr.bf16.mxu0 %v26529_v50  ;;  %v26598_v50 = vld [vmem:[%s34951_s3 + $0x24b4] ss:$8 sps:$4 sm:$0xff]  }
 0x54a   : > { %10733 = vmatmul.mubr.bf16.vlgmr.msra.gmra.mrb[28].mxu0 %v28430_v60 }
 0x54b   : > { %10744 = vmatpush1.bf16.msra.mxu0 %v26527_v51  ;;  %10775 = vmatprep.mubr.bf16.mxu0 %v28436_v63  ;;  %v26596_v51 = vld [vmem:[%s34951_s3 + $0x24b0] ss:$8 sps:$4 sm:$0xff]  }
 0x54c   : > { %10745 = vmatprep.subr.bf16.mxu0 %v26532_v52  ;;  %v26601_v52 = vld [vmem:[%s34951_s3 + $0x24c4] ss:$8 sps:$4 sm:$0xff]  }
 0x54f   : > { %10746 = vmatpush1.bf16.msra.mxu0 %v26530_v53 }
 0x550   : > { %10747 = vmatprep.subr.bf16.mxu0 %v26535_v33 }
 0x553   : > { %10748 = vmatpush1.bf16.msra.mxu0 %v26533_v55  ;;  %v26599_v55 = vld [vmem:[%s34951_s3 + $0x24c0] ss:$8 sps:$4 sm:$0xff]  }
 0x554   : > { %10749 = vmatprep.subr.bf16.mxu0 %v26538_v56 }
 0x557   : > { %10750 = vmatpush1.bf16.msra.mxu0 %v26536_v57  ;;  %v26604_v57 = vld [vmem:[%s34951_s3 + $0x24d4] ss:$8 sps:$4 sm:$0xff]  }
 0x558   : > { %10751 = vmatprep.subr.bf16.mxu0 %v26541_v58 }
 0x55b   : > { %10752 = vmatpush1.bf16.msra.mxu0 %v26539_v59 }
 0x55c   : > { %10753 = vmatprep.subr.bf16.mxu0 %v26544_v1 }
 0x55f   : > { %10754 = vmatpush1.bf16.msra.mxu0 %v26542_v2  ;;  %v26602_v2 = vld [vmem:[%s34951_s3 + $0x24d0] ss:$8 sps:$4 sm:$0xff]  }
 0x560   : > { %10755 = vmatprep.subr.bf16.mxu0 %v26547_v3  ;;  %v26605_v3 = vld [vmem:[%s34952_s4 + $0x30] sm:$0xff]  }
 0x563   : > { %10756 = vmatpush1.bf16.msra.mxu0 %v26545_v4  ;;  %v26608_v4 = vld [vmem:[%s34951_s3 + $0x24e4] ss:$8 sps:$4 sm:$0xff]  }
 0x564   : > { %10757 = vmatprep.subr.bf16.mxu0 %v26550_v5  ;;  %v26621_v5 = vld [vmem:[%s34951_s3 + $0x156c] ss:$8 sps:$4 sm:$0xff]  }
 0x567   : > { %10758 = vmatpush1.bf16.msra.mxu0 %v26548_v6  ;;  %v26606_v6 = vld [vmem:[%s34951_s3 + $0x24e0] ss:$8 sps:$4 sm:$0xff]  }
 0x568   : > { %10759 = vmatprep.subr.bf16.mxu0 %v26553_v7  ;;  %v26611_v7 = vld [vmem:[%s34951_s3 + $0x24f4] ss:$8 sps:$4 sm:$0xff]  }
 0x56b   : > { %10760 = vmatpush1.bf16.msra.mxu0 %v26551_v8  ;;  %v26622_v8 = vld [vmem:[%s34952_s4 + $0x40] sm:$0xff]  }
 0x56c   : > { %10761 = vmatprep.subr.bf16.mxu0 %v26556_v9  ;;  %v26625_v9 = vld [vmem:[%s34951_s3 + $0x2524] ss:$8 sps:$4 sm:$0xff]  }
 0x56f   : > { %10762 = vmatpush1.bf16.msra.mxu0 %v26554_v10  ;;  %v26619_v10 = vld [vmem:[%s34951_s3 + $0x1568] ss:$8 sps:$4 sm:$0xff]  }
 0x570   : > { %10763 = vmatprep.subr.bf16.mxu0 %v26559_v11  ;;  %v26628_v11 = vld [vmem:[%s34951_s3 + $0x157c] ss:$8 sps:$4 sm:$0xff]  }
 0x573   : > { %10764 = vmatpush1.bf16.msra.mxu0 %v26557_v12  ;;  %v26623_v12 = vld [vmem:[%s34951_s3 + $0x2520] ss:$8 sps:$4 sm:$0xff]  }
 0x574   : > { %10765 = vmatprep.subr.bf16.mxu0 %v26562_v13  ;;  %v26631_v13 = vld [vmem:[%s34951_s3 + $0x2534] ss:$8 sps:$4 sm:$0xff]  }
 0x577   : > { %10766 = vmatpush1.bf16.msra.mxu0 %v26560_v14  ;;  %v26626_v14 = vld [vmem:[%s34951_s3 + $0x1578] ss:$8 sps:$4 sm:$0xff]  }
 0x578   : > { %10767 = vmatprep.subr.bf16.mxu0 %v26565_v15  ;;  %v26634_v15 = vld [vmem:[%s34951_s3 + $0x158c] ss:$8 sps:$4 sm:$0xff]  }
 0x57b   : > { %10768 = vmatpush1.bf16.msra.mxu0 %v26563_v16  ;;  %v26629_v16 = vld [vmem:[%s34951_s3 + $0x2530] ss:$8 sps:$4 sm:$0xff]  }
 0x57c   : > { %10769 = vmatprep.subr.bf16.mxu0 %v26568_v18  ;;  %v26635_v18 = vld [vmem:[%s34952_s4 + $0x48] sm:$0xff]  }
 0x57f   : > { %10770 = vmatpush1.bf16.msra.mxu0 %v26566_v21  ;;  %v26638_v21 = vld [vmem:[%s34951_s3 + $0x2544] ss:$8 sps:$4 sm:$0xff]  }
 0x580   : > { %10771 = vmatprep.subr.bf16.mxu0 %v26571_v24  ;;  %v26632_v24 = vld [vmem:[%s34951_s3 + $0x1588] ss:$8 sps:$4 sm:$0xff]  }
 0x583   : > { %10772 = vmatpush1.bf16.msra.mxu0 %v26569_v26  ;;  %v26641_v26 = vld [vmem:[%s34951_s3 + $0x159c] ss:$8 sps:$4 sm:$0xff]  }
 0x584   : > { %10773 = vmatprep.subr.bf16.mxu0 %v26574_v29  ;;  %v26636_v29 = vld [vmem:[%s34951_s3 + $0x2540] ss:$8 sps:$4 sm:$0xff]  }
 0x587   : > { %10774 = vmatpush1.bf16.msra.mxu0 %v26572_v30  ;;  %v26644_v30 = vld [vmem:[%s34951_s3 + $0x2554] ss:$8 sps:$4 sm:$0xff]  }
 0x588   : > { %10786 = vmatprep.subr.bf16.mxu0 %v26577_v31  ;;  %v26639_v31 = vld [vmem:[%s34951_s3 + $0x1598] ss:$8 sps:$4 sm:$0xff]  }
 0x58a   : > { %10776 = vmatmul.mubr.bf16.vlgmr.msra.gmra.mrb[28].mxu0 %v28432_v61 }
 0x58b   : > { %10787 = vmatpush1.bf16.msra.mxu0 %v26575_v36  ;;  %10818 = vmatprep.mubr.bf16.mxu0 %v28480_v38  ;;  %v26647_v36 = vld [vmem:[%s34951_s3 + $0x15ac] ss:$8 sps:$4 sm:$0xff]  }
 0x58c   : > { %10788 = vmatprep.subr.bf16.mxu0 %v26580_v37  ;;  %v26642_v37 = vld [vmem:[%s34951_s3 + $0x2550] ss:$8 sps:$4 sm:$0xff]  }
 0x58f   : > { %10789 = vmatpush1.bf16.msra.mxu0 %v26578_v40  ;;  %v26650_v40 = vld [vmem:[%s34951_s3 + $0x2564] ss:$8 sps:$4 sm:$0xff]  }
 0x590   : > { %10790 = vmatprep.subr.bf16.mxu0 %v26583_v41  ;;  %v26645_v41 = vld [vmem:[%s34951_s3 + $0x15a8] ss:$8 sps:$4 sm:$0xff]  }
 0x593   : > { %10791 = vmatpush1.bf16.msra.mxu0 %v26581_v42  ;;  %v26653_v42 = vld [vmem:[%s34951_s3 + $0x15bc] ss:$8 sps:$4 sm:$0xff]  }
 0x594   : > { %10792 = vmatprep.subr.bf16.mxu0 %v26586_v43  ;;  %v26648_v43 = vld [vmem:[%s34951_s3 + $0x2560] ss:$8 sps:$4 sm:$0xff]  }
 0x597   : > { %10793 = vmatpush1.bf16.msra.mxu0 %v26584_v44  ;;  %v26656_v44 = vld [vmem:[%s34951_s3 + $0x2574] ss:$8 sps:$4 sm:$0xff]  }
 0x598   : > { %10794 = vmatprep.subr.bf16.mxu0 %v26589_v45  ;;  %v26651_v45 = vld [vmem:[%s34951_s3 + $0x15b8] ss:$8 sps:$4 sm:$0xff]  }
 0x59b   : > { %10795 = vmatpush1.bf16.msra.mxu0 %v26587_v46  ;;  %v26659_v46 = vld [vmem:[%s34951_s3 + $0x15cc] ss:$8 sps:$4 sm:$0xff]  }
 0x59c   : > { %10796 = vmatprep.subr.bf16.mxu0 %v26592_v32  ;;  %v26654_v32 = vld [vmem:[%s34951_s3 + $0x2570] ss:$8 sps:$4 sm:$0xff]  }
 0x59f   : > { %10797 = vmatpush1.bf16.msra.mxu0 %v26590_v47  ;;  %v26662_v47 = vld [vmem:[%s34951_s3 + $0x2584] ss:$8 sps:$4 sm:$0xff]  }
 0x5a0   : > { %10798 = vmatprep.subr.bf16.mxu0 %v26595_v48  ;;  %v26657_v48 = vld [vmem:[%s34951_s3 + $0x15c8] ss:$8 sps:$4 sm:$0xff]  }
 0x5a3   : > { %10799 = vmatpush1.bf16.msra.mxu0 %v26593_v49  ;;  %v26665_v49 = vld [vmem:[%s34951_s3 + $0x15dc] ss:$8 sps:$4 sm:$0xff]  }
 0x5a4   : > { %10800 = vmatprep.subr.bf16.mxu0 %v26598_v50  ;;  %v26660_v50 = vld [vmem:[%s34951_s3 + $0x2580] ss:$8 sps:$4 sm:$0xff]  }
 0x5a6   : > { %v5266_v53 = vpop.f32.mrb[20].mxu1 }
 0x5a7   : > { %v5268_v33 = vpop.f32.mrb[21].mxu1  ;;  %10801 = vmatpush1.bf16.msra.mxu0 %v26596_v51  ;;  %v26668_v51 = vld [vmem:[%s34951_s3 + $0x2594] ss:$8 sps:$4 sm:$0xff]  }
 0x5a8   : > { %v5270_v56 = vpop.f32.mrb[22].mxu1  ;;  %10802 = vmatprep.subr.bf16.mxu0 %v26601_v52  ;;  %v26663_v52 = vld [vmem:[%s34951_s3 + $0x15d8] ss:$8 sps:$4 sm:$0xff]  }
 0x5a9   : > { %v5275_v58 = vpack.c.bf16 %v5270_v56, %v5266_v53  ;;  %v5272_v59 = vpop.f32.mrb[23].mxu1  ;;  %v26671_v53 = vld [vmem:[%s34951_s3 + $0x15ec] ss:$8 sps:$4 sm:$0xff]  }
 0x5aa   : > { %v5276_v1 = vpack.c.bf16 %v5272_v59, %v5268_v33  ;;  %v26666_v33 = vld [vmem:[%s34951_s3 + $0x2590] ss:$8 sps:$4 sm:$0xff]   ;;  %v26677_v59 = vld [vmem:[%s34951_s3 + $0x15fc] ss:$8 sps:$4 sm:$0xff]  }
 0x5ab   : > { %10803 = vmatpush1.bf16.msra.mxu0 %v26599_v55  ;;  %v26674_v55 = vld [vmem:[%s34951_s3 + $0x25a4] ss:$8 sps:$4 sm:$0xff]  }
 0x5ac   : > { %5298 = vmatprep.subr.bf16.mxu1 %v5276_v1  ;;  %10804 = vmatprep.subr.bf16.mxu0 %v26604_v57  ;;  %v26669_v57 = vld [vmem:[%s34951_s3 + $0x15e8] ss:$8 sps:$4 sm:$0xff]  }
 0x5ad   : > { %5299 = vmatpush1.bf16.msra.mxu1 %v5275_v58 }
 0x5ae   : > { %6426 = vmatprep.subr.bf16.mxu1 %v6404_v27  ;;  %v26615_v27 = vld [vmem:[%s34951_s3 + $0x2504] ss:$8 sps:$4 sm:$0xff]  }
 0x5af   : > { %10805 = vmatpush1.bf16.msra.mxu0 %v26602_v2  ;;  %v26672_v2 = vld [vmem:[%s34951_s3 + $0x25a0] ss:$8 sps:$4 sm:$0xff]  }
 0x5b0   : > { %21840 = vmatmul.mubr.msk.bf16.vlgmr.msra.gmra.mrb[12].mxu1 %vm2974_vm4, %v26605_v3  ;;  %10806 = vmatprep.subr.bf16.mxu0 %v26608_v4 }
 0x5b1   : > { %6427 = vmatpush1.bf16.msra.mxu1 %v6403_v22  ;;  %5340 = vmatprep.mubr.bf16.mxu1 %v28055_v0  ;;  %v26616_v22 = vld [vmem:[%s34951_s3 + $0x2510] ss:$8 sps:$4 sm:$0xff]  }
 0x5b2   : > { %7316 = vmatprep.subr.bf16.mxu1 %v26621_v5  ;;  %v26680_v5 = vld [vmem:[%s34951_s3 + $0x25b4] ss:$8 sps:$4 sm:$0xff]  }
 0x5b3   : > { %10807 = vmatpush1.bf16.msra.mxu0 %v26606_v6 }
 0x5b4   : > { %10808 = vmatprep.subr.bf16.mxu0 %v26611_v7  ;;  %v26675_v7 = vld [vmem:[%s34951_s3 + $0x15f8] ss:$8 sps:$4 sm:$0xff]  }
 0x5b7   : > { %10809 = vmatpush1.bf16.msra.mxu0 %v26609_v19  ;;  %v26683_v19 = vld [vmem:[%s34951_s3 + $0x160c] ss:$8 sps:$4 sm:$0xff]  }
 0x5b8   : > { %21841 = vmatmul.mubr.msk.bf16.gmra.mrb[16].mxu1 %vm2974_vm4, %v26612_v23  ;;  %10810 = vmatprep.subr.bf16.mxu0 %v26615_v27  ;;  %v26678_v23 = vld [vmem:[%s34951_s3 + $0x25b0] ss:$8 sps:$4 sm:$0xff]   ;;  %v26686_v27 = vld [vmem:[%s34951_s3 + $0x25c4] ss:$8 sps:$4 sm:$0xff]  }
 0x5b9   : > { %6458 = vmatprep.mubr.bf16.mxu1 %v28055_v0 }
 0x5bb   : > { %10811 = vmatpush1.bf16.msra.mxu0 %v26613_v17  ;;  %v26681_v17 = vld [vmem:[%s34951_s3 + $0x1608] ss:$8 sps:$4 sm:$0xff]  }
 0x5bc   : > { %10812 = vmatprep.subr.bf16.mxu0 %v26618_v20  ;;  %v26689_v20 = vld [vmem:[%s34951_s3 + $0x161c] ss:$8 sps:$4 sm:$0xff]  }
 0x5bf   : > { %10813 = vmatpush1.bf16.msra.mxu0 %v26616_v22  ;;  %v26684_v22 = vld [vmem:[%s34951_s3 + $0x25c0] ss:$8 sps:$4 sm:$0xff]  }
 0x5c0   : > { %22124 = vmatmul.mubr.msk.bf16.vlgmr.msra.gmra.mrb[12].mxu1 %vm2974_vm4, %v26622_v8  ;;  %10814 = vmatprep.subr.bf16.mxu0 %v26625_v9  ;;  %v26692_v8 = vld [vmem:[%s34951_s3 + $0x25d4] ss:$8 sps:$4 sm:$0xff]   ;;  %v26687_v9 = vld [vmem:[%s34951_s3 + $0x1618] ss:$8 sps:$4 sm:$0xff]  }
 0x5c1   : > { %7317 = vmatpush1.bf16.msra.mxu1 %v26619_v10  ;;  %6468 = vmatprep.mubr.bf16.mxu1 %v28055_v0  ;;  %v26695_v10 = vld [vmem:[%s34951_s3 + $0x162c] ss:$8 sps:$4 sm:$0xff]  }
 0x5c2   : > { %7318 = vmatprep.subr.bf16.mxu1 %v26628_v11  ;;  %v26690_v11 = vld [vmem:[%s34951_s3 + $0x25d0] ss:$8 sps:$4 sm:$0xff]  }
 0x5c3   : > { %10815 = vmatpush1.bf16.msra.mxu0 %v26623_v12  ;;  %v26698_v12 = vld [vmem:[%s34951_s3 + $0x25e4] ss:$8 sps:$4 sm:$0xff]  }
 0x5c4   : > { %10816 = vmatprep.subr.bf16.mxu0 %v26631_v13  ;;  %v26693_v13 = vld [vmem:[%s34951_s3 + $0x1628] ss:$8 sps:$4 sm:$0xff]  }
 0x5c5   : > { %7319 = vmatpush1.bf16.msra.mxu1 %v26626_v14  ;;  %v26701_v14 = vld [vmem:[%s34951_s3 + $0x163c] ss:$8 sps:$4 sm:$0xff]  }
 0x5c6   : > { %7320 = vmatprep.subr.bf16.mxu1 %v26634_v15  ;;  %v26696_v15 = vld [vmem:[%s34951_s3 + $0x25e0] ss:$8 sps:$4 sm:$0xff]  }
 0x5c7   : > { %10817 = vmatpush1.bf16.msra.mxu0 %v26629_v16  ;;  %v26704_v16 = vld [vmem:[%s34951_s3 + $0x25f4] ss:$8 sps:$4 sm:$0xff]  }
 0x5c8   : > { %22125 = vmatmul.mubr.msk.bf16.gmra.mrb[16].mxu1 %vm2974_vm4, %v26635_v18  ;;  %10829 = vmatprep.subr.bf16.mxu0 %v26638_v21  ;;  %v26699_v18 = vld [vmem:[%s34951_s3 + $0x1638] ss:$8 sps:$4 sm:$0xff]   ;;  %v26707_v21 = vld [vmem:[%s34951_s3 + $0x164c] ss:$8 sps:$4 sm:$0xff]  }
 0x5c9   : > { %7321 = vmatpush1.bf16.msra.mxu1 %v26632_v24  ;;  %7348 = vmatprep.mubr.bf16.mxu1 %v28434_v62  ;;  %v26702_v24 = vld [vmem:[%s34951_s3 + $0x25f0] ss:$8 sps:$4 sm:$0xff]  }
 0x5ca   : > { %10819 = vmatmul.mubr.bf16.vlgmr.msra.gmra.mrb[28].mxu0 %v28470_v34  ;;  %7322 = vmatprep.subr.bf16.mxu1 %v26641_v26  ;;  %v26710_v26 = vld [vmem:[%s34951_s3 + $0x2604] ss:$8 sps:$4 sm:$0xff]  }
 0x5cb   : > { %10830 = vmatpush1.bf16.msra.mxu0 %v26636_v29  ;;  %10861 = vmatprep.mubr.bf16.mxu0 %v28482_v39  ;;  %v26705_v29 = vld [vmem:[%s34951_s3 + $0x1648] ss:$8 sps:$4 sm:$0xff]  }
 0x5cc   : > { %10831 = vmatprep.subr.bf16.mxu0 %v26644_v30  ;;  %v26713_v30 = vld [vmem:[%s34951_s3 + $0x165c] ss:$8 sps:$4 sm:$0xff]  }
 0x5cd   : > { %7323 = vmatpush1.bf16.msra.mxu1 %v26639_v31  ;;  %v26708_v31 = vld [vmem:[%s34951_s3 + $0x2600] ss:$8 sps:$4 sm:$0xff]  }
 0x5ce   : > { %7324 = vmatprep.subr.bf16.mxu1 %v26647_v36  ;;  %v26716_v36 = vld [vmem:[%s34951_s3 + $0x2614] ss:$8 sps:$4 sm:$0xff]  }
 0x5cf   : > { %10832 = vmatpush1.bf16.msra.mxu0 %v26642_v37  ;;  %v26711_v37 = vld [vmem:[%s34951_s3 + $0x1658] ss:$8 sps:$4 sm:$0xff]  }
 0x5d0   : > { %10833 = vmatprep.subr.bf16.mxu0 %v26650_v40  ;;  %v26719_v40 = vld [vmem:[%s34951_s3 + $0x166c] ss:$8 sps:$4 sm:$0xff]  }
 0x5d1   : > { %7325 = vmatpush1.bf16.msra.mxu1 %v26645_v41  ;;  %v26714_v41 = vld [vmem:[%s34951_s3 + $0x2610] ss:$8 sps:$4 sm:$0xff]  }
 0x5d2   : > { %7326 = vmatprep.subr.bf16.mxu1 %v26653_v42  ;;  %v26722_v42 = vld [vmem:[%s34951_s3 + $0x2624] ss:$8 sps:$4 sm:$0xff]  }
 0x5d3   : > { %10834 = vmatpush1.bf16.msra.mxu0 %v26648_v43  ;;  %v26717_v43 = vld [vmem:[%s34951_s3 + $0x1668] ss:$8 sps:$4 sm:$0xff]  }
 0x5d4   : > { %10835 = vmatprep.subr.bf16.mxu0 %v26656_v44  ;;  %v26725_v44 = vld [vmem:[%s34951_s3 + $0x167c] ss:$8 sps:$4 sm:$0xff]  }
 0x5d5   : > { %7327 = vmatpush1.bf16.msra.mxu1 %v26651_v45  ;;  %v26720_v45 = vld [vmem:[%s34951_s3 + $0x2620] ss:$8 sps:$4 sm:$0xff]  }
 0x5d6   : > { %7328 = vmatprep.subr.bf16.mxu1 %v26659_v46  ;;  %v26728_v46 = vld [vmem:[%s34951_s3 + $0x2634] ss:$8 sps:$4 sm:$0xff]  }
 0x5d7   : > { %10836 = vmatpush1.bf16.msra.mxu0 %v26654_v32  ;;  %v26723_v32 = vld [vmem:[%s34951_s3 + $0x1678] ss:$8 sps:$4 sm:$0xff]  }
 0x5d8   : > { %10837 = vmatprep.subr.bf16.mxu0 %v26662_v47  ;;  %v26731_v47 = vld [vmem:[%s34951_s3 + $0x168c] ss:$8 sps:$4 sm:$0xff]  }
 0x5d9   : > { %7329 = vmatpush1.bf16.msra.mxu1 %v26657_v48  ;;  %v26726_v48 = vld [vmem:[%s34951_s3 + $0x2630] ss:$8 sps:$4 sm:$0xff]  }
 0x5da   : > { %7330 = vmatprep.subr.bf16.mxu1 %v26665_v49  ;;  %v26734_v49 = vld [vmem:[%s34951_s3 + $0x2644] ss:$8 sps:$4 sm:$0xff]  }
 0x5db   : > { %10838 = vmatpush1.bf16.msra.mxu0 %v26660_v50  ;;  %v26729_v50 = vld [vmem:[%s34951_s3 + $0x1688] ss:$8 sps:$4 sm:$0xff]  }
 0x5dc   : > { %10839 = vmatprep.subr.bf16.mxu0 %v26668_v51  ;;  %v26737_v51 = vld [vmem:[%s34951_s3 + $0x169c] ss:$8 sps:$4 sm:$0xff]  }
 0x5dd   : > { %7331 = vmatpush1.bf16.msra.mxu1 %v26663_v52  ;;  %v31256_v56 = vpop.f32.mrb[24].mxu0  ;;  %v26732_v52 = vld [vmem:[%s34951_s3 + $0x2640] ss:$8 sps:$4 sm:$0xff]  }
 0x5de   : > { %v31261_v58 = vpop.f32.mrb[25].mxu0  ;;  %7332 = vmatprep.subr.bf16.mxu1 %v26671_v53  ;;  %v26740_v53 = vld [vmem:[%s34951_s3 + $0x2654] ss:$8 sps:$4 sm:$0xff]  }
 0x5df   : > { %v31266_v1 = vpop.f32.mrb[26].mxu0  ;;  %10840 = vmatpush1.bf16.msra.mxu0 %v26666_v33  ;;  %v26735_v33 = vld [vmem:[%s34951_s3 + $0x1698] ss:$8 sps:$4 sm:$0xff]  }
 0x5e0   : > { %v8659_v3 = vpack.c.bf16 %v31266_v1, %v31256_v56  ;;  %v31273_v4 = vpop.f32.mrb[27].mxu0  ;;  %10841 = vmatprep.subr.bf16.mxu0 %v26674_v55  ;;  %v26743_v55 = vld [vmem:[%s34951_s3 + $0x16ac] ss:$8 sps:$4 sm:$0xff]   ;;  %v26897_v56 = vld [vmem:[%s34951_s3 + $0x1df8] ss:$8 sps:$4 sm:$0xff]  }
 0x5e1   : > { %7333 = vmatpush1.bf16.msra.mxu1 %v26669_v57  ;;  %v8660_v6 = vpack.c.bf16 %v31273_v4, %v31261_v58  ;;  %v26738_v57 = vld [vmem:[%s34951_s3 + $0x2650] ss:$8 sps:$4 sm:$0xff]   ;;  %v26900_v58 = vld [vmem:[%s34952_s4 + $0x60] sm:$0xff]   ;;  %v26903_v1 = vld [vmem:[%s34951_s3 + $0x1e0c] ss:$8 sps:$4 sm:$0xff]  }
 0x5e2   : > { %7334 = vmatprep.subr.bf16.mxu1 %v26677_v59  ;;  %v26746_v59 = vld [vmem:[%s34951_s3 + $0x2664] ss:$8 sps:$4 sm:$0xff]  }
 0x5e3   : > { %10842 = vmatpush1.bf16.msra.mxu0 %v26672_v2  ;;  %v26741_v2 = vld [vmem:[%s34951_s3 + $0x16a8] ss:$8 sps:$4 sm:$0xff]   ;;  %v26906_v4 = vld [vmem:[%s34951_s3 + $0x1e1c] ss:$8 sps:$4 sm:$0xff]  }
 0x5e4   : > { %10843 = vmatprep.subr.bf16.mxu0 %v26680_v5  ;;  %v23114_v5 = vld [vmem:[%s34951_s3 + $0x2680] sm:$0x11] }
 0x5e5   : > { %7335 = vmatpush1.bf16.msra.mxu1 %v26675_v7  ;;  %v26749_v7 = vld [vmem:[%s34951_s3 + $0x16bc] ss:$8 sps:$4 sm:$0xff]  }
 0x5e6   : > { %7336 = vmatprep.subr.bf16.mxu1 %v26683_v19  ;;  %v26744_v19 = vld [vmem:[%s34951_s3 + $0x2660] ss:$8 sps:$4 sm:$0xff]  }
 0x5e7   : > { %10844 = vmatpush1.bf16.msra.mxu0 %v26678_v23  ;;  %v26752_v23 = vld [vmem:[%s34951_s3 + $0x2674] ss:$8 sps:$4 sm:$0xff]  }
 0x5e8   : > { %10845 = vmatprep.subr.bf16.mxu0 %v26686_v27  ;;  %v23252_v27 = vcombine.high %v23114_v5, %v23114_v5 }
 0x5e9   : > { %7337 = vmatpush1.bf16.msra.mxu1 %v26681_v17  ;;  %v26747_v17 = vld [vmem:[%s34951_s3 + $0x16b8] ss:$8 sps:$4 sm:$0xff]  }
 0x5ea   : > { %7338 = vmatprep.subr.bf16.mxu1 %v26689_v20  ;;  %v26755_v20 = vld [vmem:[%s34951_s3 + $0x16cc] ss:$8 sps:$4 sm:$0xff]  }
 0x5eb   : > { %10846 = vmatpush1.bf16.msra.mxu0 %v26684_v22  ;;  %v26750_v22 = vld [vmem:[%s34951_s3 + $0x2670] ss:$8 sps:$4 sm:$0xff]  }
 0x5ec   : > { %10847 = vmatprep.subr.bf16.mxu0 %v26692_v8  ;;  %v23251_v8 = vcombine.low %v23114_v5, %v23114_v5  ;;  %v26811_v5 = vld [vmem:[%s34951_s3 + $0x17ec] ss:$8 sps:$4 sm:$0xff]  }
 0x5ed   : > { %7339 = vmatpush1.bf16.msra.mxu1 %v26687_v9  ;;  %v10698_v9 = vand.u32 %v23252_v27, %v29093_v28  ;;  %v26817_v27 = vld [vmem:[%s34951_s3 + $0x180c] ss:$8 sps:$4 sm:$0xff]  }
 0x5ee   : > { %7340 = vmatprep.subr.bf16.mxu1 %v26695_v10  ;;  %v26753_v10 = vld [vmem:[%s34951_s3 + $0x16c8] ss:$8 sps:$4 sm:$0xff]  }
 0x5ef   : > { %10848 = vmatpush1.bf16.msra.mxu0 %v26690_v11  ;;  %v26760_v11 = vld [vmem:[%s34951_s3 + $0x16dc] ss:$8 sps:$4 sm:$0xff]  }
 0x5f0   : > { %10849 = vmatprep.subr.bf16.mxu0 %v26698_v12  ;;  %v10695_v12 = vand.u32 %v23251_v8, %v29093_v28  ;;  %v26823_v8 = vld [vmem:[%s34951_s3 + $0x182c] ss:$8 sps:$4 sm:$0xff]  }
 0x5f1   : > { %7341 = vmatpush1.bf16.msra.mxu1 %v26693_v13  ;;  %v26758_v13 = vld [vmem:[%s34951_s3 + $0x16d8] ss:$8 sps:$4 sm:$0xff]  }
 0x5f2   : > { %7342 = vmatprep.subr.bf16.mxu1 %v26701_v14  ;;  %v26763_v14 = vld [vmem:[%s34951_s3 + $0x16ec] ss:$8 sps:$4 sm:$0xff]  }
 0x5f3   : > { %10850 = vmatpush1.bf16.msra.mxu0 %v26696_v15  ;;  %v26761_v15 = vld [vmem:[%s34951_s3 + $0x16e8] ss:$8 sps:$4 sm:$0xff]  }
 0x5f4   : > { %10851 = vmatprep.subr.bf16.mxu0 %v26704_v16  ;;  %v26766_v16 = vld [vmem:[%s34951_s3 + $0x16fc] ss:$8 sps:$4 sm:$0xff]  }
 0x5f5   : > { %7343 = vmatpush1.bf16.msra.mxu1 %v26699_v18  ;;  %v26764_v18 = vld [vmem:[%s34951_s3 + $0x16f8] ss:$8 sps:$4 sm:$0xff]  }
 0x5f6   : > { %7344 = vmatprep.subr.bf16.mxu1 %v26707_v21  ;;  %v26769_v21 = vld [vmem:[%s34951_s3 + $0x170c] ss:$8 sps:$4 sm:$0xff]  }
 0x5f7   : > { %10852 = vmatpush1.bf16.msra.mxu0 %v26702_v24  ;;  %v26767_v24 = vld [vmem:[%s34951_s3 + $0x1708] ss:$8 sps:$4 sm:$0xff]  }
 0x5f8   : > { %10853 = vmatprep.subr.bf16.mxu0 %v26710_v26  ;;  %v26772_v26 = vld [vmem:[%s34951_s3 + $0x171c] ss:$8 sps:$4 sm:$0xff]  }
 0x5f9   : > { %7345 = vmatpush1.bf16.msra.mxu1 %v26705_v29  ;;  %v26770_v29 = vld [vmem:[%s34951_s3 + $0x1718] ss:$8 sps:$4 sm:$0xff]  }
 0x5fa   : > { %7346 = vmatprep.subr.bf16.mxu1 %v26713_v30  ;;  %v26775_v30 = vld [vmem:[%s34951_s3 + $0x172c] ss:$8 sps:$4 sm:$0xff]  }
 0x5fb   : > { %10854 = vmatpush1.bf16.msra.mxu0 %v26708_v31  ;;  %v26773_v31 = vld [vmem:[%s34951_s3 + $0x1728] ss:$8 sps:$4 sm:$0xff]  }
 0x5fc   : > { %10855 = vmatprep.subr.bf16.mxu0 %v26716_v36  ;;  %v26778_v36 = vld [vmem:[%s34951_s3 + $0x173c] ss:$8 sps:$4 sm:$0xff]  }
 0x5fd   : > { %7347 = vmatpush1.bf16.msra.mxu1 %v26711_v37  ;;  %v26776_v37 = vld [vmem:[%s34951_s3 + $0x1738] ss:$8 sps:$4 sm:$0xff]  }
 0x5fe   : > { %7359 = vmatprep.subr.bf16.mxu1 %v26719_v40  ;;  %v26781_v40 = vld [vmem:[%s34951_s3 + $0x174c] ss:$8 sps:$4 sm:$0xff]  }
 0x5ff   : > { %10856 = vmatpush1.bf16.msra.mxu0 %v26714_v41  ;;  %v26779_v41 = vld [vmem:[%s34951_s3 + $0x1748] ss:$8 sps:$4 sm:$0xff]  }
 0x600   : > { %7349 = vmatmul.mubr.bf16.vlgmr.msra.gmra.mrb[24].mxu1 %v28430_v60  ;;  %10857 = vmatprep.subr.bf16.mxu0 %v26722_v42  ;;  %v26784_v42 = vld [vmem:[%s34951_s3 + $0x175c] ss:$8 sps:$4 sm:$0xff]  }
 0x601   : > { %7360 = vmatpush1.bf16.msra.mxu1 %v26717_v43  ;;  %7391 = vmatprep.mubr.bf16.mxu1 %v28436_v63  ;;  %v26782_v43 = vld [vmem:[%s34951_s3 + $0x1758] ss:$8 sps:$4 sm:$0xff]  }
 0x602   : > { %7361 = vmatprep.subr.bf16.mxu1 %v26725_v44  ;;  %v26787_v44 = vld [vmem:[%s34951_s3 + $0x176c] ss:$8 sps:$4 sm:$0xff]  }
 0x603   : > { %10858 = vmatpush1.bf16.msra.mxu0 %v26720_v45  ;;  %v26785_v45 = vld [vmem:[%s34951_s3 + $0x1768] ss:$8 sps:$4 sm:$0xff]  }
 0x604   : > { %10859 = vmatprep.subr.bf16.mxu0 %v26728_v46  ;;  %v26790_v46 = vld [vmem:[%s34951_s3 + $0x177c] ss:$8 sps:$4 sm:$0xff]  }
 0x605   : > { %7362 = vmatpush1.bf16.msra.mxu1 %v26723_v32  ;;  %v26788_v32 = vld [vmem:[%s34951_s3 + $0x1778] ss:$8 sps:$4 sm:$0xff]  }
 0x606   : > { %7363 = vmatprep.subr.bf16.mxu1 %v26731_v47  ;;  %v26793_v47 = vld [vmem:[%s34951_s3 + $0x178c] ss:$8 sps:$4 sm:$0xff]  }
 0x607   : > { %10860 = vmatpush1.bf16.msra.mxu0 %v26726_v48  ;;  %v26791_v48 = vld [vmem:[%s34951_s3 + $0x1788] ss:$8 sps:$4 sm:$0xff]  }
 0x608   : > { %10872 = vmatprep.subr.bf16.mxu0 %v26734_v49  ;;  %v26796_v49 = vld [vmem:[%s34951_s3 + $0x179c] ss:$8 sps:$4 sm:$0xff]  }
 0x609   : > { %7364 = vmatpush1.bf16.msra.mxu1 %v26729_v50  ;;  %v26794_v50 = vld [vmem:[%s34951_s3 + $0x1798] ss:$8 sps:$4 sm:$0xff]  }
 0x60a   : > { %10862 = vmatmul.mubr.bf16.vlgmr.msra.gmra.mrb[28].mxu0 %v28472_v35  ;;  %7365 = vmatprep.subr.bf16.mxu1 %v26737_v51  ;;  %v26799_v51 = vld [vmem:[%s34951_s3 + $0x17ac] ss:$8 sps:$4 sm:$0xff]  }
 0x60b   : > { %10873 = vmatpush1.bf16.msra.mxu0 %v26732_v52  ;;  %10904 = vmatprep.mubr.bf16.mxu0 %v28055_v0  ;;  %v26797_v52 = vld [vmem:[%s34951_s3 + $0x17a8] ss:$8 sps:$4 sm:$0xff]  }
 0x60c   : > { %10874 = vmatprep.subr.bf16.mxu0 %v26740_v53  ;;  %v26802_v53 = vld [vmem:[%s34951_s3 + $0x17bc] ss:$8 sps:$4 sm:$0xff]  }
 0x60d   : > { %7366 = vmatpush1.bf16.msra.mxu1 %v26735_v33  ;;  %v26800_v33 = vld [vmem:[%s34951_s3 + $0x17b8] ss:$8 sps:$4 sm:$0xff]  }
 0x60e   : > { %7367 = vmatprep.subr.bf16.mxu1 %v26743_v55  ;;  %v26805_v55 = vld [vmem:[%s34951_s3 + $0x17cc] ss:$8 sps:$4 sm:$0xff]  }
 0x60f   : > { %10875 = vmatpush1.bf16.msra.mxu0 %v26738_v57  ;;  %v26803_v57 = vld [vmem:[%s34951_s3 + $0x17c8] ss:$8 sps:$4 sm:$0xff]  }
 0x610   : > { %10876 = vmatprep.subr.bf16.mxu0 %v26746_v59  ;;  %v26808_v59 = vld [vmem:[%s34951_s3 + $0x17dc] ss:$8 sps:$4 sm:$0xff]  }
 0x611   : > { %7368 = vmatpush1.bf16.msra.mxu1 %v26741_v2  ;;  %v26806_v2 = vld [vmem:[%s34951_s3 + $0x17d8] ss:$8 sps:$4 sm:$0xff]  }
 0x612   : > { %7369 = vmatprep.subr.bf16.mxu1 %v26749_v7  ;;  %v26809_v7 = vld [vmem:[%s34951_s3 + $0x17e8] ss:$8 sps:$4 sm:$0xff]  }
 0x613   : > { %10877 = vmatpush1.bf16.msra.mxu0 %v26744_v19  ;;  %v26814_v19 = vld [vmem:[%s34951_s3 + $0x17fc] ss:$8 sps:$4 sm:$0xff]  }
 0x614   : > { %10878 = vmatprep.subr.bf16.mxu0 %v26752_v23  ;;  %v26812_v23 = vld [vmem:[%s34951_s3 + $0x17f8] ss:$8 sps:$4 sm:$0xff]  }
 0x615   : > { %7370 = vmatpush1.bf16.msra.mxu1 %v26747_v17  ;;  %v26815_v17 = vld [vmem:[%s34951_s3 + $0x1808] ss:$8 sps:$4 sm:$0xff]  }
 0x616   : > { %7371 = vmatprep.subr.bf16.mxu1 %v26755_v20  ;;  %v26820_v20 = vld [vmem:[%s34951_s3 + $0x181c] ss:$8 sps:$4 sm:$0xff]  }
 0x617   : > { %10879 = vmatpush1.bf16.msra.mxu0 %v26750_v22  ;;  %v26818_v22 = vld [vmem:[%s34951_s3 + $0x1818] ss:$8 sps:$4 sm:$0xff]  }
 0x618   : > { %10880 = vmatprep.subr.bf16.mxu0 %v10698_v9  ;;  %v26821_v9 = vld [vmem:[%s34951_s3 + $0x1828] ss:$8 sps:$4 sm:$0xff]  }
 0x619   : > { %7372 = vmatpush1.bf16.msra.mxu1 %v26753_v10  ;;  %v26826_v10 = vld [vmem:[%s34951_s3 + $0x183c] ss:$8 sps:$4 sm:$0xff]  }
 0x61a   : > { %7373 = vmatprep.subr.bf16.mxu1 %v26760_v11  ;;  %v26824_v11 = vld [vmem:[%s34951_s3 + $0x1838] ss:$8 sps:$4 sm:$0xff]  }
 0x61b   : > { %10881 = vmatpush1.bf16.msra.mxu0 %v10695_v12  ;;  %v26829_v12 = vld [vmem:[%s34951_s3 + $0x184c] ss:$8 sps:$4 sm:$0xff]  }
 0x61d   : > { %7374 = vmatpush1.bf16.msra.mxu1 %v26758_v13  ;;  %v26827_v13 = vld [vmem:[%s34951_s3 + $0x1848] ss:$8 sps:$4 sm:$0xff]  }
 0x61e   : > { %23253 = vmatmul.mubr.msk.bf16.vlgmr.msra.gmra.mrb[28].mxu0 %vm1679_vm3, %v28510_v54  ;;  %7375 = vmatprep.subr.bf16.mxu1 %v26763_v14  ;;  %v26832_v14 = vld [vmem:[%s34951_s3 + $0x185c] ss:$8 sps:$4 sm:$0xff]  }
 0x621   : > { %7376 = vmatpush1.bf16.msra.mxu1 %v26761_v15  ;;  %v26830_v15 = vld [vmem:[%s34951_s3 + $0x1858] ss:$8 sps:$4 sm:$0xff]  }
 0x622   : > { %7377 = vmatprep.subr.bf16.mxu1 %v26766_v16  ;;  %v26835_v16 = vld [vmem:[%s34951_s3 + $0x186c] ss:$8 sps:$4 sm:$0xff]  }
 0x625   : > { %7378 = vmatpush1.bf16.msra.mxu1 %v26764_v18  ;;  %v26833_v18 = vld [vmem:[%s34951_s3 + $0x1868] ss:$8 sps:$4 sm:$0xff]  }
 0x626   : > { %7379 = vmatprep.subr.bf16.mxu1 %v26769_v21  ;;  %v26838_v21 = vld [vmem:[%s34951_s3 + $0x187c] ss:$8 sps:$4 sm:$0xff]  }
 0x629   : > { %7380 = vmatpush1.bf16.msra.mxu1 %v26767_v24  ;;  %v26836_v24 = vld [vmem:[%s34951_s3 + $0x1878] ss:$8 sps:$4 sm:$0xff]  }
 0x62a   : > { %7381 = vmatprep.subr.bf16.mxu1 %v26772_v26  ;;  %v26841_v26 = vld [vmem:[%s34951_s3 + $0x188c] ss:$8 sps:$4 sm:$0xff]  }
 0x62d   : > { %7382 = vmatpush1.bf16.msra.mxu1 %v26770_v29  ;;  %v26839_v29 = vld [vmem:[%s34951_s3 + $0x1888] ss:$8 sps:$4 sm:$0xff]  }
 0x62e   : > { %7383 = vmatprep.subr.bf16.mxu1 %v26775_v30  ;;  %v26844_v30 = vld [vmem:[%s34951_s3 + $0x189c] ss:$8 sps:$4 sm:$0xff]  }
 0x631   : > { %7384 = vmatpush1.bf16.msra.mxu1 %v26773_v31  ;;  %v26842_v31 = vld [vmem:[%s34951_s3 + $0x1898] ss:$8 sps:$4 sm:$0xff]  }
 0x632   : > { %7385 = vmatprep.subr.bf16.mxu1 %v26778_v36  ;;  %v26847_v36 = vld [vmem:[%s34951_s3 + $0x18ac] ss:$8 sps:$4 sm:$0xff]  }
 0x635   : > { %7386 = vmatpush1.bf16.msra.mxu1 %v26776_v37  ;;  %v26845_v37 = vld [vmem:[%s34951_s3 + $0x18a8] ss:$8 sps:$4 sm:$0xff]  }
 0x636   : > { %7387 = vmatprep.subr.bf16.mxu1 %v26781_v40  ;;  %v26850_v40 = vld [vmem:[%s34951_s3 + $0x18bc] ss:$8 sps:$4 sm:$0xff]  }
 0x639   : > { %7388 = vmatpush1.bf16.msra.mxu1 %v26779_v41  ;;  %v26848_v41 = vld [vmem:[%s34951_s3 + $0x18b8] ss:$8 sps:$4 sm:$0xff]  }
 0x63a   : > { %7389 = vmatprep.subr.bf16.mxu1 %v26784_v42  ;;  %v26853_v42 = vld [vmem:[%s34951_s3 + $0x18cc] ss:$8 sps:$4 sm:$0xff]  }
 0x63d   : > { %7390 = vmatpush1.bf16.msra.mxu1 %v26782_v43  ;;  %v26851_v43 = vld [vmem:[%s34951_s3 + $0x18c8] ss:$8 sps:$4 sm:$0xff]  }
 0x63e   : > { %7402 = vmatprep.subr.bf16.mxu1 %v26787_v44  ;;  %v26856_v44 = vld [vmem:[%s34951_s3 + $0x18dc] ss:$8 sps:$4 sm:$0xff]  }
 0x640   : > { %7392 = vmatmul.mubr.bf16.vlgmr.msra.gmra.mrb[24].mxu1 %v28432_v61 }
 0x641   : > { %7403 = vmatpush1.bf16.msra.mxu1 %v26785_v45  ;;  %7434 = vmatprep.mubr.bf16.mxu1 %v28480_v38  ;;  %v26854_v45 = vld [vmem:[%s34951_s3 + $0x18d8] ss:$8 sps:$4 sm:$0xff]  }
 0x642   : > { %7404 = vmatprep.subr.bf16.mxu1 %v26790_v46  ;;  %v26859_v46 = vld [vmem:[%s34951_s3 + $0x18ec] ss:$8 sps:$4 sm:$0xff]  }
 0x645   : > { %7405 = vmatpush1.bf16.msra.mxu1 %v26788_v32  ;;  %v26857_v32 = vld [vmem:[%s34951_s3 + $0x18e8] ss:$8 sps:$4 sm:$0xff]  }
 0x646   : > { %7406 = vmatprep.subr.bf16.mxu1 %v26793_v47  ;;  %v26862_v47 = vld [vmem:[%s34951_s3 + $0x18fc] ss:$8 sps:$4 sm:$0xff]  }
 0x649   : > { %7407 = vmatpush1.bf16.msra.mxu1 %v26791_v48  ;;  %v26860_v48 = vld [vmem:[%s34951_s3 + $0x18f8] ss:$8 sps:$4 sm:$0xff]  }
 0x64a   : > { %7408 = vmatprep.subr.bf16.mxu1 %v26796_v49  ;;  %v26865_v49 = vld [vmem:[%s34951_s3 + $0x190c] ss:$8 sps:$4 sm:$0xff]  }
 0x64d   : > { %7409 = vmatpush1.bf16.msra.mxu1 %v26794_v50  ;;  %v26863_v50 = vld [vmem:[%s34951_s3 + $0x1908] ss:$8 sps:$4 sm:$0xff]  }
 0x64e   : > { %7410 = vmatprep.subr.bf16.mxu1 %v26799_v51  ;;  %v26868_v51 = vld [vmem:[%s34951_s3 + $0x191c] ss:$8 sps:$4 sm:$0xff]  }
 0x651   : > { %7411 = vmatpush1.bf16.msra.mxu1 %v26797_v52  ;;  %v26866_v52 = vld [vmem:[%s34951_s3 + $0x1918] ss:$8 sps:$4 sm:$0xff]  }
 0x652   : > { %7412 = vmatprep.subr.bf16.mxu1 %v26802_v53  ;;  %v26871_v53 = vld [vmem:[%s34951_s3 + $0x192c] ss:$8 sps:$4 sm:$0xff]  }
 0x655   : > { %7413 = vmatpush1.bf16.msra.mxu1 %v26800_v33  ;;  %v26869_v33 = vld [vmem:[%s34951_s3 + $0x1928] ss:$8 sps:$4 sm:$0xff]  }
 0x656   : > { %7414 = vmatprep.subr.bf16.mxu1 %v26805_v55  ;;  %v26874_v55 = vld [vmem:[%s34951_s3 + $0x193c] ss:$8 sps:$4 sm:$0xff]  }
 0x659   : > { %7415 = vmatpush1.bf16.msra.mxu1 %v26803_v57  ;;  %v26872_v57 = vld [vmem:[%s34951_s3 + $0x1938] ss:$8 sps:$4 sm:$0xff]  }
 0x65a   : > { %7416 = vmatprep.subr.bf16.mxu1 %v26808_v59  ;;  %v26877_v59 = vld [vmem:[%s34951_s3 + $0x194c] ss:$8 sps:$4 sm:$0xff]  }
 0x65d   : > { %7417 = vmatpush1.bf16.msra.mxu1 %v26806_v2  ;;  %v26875_v2 = vld [vmem:[%s34951_s3 + $0x1948] ss:$8 sps:$4 sm:$0xff]  }
 0x65e   : > { %7418 = vmatprep.subr.bf16.mxu1 %v26811_v5  ;;  %v26880_v5 = vld [vmem:[%s34951_s3 + $0x195c] ss:$8 sps:$4 sm:$0xff]  }
 0x661   : > { %7419 = vmatpush1.bf16.msra.mxu1 %v26809_v7  ;;  %v26878_v7 = vld [vmem:[%s34951_s3 + $0x1958] ss:$8 sps:$4 sm:$0xff]  }
 0x662   : > { %7420 = vmatprep.subr.bf16.mxu1 %v26814_v19  ;;  %v26883_v19 = vld [vmem:[%s34951_s3 + $0x196c] ss:$8 sps:$4 sm:$0xff]  }
 0x665   : > { %7421 = vmatpush1.bf16.msra.mxu1 %v26812_v23  ;;  %v26881_v23 = vld [vmem:[%s34951_s3 + $0x1968] ss:$8 sps:$4 sm:$0xff]  }
 0x666   : > { %7422 = vmatprep.subr.bf16.mxu1 %v26817_v27  ;;  %v26886_v27 = vld [vmem:[%s34951_s3 + $0x197c] ss:$8 sps:$4 sm:$0xff]  }
 0x669   : > { %7423 = vmatpush1.bf16.msra.mxu1 %v26815_v17  ;;  %v26884_v17 = vld [vmem:[%s34951_s3 + $0x1978] ss:$8 sps:$4 sm:$0xff]  }
 0x66a   : > { %7424 = vmatprep.subr.bf16.mxu1 %v26820_v20  ;;  %v26889_v20 = vld [vmem:[%s34951_s3 + $0x198c] ss:$8 sps:$4 sm:$0xff]  }
 0x66d   : > { %7425 = vmatpush1.bf16.msra.mxu1 %v26818_v22  ;;  %v22262_v22 = vld [vmem:[%s34951_s3 + $0x19a8] sm:$0x11] }
 0x66e   : > { %7426 = vmatprep.subr.bf16.mxu1 %v26823_v8  ;;  %v26887_v8 = vld [vmem:[%s34951_s3 + $0x1988] ss:$8 sps:$4 sm:$0xff]  }
 0x671   : > { %7427 = vmatpush1.bf16.msra.mxu1 %v26821_v9  ;;  %v26892_v9 = vld [vmem:[%s34951_s3 + $0x199c] ss:$8 sps:$4 sm:$0xff]  }
 0x672   : > { %7428 = vmatprep.subr.bf16.mxu1 %v26826_v10  ;;  %v22400_v10 = vcombine.high %v22262_v22, %v22262_v22 }
 0x675   : > { %7429 = vmatpush1.bf16.msra.mxu1 %v26824_v11  ;;  %v26890_v11 = vld [vmem:[%s34951_s3 + $0x1998] ss:$8 sps:$4 sm:$0xff]  }
 0x676   : > { %7430 = vmatprep.subr.bf16.mxu1 %v26829_v12  ;;  %v22399_v12 = vcombine.low %v22262_v22, %v22262_v22  ;;  %v26941_v22 = vld [vmem:[%s34951_s3 + $0x1ed8] ss:$8 sps:$4 sm:$0xff]  }
 0x679   : > { %7431 = vmatpush1.bf16.msra.mxu1 %v26827_v13  ;;  %v7314_v13 = vand.u32 %v22400_v10, %v29093_v28  ;;  %v26949_v10 = vld [vmem:[%s34951_s3 + $0x1efc] ss:$8 sps:$4 sm:$0xff]  }
 0x67a   : > { %7432 = vmatprep.subr.bf16.mxu1 %v26832_v14  ;;  %v7311_v14 = vand.u32 %v22399_v12, %v29093_v28  ;;  %v26952_v12 = vld [vmem:[%s34951_s3 + $0x1f0c] ss:$8 sps:$4 sm:$0xff]  }
 0x67d   : > { %7433 = vmatpush1.bf16.msra.mxu1 %v26830_v15 }
 0x67e   : > { %7445 = vmatprep.subr.bf16.mxu1 %v26835_v16 }
 0x680   : > { %7435 = vmatmul.mubr.bf16.vlgmr.msra.gmra.mrb[24].mxu1 %v28470_v34 }
 0x681   : > { %7446 = vmatpush1.bf16.msra.mxu1 %v26833_v18  ;;  %7477 = vmatprep.mubr.bf16.mxu1 %v28482_v39 }
 0x682   : > { %7447 = vmatprep.subr.bf16.mxu1 %v26838_v21 }
 0x685   : > { %7448 = vmatpush1.bf16.msra.mxu1 %v26836_v24 }
 0x686   : > { %7449 = vmatprep.subr.bf16.mxu1 %v26841_v26 }
 0x689   : > { %7450 = vmatpush1.bf16.msra.mxu1 %v26839_v29 }
 0x68a   : > { %7451 = vmatprep.subr.bf16.mxu1 %v26844_v30 }
 0x68d   : > { %7452 = vmatpush1.bf16.msra.mxu1 %v26842_v31 }
 0x68e   : > { %7453 = vmatprep.subr.bf16.mxu1 %v26847_v36 }
 0x691   : > { %7454 = vmatpush1.bf16.msra.mxu1 %v26845_v37 }
 0x692   : > { %7455 = vmatprep.subr.bf16.mxu1 %v26850_v40 }
 0x695   : > { %7456 = vmatpush1.bf16.msra.mxu1 %v26848_v41  ;;  %v26895_v41 = vld [vmem:[%s34952_s4 + $0x50] sm:$0xff]  }
 0x696   : > { %7457 = vmatprep.subr.bf16.mxu1 %v26853_v42  ;;  %v26899_v42 = vld [vmem:[%s34951_s3 + $0x1dfc] ss:$8 sps:$4 sm:$0xff]  }
 0x699   : > { %7458 = vmatpush1.bf16.msra.mxu1 %v26851_v43  ;;  %v26896_v43 = vld [vmem:[%s34952_s4 + $0x58] sm:$0xff]  }
 0x69a   : > { %7459 = vmatprep.subr.bf16.mxu1 %v26856_v44  ;;  %v26904_v44 = vld [vmem:[%s34951_s3 + $0x1e18] ss:$8 sps:$4 sm:$0xff]  }
 0x69d   : > { %7460 = vmatpush1.bf16.msra.mxu1 %v26854_v45  ;;  %v26910_v45 = vld [vmem:[%s34951_s3 + $0x1e2c] ss:$8 sps:$4 sm:$0xff]  }
 0x69e   : > { %7461 = vmatprep.subr.bf16.mxu1 %v26859_v46  ;;  %v26908_v46 = vld [vmem:[%s34951_s3 + $0x1e28] ss:$8 sps:$4 sm:$0xff]  }
 0x6a1   : > { %7462 = vmatpush1.bf16.msra.mxu1 %v26857_v32  ;;  %v26913_v32 = vld [vmem:[%s34951_s3 + $0x1e3c] ss:$8 sps:$4 sm:$0xff]  }
 0x6a2   : > { %7463 = vmatprep.subr.bf16.mxu1 %v26862_v47  ;;  %v26911_v47 = vld [vmem:[%s34951_s3 + $0x1e38] ss:$8 sps:$4 sm:$0xff]  }
 0x6a5   : > { %7464 = vmatpush1.bf16.msra.mxu1 %v26860_v48  ;;  %v26916_v48 = vld [vmem:[%s34951_s3 + $0x1e4c] ss:$8 sps:$4 sm:$0xff]  }
 0x6a6   : > { %7465 = vmatprep.subr.bf16.mxu1 %v26865_v49  ;;  %v26919_v49 = vld [vmem:[%s34951_s3 + $0x1e5c] ss:$8 sps:$4 sm:$0xff]  }
 0x6a9   : > { %7466 = vmatpush1.bf16.msra.mxu1 %v26863_v50  ;;  %v26917_v50 = vld [vmem:[%s34951_s3 + $0x1e58] ss:$8 sps:$4 sm:$0xff]  }
 0x6aa   : > { %7467 = vmatprep.subr.bf16.mxu1 %v26868_v51  ;;  %v26922_v51 = vld [vmem:[%s34951_s3 + $0x1e6c] ss:$8 sps:$4 sm:$0xff]  }
 0x6ad   : > { %7468 = vmatpush1.bf16.msra.mxu1 %v26866_v52  ;;  %v26920_v52 = vld [vmem:[%s34951_s3 + $0x1e68] ss:$8 sps:$4 sm:$0xff]  }
 0x6ae   : > { %7469 = vmatprep.subr.bf16.mxu1 %v26871_v53  ;;  %v26925_v53 = vld [vmem:[%s34951_s3 + $0x1e7c] ss:$8 sps:$4 sm:$0xff]  }
 0x6b1   : > { %7470 = vmatpush1.bf16.msra.mxu1 %v26869_v33  ;;  %v26923_v33 = vld [vmem:[%s34951_s3 + $0x1e78] ss:$8 sps:$4 sm:$0xff]  }
 0x6b2   : > { %7471 = vmatprep.subr.bf16.mxu1 %v26874_v55  ;;  %v26928_v55 = vld [vmem:[%s34951_s3 + $0x1e8c] ss:$8 sps:$4 sm:$0xff]  }
 0x6b5   : > { %7472 = vmatpush1.bf16.msra.mxu1 %v26872_v57  ;;  %v26926_v57 = vld [vmem:[%s34951_s3 + $0x1e88] ss:$8 sps:$4 sm:$0xff]  }
 0x6b6   : > { %7473 = vmatprep.subr.bf16.mxu1 %v26877_v59  ;;  %v26931_v59 = vld [vmem:[%s34951_s3 + $0x1e9c] ss:$8 sps:$4 sm:$0xff]  }
 0x6b9   : > { %7474 = vmatpush1.bf16.msra.mxu1 %v26875_v2  ;;  %v26929_v2 = vld [vmem:[%s34951_s3 + $0x1e98] ss:$8 sps:$4 sm:$0xff]  }
 0x6ba   : > { %7475 = vmatprep.subr.bf16.mxu1 %v26880_v5  ;;  %v26934_v5 = vld [vmem:[%s34951_s3 + $0x1eac] ss:$8 sps:$4 sm:$0xff]  }
 0x6bd   : > { %7476 = vmatpush1.bf16.msra.mxu1 %v26878_v7  ;;  %v26932_v7 = vld [vmem:[%s34951_s3 + $0x1ea8] ss:$8 sps:$4 sm:$0xff]  }
 0x6be   : > { %7488 = vmatprep.subr.bf16.mxu1 %v26883_v19  ;;  %v26937_v19 = vld [vmem:[%s34951_s3 + $0x1ebc] ss:$8 sps:$4 sm:$0xff]  }
 0x6c0   : > { %7478 = vmatmul.mubr.bf16.vlgmr.msra.gmra.mrb[24].mxu1 %v28472_v35 }
 0x6c1   : > { %7489 = vmatpush1.bf16.msra.mxu1 %v26881_v23  ;;  %7520 = vmatprep.mubr.bf16.mxu1 %v28055_v0  ;;  %v26935_v23 = vld [vmem:[%s34951_s3 + $0x1eb8] ss:$8 sps:$4 sm:$0xff]  }
 0x6c2   : > { %7490 = vmatprep.subr.bf16.mxu1 %v26886_v27  ;;  %v26940_v27 = vld [vmem:[%s34951_s3 + $0x1ecc] ss:$8 sps:$4 sm:$0xff]  }
 0x6c5   : > { %7491 = vmatpush1.bf16.msra.mxu1 %v26884_v17  ;;  %v26938_v17 = vld [vmem:[%s34951_s3 + $0x1ec8] ss:$8 sps:$4 sm:$0xff]  }
 0x6c6   : > { %7492 = vmatprep.subr.bf16.mxu1 %v26889_v20  ;;  %v26943_v20 = vld [vmem:[%s34951_s3 + $0x1edc] ss:$8 sps:$4 sm:$0xff]  }
 0x6c9   : > { %7493 = vmatpush1.bf16.msra.mxu1 %v26887_v8  ;;  %v26946_v8 = vld [vmem:[%s34951_s3 + $0x1eec] ss:$8 sps:$4 sm:$0xff]  }
 0x6ca   : > { %7494 = vmatprep.subr.bf16.mxu1 %v26892_v9  ;;  %v26944_v9 = vld [vmem:[%s34951_s3 + $0x1ee8] ss:$8 sps:$4 sm:$0xff]  }
 0x6cd   : > { %7495 = vmatpush1.bf16.msra.mxu1 %v26890_v11  ;;  %v26947_v11 = vld [vmem:[%s34951_s3 + $0x1ef8] ss:$8 sps:$4 sm:$0xff]  }
 0x6ce   : > { %7496 = vmatprep.subr.bf16.mxu1 %v7314_v13  ;;  %v26950_v13 = vld [vmem:[%s34951_s3 + $0x1f08] ss:$8 sps:$4 sm:$0xff]  }
 0x6d1   : > { %7497 = vmatpush1.bf16.msra.mxu1 %v7311_v14  ;;  %v26955_v14 = vld [vmem:[%s34951_s3 + $0x1f1c] ss:$8 sps:$4 sm:$0xff]  }
 0x6d4   : > { %22401 = vmatmul.mubr.msk.bf16.vlgmr.msra.gmra.mrb[24].mxu1 %vm1679_vm3, %v28510_v54 }
 0x6d5   : > { %7586 = vmatprep.mubr.bf16.mxu1 %v28055_v0 }
 0x6f1   : > { %v31731_v15 = vpop.f32.mrb[28].mxu0 }
 0x6f2   : > { %v31733_v16 = vpop.f32.mrb[29].mxu0 }
 0x6f3   : > { %v31735_v18 = vpop.f32.mrb[30].mxu0 }
 0x6f4   : > { %v10915_v21 = vpack.c.bf16 %v31735_v18, %v31731_v15  ;;  %v31739_v24 = vpop.f32.mrb[31].mxu0  ;;  %v27111_v15 = vld [vmem:[%s34954_s6] sm:$0xff]   ;;  %v27113_v18 = vld [vmem:[%s34954_s6 + $0x48] sm:$0xff]  }
 0x6f5   : > { %v10916_v26 = vpack.c.bf16 %v31739_v24, %v31733_v16  ;;  %v27107_v16 = vld [vmem:[%s34952_s4 + $0x80] sm:$0xff]   ;;  %v27117_v24 = vld [vmem:[%s34954_s6 + $0x50] sm:$0xff]  }
 0x7a7   : > { %v7522_v29 = vpop.f32.mrb[24].mxu1 }
 0x7a8   : > { %v7524_v30 = vpop.f32.mrb[25].mxu1 }
 0x7a9   : > { %v7526_v31 = vpop.f32.mrb[26].mxu1 }
 0x7aa   : > { %v7531_v36 = vpack.c.bf16 %v7526_v31, %v7522_v29  ;;  %v7528_v37 = vpop.f32.mrb[27].mxu1  ;;  %v26953_v29 = vld [vmem:[%s34951_s3 + $0x1f18] ss:$8 sps:$4 sm:$0xff]  }
 0x7ab   : > { %v7532_v40 = vpack.c.bf16 %v7528_v37, %v7524_v30  ;;  %v26961_v30 = vld [vmem:[%s34951_s3 + $0x1f3c] ss:$8 sps:$4 sm:$0xff]   ;;  %v26959_v31 = vld [vmem:[%s34951_s3 + $0x1f38] ss:$8 sps:$4 sm:$0xff]   ;;  %v26962_v37 = vld [vmem:[%s34951_s3 + $0x1f48] ss:$8 sps:$4 sm:$0xff]  }
 0x7ad   : > { %7554 = vmatprep.subr.bf16.mxu1 %v7532_v40  ;;  %v26967_v40 = vld [vmem:[%s34951_s3 + $0x1f5c] ss:$8 sps:$4 sm:$0xff]  }
 0x7ae   : > { %7555 = vmatpush1.bf16.msra.mxu1 %v7531_v36  ;;  %v26964_v36 = vld [vmem:[%s34951_s3 + $0x1f4c] ss:$8 sps:$4 sm:$0xff]  }
 0x7af   : > { %8682 = vmatprep.subr.bf16.mxu1 %v8660_v6  ;;  %v26907_v6 = vld [vmem:[%s34952_s4 + $0x68] sm:$0xff]  }
 0x7b1   : > { %22408 = vmatmul.mubr.msk.bf16.vlgmr.msra.gmra.mrb[12].mxu1 %vm2974_vm4, %v26895_v41  ;;  %v26965_v41 = vld [vmem:[%s34951_s3 + $0x1f58] ss:$8 sps:$4 sm:$0xff]  }
 0x7b2   : > { %8683 = vmatpush1.bf16.msra.mxu1 %v8659_v3  ;;  %7596 = vmatprep.mubr.bf16.mxu1 %v28055_v0  ;;  %v26901_v3 = vld [vmem:[%s34951_s3 + $0x1e08] ss:$8 sps:$4 sm:$0xff]  }
 0x7b3   : > { %9572 = vmatprep.subr.bf16.mxu1 %v26899_v42  ;;  %v26970_v42 = vld [vmem:[%s34951_s3 + $0x1f6c] ss:$8 sps:$4 sm:$0xff]  }
 0x7b9   : > { %22409 = vmatmul.mubr.msk.bf16.gmra.mrb[16].mxu1 %vm2974_vm4, %v26896_v43  ;;  %v26968_v43 = vld [vmem:[%s34951_s3 + $0x1f68] ss:$8 sps:$4 sm:$0xff]  }
 0x7ba   : > { %8714 = vmatprep.mubr.bf16.mxu1 %v28055_v0 }
 0x7c1   : > { %22692 = vmatmul.mubr.msk.bf16.vlgmr.msra.gmra.mrb[12].mxu1 %vm2974_vm4, %v26900_v58  ;;  %v26973_v58 = vld [vmem:[%s34951_s3 + $0x1f7c] ss:$8 sps:$4 sm:$0xff]  }
 0x7c2   : > { %9573 = vmatpush1.bf16.msra.mxu1 %v26897_v56  ;;  %8724 = vmatprep.mubr.bf16.mxu1 %v28055_v0  ;;  %v26971_v56 = vld [vmem:[%s34951_s3 + $0x1f78] ss:$8 sps:$4 sm:$0xff]  }
 0x7c3   : > { %9574 = vmatprep.subr.bf16.mxu1 %v26903_v1  ;;  %v26976_v1 = vld [vmem:[%s34951_s3 + $0x1f8c] ss:$8 sps:$4 sm:$0xff]  }
 0x7c6   : > { %9575 = vmatpush1.bf16.msra.mxu1 %v26901_v3  ;;  %v26974_v3 = vld [vmem:[%s34951_s3 + $0x1f88] ss:$8 sps:$4 sm:$0xff]  }
 0x7c7   : > { %9576 = vmatprep.subr.bf16.mxu1 %v26906_v4  ;;  %v26979_v4 = vld [vmem:[%s34951_s3 + $0x1f9c] ss:$8 sps:$4 sm:$0xff]  }
 0x7c9   : > { %22693 = vmatmul.mubr.msk.bf16.gmra.mrb[16].mxu1 %vm2974_vm4, %v26907_v6  ;;  %v26977_v6 = vld [vmem:[%s34951_s3 + $0x1f98] ss:$8 sps:$4 sm:$0xff]  }
 0x7ca   : > { %9577 = vmatpush1.bf16.msra.mxu1 %v26904_v44  ;;  %9604 = vmatprep.mubr.bf16.mxu1 %v28434_v62  ;;  %v26914_v62 = vld [vmem:[%s34951_s3 + $0x1e48] ss:$8 sps:$4 sm:$0xff]   ;;  %v26982_v44 = vld [vmem:[%s34951_s3 + $0x1fac] ss:$8 sps:$4 sm:$0xff]  }
 0x7cb   : > { %9578 = vmatprep.subr.bf16.mxu1 %v26910_v45  ;;  %v26980_v45 = vld [vmem:[%s34951_s3 + $0x1fa8] ss:$8 sps:$4 sm:$0xff]  }
 0x7ce   : > { %9579 = vmatpush1.bf16.msra.mxu1 %v26908_v46  ;;  %v26985_v46 = vld [vmem:[%s34951_s3 + $0x1fbc] ss:$8 sps:$4 sm:$0xff]  }
 0x7cf   : > { %9580 = vmatprep.subr.bf16.mxu1 %v26913_v32  ;;  %v26983_v32 = vld [vmem:[%s34951_s3 + $0x1fb8] ss:$8 sps:$4 sm:$0xff]  }
 0x7d2   : > { %9581 = vmatpush1.bf16.msra.mxu1 %v26911_v47  ;;  %v26988_v47 = vld [vmem:[%s34951_s3 + $0x1fcc] ss:$8 sps:$4 sm:$0xff]  }
 0x7d3   : > { %9582 = vmatprep.subr.bf16.mxu1 %v26916_v48  ;;  %v26986_v48 = vld [vmem:[%s34951_s3 + $0x1fc8] ss:$8 sps:$4 sm:$0xff]  }
 0x7d6   : > { %9583 = vmatpush1.bf16.msra.mxu1 %v26914_v62  ;;  %v26991_v62 = vld [vmem:[%s34951_s3 + $0x1fdc] ss:$8 sps:$4 sm:$0xff]  }
 0x7d7   : > { %9584 = vmatprep.subr.bf16.mxu1 %v26919_v49  ;;  %v26989_v49 = vld [vmem:[%s34951_s3 + $0x1fd8] ss:$8 sps:$4 sm:$0xff]  }
 0x7da   : > { %9585 = vmatpush1.bf16.msra.mxu1 %v26917_v50  ;;  %v26994_v50 = vld [vmem:[%s34951_s3 + $0x1fec] ss:$8 sps:$4 sm:$0xff]  }
 0x7db   : > { %9586 = vmatprep.subr.bf16.mxu1 %v26922_v51  ;;  %v26992_v51 = vld [vmem:[%s34951_s3 + $0x1fe8] ss:$8 sps:$4 sm:$0xff]  }
 0x7de   : > { %9587 = vmatpush1.bf16.msra.mxu1 %v26920_v52  ;;  %v26997_v52 = vld [vmem:[%s34951_s3 + $0x1ffc] ss:$8 sps:$4 sm:$0xff]  }
 0x7df   : > { %9588 = vmatprep.subr.bf16.mxu1 %v26925_v53  ;;  %v26995_v53 = vld [vmem:[%s34951_s3 + $0x1ff8] ss:$8 sps:$4 sm:$0xff]  }
 0x7e2   : > { %9589 = vmatpush1.bf16.msra.mxu1 %v26923_v33  ;;  %v27000_v33 = vld [vmem:[%s34951_s3 + $0x200c] ss:$8 sps:$4 sm:$0xff]  }
 0x7e3   : > { %9590 = vmatprep.subr.bf16.mxu1 %v26928_v55  ;;  %v26998_v55 = vld [vmem:[%s34951_s3 + $0x2008] ss:$8 sps:$4 sm:$0xff]  }
 0x7e6   : > { %9591 = vmatpush1.bf16.msra.mxu1 %v26926_v57  ;;  %v27003_v57 = vld [vmem:[%s34951_s3 + $0x201c] ss:$8 sps:$4 sm:$0xff]  }
 0x7e7   : > { %9592 = vmatprep.subr.bf16.mxu1 %v26931_v59  ;;  %v27001_v59 = vld [vmem:[%s34951_s3 + $0x2018] ss:$8 sps:$4 sm:$0xff]  }
 0x7ea   : > { %9593 = vmatpush1.bf16.msra.mxu1 %v26929_v2  ;;  %v27009_v2 = vld [vmem:[%s34951_s3 + $0x203c] ss:$8 sps:$4 sm:$0xff]  }
 0x7eb   : > { %9594 = vmatprep.subr.bf16.mxu1 %v26934_v5  ;;  %v27007_v5 = vld [vmem:[%s34951_s3 + $0x2038] ss:$8 sps:$4 sm:$0xff]  }
 0x7ee   : > { %9595 = vmatpush1.bf16.msra.mxu1 %v26932_v7  ;;  %v27012_v7 = vld [vmem:[%s34951_s3 + $0x204c] ss:$8 sps:$4 sm:$0xff]  }
 0x7ef   : > { %9596 = vmatprep.subr.bf16.mxu1 %v26937_v19  ;;  %v27010_v19 = vld [vmem:[%s34951_s3 + $0x2048] ss:$8 sps:$4 sm:$0xff]  }
 0x7f2   : > { %9597 = vmatpush1.bf16.msra.mxu1 %v26935_v23  ;;  %v27015_v23 = vld [vmem:[%s34951_s3 + $0x205c] ss:$8 sps:$4 sm:$0xff]  }
 0x7f3   : > { %9598 = vmatprep.subr.bf16.mxu1 %v26940_v27  ;;  %v27013_v27 = vld [vmem:[%s34951_s3 + $0x2058] ss:$8 sps:$4 sm:$0xff]  }
 0x7f6   : > { %9599 = vmatpush1.bf16.msra.mxu1 %v26938_v17  ;;  %v27018_v17 = vld [vmem:[%s34951_s3 + $0x206c] ss:$8 sps:$4 sm:$0xff]  }
 0x7f7   : > { %9600 = vmatprep.subr.bf16.mxu1 %v26943_v20  ;;  %v27016_v20 = vld [vmem:[%s34951_s3 + $0x2068] ss:$8 sps:$4 sm:$0xff]  }
 0x7fa   : > { %9601 = vmatpush1.bf16.msra.mxu1 %v26941_v22  ;;  %v27021_v22 = vld [vmem:[%s34951_s3 + $0x207c] ss:$8 sps:$4 sm:$0xff]  }
 0x7fb   : > { %9602 = vmatprep.subr.bf16.mxu1 %v26946_v8  ;;  %v27019_v8 = vld [vmem:[%s34951_s3 + $0x2078] ss:$8 sps:$4 sm:$0xff]  }
 0x7fe   : > { %9603 = vmatpush1.bf16.msra.mxu1 %v26944_v9  ;;  %v27024_v9 = vld [vmem:[%s34951_s3 + $0x208c] ss:$8 sps:$4 sm:$0xff]  }
 0x7ff   : > { %9615 = vmatprep.subr.bf16.mxu1 %v26949_v10  ;;  %v27022_v10 = vld [vmem:[%s34951_s3 + $0x2088] ss:$8 sps:$4 sm:$0xff]  }
 0x801   : > { %9605 = vmatmul.mubr.bf16.vlgmr.msra.gmra.mrb[28].mxu1 %v28430_v60  ;;  %v26958_v60 = vld [vmem:[%s34951_s3 + $0x1f2c] ss:$8 sps:$4 sm:$0xff]  }
 0x802   : > { %9616 = vmatpush1.bf16.msra.mxu1 %v26947_v11  ;;  %9647 = vmatprep.mubr.bf16.mxu1 %v28436_v63  ;;  %v26956_v63 = vld [vmem:[%s34951_s3 + $0x1f28] ss:$8 sps:$4 sm:$0xff]   ;;  %v27027_v11 = vld [vmem:[%s34951_s3 + $0x209c] ss:$8 sps:$4 sm:$0xff]  }
 0x803   : > { %9617 = vmatprep.subr.bf16.mxu1 %v26952_v12  ;;  %v27025_v12 = vld [vmem:[%s34951_s3 + $0x2098] ss:$8 sps:$4 sm:$0xff]  }
 0x806   : > { %9618 = vmatpush1.bf16.msra.mxu1 %v26950_v13  ;;  %v27030_v13 = vld [vmem:[%s34951_s3 + $0x20ac] ss:$8 sps:$4 sm:$0xff]  }
 0x807   : > { %9619 = vmatprep.subr.bf16.mxu1 %v26955_v14  ;;  %v27028_v14 = vld [vmem:[%s34951_s3 + $0x20a8] ss:$8 sps:$4 sm:$0xff]  }
 0x80a   : > { %9620 = vmatpush1.bf16.msra.mxu1 %v26953_v29  ;;  %v27033_v29 = vld [vmem:[%s34951_s3 + $0x20bc] ss:$8 sps:$4 sm:$0xff]  }
 0x80b   : > { %9621 = vmatprep.subr.bf16.mxu1 %v26958_v60  ;;  %v27031_v60 = vld [vmem:[%s34951_s3 + $0x20b8] ss:$8 sps:$4 sm:$0xff]  }
 0x80e   : > { %9622 = vmatpush1.bf16.msra.mxu1 %v26956_v63  ;;  %v27036_v63 = vld [vmem:[%s34951_s3 + $0x20cc] ss:$8 sps:$4 sm:$0xff]  }
 0x80f   : > { %9623 = vmatprep.subr.bf16.mxu1 %v26961_v30  ;;  %v27034_v30 = vld [vmem:[%s34951_s3 + $0x20c8] ss:$8 sps:$4 sm:$0xff]  }
 0x812   : > { %9624 = vmatpush1.bf16.msra.mxu1 %v26959_v31  ;;  %v27039_v31 = vld [vmem:[%s34951_s3 + $0x20dc] ss:$8 sps:$4 sm:$0xff]  }
 0x813   : > { %9625 = vmatprep.subr.bf16.mxu1 %v26964_v36  ;;  %v27037_v36 = vld [vmem:[%s34951_s3 + $0x20d8] ss:$8 sps:$4 sm:$0xff]  }
 0x816   : > { %9626 = vmatpush1.bf16.msra.mxu1 %v26962_v37  ;;  %v27042_v37 = vld [vmem:[%s34951_s3 + $0x20ec] ss:$8 sps:$4 sm:$0xff]  }
 0x817   : > { %9627 = vmatprep.subr.bf16.mxu1 %v26967_v40  ;;  %v27040_v40 = vld [vmem:[%s34951_s3 + $0x20e8] ss:$8 sps:$4 sm:$0xff]  }
 0x81a   : > { %9628 = vmatpush1.bf16.msra.mxu1 %v26965_v41  ;;  %v27045_v41 = vld [vmem:[%s34951_s3 + $0x20fc] ss:$8 sps:$4 sm:$0xff]  }
 0x81b   : > { %9629 = vmatprep.subr.bf16.mxu1 %v26970_v42  ;;  %v27043_v42 = vld [vmem:[%s34951_s3 + $0x20f8] ss:$8 sps:$4 sm:$0xff]  }
 0x81e   : > { %9630 = vmatpush1.bf16.msra.mxu1 %v26968_v43  ;;  %v27048_v43 = vld [vmem:[%s34951_s3 + $0x210c] ss:$8 sps:$4 sm:$0xff]  }
 0x81f   : > { %9631 = vmatprep.subr.bf16.mxu1 %v26973_v58  ;;  %v27046_v58 = vld [vmem:[%s34951_s3 + $0x2108] ss:$8 sps:$4 sm:$0xff]  }
 0x822   : > { %9632 = vmatpush1.bf16.msra.mxu1 %v26971_v56  ;;  %v27051_v56 = vld [vmem:[%s34951_s3 + $0x211c] ss:$8 sps:$4 sm:$0xff]  }
 0x823   : > { %9633 = vmatprep.subr.bf16.mxu1 %v26976_v1  ;;  %v27049_v1 = vld [vmem:[%s34951_s3 + $0x2118] ss:$8 sps:$4 sm:$0xff]  }
 0x826   : > { %9634 = vmatpush1.bf16.msra.mxu1 %v26974_v3  ;;  %v27057_v3 = vld [vmem:[%s34951_s3 + $0x213c] ss:$8 sps:$4 sm:$0xff]  }
 0x827   : > { %9635 = vmatprep.subr.bf16.mxu1 %v26979_v4  ;;  %v27055_v4 = vld [vmem:[%s34951_s3 + $0x2138] ss:$8 sps:$4 sm:$0xff]  }
 0x82a   : > { %9636 = vmatpush1.bf16.msra.mxu1 %v26977_v6  ;;  %v27060_v6 = vld [vmem:[%s34951_s3 + $0x214c] ss:$8 sps:$4 sm:$0xff]  }
 0x82b   : > { %9637 = vmatprep.subr.bf16.mxu1 %v26982_v44  ;;  %v27058_v44 = vld [vmem:[%s34951_s3 + $0x2148] ss:$8 sps:$4 sm:$0xff]  }
 0x82e   : > { %9638 = vmatpush1.bf16.msra.mxu1 %v26980_v45  ;;  %v27063_v45 = vld [vmem:[%s34951_s3 + $0x215c] ss:$8 sps:$4 sm:$0xff]  }
 0x82f   : > { %9639 = vmatprep.subr.bf16.mxu1 %v26985_v46  ;;  %v27061_v46 = vld [vmem:[%s34951_s3 + $0x2158] ss:$8 sps:$4 sm:$0xff]  }
 0x832   : > { %9640 = vmatpush1.bf16.msra.mxu1 %v26983_v32  ;;  %v27066_v32 = vld [vmem:[%s34951_s3 + $0x216c] ss:$8 sps:$4 sm:$0xff]  }
 0x833   : > { %9641 = vmatprep.subr.bf16.mxu1 %v26988_v47  ;;  %v27064_v47 = vld [vmem:[%s34951_s3 + $0x2168] ss:$8 sps:$4 sm:$0xff]  }
 0x836   : > { %9642 = vmatpush1.bf16.msra.mxu1 %v26986_v48  ;;  %v27069_v48 = vld [vmem:[%s34951_s3 + $0x217c] ss:$8 sps:$4 sm:$0xff]  }
 0x837   : > { %9643 = vmatprep.subr.bf16.mxu1 %v26991_v62  ;;  %v27067_v62 = vld [vmem:[%s34951_s3 + $0x2178] ss:$8 sps:$4 sm:$0xff]  }
 0x83a   : > { %9644 = vmatpush1.bf16.msra.mxu1 %v26989_v49  ;;  %v27072_v49 = vld [vmem:[%s34951_s3 + $0x218c] ss:$8 sps:$4 sm:$0xff]  }
 0x83b   : > { %9645 = vmatprep.subr.bf16.mxu1 %v26994_v50  ;;  %v27070_v50 = vld [vmem:[%s34951_s3 + $0x2188] ss:$8 sps:$4 sm:$0xff]  }
 0x83e   : > { %9646 = vmatpush1.bf16.msra.mxu1 %v26992_v51  ;;  %v27075_v51 = vld [vmem:[%s34951_s3 + $0x219c] ss:$8 sps:$4 sm:$0xff]  }
 0x83f   : > { %9658 = vmatprep.subr.bf16.mxu1 %v26997_v52  ;;  %v27073_v52 = vld [vmem:[%s34951_s3 + $0x2198] ss:$8 sps:$4 sm:$0xff]  }
 0x841   : > { %9648 = vmatmul.mubr.bf16.vlgmr.msra.gmra.mrb[28].mxu1 %v28432_v61  ;;  %v27006_v61 = vld [vmem:[%s34951_s3 + $0x202c] ss:$8 sps:$4 sm:$0xff]  }
 0x842   : > { %9659 = vmatpush1.bf16.msra.mxu1 %v26995_v53  ;;  %9690 = vmatprep.mubr.bf16.mxu1 %v28480_v38  ;;  %v27004_v38 = vld [vmem:[%s34951_s3 + $0x2028] ss:$8 sps:$4 sm:$0xff]   ;;  %v27078_v53 = vld [vmem:[%s34951_s3 + $0x21ac] ss:$8 sps:$4 sm:$0xff]  }
 0x843   : > { %9660 = vmatprep.subr.bf16.mxu1 %v27000_v33  ;;  %v27076_v33 = vld [vmem:[%s34951_s3 + $0x21a8] ss:$8 sps:$4 sm:$0xff]  }
 0x846   : > { %9661 = vmatpush1.bf16.msra.mxu1 %v26998_v55  ;;  %v27081_v55 = vld [vmem:[%s34951_s3 + $0x21bc] ss:$8 sps:$4 sm:$0xff]  }
 0x847   : > { %9662 = vmatprep.subr.bf16.mxu1 %v27003_v57  ;;  %v27079_v57 = vld [vmem:[%s34951_s3 + $0x21b8] ss:$8 sps:$4 sm:$0xff]  }
 0x84a   : > { %9663 = vmatpush1.bf16.msra.mxu1 %v27001_v59  ;;  %v27084_v59 = vld [vmem:[%s34951_s3 + $0x21cc] ss:$8 sps:$4 sm:$0xff]  }
 0x84b   : > { %9664 = vmatprep.subr.bf16.mxu1 %v27006_v61  ;;  %v27082_v61 = vld [vmem:[%s34951_s3 + $0x21c8] ss:$8 sps:$4 sm:$0xff]  }
 0x84e   : > { %9665 = vmatpush1.bf16.msra.mxu1 %v27004_v38  ;;  %v27087_v38 = vld [vmem:[%s34951_s3 + $0x21dc] ss:$8 sps:$4 sm:$0xff]  }
 0x84f   : > { %9666 = vmatprep.subr.bf16.mxu1 %v27009_v2  ;;  %v27085_v2 = vld [vmem:[%s34951_s3 + $0x21d8] ss:$8 sps:$4 sm:$0xff]  }
 0x852   : > { %9667 = vmatpush1.bf16.msra.mxu1 %v27007_v5  ;;  %v27090_v5 = vld [vmem:[%s34951_s3 + $0x21ec] ss:$8 sps:$4 sm:$0xff]  }
 0x853   : > { %9668 = vmatprep.subr.bf16.mxu1 %v27012_v7  ;;  %v27088_v7 = vld [vmem:[%s34951_s3 + $0x21e8] ss:$8 sps:$4 sm:$0xff]  }
 0x856   : > { %9669 = vmatpush1.bf16.msra.mxu1 %v27010_v19  ;;  %v27093_v19 = vld [vmem:[%s34951_s3 + $0x21fc] ss:$8 sps:$4 sm:$0xff]  }
 0x857   : > { %9670 = vmatprep.subr.bf16.mxu1 %v27015_v23  ;;  %v27091_v23 = vld [vmem:[%s34951_s3 + $0x21f8] ss:$8 sps:$4 sm:$0xff]  }
 0x85a   : > { %9671 = vmatpush1.bf16.msra.mxu1 %v27013_v27  ;;  %v27096_v27 = vld [vmem:[%s34951_s3 + $0x220c] ss:$8 sps:$4 sm:$0xff]  }
 0x85b   : > { %9672 = vmatprep.subr.bf16.mxu1 %v27018_v17  ;;  %v27094_v17 = vld [vmem:[%s34951_s3 + $0x2208] ss:$8 sps:$4 sm:$0xff]  }
 0x85e   : > { %9673 = vmatpush1.bf16.msra.mxu1 %v27016_v20  ;;  %v27099_v20 = vld [vmem:[%s34951_s3 + $0x221c] ss:$8 sps:$4 sm:$0xff]  }
 0x85f   : > { %9674 = vmatprep.subr.bf16.mxu1 %v27021_v22  ;;  %v22830_v22 = vld [vmem:[%s34951_s3 + $0x2238] sm:$0x11] }
 0x862   : > { %9675 = vmatpush1.bf16.msra.mxu1 %v27019_v8  ;;  %v27102_v8 = vld [vmem:[%s34951_s3 + $0x222c] ss:$8 sps:$4 sm:$0xff]  }
 0x863   : > { %9676 = vmatprep.subr.bf16.mxu1 %v27024_v9  ;;  %v22968_v9 = vcombine.high %v22830_v22, %v22830_v22 }
 0x866   : > { %9677 = vmatpush1.bf16.msra.mxu1 %v27022_v10  ;;  %v27100_v10 = vld [vmem:[%s34951_s3 + $0x2228] ss:$8 sps:$4 sm:$0xff]  }
 0x867   : > { %9678 = vmatprep.subr.bf16.mxu1 %v27027_v11  ;;  %v22967_v11 = vcombine.low %v22830_v22, %v22830_v22 }
 0x86a   : > { %9679 = vmatpush1.bf16.msra.mxu1 %v27025_v12  ;;  %v9570_v12 = vand.u32 %v22968_v9, %v29093_v28 }
 0x86b   : > { %9680 = vmatprep.subr.bf16.mxu1 %v27030_v13  ;;  %v9567_v13 = vand.u32 %v22967_v11, %v29093_v28 }
 0x86e   : > { %9681 = vmatpush1.bf16.msra.mxu1 %v27028_v14  ;;  %v10999_v14 = vld [vmem:[%s34953_s5] sm:$0xff] }
 0x86f   : > { %9682 = vmatprep.subr.bf16.mxu1 %v27033_v29  ;;  %11005 = vperm.xlu1 %25209, %v10999_v14   ;;  %v11000_v29 = vld [vmem:[%s34953_s5 + $0x8] sm:$0xff] }
 0x872   : > { %9683 = vmatpush1.bf16.msra.mxu1 %v27031_v60  ;;  %v27110_v60 = vld [vmem:[%s34954_s6 + $0x240] sm:$0xff]  }
 0x873   : > { %9684 = vmatprep.subr.bf16.mxu1 %v27036_v63  ;;  %v27112_v63 = vld [vmem:[%s34954_s6 + $0x200] sm:$0xff]   ;;  %24579 = vmatprep.subr.bf16.mxu0 %v27110_v60 }
 0x874   : > { %11010 = vperm.xlu1 %25209, %v11000_v29   ;;  %24580 = vmatpush3.bf16.msra.mxu0 %v27112_v63 }
 0x876   : > { %9685 = vmatpush1.bf16.msra.mxu1 %v27034_v30  ;;  %v27116_v30 = vld [vmem:[%s34954_s6 + $0x208] sm:$0xff]  }
 0x877   : > { %9686 = vmatprep.subr.bf16.mxu1 %v27039_v31  ;;  %v11002_v31 = vld [vmem:[%s34953_s5 + $0x18] sm:$0xff] }
 0x878   : > { %11020 = vperm.xlu1 %25209, %v11002_v31  }
 0x87a   : > { %9687 = vmatpush1.bf16.msra.mxu1 %v27037_v36  ;;  %v27118_v36 = vld [vmem:[%s34954_s6 + $0x250] sm:$0xff]  }
 0x87b   : > { %9688 = vmatprep.subr.bf16.mxu1 %v27042_v37  ;;  %v27120_v37 = vld [vmem:[%s34954_s6 + $0x210] sm:$0xff]  }
 0x87e   : > { %9689 = vmatpush1.bf16.msra.mxu1 %v27040_v40  ;;  %v13672_v40 = vld [vmem:[%s34956_s8 + $0x8] sm:$0xff] }
 0x87f   : > { %9701 = vmatprep.subr.bf16.mxu1 %v27045_v41  ;;  %v27122_v41 = vld [vmem:[%s34954_s6 + $0x258] sm:$0xff]   ;;  %13686 = vperm.xlu1 %25209, %v13672_v40   ;;  %v27144_v40 = vld [vmem:[%s34954_s6 + $0x280] sm:$0xff]  }
 0x881   : > { %9691 = vmatmul.mubr.bf16.vlgmr.msra.gmra.mrb[28].mxu1 %v28470_v34  ;;  %v27054_v34 = vld [vmem:[%s34951_s3 + $0x212c] ss:$8 sps:$4 sm:$0xff]  }
 0x882   : > { %9702 = vmatpush1.bf16.msra.mxu1 %v27043_v42  ;;  %9733 = vmatprep.mubr.bf16.mxu1 %v28482_v39  ;;  %v27052_v39 = vld [vmem:[%s34951_s3 + $0x2128] ss:$8 sps:$4 sm:$0xff]   ;;  %v27124_v42 = vld [vmem:[%s34954_s6 + $0x218] sm:$0xff]  }
 0x883   : > { %9703 = vmatprep.subr.bf16.mxu1 %v27048_v43  ;;  %v13674_v43 = vld [vmem:[%s34956_s8 + $0x18] sm:$0xff] }
 0x884   : > { %13696 = vperm.xlu1 %25209, %v13674_v43   ;;  %v27145_v43 = vld [vmem:[%s34954_s6 + $0xc8] sm:$0xff]  }
 0x886   : > { %9704 = vmatpush1.bf16.msra.mxu1 %v27046_v58  ;;  %v27126_v58 = vld [vmem:[%s34954_s6 + $0x260] sm:$0xff]  }
 0x887   : > { %9705 = vmatprep.subr.bf16.mxu1 %v27051_v56  ;;  %v27128_v56 = vld [vmem:[%s34954_s6 + $0x220] sm:$0xff]  }
 0x88a   : > { %9706 = vmatpush1.bf16.msra.mxu1 %v27049_v1  ;;  %v13676_v1 = vld [vmem:[%s34956_s8 + $0x28] sm:$0xff] }
 0x88b   : > { %9707 = vmatprep.subr.bf16.mxu1 %v27054_v34  ;;  %v27130_v34 = vld [vmem:[%s34954_s6 + $0x268] sm:$0xff]   ;;  %13706 = vperm.xlu1 %25209, %v13676_v1  }
 0x88e   : > { %9708 = vmatpush1.bf16.msra.mxu1 %v27052_v39  ;;  %v27132_v39 = vld [vmem:[%s34954_s6 + $0x228] sm:$0xff]  }
 0x88f   : > { %9709 = vmatprep.subr.bf16.mxu1 %v27057_v3  ;;  %v13678_v3 = vld [vmem:[%s34956_s8 + $0x38] sm:$0xff] }
 0x890   : > { %13716 = vperm.xlu1 %25209, %v13678_v3  }
 0x892   : > { %9710 = vmatpush1.bf16.msra.mxu1 %v27055_v4 }
 0x893   : > { %9711 = vmatprep.subr.bf16.mxu1 %v27060_v6 }
 0x896   : > { %9712 = vmatpush1.bf16.msra.mxu1 %v27058_v44 }
 0x897   : > { %9713 = vmatprep.subr.bf16.mxu1 %v27063_v45 }
 0x89a   : > { %9714 = vmatpush1.bf16.msra.mxu1 %v27061_v46 }
 0x89b   : > { %9715 = vmatprep.subr.bf16.mxu1 %v27066_v32 }
 0x89e   : > { %9716 = vmatpush1.bf16.msra.mxu1 %v27064_v47  ;;  %v27105_v47 = vld [vmem:[%s34952_s4 + $0x70] sm:$0xff]  }
 0x89f   : > { %9717 = vmatprep.subr.bf16.mxu1 %v27069_v48  ;;  %v27109_v48 = vld [vmem:[%s34954_s6 + $0x40] sm:$0xff]  }
 0x8a2   : > { %9718 = vmatpush1.bf16.msra.mxu1 %v27067_v62  ;;  %v27106_v62 = vld [vmem:[%s34952_s4 + $0x78] sm:$0xff]  }
 0x8a3   : > { %9719 = vmatprep.subr.bf16.mxu1 %v27072_v49  ;;  %v27119_v49 = vld [vmem:[%s34954_s6 + $0x10] sm:$0xff]  }
 0x8a6   : > { %9720 = vmatpush1.bf16.msra.mxu1 %v27070_v50  ;;  %v27121_v50 = vld [vmem:[%s34954_s6 + $0x58] sm:$0xff]  }
 0x8a7   : > { %9721 = vmatprep.subr.bf16.mxu1 %v27075_v51  ;;  %v27123_v51 = vld [vmem:[%s34954_s6 + $0x18] sm:$0xff]  }
 0x8aa   : > { %9722 = vmatpush1.bf16.msra.mxu1 %v27073_v52  ;;  %v27125_v52 = vld [vmem:[%s34954_s6 + $0x60] sm:$0xff]  }
 0x8ab   : > { %9723 = vmatprep.subr.bf16.mxu1 %v27078_v53  ;;  %v27127_v53 = vld [vmem:[%s34954_s6 + $0x20] sm:$0xff]  }
 0x8ae   : > { %9724 = vmatpush1.bf16.msra.mxu1 %v27076_v33  ;;  %v27129_v33 = vld [vmem:[%s34954_s6 + $0x68] sm:$0xff]  }
 0x8af   : > { %9725 = vmatprep.subr.bf16.mxu1 %v27081_v55  ;;  %v27131_v55 = vld [vmem:[%s34954_s6 + $0x28] sm:$0xff]  }
 0x8b2   : > { %9726 = vmatpush1.bf16.msra.mxu1 %v27079_v57  ;;  %v27133_v57 = vld [vmem:[%s34954_s6 + $0x70] sm:$0xff]  }
 0x8b3   : > { %9727 = vmatprep.subr.bf16.mxu1 %v27084_v59  ;;  %v27134_v59 = vld [vmem:[%s34954_s6 + $0x270] sm:$0xff]  }
 0x8b6   : > { %9728 = vmatpush1.bf16.msra.mxu1 %v27082_v61  ;;  %v27135_v61 = vld [vmem:[%s34954_s6 + $0x30] sm:$0xff]  }
 0x8b7   : > { %9729 = vmatprep.subr.bf16.mxu1 %v27087_v38  ;;  %v27136_v38 = vld [vmem:[%s34954_s6 + $0x230] sm:$0xff]  }
 0x8ba   : > { %9730 = vmatpush1.bf16.msra.mxu1 %v27085_v2  ;;  %v27137_v2 = vld [vmem:[%s34954_s6 + $0x78] sm:$0xff]  }
 0x8bb   : > { %9731 = vmatprep.subr.bf16.mxu1 %v27090_v5  ;;  %v27138_v5 = vld [vmem:[%s34954_s6 + $0x278] sm:$0xff]  }
 0x8be   : > { %9732 = vmatpush1.bf16.msra.mxu1 %v27088_v7  ;;  %v27139_v7 = vld [vmem:[%s34954_s6 + $0x38] sm:$0xff]  }
 0x8bf   : > { %9744 = vmatprep.subr.bf16.mxu1 %v27093_v19  ;;  %v27140_v19 = vld [vmem:[%s34954_s6 + $0x238] sm:$0xff]  }
 0x8c1   : > { %9734 = vmatmul.mubr.bf16.vlgmr.msra.gmra.mrb[28].mxu1 %v28472_v35  ;;  %v27097_v35 = vld [vmem:[%s34951_s3 + $0x2218] ss:$8 sps:$4 sm:$0xff]  }
 0x8c2   : > { %9745 = vmatpush1.bf16.msra.mxu1 %v27091_v23  ;;  %9776 = vmatprep.mubr.bf16.mxu1 %v28055_v0  ;;  %v27141_v23 = vld [vmem:[%s34954_s6 + $0xc0] sm:$0xff]  }
 0x8c3   : > { %9746 = vmatprep.subr.bf16.mxu1 %v27096_v27  ;;  %v27142_v27 = vld [vmem:[%s34954_s6 + $0x2c0] sm:$0xff]  }
 0x8c6   : > { %9747 = vmatpush1.bf16.msra.mxu1 %v27094_v17 }
 0x8c7   : > { %9748 = vmatprep.subr.bf16.mxu1 %v27099_v20 }
 0x8ca   : > { %9749 = vmatpush1.bf16.msra.mxu1 %v27097_v35 }
 0x8cb   : > { %9750 = vmatprep.subr.bf16.mxu1 %v27102_v8 }
 0x8ce   : > { %9751 = vmatpush1.bf16.msra.mxu1 %v27100_v10 }
 0x8cf   : > { %9752 = vmatprep.subr.bf16.mxu1 %v9570_v12 }
 0x8d2   : > { %9753 = vmatpush1.bf16.msra.mxu1 %v9567_v13 }
 0x8d5   : > { %22969 = vmatmul.mubr.msk.bf16.vlgmr.msra.gmra.mrb[28].mxu1 %vm1679_vm3, %v28510_v54  ;;  %v27114_v54 = vld [vmem:[%s34954_s6 + $0x248] sm:$0xff]  }
 0x8d6   : > { %9842 = vmatprep.mubr.bf16.mxu1 %v28055_v0  ;;  %24581 = vmatprep.subr.bf16.mxu0 %v27114_v54 }
 0x8d7   : > { %24582 = vmatpush3.bf16.msra.mxu0 %v27116_v30  ;;  %v11016_v30 = vpop.permute.xlu0 %11015 }
 0x8d8   : > { %24583 = vmatprep.subr.bf16.mxu0 %v27118_v36 }
 0x8db   : > { %24584 = vmatpush3.bf16.msra.mxu0 %v27120_v37  ;;  %v27143_v37 = vld [vmem:[%s34954_s6 + $0x80] sm:$0xff]  }
 0x8dc   : > { %24585 = vmatprep.subr.bf16.mxu0 %v27122_v41 }
 0x8df   : > { %24586 = vmatpush3.bf16.msra.mxu0 %v27124_v42 }
 0x8e0   : > { %24587 = vmatprep.subr.bf16.mxu0 %v27126_v58  ;;  %v27146_v58 = vld [vmem:[%s34954_s6 + $0x2c8] sm:$0xff]  }
 0x8e3   : > { %24588 = vmatpush3.bf16.msra.mxu0 %v27128_v56 }
 0x8e4   : > { %24589 = vmatprep.subr.bf16.mxu0 %v27130_v34 }
 0x8e7   : > { %24590 = vmatpush3.bf16.msra.mxu0 %v27132_v39 }
 0x8e8   : > { %24591 = vmatprep.subr.bf16.mxu0 %v27134_v59  ;;  %v27163_v59 = vld [vmem:[%s34954_s6 + $0xa8] sm:$0xff]  }
 0x8eb   : > { %24592 = vmatpush3.bf16.msra.mxu0 %v27136_v38  ;;  %v27165_v38 = vld [vmem:[%s34954_s6 + $0xf0] sm:$0xff]  }
 0x8ec   : > { %24593 = vmatprep.subr.bf16.mxu0 %v27138_v5  ;;  %v27167_v5 = vld [vmem:[%s34954_s6 + $0xb0] sm:$0xff]  }
 0x8ee   : > { %v11006_v17 = vpop.permute.xlu1 %11005 }
 0x8ef   : > { %24594 = vmatpush3.bf16.msra.mxu0 %v27140_v19  ;;  %v27169_v19 = vld [vmem:[%s34954_s6 + $0xf8] sm:$0xff]  }
 0x8f0   : > { %24613 = vmatprep.subr.bf16.mxu0 %v27142_v27  ;;  %v27171_v27 = vld [vmem:[%s34954_s6 + $0xb8] sm:$0xff]  }
 0x8f3   : > { %v11011_v8 = vpop.permute.xlu1 %11010 }
 0x8f7   : > { %v11021_v56 = vpop.permute.xlu1 %11020 }
 0x9a8   : > { %v9778_v4 = vpop.f32.mrb[28].mxu1 }
 0x9a9   : > { %v9780_v6 = vpop.f32.mrb[29].mxu1 }
 0x9aa   : > { %v9782_v44 = vpop.f32.mrb[30].mxu1 }
 0x9ab   : > { %v9787_v45 = vpack.c.bf16 %v9782_v44, %v9778_v4  ;;  %v9784_v46 = vpop.f32.mrb[31].mxu1  ;;  %v27148_v44 = vld [vmem:[%s34954_s6 + $0x288] sm:$0xff]  }
 0x9ac   : > { %v9788_v32 = vpack.c.bf16 %v9784_v46, %v9780_v6  ;;  %v27147_v6 = vld [vmem:[%s34954_s6 + $0x88] sm:$0xff]  }
 0x9ae   : > { %9810 = vmatprep.subr.bf16.mxu1 %v9788_v32  ;;  %v27149_v32 = vld [vmem:[%s34954_s6 + $0xd0] sm:$0xff]  }
 0x9af   : > { %9811 = vmatpush1.bf16.msra.mxu1 %v9787_v45 }
 0x9b0   : > { %10938 = vmatprep.subr.bf16.mxu1 %v10916_v26  ;;  %v27108_v26 = vld [vmem:[%s34952_s4 + $0x88] sm:$0xff]  }
 0x9b2   : > { %22976 = vmatmul.mubr.msk.bf16.vlgmr.msra.gmra.mrb[12].mxu1 %vm2974_vm4, %v27105_v47  ;;  %v27150_v47 = vld [vmem:[%s34954_s6 + $0x2d0] sm:$0xff]  }
 0x9b3   : > { %10939 = vmatpush1.bf16.msra.mxu1 %v10915_v21  ;;  %9852 = vmatprep.mubr.bf16.mxu1 %v28055_v0  ;;  %v27115_v21 = vld [vmem:[%s34954_s6 + $0x8] sm:$0xff]  }
 0x9b4   : > { %24443 = vmatprep.subr.bf16.mxu1 %v27109_v48 }
 0x9ba   : > { %22977 = vmatmul.mubr.msk.bf16.gmra.mrb[16].mxu1 %vm2974_vm4, %v27106_v62 }
 0x9bb   : > { %10970 = vmatprep.mubr.bf16.mxu1 %v28055_v0 }
 0x9c2   : > { %23260 = vmatmul.mubr.msk.bf16.vlgmr.msra.gmra.mrb[12].mxu1 %vm2974_vm4, %v27107_v16 }
 0x9c3   : > { %10980 = vmatprep.mubr.bf16.mxu1 %v28055_v0  ;;  %24444 = vmatpush3.bf16.msra.mxu1 %v27111_v15 }
 0x9c4   : > { %24445 = vmatprep.subr.bf16.mxu1 %v27113_v18  ;;  %v27151_v18 = vld [vmem:[%s34954_s6 + $0x90] sm:$0xff]  }
 0x9c7   : > { %24446 = vmatpush3.bf16.msra.mxu1 %v27115_v21  ;;  %v27152_v21 = vld [vmem:[%s34954_s6 + $0x290] sm:$0xff]  }
 0x9c8   : > { %24447 = vmatprep.subr.bf16.mxu1 %v27117_v24  ;;  %v27153_v24 = vld [vmem:[%s34954_s6 + $0xd8] sm:$0xff]  }
 0x9ca   : > { %23261 = vmatmul.mubr.msk.bf16.gmra.mrb[16].mxu1 %vm2974_vm4, %v27108_v26  ;;  %v27154_v26 = vld [vmem:[%s34954_s6 + $0x2d8] sm:$0xff]  }
 0x9cb   : > { %24448 = vmatpush3.bf16.msra.mxu1 %v27119_v49  ;;  %v27155_v49 = vld [vmem:[%s34954_s6 + $0x98] sm:$0xff]  }
 0x9cc   : > { %24449 = vmatprep.subr.bf16.mxu1 %v27121_v50  ;;  %v27156_v50 = vld [vmem:[%s34954_s6 + $0x298] sm:$0xff]  }
 0x9cf   : > { %24450 = vmatpush3.bf16.msra.mxu1 %v27123_v51  ;;  %v27157_v51 = vld [vmem:[%s34954_s6 + $0xe0] sm:$0xff]  }
 0x9d0   : > { %24451 = vmatprep.subr.bf16.mxu1 %v27125_v52  ;;  %v27158_v52 = vld [vmem:[%s34954_s6 + $0x2e0] sm:$0xff]  }
 0x9d3   : > { %24452 = vmatpush3.bf16.msra.mxu1 %v27127_v53  ;;  %v27159_v53 = vld [vmem:[%s34954_s6 + $0xa0] sm:$0xff]  }
 0x9d4   : > { %24453 = vmatprep.subr.bf16.mxu1 %v27129_v33  ;;  %v27160_v33 = vld [vmem:[%s34954_s6 + $0x2a0] sm:$0xff]  }
 0x9d7   : > { %24454 = vmatpush3.bf16.msra.mxu1 %v27131_v55  ;;  %v27161_v55 = vld [vmem:[%s34954_s6 + $0xe8] sm:$0xff]  }
 0x9d8   : > { %24455 = vmatprep.subr.bf16.mxu1 %v27133_v57  ;;  %v27162_v57 = vld [vmem:[%s34954_s6 + $0x2e8] sm:$0xff]  }
 0x9db   : > { %24456 = vmatpush3.bf16.msra.mxu1 %v27135_v61  ;;  %v27164_v61 = vld [vmem:[%s34954_s6 + $0x2a8] sm:$0xff]  }
 0x9dc   : > { %24457 = vmatprep.subr.bf16.mxu1 %v27137_v2  ;;  %v27166_v2 = vld [vmem:[%s34954_s6 + $0x2f0] sm:$0xff]  }
 0x9df   : > { %24458 = vmatpush3.bf16.msra.mxu1 %v27139_v7  ;;  %v27168_v7 = vld [vmem:[%s34954_s6 + $0x2b0] sm:$0xff]  }
 0x9e0   : > { %24471 = vmatprep.subr.bf16.mxu1 %v27141_v23  ;;  %v27170_v23 = vld [vmem:[%s34954_s6 + $0x2f8] sm:$0xff]  }
 0xa95   : > { %v10972_v20 = vpop.f32.mrb[12].mxu1 }
 0xa96   : > { %v11023_v22 = vadd.f32 %v11006_v17, %v10972_v20  ;;  %v10974_v35 = vpop.f32.mrb[13].mxu1  ;;  %v27173_v20 = vld [vmem:[%s34954_s6 + $0x3c0] sm:$0xff]  }
 0xa97   : > { %v11024_v9 = vadd.f32 %v11006_v17, %v10974_v35  ;;  %v10976_v10 = vpop.f32.mrb[14].mxu1  ;;  %v27172_v17 = vld [vmem:[%s34954_s6 + $0x2b8] sm:$0xff]   ;;  %v27175_v35 = vld [vmem:[%s34954_s6 + $0x3c8] sm:$0xff]  }
 0xa98   : > { %v11025_v11 = vadd.f32 %v11011_v8, %v10976_v10  ;;  %v10978_v12 = vpop.f32.mrb[15].mxu1  ;;  %v11031_v14 = vmax.f32 %v11023_v22, 0.0  ;;  %v27174_v22 = vld [vmem:[%s34954_s6 + $0x380] sm:$0xff]   ;;  %v27178_v10 = vld [vmem:[%s34954_s6 + $0x390] sm:$0xff]  }
 0xa99   : > { %v11026_v13 = vadd.f32 %v11011_v8, %v10978_v12  ;;  %v11032_v60 = vmax.f32 %v11024_v9, 0.0  ;;  %v27176_v8 = vld [vmem:[%s34954_s6 + $0x388] sm:$0xff]   ;;  %v27177_v9 = vld [vmem:[%s34954_s6 + $0x3d0] sm:$0xff]   ;;  %v27180_v12 = vld [vmem:[%s34954_s6 + $0x398] sm:$0xff]  }
 0xa9a   : > { %v11033_v29 = vmax.f32 %v11025_v11, 0.0  ;;  %v27179_v11 = vld [vmem:[%s34954_s6 + $0x3d8] sm:$0xff]  }
 0xa9b   : > { %v11034_v63 = vmax.f32 %v11026_v13, 0.0  ;;  %v27181_v13 = vld [vmem:[%s34954_s6 + $0x3e0] sm:$0xff]  }
 0xa9c   : > { %v32341_v54 = vpack.c.bf16 %v11033_v29, %v11031_v14  ;;  %v27182_v14 = vld [vmem:[%s34954_s6 + $0x3a0] sm:$0xff]   ;;  %v27183_v29 = vld [vmem:[%s34954_s6 + $0x3e8] sm:$0xff]  }
 0xa9d   : > { %v32343_v31 = vpack.c.bf16 %v11034_v63, %v11032_v60  ;;  %v10982_v36 = vpop.f32.mrb[16].mxu1  ;;  %v27184_v60 = vld [vmem:[%s34954_s6 + $0x3a8] sm:$0xff]   ;;  %v27185_v63 = vld [vmem:[%s34954_s6 + $0x3f0] sm:$0xff]  }
 0xa9e   : > { %v11027_v41 = vadd.f32 %v11016_v30, %v10982_v36  ;;  %v10984_v42 = vpop.f32.mrb[17].mxu1  ;;  %v27187_v36 = vld [vmem:[%s34954_s6 + $0x3f8] sm:$0xff]  }
 0xa9f   : > { %v11028_v1 = vadd.f32 %v11016_v30, %v10984_v42  ;;  %v10986_v34 = vpop.f32.mrb[18].mxu1  ;;  %11203 = vmatprep.mubr.bf16.mxu1 %v32343_v31  ;;  %12362 = vmatprep.mubr.bf16.mxu0 %v32343_v31  ;;  %v27186_v30 = vld [vmem:[%s34954_s6 + $0x3b0] sm:$0xff]   ;;  %v27191_v42 = vld [vmem:[%s34954_s6 + $0x448] sm:$0xff]  }
 0xaa0   : > { %v11029_v39 = vadd.f32 %v11021_v56, %v10986_v34  ;;  %v10988_v3 = vpop.f32.mrb[19].mxu1  ;;  %11204 = vmatmul.mubr.bf16.vlgmr.msra.gmra.mrb[32].mxu1 %v32341_v54  ;;  %12363 = vmatmul.mubr.bf16.vlgmr.msra.gmra.mrb[32].mxu0 %v32341_v54  ;;  %v11035_v45 = vmax.f32 %v11027_v41, 0.0  ;;  %v27190_v41 = vld [vmem:[%s34954_s6 + $0x400] sm:$0xff]   ;;  %v27196_v34 = vld [vmem:[%s34954_s6 + $0x418] sm:$0xff]  }
 0xaa1   : > { %v11030_v4 = vadd.f32 %v11021_v56, %v10988_v3  ;;  %24472 = vmatpush3.bf16.msra.mxu1 %v27143_v37  ;;  %24614 = vmatpush3.bf16.msra.mxu0 %v27144_v40  ;;  %v11036_v48 = vmax.f32 %v11028_v1, 0.0  ;;  %v27188_v37 = vld [vmem:[%s34954_s6 + $0x3b8] sm:$0xff]   ;;  %v27189_v40 = vld [vmem:[%s34954_s6 + $0x440] sm:$0xff]   ;;  %v27194_v56 = vld [vmem:[%s34954_s6 + $0x410] sm:$0xff]  }
 0xaa2   : > { %v11037_v46 = vmax.f32 %v11029_v39, 0.0  ;;  %24473 = vmatprep.subr.bf16.mxu1 %v27145_v43  ;;  %24615 = vmatprep.subr.bf16.mxu0 %v27146_v58  ;;  %v27192_v43 = vld [vmem:[%s34954_s6 + $0x408] sm:$0xff]   ;;  %v27193_v58 = vld [vmem:[%s34954_s6 + $0x450] sm:$0xff]   ;;  %v27195_v1 = vld [vmem:[%s34954_s6 + $0x458] sm:$0xff]  }
 0xaa3   : > { %v11038_v62 = vmax.f32 %v11030_v4, 0.0  ;;  %v27197_v39 = vld [vmem:[%s34954_s6 + $0x460] sm:$0xff]   ;;  %v27199_v4 = vld [vmem:[%s34954_s6 + $0x468] sm:$0xff]  }
 0xaa4   : > { %v32373_v16 = vpack.c.bf16 %v11037_v46, %v11035_v45  ;;  %v27198_v3 = vld [vmem:[%s34954_s6 + $0x420] sm:$0xff]   ;;  %v27202_v45 = vld [vmem:[%s34954_s6 + $0x430] sm:$0xff]   ;;  %v27203_v46 = vld [vmem:[%s34954_s6 + $0x478] sm:$0xff]  }
 0xaa5   : > { %v32375_v15 = vpack.c.bf16 %v11038_v62, %v11036_v48  ;;  %24474 = vmatpush3.bf16.msra.mxu1 %v27147_v6  ;;  %24616 = vmatpush3.bf16.msra.mxu0 %v27148_v44  ;;  %v27200_v6 = vld [vmem:[%s34954_s6 + $0x428] sm:$0xff]   ;;  %v27201_v44 = vld [vmem:[%s34954_s6 + $0x470] sm:$0xff]  }
 0xaa6   : > { %24475 = vmatprep.subr.bf16.mxu1 %v27149_v32  ;;  %24617 = vmatprep.subr.bf16.mxu0 %v27150_v47  ;;  %v27204_v32 = vld [vmem:[%s34954_s6 + $0x438] sm:$0xff]   ;;  %v27205_v47 = vld [vmem:[%s34955_s7 + $0x20] sm:$0xff]  }
 0xaa7   : > { %11211 = vmatprep.mubr.bf16.mxu1 %v32375_v15  ;;  %12370 = vmatprep.mubr.bf16.mxu0 %v32375_v15 }
 0xaa8   : > { %11212 = vmatmul.mubr.bf16.gmra.mrb[36].mxu1 %v32373_v16  ;;  %12371 = vmatmul.mubr.bf16.gmra.mrb[36].mxu0 %v32373_v16 }
 0xaa9   : > { %24476 = vmatpush3.bf16.msra.mxu1 %v27151_v18  ;;  %24618 = vmatpush3.bf16.msra.mxu0 %v27152_v21 }
 0xaaa   : > { %11391 = vmatprep.mubr.bf16.mxu1 %v32343_v31  ;;  %12656 = vmatprep.mubr.bf16.mxu0 %v32343_v31 }
 0xaab   : > { %24477 = vmatprep.subr.bf16.mxu1 %v27153_v24  ;;  %24619 = vmatprep.subr.bf16.mxu0 %v27154_v26 }
 0xaad   : > { %24478 = vmatpush3.bf16.msra.mxu1 %v27155_v49  ;;  %24620 = vmatpush3.bf16.msra.mxu0 %v27156_v50 }
 0xaae   : > { %24479 = vmatprep.subr.bf16.mxu1 %v27157_v51  ;;  %24621 = vmatprep.subr.bf16.mxu0 %v27158_v52 }
 0xab1   : > { %24480 = vmatpush3.bf16.msra.mxu1 %v27159_v53  ;;  %24622 = vmatpush3.bf16.msra.mxu0 %v27160_v33 }
 0xab2   : > { %24481 = vmatprep.subr.bf16.mxu1 %v27161_v55  ;;  %24623 = vmatprep.subr.bf16.mxu0 %v27162_v57 }
 0xab5   : > { %24482 = vmatpush3.bf16.msra.mxu1 %v27163_v59  ;;  %24624 = vmatpush3.bf16.msra.mxu0 %v27164_v61 }
 0xab6   : > { %24483 = vmatprep.subr.bf16.mxu1 %v27165_v38  ;;  %24625 = vmatprep.subr.bf16.mxu0 %v27166_v2 }
 0xab9   : > { %24484 = vmatpush3.bf16.msra.mxu1 %v27167_v5  ;;  %24626 = vmatpush3.bf16.msra.mxu0 %v27168_v7 }
 0xaba   : > { %24485 = vmatprep.subr.bf16.mxu1 %v27169_v19  ;;  %24627 = vmatprep.subr.bf16.mxu0 %v27170_v23 }
 0xabd   : > { %24486 = vmatpush3.bf16.msra.mxu1 %v27171_v27  ;;  %24628 = vmatpush3.bf16.msra.mxu0 %v27172_v17 }
 0xabe   : > { %24681 = vmatprep.subr.bf16.mxu0 %v27173_v20 }
 0xac0   : > { %11392 = vmatmul.mubr.bf16.vlgmr.msra.gmra.mrb[40].mxu1 %v32341_v54  ;;  %12657 = vmatmul.mubr.bf16.vlgmr.msra.gmra.mrb[40].mxu0 %v32341_v54 }
 0xac1   : > { %11399 = vmatprep.mubr.bf16.mxu1 %v32375_v15  ;;  %12664 = vmatprep.mubr.bf16.mxu0 %v32375_v15 }
 0xac2   : > { %24682 = vmatpush3.bf16.msra.mxu0 %v27174_v22 }
 0xac3   : > { %24683 = vmatprep.subr.bf16.mxu0 %v27175_v35 }
 0xac6   : > { %24684 = vmatpush3.bf16.msra.mxu0 %v27176_v8 }
 0xac7   : > { %24685 = vmatprep.subr.bf16.mxu0 %v27177_v9 }
 0xac8   : > { %11400 = vmatmul.mubr.bf16.gmra.mrb[44].mxu1 %v32373_v16  ;;  %12665 = vmatmul.mubr.bf16.gmra.mrb[44].mxu0 %v32373_v16 }
 0xac9   : > { %13244 = vmatprep.mubr.bf16.mxu0 %v32343_v31  ;;  %24792 = vmatprep.mubr.msk.bf16.mxu1 %vm613_vm0, %v27205_v47  ;;  %v27206_v47 = vld [vmem:[%s34955_s7 + $0x28] sm:$0xff]  }
 0xaca   : > { %24686 = vmatpush3.bf16.msra.mxu0 %v27178_v10 }
 0xacb   : > { %24687 = vmatprep.subr.bf16.mxu0 %v27179_v11 }
 0xace   : > { %24688 = vmatpush3.bf16.msra.mxu0 %v27180_v12 }
 0xacf   : > { %24689 = vmatprep.subr.bf16.mxu0 %v27181_v13 }
 0xad2   : > { %24690 = vmatpush3.bf16.msra.mxu0 %v27182_v14 }
 0xad3   : > { %24691 = vmatprep.subr.bf16.mxu0 %v27183_v29 }
 0xad6   : > { %24692 = vmatpush3.bf16.msra.mxu0 %v27184_v60 }
 0xad7   : > { %24693 = vmatprep.subr.bf16.mxu0 %v27185_v63 }
 0xada   : > { %24694 = vmatpush3.bf16.msra.mxu0 %v27186_v30 }
 0xadb   : > { %24695 = vmatprep.subr.bf16.mxu0 %v27187_v36 }
 0xade   : > { %24696 = vmatpush3.bf16.msra.mxu0 %v27188_v37 }
 0xadf   : > { %24715 = vmatprep.subr.bf16.mxu0 %v27189_v40 }
 0xae1   : > { %13245 = vmatmul.mubr.bf16.vlgmr.msra.gmra.mrb[48].mxu0 %v32341_v54 }
 0xae2   : > { %13252 = vmatprep.mubr.bf16.mxu0 %v32375_v15  ;;  %24716 = vmatpush3.bf16.msra.mxu0 %v27190_v41 }
 0xae3   : > { %24717 = vmatprep.subr.bf16.mxu0 %v27191_v42 }
 0xae6   : > { %24718 = vmatpush3.bf16.msra.mxu0 %v27192_v43 }
 0xae7   : > { %24719 = vmatprep.subr.bf16.mxu0 %v27193_v58 }
 0xae9   : > { %13253 = vmatmul.mubr.bf16.gmra.mrb[52].mxu0 %v32373_v16 }
 0xaea   : > { %24720 = vmatpush3.bf16.msra.mxu0 %v27194_v56  ;;  %13538 = vmatprep.mubr.bf16.mxu0 %v32343_v31 }
 0xaeb   : > { %24721 = vmatprep.subr.bf16.mxu0 %v27195_v1 }
 0xaee   : > { %24722 = vmatpush3.bf16.msra.mxu0 %v27196_v34 }
 0xaef   : > { %24723 = vmatprep.subr.bf16.mxu0 %v27197_v39 }
 0xaf2   : > { %24724 = vmatpush3.bf16.msra.mxu0 %v27198_v3 }
 0xaf3   : > { %24725 = vmatprep.subr.bf16.mxu0 %v27199_v4 }
 0xaf6   : > { %24726 = vmatpush3.bf16.msra.mxu0 %v27200_v6 }
 0xaf7   : > { %24727 = vmatprep.subr.bf16.mxu0 %v27201_v44 }
 0xafa   : > { %24728 = vmatpush3.bf16.msra.mxu0 %v27202_v45 }
 0xafb   : > { %24729 = vmatprep.subr.bf16.mxu0 %v27203_v46 }
 0xafe   : > { %24730 = vmatpush3.bf16.msra.mxu0 %v27204_v32 }
 0xb01   : > { %13539 = vmatmul.mubr.bf16.vlgmr.msra.gmra.mrb[56].mxu0 %v32341_v54 }
 0xb02   : > { %13546 = vmatprep.mubr.bf16.mxu0 %v32375_v15 }
 0xb09   : > { %13547 = vmatmul.mubr.bf16.gmra.mrb[60].mxu0 %v32373_v16 }
 0xb0a   : > { %14533 = vmatprep.mubr.bf16.mxu0 %v28055_v0 }
 0xb73   : > { %v24459_v48 = vpop.f32.mrb[32].mxu1  ;;  %v24595_v62 = vpop.f32.mrb[32].mxu0 }
 0xb74   : > { %v24460_v18 = vpop.f32.mrb[33].mxu1  ;;  %v24596_v21 = vpop.f32.mrb[33].mxu0 }
 0xb75   : > { %v24461_v24 = vadd.f32 %v24460_v18, %v24459_v48  ;;  %v24597_v26 = vadd.f32 %v24596_v21, %v24595_v62  ;;  %v24462_v49 = vpop.f32.mrb[34].mxu1  ;;  %v24598_v50 = vpop.f32.mrb[34].mxu0  ;;  %v27207_v48 = vld [vmem:[%s34955_s7 + $0x30] sm:$0xff]   ;;  %v27210_v62 = vld [vmem:[%s34954_s6 + $0x140] sm:$0xff]   ;;  %v27208_v18 = vld [vmem:[%s34955_s7 + $0x38] sm:$0xff]  }
 0xb76   : > { %v24463_v51 = vpop.f32.mrb[35].mxu1  ;;  %v24599_v52 = vpop.f32.mrb[35].mxu0  ;;  %v27209_v21 = vld [vmem:[%s34955_s7] sm:$0xff]  }
 0xb77   : > { %v24464_v53 = vadd.f32 %v24463_v51, %v24462_v49  ;;  %v24600_v33 = vadd.f32 %v24599_v52, %v24598_v50  ;;  %v27212_v49 = vld [vmem:[%s34954_s6 + $0x100] sm:$0xff]   ;;  %v27215_v50 = vld [vmem:[%s34955_s7 + $0x10] sm:$0xff]   ;;  %v27213_v52 = vld [vmem:[%s34954_s6 + $0x148] sm:$0xff]  }
 0xb79   : > { %v11220_v55 = vpack.c.bf16 %v24464_v53, %v24461_v24  ;;  %v32564_v57 = vpack.c.bf16 %v24600_v33, %v24597_v26  ;;  %v27211_v24 = vld [vmem:[%s34955_s7 + $0x8] sm:$0xff]  }
 0xb7b   : > { %v24465_v59 = vpop.f32.mrb[36].mxu1  ;;  %v24601_v61 = vpop.f32.mrb[36].mxu0 }
 0xb7c   : > { %v24466_v38 = vpop.f32.mrb[37].mxu1  ;;  %v24602_v2 = vpop.f32.mrb[37].mxu0 }
 0xb7d   : > { %v24467_v5 = vadd.f32 %v24466_v38, %v24465_v59  ;;  %v24603_v7 = vadd.f32 %v24602_v2, %v24601_v61  ;;  %v24468_v19 = vpop.f32.mrb[38].mxu1  ;;  %v24604_v23 = vpop.f32.mrb[38].mxu0  ;;  %v27214_v61 = vld [vmem:[%s34954_s6 + $0x108] sm:$0xff]   ;;  %v27216_v38 = vld [vmem:[%s34954_s6 + $0x150] sm:$0xff]  }
 0xb7e   : > { %v24469_v27 = vpop.f32.mrb[39].mxu1  ;;  %v24605_v17 = vpop.f32.mrb[39].mxu0 }
 0xb7f   : > { %v24470_v20 = vadd.f32 %v24469_v27, %v24468_v19  ;;  %v24606_v22 = vadd.f32 %v24605_v17, %v24604_v23  ;;  %v27218_v19 = vld [vmem:[%s34954_s6 + $0x110] sm:$0xff]   ;;  %v27219_v27 = vld [vmem:[%s34954_s6 + $0x158] sm:$0xff]  }
 0xb81   : > { %v11221_v35 = vpack.c.bf16 %v24470_v20, %v24467_v5  ;;  %v32566_v8 = vpack.c.bf16 %v24606_v22, %v24603_v7  ;;  %v27217_v5 = vld [vmem:[%s34955_s7 + $0x18] sm:$0xff]  }
 0xb93   : > { %v24487_v9 = vpop.f32.mrb[40].mxu1  ;;  %v24629_v10 = vpop.f32.mrb[40].mxu0 }
 0xb94   : > { %v24488_v11 = vpop.f32.mrb[41].mxu1  ;;  %v24630_v12 = vpop.f32.mrb[41].mxu0 }
 0xb95   : > { %v24489_v13 = vadd.f32 %v24488_v11, %v24487_v9  ;;  %v24631_v14 = vadd.f32 %v24630_v12, %v24629_v10  ;;  %v24490_v29 = vpop.f32.mrb[42].mxu1  ;;  %v24632_v60 = vpop.f32.mrb[42].mxu0  ;;  %v27220_v9 = vld [vmem:[%s34954_s6 + $0x118] sm:$0xff]   ;;  %v27221_v10 = vld [vmem:[%s34954_s6 + $0x160] sm:$0xff]  }
 0xb96   : > { %v24491_v63 = vpop.f32.mrb[43].mxu1  ;;  %v24633_v30 = vpop.f32.mrb[43].mxu0  ;;  %v27222_v12 = vld [vmem:[%s34954_s6 + $0x120] sm:$0xff]  }
 0xb97   : > { %v24492_v36 = vadd.f32 %v24491_v63, %v24490_v29  ;;  %v24634_v37 = vadd.f32 %v24633_v30, %v24632_v60  ;;  %v27225_v29 = vld [vmem:[%s34954_s6 + $0x170] sm:$0xff]   ;;  %v27227_v63 = vld [vmem:[%s34954_s6 + $0x178] sm:$0xff]  }
 0xb98   : > { %v27226_v60 = vld [vmem:[%s34954_s6 + $0x130] sm:$0xff]   ;;  %v27228_v30 = vld [vmem:[%s34954_s6 + $0x138] sm:$0xff]  }
 0xb99   : > { %v11408_v40 = vpack.c.bf16 %v24492_v36, %v24489_v13  ;;  %v32568_v41 = vpack.c.bf16 %v24634_v37, %v24631_v14  ;;  %v27223_v13 = vld [vmem:[%s34954_s6 + $0x168] sm:$0xff]  }
 0xb9a   : > { %v27224_v14 = vld [vmem:[%s34954_s6 + $0x128] sm:$0xff]  }
 0xb9b   : > { %v24493_v42 = vpop.f32.mrb[44].mxu1  ;;  %24788 = vmatprep.subr.bf16.mxu1 %v11408_v40  ;;  %v24635_v43 = vpop.f32.mrb[44].mxu0 }
 0xb9c   : > { %v24494_v58 = vpop.f32.mrb[45].mxu1  ;;  %24789 = vmatpush3.bf16.msra.mxu1 %v11408_v40  ;;  %v24636_v56 = vpop.f32.mrb[45].mxu0 }
 0xb9d   : > { %v24495_v1 = vadd.f32 %v24494_v58, %v24493_v42  ;;  %v24637_v34 = vadd.f32 %v24636_v56, %v24635_v43  ;;  %v24496_v39 = vpop.f32.mrb[46].mxu1  ;;  %v24638_v3 = vpop.f32.mrb[46].mxu0 }
 0xb9e   : > { %v24497_v4 = vpop.f32.mrb[47].mxu1  ;;  %v24639_v6 = vpop.f32.mrb[47].mxu0 }
 0xb9f   : > { %v24498_v44 = vadd.f32 %v24497_v4, %v24496_v39  ;;  %v24640_v45 = vadd.f32 %v24639_v6, %v24638_v3 }
 0xba1   : > { %v11409_v46 = vpack.c.bf16 %v24498_v44, %v24495_v1  ;;  %v32570_v32 = vpack.c.bf16 %v24640_v45, %v24637_v34  ;;  %v27229_v45 = vld [vmem:[%s34955_s7 + $0x40] sm:$0xff]  }
 0xba3   : > { %24790 = vmatprep.subr.bf16.mxu1 %v11409_v46 }
 0xba4   : > { %24791 = vmatpush3.bf16.msra.mxu1 %v11409_v46 }
 0xba5   : > { %24800 = vmatprep.subr.bf16.mxu1 %v11220_v55 }
 0xba7   : > { %24793 = vmatmul.mubr.msk.bf16.vlgmr.msra.gmra.mrb[48].mxu1 %vm613_vm0, %v27206_v47 }
 0xba8   : > { %24801 = vmatpush3.bf16.msra.mxu1 %v11220_v55  ;;  %24796 = vmatprep.mubr.msk.bf16.mxu1 %vm613_vm0, %v27207_v48 }
 0xba9   : > { %24802 = vmatprep.subr.bf16.mxu1 %v11221_v35 }
 0xbac   : > { %24803 = vmatpush3.bf16.msra.mxu1 %v11221_v35 }
 0xbad   : > { %24511 = vmatprep.subr.bf16.mxu1 %v27210_v62 }
 0xbaf   : > { %24797 = vmatmul.mubr.msk.bf16.gmra.mrb[52].mxu1 %vm613_vm0, %v27208_v18 }
 0xbb0   : > { %24804 = vmatprep.mubr.msk.bf16.mxu1 %vm613_vm0, %v27209_v21 }
 0xbb4   : > { %v24697_v26 = vpop.f32.mrb[48].mxu0 }
 0xbb5   : > { %v24698_v51 = vpop.f32.mrb[49].mxu0 }
 0xbb6   : > { %v24699_v53 = vadd.f32 %v24698_v51, %v24697_v26  ;;  %v24700_v33 = vpop.f32.mrb[50].mxu0 }
 0xbb7   : > { %v24701_v55 = vpop.f32.mrb[51].mxu0  ;;  %24805 = vmatmul.mubr.msk.bf16.vlgmr.msra.gmra.mrb[48].mxu1 %vm613_vm0, %v27211_v24 }
 0xbb8   : > { %v24702_v59 = vadd.f32 %v24701_v55, %v24700_v33  ;;  %24512 = vmatpush3.bf16.msra.mxu1 %v27212_v49  ;;  %24808 = vmatprep.mubr.msk.bf16.mxu1 %vm613_vm0, %v27215_v50  ;;  %v27231_v55 = vld [vmem:[%s34954_s6 + $0x1c0] sm:$0xff]  }
 0xbb9   : > { %24513 = vmatprep.subr.bf16.mxu1 %v27213_v52 }
 0xbba   : > { %v32611_v2 = vpack.c.bf16 %v24702_v59, %v24699_v53  ;;  %v27230_v59 = vld [vmem:[%s34955_s7 + $0x48] sm:$0xff]  }
 0xbbc   : > { %24514 = vmatpush3.bf16.msra.mxu1 %v27214_v61  ;;  %v24703_v7 = vpop.f32.mrb[52].mxu0  ;;  %v27232_v61 = vld [vmem:[%s34954_s6 + $0x180] sm:$0xff]  }
 0xbbd   : > { %v24704_v23 = vpop.f32.mrb[53].mxu0  ;;  %24515 = vmatprep.subr.bf16.mxu1 %v27216_v38  ;;  %v27235_v38 = vld [vmem:[%s34955_s7 + $0x50] sm:$0xff]  }
 0xbbe   : > { %v24705_v17 = vadd.f32 %v24704_v23, %v24703_v7  ;;  %v24706_v20 = vpop.f32.mrb[54].mxu0  ;;  %v27234_v7 = vld [vmem:[%s34954_s6 + $0x188] sm:$0xff]   ;;  %v27236_v23 = vld [vmem:[%s34955_s7 + $0x58] sm:$0xff]  }
 0xbbf   : > { %v24707_v22 = vpop.f32.mrb[55].mxu0  ;;  %24809 = vmatmul.mubr.msk.bf16.gmra.mrb[52].mxu1 %vm613_vm0, %v27217_v5  ;;  %v27233_v5 = vld [vmem:[%s34954_s6 + $0x1c8] sm:$0xff]  }
 0xbc0   : > { %v24708_v35 = vadd.f32 %v24707_v22, %v24706_v20  ;;  %24516 = vmatpush3.bf16.msra.mxu1 %v27218_v19  ;;  %11774 = vmatprep.mubr.bf16.mxu1 %v32343_v31  ;;  %v27237_v19 = vld [vmem:[%s34954_s6 + $0x1d0] sm:$0xff]   ;;  %v27240_v20 = vld [vmem:[%s34954_s6 + $0x198] sm:$0xff]   ;;  %v27241_v22 = vld [vmem:[%s34954_s6 + $0x1e0] sm:$0xff]  }
 0xbc1   : > { %24517 = vmatprep.subr.bf16.mxu1 %v27219_v27  ;;  %v27238_v27 = vld [vmem:[%s34954_s6 + $0x190] sm:$0xff]  }
 0xbc2   : > { %v32630_v11 = vpack.c.bf16 %v24708_v35, %v24705_v17  ;;  %v27239_v17 = vld [vmem:[%s34954_s6 + $0x1d8] sm:$0xff]   ;;  %v27242_v35 = vld [vmem:[%s34954_s6 + $0x1a0] sm:$0xff]  }
 0xbc4   : > { %24518 = vmatpush3.bf16.msra.mxu1 %v27220_v9  ;;  %v27243_v9 = vld [vmem:[%s34954_s6 + $0x1e8] sm:$0xff]  }
 0xbc5   : > { %24519 = vmatprep.subr.bf16.mxu1 %v27221_v10  ;;  %v27244_v10 = vld [vmem:[%s34954_s6 + $0x1a8] sm:$0xff]  }
 0xbc8   : > { %24520 = vmatpush3.bf16.msra.mxu1 %v27222_v12  ;;  %v27245_v12 = vld [vmem:[%s34954_s6 + $0x1f0] sm:$0xff]  }
 0xbc9   : > { %24521 = vmatprep.subr.bf16.mxu1 %v27223_v13  ;;  %v27246_v13 = vld [vmem:[%s34954_s6 + $0x1b0] sm:$0xff]  }
 0xbcc   : > { %24522 = vmatpush3.bf16.msra.mxu1 %v27224_v14  ;;  %v27247_v14 = vld [vmem:[%s34954_s6 + $0x1f8] sm:$0xff]  }
 0xbcd   : > { %24523 = vmatprep.subr.bf16.mxu1 %v27225_v29  ;;  %v27248_v29 = vld [vmem:[%s34954_s6 + $0x1b8] sm:$0xff]  }
 0xbd0   : > { %24524 = vmatpush3.bf16.msra.mxu1 %v27226_v60  ;;  %v27249_v60 = vld [vmem:[%s34955_s7 + $0x60] sm:$0xff]  }
 0xbd1   : > { %24525 = vmatprep.subr.bf16.mxu1 %v27227_v63 }
 0xbd4   : > { %24526 = vmatpush3.bf16.msra.mxu1 %v27228_v30  ;;  %v24731_v36 = vpop.f32.mrb[56].mxu0 }
 0xbd5   : > { %v24732_v37 = vpop.f32.mrb[57].mxu0 }
 0xbd6   : > { %v24733_v40 = vadd.f32 %v24732_v37, %v24731_v36  ;;  %v24734_v42 = vpop.f32.mrb[58].mxu0 }
 0xbd7   : > { %11775 = vmatmul.mubr.bf16.vlgmr.msra.gmra.mrb[56].mxu1 %v32341_v54  ;;  %v24735_v43 = vpop.f32.mrb[59].mxu0 }
 0xbd8   : > { %v24736_v58 = vadd.f32 %v24735_v43, %v24734_v42  ;;  %11782 = vmatprep.mubr.bf16.mxu1 %v32375_v15 }
 0xbda   : > { %v32655_v56 = vpack.c.bf16 %v24736_v58, %v24733_v40 }
 0xbdc   : > { %v24737_v1 = vpop.f32.mrb[60].mxu0 }
 0xbdd   : > { %v24738_v34 = vpop.f32.mrb[61].mxu0 }
 0xbde   : > { %v24739_v39 = vadd.f32 %v24738_v34, %v24737_v1  ;;  %v24740_v3 = vpop.f32.mrb[62].mxu0 }
 0xbdf   : > { %11783 = vmatmul.mubr.bf16.gmra.mrb[60].mxu1 %v32373_v16  ;;  %v24741_v4 = vpop.f32.mrb[63].mxu0 }
 0xbe0   : > { %v24742_v6 = vadd.f32 %v24741_v4, %v24740_v3  ;;  %24816 = vmatprep.mubr.msk.bf16.mxu1 %vm613_vm0, %v27229_v45  ;;  %v27250_v45 = vld [vmem:[%s34955_s7 + $0x68] sm:$0xff]  }
 0xbe2   : > { %v32658_v44 = vpack.c.bf16 %v24742_v6, %v24739_v39 }
 0xcaa   : > { %v24527_v46 = vpop.f32.mrb[56].mxu1 }
 0xcab   : > { %v24528_v47 = vpop.f32.mrb[57].mxu1 }
 0xcac   : > { %v24529_v48 = vadd.f32 %v24528_v47, %v24527_v46  ;;  %v24530_v62 = vpop.f32.mrb[58].mxu1  ;;  %v27251_v46 = vld [vmem:[%s34955_s7 + $0x70] sm:$0xff]   ;;  %v27252_v47 = vld [vmem:[%s34955_s7 + $0x78] sm:$0xff]  }
 0xcad   : > { %v24531_v18 = vpop.f32.mrb[59].mxu1 }
 0xcae   : > { %v24532_v21 = vadd.f32 %v24531_v18, %v24530_v62  ;;  %v27255_v62 = vld [vmem:[%s34955_s7 + $0x90] sm:$0xff]   ;;  %v27256_v18 = vld [vmem:[%s34955_s7 + $0x98] sm:$0xff]  }
 0xcb0   : > { %v11791_v24 = vpack.c.bf16 %v24532_v21, %v24529_v48  ;;  %v27253_v48 = vld [vmem:[%s34955_s7 + $0x80] sm:$0xff]  }
 0xcb1   : > { %v27257_v21 = vld [vmem:[%s34955_s7 + $0xa0] sm:$0xff]  }
 0xcb2   : > { %v24533_v26 = vpop.f32.mrb[60].mxu1  ;;  %24812 = vmatprep.subr.bf16.mxu1 %v11791_v24 }
 0xcb3   : > { %v24534_v49 = vpop.f32.mrb[61].mxu1  ;;  %24813 = vmatpush3.bf16.msra.mxu1 %v11791_v24  ;;  %v27260_v24 = vld [vmem:[%s34954_s6 + $0x300] sm:$0xff]  }
 0xcb4   : > { %v24535_v50 = vadd.f32 %v24534_v49, %v24533_v26  ;;  %v24536_v51 = vpop.f32.mrb[62].mxu1  ;;  %v27261_v26 = vld [vmem:[%s34954_s6 + $0x348] sm:$0xff]  }
 0xcb5   : > { %v24537_v52 = vpop.f32.mrb[63].mxu1  ;;  %v27262_v49 = vld [vmem:[%s34954_s6 + $0x308] sm:$0xff]  }
 0xcb6   : > { %v24538_v53 = vadd.f32 %v24537_v52, %v24536_v51  ;;  %v27265_v51 = vld [vmem:[%s34955_s7 + $0xb8] sm:$0xff]   ;;  %v27266_v52 = vld [vmem:[%s34954_s6 + $0x310] sm:$0xff]  }
 0xcb8   : > { %v11792_v33 = vpack.c.bf16 %v24538_v53, %v24535_v50  ;;  %v27264_v50 = vld [vmem:[%s34954_s6 + $0x350] sm:$0xff]   ;;  %v27267_v53 = vld [vmem:[%s34954_s6 + $0x358] sm:$0xff]  }
 0xcba   : > { %24814 = vmatprep.subr.bf16.mxu1 %v11792_v33 }
 0xcbb   : > { %24815 = vmatpush3.bf16.msra.mxu1 %v11792_v33  ;;  %v27268_v33 = vld [vmem:[%s34954_s6 + $0x318] sm:$0xff]  }
 0xcbc   : > { %24545 = vmatprep.subr.bf16.mxu1 %v27231_v55  ;;  %v27269_v55 = vld [vmem:[%s34954_s6 + $0x360] sm:$0xff]  }
 0xcbe   : > { %24817 = vmatmul.mubr.msk.bf16.vlgmr.msra.gmra.mrb[48].mxu1 %vm613_vm0, %v27230_v59  ;;  %v27270_v59 = vld [vmem:[%s34954_s6 + $0x320] sm:$0xff]  }
 0xcbf   : > { %24546 = vmatpush3.bf16.msra.mxu1 %v27232_v61  ;;  %24820 = vmatprep.mubr.msk.bf16.mxu1 %vm613_vm0, %v27235_v38  ;;  %v27271_v61 = vld [vmem:[%s34954_s6 + $0x368] sm:$0xff]   ;;  %v27273_v38 = vld [vmem:[%s34954_s6 + $0x370] sm:$0xff]  }
 0xcc0   : > { %24547 = vmatprep.subr.bf16.mxu1 %v27233_v5  ;;  %v27274_v5 = vld [vmem:[%s34954_s6 + $0x330] sm:$0xff]  }
 0xcc3   : > { %24548 = vmatpush3.bf16.msra.mxu1 %v27234_v7  ;;  %v27275_v7 = vld [vmem:[%s34954_s6 + $0x378] sm:$0xff]  }
 0xcc4   : > { %24549 = vmatprep.subr.bf16.mxu1 %v27237_v19  ;;  %v27276_v19 = vld [vmem:[%s34954_s6 + $0x338] sm:$0xff]  }
 0xcc6   : > { %24821 = vmatmul.mubr.msk.bf16.gmra.mrb[52].mxu1 %vm613_vm0, %v27236_v23  ;;  %v27277_v23 = vld [vmem:[%s34955_s7 + $0xc0] sm:$0xff]  }
 0xcc7   : > { %24550 = vmatpush3.bf16.msra.mxu1 %v27238_v27  ;;  %12068 = vmatprep.mubr.bf16.mxu1 %v32343_v31 }
 0xcc8   : > { %24551 = vmatprep.subr.bf16.mxu1 %v27239_v17 }
 0xccb   : > { %24552 = vmatpush3.bf16.msra.mxu1 %v27240_v20 }
 0xccc   : > { %24553 = vmatprep.subr.bf16.mxu1 %v27241_v22 }
 0xccf   : > { %24554 = vmatpush3.bf16.msra.mxu1 %v27242_v35 }
 0xcd0   : > { %24555 = vmatprep.subr.bf16.mxu1 %v27243_v9 }
 0xcd3   : > { %24556 = vmatpush3.bf16.msra.mxu1 %v27244_v10 }
 0xcd4   : > { %24557 = vmatprep.subr.bf16.mxu1 %v27245_v12 }
 0xcd7   : > { %24558 = vmatpush3.bf16.msra.mxu1 %v27246_v13 }
 0xcd8   : > { %24559 = vmatprep.subr.bf16.mxu1 %v27247_v14 }
 0xcdb   : > { %24560 = vmatpush3.bf16.msra.mxu1 %v27248_v29 }
 0xcde   : > { %12069 = vmatmul.mubr.bf16.vlgmr.msra.gmra.mrb[64].mxu1 %v32341_v54 }
 0xcdf   : > { %12076 = vmatprep.mubr.bf16.mxu1 %v32375_v15 }
 0xce6   : > { %12077 = vmatmul.mubr.bf16.gmra.mrb[68].mxu1 %v32373_v16 }
 0xce7   : > { %24828 = vmatprep.mubr.msk.bf16.mxu1 %vm613_vm0, %v27249_v60  ;;  %v27278_v60 = vld [vmem:[%s34955_s7 + $0xc8] sm:$0xff]  }
 0xdb1   : > { %v24561_v63 = vpop.f32.mrb[64].mxu1 }
 0xdb2   : > { %v24562_v30 = vpop.f32.mrb[65].mxu1 }
 0xdb3   : > { %v24563_v36 = vadd.f32 %v24562_v30, %v24561_v63  ;;  %v24564_v37 = vpop.f32.mrb[66].mxu1  ;;  %v27279_v63 = vld [vmem:[%s34955_s7 + $0xd0] sm:$0xff]   ;;  %v27280_v30 = vld [vmem:[%s34955_s7 + $0xd8] sm:$0xff]  }
 0xdb4   : > { %v24565_v40 = vpop.f32.mrb[67].mxu1 }
 0xdb5   : > { %v24566_v42 = vadd.f32 %v24565_v40, %v24564_v37  ;;  %v27283_v37 = vld [vmem:[%s34955_s7 + $0xf0] sm:$0xff]   ;;  %v27285_v40 = vld [vmem:[%s34955_s7 + $0x100] sm:$0xff]  }
 0xdb7   : > { %v12085_v43 = vpack.c.bf16 %v24566_v42, %v24563_v36  ;;  %v27281_v36 = vld [vmem:[%s34955_s7 + $0xe0] sm:$0xff]   ;;  %v27287_v42 = vld [vmem:[%s34955_s7 + $0x110] sm:$0xff]  }
 0xdb9   : > { %v24567_v58 = vpop.f32.mrb[68].mxu1  ;;  %24824 = vmatprep.subr.bf16.mxu1 %v12085_v43 }
 0xdba   : > { %v24568_v1 = vpop.f32.mrb[69].mxu1  ;;  %24825 = vmatpush3.bf16.msra.mxu1 %v12085_v43  ;;  %v27291_v43 = vld [vmem:[%s34957_s9 + $0x4] ss:$8 sps:$4 sm:$0xff]  }
 0xdbb   : > { %v24569_v34 = vadd.f32 %v24568_v1, %v24567_v58  ;;  %v24570_v39 = vpop.f32.mrb[70].mxu1  ;;  %v27289_v58 = vld [vmem:[%s34957_s9] ss:$8 sps:$4 sm:$0xff]   ;;  %14501 = vmatprep.subr.bf16.mxu0 %v27291_v43  ;;  %v27294_v1 = vld [vmem:[%s34957_s9 + $0x3c] ss:$8 sps:$4 sm:$0xff]  }
 0xdbc   : > { %v24571_v3 = vpop.f32.mrb[71].mxu1  ;;  %14502 = vmatpush1.bf16.msra.mxu0 %v27289_v58 }
 0xdbd   : > { %v24572_v4 = vadd.f32 %v24571_v3, %v24570_v39  ;;  %v27297_v39 = vld [vmem:[%s34957_s9 + $0x14] ss:$8 sps:$4 sm:$0xff]   ;;  %v27295_v3 = vld [vmem:[%s34957_s9 + $0x10] ss:$8 sps:$4 sm:$0xff]  }
 0xdbe   : > { %14503 = vmatprep.subr.bf16.mxu0 %v27297_v39 }
 0xdbf   : > { %v12086_v6 = vpack.c.bf16 %v24572_v4, %v24569_v34  ;;  %v27292_v34 = vld [vmem:[%s34957_s9 + $0x38] ss:$8 sps:$4 sm:$0xff]   ;;  %v27300_v4 = vld [vmem:[%s34957_s9 + $0x4c] ss:$8 sps:$4 sm:$0xff]  }
 0xdc0   : > { %14504 = vmatpush1.bf16.msra.mxu0 %v27295_v3 }
 0xdc1   : > { %24826 = vmatprep.subr.bf16.mxu1 %v12086_v6 }
 0xdc2   : > { %24827 = vmatpush3.bf16.msra.mxu1 %v12086_v6  ;;  %v27298_v6 = vld [vmem:[%s34957_s9 + $0x48] ss:$8 sps:$4 sm:$0xff]  }
 0xdc3   : > { %24836 = vmatprep.subr.bf16.mxu1 %v32564_v57 }
 0xdc5   : > { %24829 = vmatmul.mubr.msk.bf16.vlgmr.msra.gmra.mrb[48].mxu1 %vm613_vm0, %v27250_v45  ;;  %v27303_v45 = vld [vmem:[%s34957_s9 + $0x24] ss:$8 sps:$4 sm:$0xff]  }
 0xdc6   : > { %24837 = vmatpush3.bf16.msra.mxu1 %v32564_v57  ;;  %24832 = vmatprep.mubr.msk.bf16.mxu1 %vm613_vm0, %v27251_v46  ;;  %v27254_v57 = vld [vmem:[%s34955_s7 + $0x88] sm:$0xff]  }
 0xdc7   : > { %24838 = vmatprep.subr.bf16.mxu1 %v32566_v8  ;;  %v27301_v46 = vld [vmem:[%s34957_s9 + $0x20] ss:$8 sps:$4 sm:$0xff]   ;;  %14505 = vmatprep.subr.bf16.mxu0 %v27303_v45 }
 0xdc8   : > { %14506 = vmatpush1.bf16.msra.mxu0 %v27301_v46 }
 0xdca   : > { %24839 = vmatpush3.bf16.msra.mxu1 %v32566_v8  ;;  %v27258_v8 = vld [vmem:[%s34954_s6 + $0x340] sm:$0xff]  }
 0xdcb   : > { %24848 = vmatprep.subr.bf16.mxu1 %v32568_v41 }
 0xdcd   : > { %24833 = vmatmul.mubr.msk.bf16.gmra.mrb[52].mxu1 %vm613_vm0, %v27252_v47  ;;  %v14009_v47 = vld [vmem:[%s34957_s9 + $0x30] sm:$0x11] }
 0xdce   : > { %24840 = vmatprep.mubr.msk.bf16.mxu1 %vm613_vm0, %v27253_v48  ;;  %v27306_v48 = vld [vmem:[%s34957_s9 + $0x5c] ss:$8 sps:$4 sm:$0xff]  }
 0xdd5   : > { %24841 = vmatmul.mubr.msk.bf16.vlgmr.msra.gmra.mrb[48].mxu1 %vm613_vm0, %v27254_v57  ;;  %v23810_v57 = vcombine.high %v14009_v47, %v14009_v47 }
 0xdd6   : > { %24849 = vmatpush3.bf16.msra.mxu1 %v32568_v41  ;;  %24844 = vmatprep.mubr.msk.bf16.mxu1 %vm613_vm0, %v27255_v62  ;;  %v27259_v41 = vld [vmem:[%s34955_s7 + $0xa8] sm:$0xff]   ;;  %v27304_v62 = vld [vmem:[%s34957_s9 + $0x58] ss:$8 sps:$4 sm:$0xff]  }
 0xdd7   : > { %24850 = vmatprep.subr.bf16.mxu1 %v32570_v32 }
 0xdda   : > { %24851 = vmatpush3.bf16.msra.mxu1 %v32570_v32  ;;  %v27263_v32 = vld [vmem:[%s34955_s7 + $0xb0] sm:$0xff]  }
 0xddb   : > { %24647 = vmatprep.subr.bf16.mxu1 %v27258_v8  ;;  %v23809_v8 = vcombine.low %v14009_v47, %v14009_v47 }
 0xddd   : > { %24845 = vmatmul.mubr.msk.bf16.gmra.mrb[52].mxu1 %vm613_vm0, %v27256_v18  ;;  %v14016_v18 = vld [vmem:[%s34957_s9 + $0x68] sm:$0x11] }
 0xdde   : > { %24852 = vmatprep.mubr.msk.bf16.mxu1 %vm613_vm0, %v27257_v21  ;;  %v14499_v21 = vand.u32 %v23810_v57, %v29093_v28  ;;  %v27311_v57 = vld [vmem:[%s34957_s9 + $0x70] ss:$8 sps:$4 sm:$0xff]  }
 0xde0   : > { %14507 = vmatprep.subr.bf16.mxu0 %v14499_v21  ;;  %v27319_v21 = vld [vmem:[%s34957_s9 + $0x84] ss:$8 sps:$4 sm:$0xff]  }
 0xde5   : > { %24853 = vmatmul.mubr.msk.bf16.vlgmr.msra.gmra.mrb[48].mxu1 %vm613_vm0, %v27259_v41  ;;  %v23819_v41 = vcombine.high %v14016_v18, %v14016_v18 }
 0xde6   : > { %24648 = vmatpush3.bf16.msra.mxu1 %v27260_v24  ;;  %24856 = vmatprep.mubr.msk.bf16.mxu1 %vm613_vm0, %v27263_v32  ;;  %v14496_v24 = vand.u32 %v23809_v8, %v29093_v28  ;;  %v23818_v32 = vcombine.low %v14016_v18, %v14016_v18 }
 0xde7   : > { %24649 = vmatprep.subr.bf16.mxu1 %v27261_v26  ;;  %v14589_v26 = vand.u32 %v23819_v41, %v29093_v28 }
 0xde8   : > { %14508 = vmatpush1.bf16.msra.mxu0 %v14496_v24 }
 0xdea   : > { %24650 = vmatpush3.bf16.msra.mxu1 %v27262_v49  ;;  %v14586_v49 = vand.u32 %v23818_v32, %v29093_v28  ;;  %v27314_v32 = vld [vmem:[%s34957_s9 + $0xa8] ss:$8 sps:$4 sm:$0xff]  }
 0xdeb   : > { %24651 = vmatprep.subr.bf16.mxu1 %v27264_v50  ;;  %v27313_v50 = vld [vmem:[%s34957_s9 + $0x74] ss:$8 sps:$4 sm:$0xff]  }
 0xdec   : > { %14681 = vmatprep.subr.bf16.mxu0 %v27313_v50 }
 0xded   : > { %24857 = vmatmul.mubr.msk.bf16.gmra.mrb[52].mxu1 %vm613_vm0, %v27265_v51  ;;  %v27316_v51 = vld [vmem:[%s34957_s9 + $0xac] ss:$8 sps:$4 sm:$0xff]  }
 0xdee   : > { %24652 = vmatpush3.bf16.msra.mxu1 %v27266_v52  ;;  %12950 = vmatprep.mubr.bf16.mxu1 %v32343_v31  ;;  %v27272_v31 = vld [vmem:[%s34954_s6 + $0x328] sm:$0xff]   ;;  %v13682_v52 = vpop.permute.xlu0 %13681 }
 0xdef   : > { %24653 = vmatprep.subr.bf16.mxu1 %v27267_v53  ;;  %v13687_v53 = vpop.permute.xlu1 %13686 }
 0xdf2   : > { %24654 = vmatpush3.bf16.msra.mxu1 %v27268_v33  ;;  %v28058_v33 = vmov 1966171168  }
 0xdf3   : > { %24655 = vmatprep.subr.bf16.mxu1 %v27269_v55  ;;  %v13745_v55 = vunpack.c.l.s4 %v28058_v33 }
 0xdf6   : > { %24656 = vmatpush3.bf16.msra.mxu1 %v27270_v59  ;;  %v13747_v59 = vlaneseq }
 0xdf7   : > { %24657 = vmatprep.subr.bf16.mxu1 %v27271_v61  ;;  %v13692_v61 = vpop.permute.xlu0 %13691 }
 0xdfa   : > { %24658 = vmatpush3.bf16.msra.mxu1 %v27272_v31 }
 0xdfb   : > { %24659 = vmatprep.subr.bf16.mxu1 %v27273_v38  ;;  %v13702_v3 = vpop.permute.xlu0 %13701 }
 0xdfe   : > { %24660 = vmatpush3.bf16.msra.mxu1 %v27274_v5 }
 0xdff   : > { %24661 = vmatprep.subr.bf16.mxu1 %v27275_v7  ;;  %v13746_v7 = vunpack.c.0.s8 %v13745_v55  ;;  %v27317_v55 = vld [vmem:[%s34957_s9 + $0x80] ss:$8 sps:$4 sm:$0xff]  }
 0xe02   : > { %24662 = vmatpush3.bf16.msra.mxu1 %v27276_v19  ;;  %v32945_v19 = vshrl.u32 %v13747_v59, 7  ;;  %v14030_v59 = vld [vmem:[%s34957_s9 + $0xd8] sm:$0x11] }
 0xe04   : > { %v32973_v45 = vsub.s32 0, %v32945_v19 }
 0xe05   : > { %12951 = vmatmul.mubr.bf16.vlgmr.msra.gmra.mrb[72].mxu1 %v32341_v54 }
 0xe06   : > { %12958 = vmatprep.mubr.bf16.mxu1 %v32375_v15 }
 0xe0d   : > { %12959 = vmatmul.mubr.bf16.gmra.mrb[76].mxu1 %v32373_v16 }
 0xe0e   : > { %24864 = vmatprep.mubr.msk.bf16.mxu1 %vm613_vm0, %v27277_v23  ;;  %v13697_v23 = vpop.permute.xlu1 %13696 }
 0xed8   : > { %v24663_v27 = vpop.f32.mrb[72].mxu1 }
 0xed9   : > { %v24664_v17 = vpop.f32.mrb[73].mxu1 }
 0xeda   : > { %v24665_v20 = vadd.f32 %v24664_v17, %v24663_v27  ;;  %v24666_v22 = vpop.f32.mrb[74].mxu1 }
 0xedb   : > { %v24667_v35 = vpop.f32.mrb[75].mxu1 }
 0xedc   : > { %v24668_v9 = vadd.f32 %v24667_v35, %v24666_v22 }
 0xede   : > { %v12967_v10 = vpack.c.bf16 %v24668_v9, %v24665_v20 }
 0xee0   : > { %v24669_v12 = vpop.f32.mrb[76].mxu1  ;;  %24860 = vmatprep.subr.bf16.mxu1 %v12967_v10 }
 0xee1   : > { %v24670_v54 = vpop.f32.mrb[77].mxu1  ;;  %24861 = vmatpush3.bf16.msra.mxu1 %v12967_v10 }
 0xee2   : > { %v24671_v15 = vadd.f32 %v24670_v54, %v24669_v12  ;;  %v24672_v13 = vpop.f32.mrb[78].mxu1  ;;  %v32948_v12 = vsub.s32 %v13746_v7, %v32945_v19 }
 0xee3   : > { %v24673_v16 = vpop.f32.mrb[79].mxu1 }
 0xee4   : > { %v24674_v14 = vadd.f32 %v24673_v16, %v24672_v13 }
 0xee6   : > { %v12968_v29 = vpack.c.bf16 %v24674_v14, %v24671_v15 }
 0xee8   : > { %24862 = vmatprep.subr.bf16.mxu1 %v12968_v29 }
 0xee9   : > { %24863 = vmatpush3.bf16.msra.mxu1 %v12968_v29 }
 0xeea   : > { %24872 = vmatprep.subr.bf16.mxu1 %v32611_v2 }
 0xeec   : > { %24865 = vmatmul.mubr.msk.bf16.vlgmr.msra.gmra.mrb[48].mxu1 %vm613_vm0, %v27278_v60 }
 0xeed   : > { %24873 = vmatpush3.bf16.msra.mxu1 %v32611_v2  ;;  %24868 = vmatprep.mubr.msk.bf16.mxu1 %vm613_vm0, %v27279_v63  ;;  %v27282_v2 = vld [vmem:[%s34955_s7 + $0xe8] sm:$0xff]  }
 0xeee   : > { %24874 = vmatprep.subr.bf16.mxu1 %v32630_v11 }
 0xef1   : > { %24875 = vmatpush3.bf16.msra.mxu1 %v32630_v11  ;;  %v27284_v11 = vld [vmem:[%s34955_s7 + $0xf8] sm:$0xff]  }
 0xef2   : > { %24884 = vmatprep.subr.bf16.mxu1 %v32655_v56 }
 0xef4   : > { %24869 = vmatmul.mubr.msk.bf16.gmra.mrb[52].mxu1 %vm613_vm0, %v27280_v30 }
 0xef5   : > { %24876 = vmatprep.mubr.msk.bf16.mxu1 %vm613_vm0, %v27281_v36 }
 0xefc   : > { %24877 = vmatmul.mubr.msk.bf16.vlgmr.msra.gmra.mrb[48].mxu1 %vm613_vm0, %v27282_v2 }
 0xefd   : > { %24885 = vmatpush3.bf16.msra.mxu1 %v32655_v56  ;;  %24880 = vmatprep.mubr.msk.bf16.mxu1 %vm613_vm0, %v27283_v37  ;;  %v27286_v56 = vld [vmem:[%s34955_s7 + $0x108] sm:$0xff]  }
 0xefe   : > { %24886 = vmatprep.subr.bf16.mxu1 %v32658_v44 }
 0xf01   : > { %24887 = vmatpush3.bf16.msra.mxu1 %v32658_v44  ;;  %v27288_v44 = vld [vmem:[%s34955_s7 + $0x118] sm:$0xff]  }
 0xf02   : > { %14591 = vmatprep.subr.bf16.mxu1 %v27294_v1 }
 0xf04   : > { %24881 = vmatmul.mubr.msk.bf16.gmra.mrb[52].mxu1 %vm613_vm0, %v27284_v11 }
 0xf05   : > { %24888 = vmatprep.mubr.msk.bf16.mxu1 %vm613_vm0, %v27285_v40 }
 0xf0c   : > { %24889 = vmatmul.mubr.msk.bf16.vlgmr.msra.gmra.mrb[48].mxu1 %vm613_vm0, %v27286_v56 }
 0xf0d   : > { %24892 = vmatprep.mubr.msk.bf16.mxu1 %vm613_vm0, %v27287_v42  ;;  %14592 = vmatpush1.bf16.msra.mxu1 %v27292_v34 }
 0xf0e   : > { %14593 = vmatprep.subr.bf16.mxu1 %v27300_v4 }
 0xf11   : > { %14594 = vmatpush1.bf16.msra.mxu1 %v27298_v6  ;;  %v13707_v6 = vpop.permute.xlu1 %13706 }
 0xf12   : > { %14595 = vmatprep.subr.bf16.mxu1 %v27306_v48 }
 0xf14   : > { %24893 = vmatmul.mubr.msk.bf16.gmra.mrb[52].mxu1 %vm613_vm0, %v27288_v44 }
 0xf15   : > { %14623 = vmatprep.mubr.bf16.mxu1 %v28055_v0  ;;  %14596 = vmatpush1.bf16.msra.mxu1 %v27304_v62  ;;  %v13712_v62 = vpop.permute.xlu0 %13711 }
 0xf16   : > { %14597 = vmatprep.subr.bf16.mxu1 %v14589_v26  ;;  %v14023_v26 = vld [vmem:[%s34957_s9 + $0xa0] sm:$0x11] }
 0xf19   : > { %14598 = vmatpush1.bf16.msra.mxu1 %v14586_v49  ;;  %v13717_v49 = vpop.permute.xlu1 %13716 }
 0xf1a   : > { %14771 = vmatprep.subr.bf16.mxu1 %v27316_v51 }
 0xfdf   : > { %v24890_v31 = vpop.f32.mrb[48].mxu1 }
 0xfe0   : > { %v13721_v38 = vadd.f32 %v24890_v31, %v13692_v61  ;;  %v13632_v5 = vpop.f32.mrb[49].mxu1  ;;  %v27325_v61 = vld [vmem:[%s34957_s9 + $0x94] ss:$8 sps:$4 sm:$0xff]   ;;  %v23829_v31 = vcombine.high %v14023_v26, %v14023_v26 }
 0xfe1   : > { %v13719_v27 = vadd.f32 %v13682_v52, %v13632_v5  ;;  %v24891_v17 = vpop.f32.mrb[50].mxu1  ;;  %v27322_v52 = vld [vmem:[%s34957_s9 + $0xbc] ss:$8 sps:$4 sm:$0xff]  }
 0xfe2   : > { %v13722_v20 = vadd.f32 %v24891_v17, %v13697_v23  ;;  %v13635_v22 = vpop.f32.mrb[51].mxu1  ;;  %v13729_v9 = vmax.f32 %v13721_v38, 0.0 }
 0xfe3   : > { %v13720_v35 = vadd.f32 %v13687_v53, %v13635_v22  ;;  %v13727_v54 = vmax.f32 %v13719_v27, 0.0  ;;  %v27320_v27 = vld [vmem:[%s34957_s9 + $0xb8] ss:$8 sps:$4 sm:$0xff]   ;;  %v23828_v22 = vcombine.low %v14023_v26, %v14023_v26 }
 0xfe4   : > { %v13730_v10 = vmax.f32 %v13722_v20, 0.0  ;;  %v27328_v20 = vld [vmem:[%s34957_s9 + $0xcc] ss:$8 sps:$4 sm:$0xff]  }
 0xfe5   : > { %v13728_v15 = vmax.f32 %v13720_v35, 0.0  ;;  %v23838_v35 = vcombine.high %v14030_v59, %v14030_v59 }
 0xfe6   : > { %v13736_v13 = vpack.c.bf16 %v13730_v10, %v13729_v9  ;;  %v23799_v16 = vpack.c.bf16 %v13730_v10, %v13730_v10 }
 0xfe7   : > { %v13735_v14 = vpack.c.bf16 %v13728_v15, %v13727_v54  ;;  %v23798_v29 = vpack.c.bf16 %v13728_v15, %v13728_v15  ;;  %v24894_v60 = vpop.f32.mrb[52].mxu1 }
 0xfe8   : > { %v13799_v63 = vrot.slane %v13736_v13, %v32948_v12  ;;  %v13806_v30 = vrot.slane %v23799_v16, %v32948_v12  ;;  %v13648_v36 = vpop.f32.mrb[53].mxu1  ;;  %v13725_v41 = vadd.f32 %v24894_v60, %v13712_v62  ;;  %v27323_v13 = vld [vmem:[%s34957_s9 + $0x90] ss:$8 sps:$4 sm:$0xff]   ;;  %v14679_v16 = vand.u32 %v23829_v31, %v29093_v28 }
 0xfe9   : > { %v13750_v2 = vrot.slane %v13735_v14, %v32948_v12  ;;  %v13757_v37 = vrot.slane %v23798_v29, %v32948_v12  ;;  %v24895_v11 = vpop.f32.mrb[54].mxu1  ;;  %v13723_v24 = vadd.f32 %v13702_v3, %v13648_v36  ;;  %v23837_v14 = vcombine.low %v14030_v59, %v14030_v59  ;;  %v27326_v36 = vld [vmem:[%s34957_s9 + $0xc8] ss:$8 sps:$4 sm:$0xff]  }
 0xfea   : > { %v13807_v40 = vcombine.high %v13799_v63, %v13799_v63  ;;  %v13808_v56 = vcombine.high %v13806_v30, %v13806_v30  ;;  %v32955_v42 = vrot.slane %v13799_v63, %v32948_v12  ;;  %v32958_v44 = vrot.slane %v13806_v30, %v32948_v12  ;;  %v13651_v43 = vpop.f32.mrb[55].mxu1  ;;  %v27339_v59 = vld [vmem:[%s34957_s9 + $0xf0] ss:$8 sps:$4 sm:$0xff]  }
 0xfeb   : > { %v32961_v58 = vrot.slane %v13757_v37, %v32948_v12  ;;  %v13759_v39 = vcombine.high %v13757_v37, %v13757_v37  ;;  %v32970_v4 = vrot.slane %v13750_v2, %v32948_v12  ;;  %v13758_v50 = vcombine.high %v13750_v2, %v13750_v2 }
 0xfec   : > { %v32964_v1 = vrot.slane %v13807_v40, %v32948_v12  ;;  %v32967_v34 = vrot.slane %v13808_v56, %v32948_v12  ;;  %v13726_v53 = vadd.f32 %v24895_v11, %v13717_v49  ;;  %v13724_v33 = vadd.f32 %v13707_v6, %v13651_v43  ;;  %v27341_v49 = vld [vmem:[%s34957_s9 + $0xf4] ss:$8 sps:$4 sm:$0xff]  }
 0xfed   : > { %v32976_v46 = vrot.slane %v13759_v39, %v32948_v12  ;;  %v13940_v47 = vunpack.i.h.s16 %v32970_v4  ;;  %v23802_v48 = vpack.i.b16 %v32970_v4, %v32970_v4  ;;  %v13733_v38 = vmax.f32 %v13725_v41, 0.0 }
 0xfee   : > { %v13731_v5 = vmax.f32 %v13723_v24, 0.0  ;;  %v13734_v7 = vmax.f32 %v13726_v53, 0.0  ;;  %v13732_v23 = vmax.f32 %v13724_v33, 0.0  ;;  %v33015_v17 = vrot.slane %v13758_v50, %v32948_v12  ;;  %v27333_v24 = vld [vmem:[%s34957_s9 + $0xe0] ss:$8 sps:$4 sm:$0xff]  }
 0xfef   : > { %v14455_v8 = vrot.slane %v23802_v48, %v32973_v45  ;;  %v14542_v18 = vpack.i.b16 %v13940_v47, %v13940_v47  ;;  %v14676_v37 = vand.u32 %v23828_v22, %v29093_v28  ;;  %v14769_v11 = vand.u32 %v23838_v35, %v29093_v28  ;;  %v27335_v48 = vld [vmem:[%s34957_s9 + $0xe4] ss:$8 sps:$4 sm:$0xff]   ;;  %v27336_v50 = vld [vmem:[%s34957_s9 + $0x118] ss:$8 sps:$4 sm:$0xff]  }
 0xff0   : > { %v13738_v9 = vpack.c.bf16 %v13734_v7, %v13733_v38  ;;  %v23801_v10 = vpack.c.bf16 %v13734_v7, %v13734_v7  ;;  %v13737_v54 = vpack.c.bf16 %v13732_v23, %v13731_v5  ;;  %v23800_v15 = vpack.c.bf16 %v13732_v23, %v13732_v23  ;;  %v27342_v38 = vld [vmem:[%s34957_s9 + $0x128] ss:$8 sps:$4 sm:$0xff]   ;;  %v27350_v7 = vld [vmem:[%s34957_s9 + $0x13c] ss:$8 sps:$4 sm:$0xff]  }
 0xff1   : > { %v14546_v51 = vrot.slane %v14542_v18, %v32973_v45  ;;  %23811 = vmatmul.mubr.msk.bf16.vlgmr.msra.gmra.mrb[64].mxu0 %vm14491_vm5, %v14455_v8  ;;  %v13942_v2 = vunpack.i.h.s16 %v33015_v17  ;;  %v23821_v3 = vpack.i.b16 %v33015_v17, %v33015_v17  ;;  %v14766_v8 = vand.u32 %v23837_v14, %v29093_v28 }
 0xff2   : > { %14682 = vmatpush1.bf16.msra.mxu0 %v27311_v57  ;;  %14713 = vmatprep.mubr.bf16.mxu0 %v28055_v0  ;;  %v13897_v29 = vrot.slane %v13738_v9, %v32948_v12  ;;  %v13904_v60 = vrot.slane %v23801_v10, %v32948_v12  ;;  %v13848_v63 = vrot.slane %v13737_v54, %v32948_v12 }
 0xff3   : > { %23820 = vmatmul.mubr.msk.bf16.vlgmr.msra.gmra.mrb[80].mxu1 %vm14491_vm5, %v14546_v51  ;;  %14683 = vmatprep.subr.bf16.mxu0 %v27319_v21  ;;  %v13855_v30 = vrot.slane %v23800_v15, %v32948_v12  ;;  %v14722_v41 = vpack.i.b16 %v13942_v2, %v13942_v2  ;;  %v14636_v26 = vrot.slane %v23821_v3, %v32973_v45  ;;  %v14037_v51 = vld [vmem:[%s34957_s9 + $0x110] sm:$0x11]  ;;  %v14051_v2 = vld [vmem:[%s34957_s9 + $0x180] sm:$0x11] }
 0xff4   : > { %14772 = vmatpush1.bf16.msra.mxu1 %v27314_v32  ;;  %14803 = vmatprep.mubr.bf16.mxu1 %v28055_v0  ;;  %v13905_v40 = vcombine.high %v13897_v29, %v13897_v29  ;;  %v13906_v56 = vcombine.high %v13904_v60, %v13904_v60  ;;  %v33035_v43 = vrot.slane %v13897_v29, %v32948_v12  ;;  %v27338_v32 = vld [vmem:[%s34957_s9 + $0x11c] ss:$8 sps:$4 sm:$0xff]   ;;  %v27360_v29 = vld [vmem:[%s34957_s9 + $0x18c] ss:$8 sps:$4 sm:$0xff]  }
 0xff5   : > { %14773 = vmatprep.subr.bf16.mxu1 %v27322_v52  ;;  %v33038_v39 = vrot.slane %v13904_v60, %v32948_v12  ;;  %v33043_v6 = vrot.slane %v13848_v63, %v32948_v12  ;;  %v33046_v47 = vrot.slane %v13855_v30, %v32948_v12  ;;  %v13856_v18 = vcombine.high %v13848_v63, %v13848_v63  ;;  %v27355_v60 = vld [vmem:[%s34957_s9 + $0x150] ss:$8 sps:$4 sm:$0xff]   ;;  %v27369_v3 = vld [vmem:[%s34957_s9 + $0x174] ss:$8 sps:$4 sm:$0xff]  }
 0xff6   : > { %14684 = vmatpush1.bf16.msra.mxu0 %v27317_v55  ;;  %v33052_v57 = vrot.slane %v13905_v40, %v32948_v12  ;;  %v33055_v62 = vrot.slane %v13906_v56, %v32948_v12  ;;  %v13857_v21 = vcombine.high %v13855_v30, %v13855_v30  ;;  %v14726_v33 = vrot.slane %v14722_v41, %v32973_v45  ;;  %v27344_v55 = vld [vmem:[%s34957_s9 + $0x12c] ss:$8 sps:$4 sm:$0xff]   ;;  %v27361_v40 = vld [vmem:[%s34957_s9 + $0x160] ss:$8 sps:$4 sm:$0xff]   ;;  %v14058_v56 = vld [vmem:[%s34957_s9 + $0x1b8] sm:$0x11] }
 0xff7   : > { %14685 = vmatprep.subr.bf16.mxu0 %v27325_v61  ;;  %v33075_v52 = vrot.slane %v13856_v18, %v32948_v12  ;;  %v14044_v61 = vld [vmem:[%s34957_s9 + $0x148] sm:$0x11]  ;;  %v23848_v31 = vcombine.high %v14037_v51, %v14037_v51  ;;  %v13788_v5 = vcombine.high %v32970_v4, %v32970_v4  ;;  %v27348_v4 = vld [vmem:[%s34957_s9 + $0x138] ss:$8 sps:$4 sm:$0xff]   ;;  %v13790_v18 = vcombine.high %v33015_v17, %v33015_v17 }
 0xff8   : > { %14774 = vmatpush1.bf16.msra.mxu1 %v27320_v27  ;;  %v33078_v53 = vrot.slane %v13857_v21, %v32948_v12  ;;  %v27347_v12 = vld [vmem:[%s34957_s9 + $0x104] ss:$8 sps:$4 sm:$0xff]   ;;  %v23857_v23 = vcombine.high %v14044_v61, %v14044_v61  ;;  %v27345_v27 = vld [vmem:[%s34957_s9 + $0x100] ss:$8 sps:$4 sm:$0xff]   ;;  %v23856_v35 = vcombine.low %v14044_v61, %v14044_v61  ;;  %v23876_v41 = vcombine.high %v14058_v56, %v14058_v56 }
 0xff9   : > { %14775 = vmatprep.subr.bf16.mxu1 %v27328_v20  ;;  %v23847_v20 = vcombine.low %v14037_v51, %v14037_v51  ;;  %v14859_v22 = vand.u32 %v23848_v31, %v29093_v28  ;;  %v13944_v9 = vunpack.i.h.s16 %v13788_v5  ;;  %v23840_v15 = vpack.i.b16 %v13788_v5, %v13788_v5  ;;  %v27363_v30 = vld [vmem:[%s34957_s9 + $0x164] ss:$8 sps:$4 sm:$0xff]   ;;  %v27370_v17 = vld [vmem:[%s34957_s9 + $0x1a8] ss:$8 sps:$4 sm:$0xff]  }
 0xffa   : > { %14686 = vmatpush1.bf16.msra.mxu0 %v27323_v13  ;;  %v14949_v10 = vand.u32 %v23857_v23, %v29093_v28  ;;  %v27357_v13 = vld [vmem:[%s34957_s9 + $0x154] ss:$8 sps:$4 sm:$0xff]   ;;  %v13946_v51 = vunpack.i.h.s16 %v13790_v18  ;;  %v27380_v23 = vld [vmem:[%s34957_s9 + $0x1f8] ss:$8 sps:$4 sm:$0xff]  }
 0xffb   : > { %14687 = vmatprep.subr.bf16.mxu0 %v14679_v16  ;;  %v14856_v54 = vand.u32 %v23847_v20, %v29093_v28  ;;  %v14946_v16 = vand.u32 %v23856_v35, %v29093_v28  ;;  %v14902_v14 = vpack.i.b16 %v13944_v9, %v13944_v9  ;;  %v14816_v63 = vrot.slane %v23840_v15, %v32973_v45  ;;  %v27372_v21 = vld [vmem:[%s34957_s9 + $0x1ac] ss:$8 sps:$4 sm:$0xff]   ;;  %v27382_v31 = vld [vmem:[%s34957_s9 + $0x1fc] ss:$8 sps:$4 sm:$0xff]  }
 0xffc   : > { %14776 = vmatpush1.bf16.msra.mxu1 %v27326_v36  ;;  %v27358_v36 = vld [vmem:[%s34957_s9 + $0x188] ss:$8 sps:$4 sm:$0xff]   ;;  %v27391_v9 = vld [vmem:[%s34957_s9 + $0x1e4] ss:$8 sps:$4 sm:$0xff]  }
 0xffd   : > { %14777 = vmatprep.subr.bf16.mxu1 %v14769_v11  ;;  %v27366_v11 = vld [vmem:[%s34957_s9 + $0x19c] ss:$8 sps:$4 sm:$0xff]   ;;  %v14072_v35 = vld [vmem:[%s34957_s9 + $0x228] sm:$0x11] }
 0xffe   : > { %14688 = vmatpush1.bf16.msra.mxu0 %v14676_v37  ;;  %v14906_v37 = vrot.slane %v14902_v14, %v32973_v45  ;;  %v27394_v15 = vld [vmem:[%s34957_s9 + $0x21c] ss:$8 sps:$4 sm:$0xff]  }
 0xfff   : > { %14861 = vmatprep.subr.bf16.mxu0 %v27335_v48  ;;  %v23867_v48 = vcombine.high %v14051_v2, %v14051_v2 }
0x1000   : > { %14778 = vmatpush1.bf16.msra.mxu1 %v14766_v8  ;;  %v27364_v8 = vld [vmem:[%s34957_s9 + $0x198] ss:$8 sps:$4 sm:$0xff]  }
0x1001   : > { %23830 = vmatmul.mubr.msk.bf16.vlgmr.msra.gmra.mrb[68].mxu0 %vm14491_vm5, %v14636_v26  ;;  %14951 = vmatprep.subr.bf16.mxu1 %v27338_v32  ;;  %v23866_v32 = vcombine.low %v14051_v2, %v14051_v2  ;;  %v15039_v26 = vand.u32 %v23867_v48, %v29093_v28  ;;  %v27399_v48 = vld [vmem:[%s34957_s9 + $0x230] ss:$8 sps:$4 sm:$0xff]  }
0x1002   : > { %14862 = vmatpush1.bf16.msra.mxu0 %v27333_v24  ;;  %14893 = vmatprep.mubr.bf16.mxu0 %v28055_v0  ;;  %v27367_v24 = vld [vmem:[%s34957_s9 + $0x170] ss:$8 sps:$4 sm:$0xff]  }
0x1003   : > { %23839 = vmatmul.mubr.msk.bf16.vlgmr.msra.gmra.mrb[84].mxu1 %vm14491_vm5, %v14726_v33  ;;  %14863 = vmatprep.subr.bf16.mxu0 %v27341_v49  ;;  %v23875_v49 = vcombine.low %v14058_v56, %v14058_v56  ;;  %v15036_v33 = vand.u32 %v23866_v32, %v29093_v28  ;;  %v27410_v32 = vld [vmem:[%s34957_s9 + $0x27c] ss:$8 sps:$4 sm:$0xff]  }
0x1004   : > { %14952 = vmatpush1.bf16.msra.mxu1 %v27336_v50  ;;  %14983 = vmatprep.mubr.bf16.mxu1 %v28055_v0  ;;  %v15129_v50 = vand.u32 %v23876_v41, %v29093_v28  ;;  %v14079_v41 = vld [vmem:[%s34957_s9 + $0x260] sm:$0x11] }
0x1005   : > { %14953 = vmatprep.subr.bf16.mxu1 %v27344_v55  ;;  %v23859_v55 = vpack.i.b16 %v13790_v18, %v13790_v18  ;;  %v15126_v61 = vand.u32 %v23875_v49, %v29093_v28  ;;  %v27407_v18 = vld [vmem:[%s34957_s9 + $0x244] ss:$8 sps:$4 sm:$0xff]   ;;  %v27413_v49 = vld [vmem:[%s34957_s9 + $0x254] ss:$8 sps:$4 sm:$0xff]  }
0x1006   : > { %14864 = vmatpush1.bf16.msra.mxu0 %v27339_v59  ;;  %v27379_v59 = vld [vmem:[%s34957_s9 + $0x1c4] ss:$8 sps:$4 sm:$0xff]  }
0x1007   : > { %14865 = vmatprep.subr.bf16.mxu0 %v27347_v12  ;;  %v15082_v12 = vpack.i.b16 %v13946_v51, %v13946_v51  ;;  %v14996_v5 = vrot.slane %v23859_v55, %v32973_v45  ;;  %v27408_v51 = vld [vmem:[%s34957_s9 + $0x278] ss:$8 sps:$4 sm:$0xff]  }
0x1008   : > { %14954 = vmatpush1.bf16.msra.mxu1 %v27342_v38  ;;  %v27377_v38 = vld [vmem:[%s34957_s9 + $0x1c0] ss:$8 sps:$4 sm:$0xff]  }
0x1009   : > { %14955 = vmatprep.subr.bf16.mxu1 %v27350_v7  ;;  %v27385_v7 = vld [vmem:[%s34957_s9 + $0x1d4] ss:$8 sps:$4 sm:$0xff]   ;;  %v15086_v20 = vrot.slane %v15082_v12, %v32973_v45 }
0x100a   : > { %14866 = vmatpush1.bf16.msra.mxu0 %v27345_v27  ;;  %v14065_v27 = vld [vmem:[%s34957_s9 + $0x1f0] sm:$0x11] }
0x100b   : > { %14867 = vmatprep.subr.bf16.mxu0 %v14859_v22  ;;  %v27388_v22 = vld [vmem:[%s34957_s9 + $0x20c] ss:$8 sps:$4 sm:$0xff]   ;;  %v23885_v14 = vcombine.low %v14065_v27, %v14065_v27 }
0x100c   : > { %14956 = vmatpush1.bf16.msra.mxu1 %v27348_v4  ;;  %v27383_v4 = vld [vmem:[%s34957_s9 + $0x1d0] ss:$8 sps:$4 sm:$0xff]  }
0x100d   : > { %14957 = vmatprep.subr.bf16.mxu1 %v14949_v10  ;;  %v23886_v10 = vcombine.high %v14065_v27, %v14065_v27  ;;  %v15216_v2 = vand.u32 %v23885_v14, %v29093_v28  ;;  %v23897_v27 = vpack.i.b16 %v32976_v46, %v32976_v46  ;;  %v27432_v14 = vld [vmem:[%s34957_s9 + $0x2ec] ss:$8 sps:$4 sm:$0xff]  }
0x100e   : > { %14868 = vmatpush1.bf16.msra.mxu0 %v14856_v54  ;;  %v27386_v54 = vld [vmem:[%s34957_s9 + $0x208] ss:$8 sps:$4 sm:$0xff]  }
0x100f   : > { %15041 = vmatprep.subr.bf16.mxu0 %v27357_v13  ;;  %v23895_v13 = vcombine.high %v14072_v35, %v14072_v35 }
0x1010   : > { %14958 = vmatpush1.bf16.msra.mxu1 %v14946_v16  ;;  %v27389_v16 = vld [vmem:[%s34957_s9 + $0x1e0] ss:$8 sps:$4 sm:$0xff]  }
0x1011   : > { %23849 = vmatmul.mubr.msk.bf16.vlgmr.msra.gmra.mrb[72].mxu0 %vm14491_vm5, %v14816_v63  ;;  %15131 = vmatprep.subr.bf16.mxu1 %v27360_v29  ;;  %v15219_v29 = vand.u32 %v23886_v10, %v29093_v28  ;;  %v23894_v63 = vcombine.low %v14072_v35, %v14072_v35  ;;  %v27426_v35 = vld [vmem:[%s34957_s9 + $0x2dc] ss:$8 sps:$4 sm:$0xff]   ;;  %v15356_v10 = vrot.slane %v23897_v27, %v32973_v45  ;;  %v27460_v27 = vld [vmem:[%s34957_s9 + $0x36c] ss:$8 sps:$4 sm:$0xff]  }
0x1012   : > { %15042 = vmatpush1.bf16.msra.mxu0 %v27355_v60  ;;  %15073 = vmatprep.mubr.bf16.mxu0 %v28055_v0  ;;  %v27392_v60 = vld [vmem:[%s34957_s9 + $0x218] ss:$8 sps:$4 sm:$0xff]  }
0x1013   : > { %23858 = vmatmul.mubr.msk.bf16.vlgmr.msra.gmra.mrb[88].mxu1 %vm14491_vm5, %v14906_v37  ;;  %15043 = vmatprep.subr.bf16.mxu0 %v27363_v30  ;;  %v13948_v30 = vunpack.i.h.s16 %v32961_v58  ;;  %v23878_v37 = vpack.i.b16 %v32961_v58, %v32961_v58 }
0x1014   : > { %15132 = vmatpush1.bf16.msra.mxu1 %v27358_v36  ;;  %15163 = vmatprep.mubr.bf16.mxu1 %v28055_v0  ;;  %v15309_v36 = vand.u32 %v23895_v13, %v29093_v28  ;;  %v14093_v13 = vld [vmem:[%s34957_s9 + $0x2d0] sm:$0x11] }
0x1015   : > { %15133 = vmatprep.subr.bf16.mxu1 %v27366_v11  ;;  %v27401_v11 = vld [vmem:[%s34957_s9 + $0x234] ss:$8 sps:$4 sm:$0xff]   ;;  %v15262_v56 = vpack.i.b16 %v13948_v30, %v13948_v30  ;;  %v23924_v30 = vcombine.high %v14093_v13, %v14093_v13 }
0x1016   : > { %15044 = vmatpush1.bf16.msra.mxu0 %v27361_v40  ;;  %v15306_v40 = vand.u32 %v23894_v63, %v29093_v28  ;;  %v27435_v63 = vld [vmem:[%s34957_s9 + $0x2c4] ss:$8 sps:$4 sm:$0xff]  }
0x1017   : > { %15045 = vmatprep.subr.bf16.mxu0 %v27369_v3  ;;  %v27404_v3 = vld [vmem:[%s34957_s9 + $0x26c] ss:$8 sps:$4 sm:$0xff]  }
0x1018   : > { %15134 = vmatpush1.bf16.msra.mxu1 %v27364_v8  ;;  %v15176_v8 = vrot.slane %v23878_v37, %v32973_v45  ;;  %v27438_v37 = vld [vmem:[%s34957_s9 + $0x2fc] ss:$8 sps:$4 sm:$0xff]  }
0x1019   : > { %15135 = vmatprep.subr.bf16.mxu1 %v27372_v21  ;;  %v27402_v21 = vld [vmem:[%s34957_s9 + $0x268] ss:$8 sps:$4 sm:$0xff]  }
0x101a   : > { %15046 = vmatpush1.bf16.msra.mxu0 %v27367_v24  ;;  %v15266_v24 = vrot.slane %v15262_v56, %v32973_v45  ;;  %v23923_v56 = vcombine.low %v14093_v13, %v14093_v13 }
0x101b   : > { %15047 = vmatprep.subr.bf16.mxu0 %v15039_v26  ;;  %v27405_v26 = vld [vmem:[%s34957_s9 + $0x240] ss:$8 sps:$4 sm:$0xff]  }
0x101c   : > { %15136 = vmatpush1.bf16.msra.mxu1 %v27370_v17  ;;  %v14086_v17 = vld [vmem:[%s34957_s9 + $0x298] sm:$0x11] }
0x101d   : > { %15137 = vmatprep.subr.bf16.mxu1 %v15129_v50  ;;  %v23905_v50 = vcombine.high %v14079_v41, %v14079_v41  ;;  %v23914_v55 = vcombine.high %v14086_v17, %v14086_v17 }
0x101e   : > { %15048 = vmatpush1.bf16.msra.mxu0 %v15036_v33  ;;  %v27416_v33 = vld [vmem:[%s34957_s9 + $0x28c] ss:$8 sps:$4 sm:$0xff]  }
0x101f   : > { %15221 = vmatprep.subr.bf16.mxu0 %v27379_v59  ;;  %v27411_v59 = vld [vmem:[%s34957_s9 + $0x250] ss:$8 sps:$4 sm:$0xff]   ;;  %v15399_v12 = vand.u32 %v23905_v50, %v29093_v28 }
0x1020   : > { %15138 = vmatpush1.bf16.msra.mxu1 %v15126_v61  ;;  %v23904_v61 = vcombine.low %v14079_v41, %v14079_v41 }
0x1021   : > { %23868 = vmatmul.mubr.msk.bf16.vlgmr.msra.gmra.mrb[76].mxu0 %vm14491_vm5, %v14996_v5  ;;  %15311 = vmatprep.subr.bf16.mxu1 %v27382_v31  ;;  %v27414_v31 = vld [vmem:[%s34957_s9 + $0x288] ss:$8 sps:$4 sm:$0xff]   ;;  %v13950_v5 = vunpack.i.h.s16 %v32976_v46 }
0x1022   : > { %15222 = vmatpush1.bf16.msra.mxu0 %v27377_v38  ;;  %15253 = vmatprep.mubr.bf16.mxu0 %v28055_v0  ;;  %v23913_v38 = vcombine.low %v14086_v17, %v14086_v17  ;;  %v27448_v17 = vld [vmem:[%s34957_s9 + $0x34c] ss:$8 sps:$4 sm:$0xff]  }
0x1023   : > { %23877 = vmatmul.mubr.msk.bf16.vlgmr.msra.gmra.mrb[92].mxu1 %vm14491_vm5, %v15086_v20  ;;  %15223 = vmatprep.subr.bf16.mxu0 %v27385_v7  ;;  %v15489_v7 = vand.u32 %v23914_v55, %v29093_v28  ;;  %v27423_v20 = vld [vmem:[%s34957_s9 + $0x2a4] ss:$8 sps:$4 sm:$0xff]  }
0x1024   : > { %15312 = vmatpush1.bf16.msra.mxu1 %v27380_v23  ;;  %15343 = vmatprep.mubr.bf16.mxu1 %v28055_v0  ;;  %v15396_v23 = vand.u32 %v23904_v61, %v29093_v28  ;;  %v14107_v55 = vld [vmem:[%s34957_s9 + $0x340] sm:$0x11] }
0x1025   : > { %15313 = vmatprep.subr.bf16.mxu1 %v27388_v22  ;;  %v15486_v22 = vand.u32 %v23913_v38, %v29093_v28  ;;  %v27454_v61 = vld [vmem:[%s34957_s9 + $0x35c] ss:$8 sps:$4 sm:$0xff]  }
0x1026   : > { %15224 = vmatpush1.bf16.msra.mxu0 %v27383_v4  ;;  %v15442_v4 = vpack.i.b16 %v13950_v5, %v13950_v5  ;;  %v27457_v38 = vld [vmem:[%s34957_s9 + $0x334] ss:$8 sps:$4 sm:$0xff]   ;;  %v23943_v5 = vcombine.high %v14107_v55, %v14107_v55 }
0x1027   : > { %15225 = vmatprep.subr.bf16.mxu0 %v27391_v9  ;;  %v27421_v9 = vld [vmem:[%s34957_s9 + $0x2a0] ss:$8 sps:$4 sm:$0xff]  }
0x1028   : > { %15314 = vmatpush1.bf16.msra.mxu1 %v27386_v54  ;;  %v27429_v54 = vld [vmem:[%s34957_s9 + $0x2b4] ss:$8 sps:$4 sm:$0xff]  }
0x1029   : > { %15315 = vmatprep.subr.bf16.mxu1 %v27394_v15  ;;  %v27424_v15 = vld [vmem:[%s34957_s9 + $0x2d8] ss:$8 sps:$4 sm:$0xff]  }
0x102a   : > { %15226 = vmatpush1.bf16.msra.mxu0 %v27389_v16  ;;  %v15446_v16 = vrot.slane %v15442_v4, %v32973_v45  ;;  %v23942_v4 = vcombine.low %v14107_v55, %v14107_v55  ;;  %v27489_v55 = vld [vmem:[%s34957_s9 + $0x3f4] ss:$8 sps:$4 sm:$0xff]  }
0x102b   : > { %15227 = vmatprep.subr.bf16.mxu0 %v15219_v29  ;;  %v27427_v29 = vld [vmem:[%s34957_s9 + $0x2b0] ss:$8 sps:$4 sm:$0xff]  }
0x102c   : > { %15316 = vmatpush1.bf16.msra.mxu1 %v27392_v60  ;;  %v14100_v60 = vld [vmem:[%s34957_s9 + $0x308] sm:$0x11] }
0x102d   : > { %15317 = vmatprep.subr.bf16.mxu1 %v15309_v36  ;;  %v27430_v36 = vld [vmem:[%s34957_s9 + $0x2e8] ss:$8 sps:$4 sm:$0xff]  }
0x102e   : > { %15228 = vmatpush1.bf16.msra.mxu0 %v15216_v2  ;;  %v13789_v2 = vcombine.high %v32961_v58, %v32961_v58  ;;  %v27436_v58 = vld [vmem:[%s34957_s9 + $0x2f8] ss:$8 sps:$4 sm:$0xff]  }
0x102f   : > { %15401 = vmatprep.subr.bf16.mxu0 %v27401_v11  ;;  %v23933_v11 = vcombine.high %v14100_v60, %v14100_v60 }
0x1030   : > { %15318 = vmatpush1.bf16.msra.mxu1 %v15306_v40  ;;  %v27433_v40 = vld [vmem:[%s34957_s9 + $0x2c0] ss:$8 sps:$4 sm:$0xff]   ;;  %v23916_v41 = vpack.i.b16 %v13789_v2, %v13789_v2 }
0x1031   : > { %23887 = vmatmul.mubr.msk.bf16.vlgmr.msra.gmra.mrb[80].mxu0 %vm14491_vm5, %v15176_v8  ;;  %15491 = vmatprep.subr.bf16.mxu1 %v27404_v3  ;;  %v15579_v3 = vand.u32 %v23924_v30, %v29093_v28  ;;  %v13952_v8 = vunpack.i.h.s16 %v13789_v2  ;;  %v27468_v2 = vld [vmem:[%s34957_s9 + $0x3b8] ss:$8 sps:$4 sm:$0xff]  }
0x1032   : > { %15402 = vmatpush1.bf16.msra.mxu0 %v27399_v48  ;;  %15433 = vmatprep.mubr.bf16.mxu0 %v28055_v0  ;;  %v23932_v48 = vcombine.low %v14100_v60, %v14100_v60  ;;  %v15536_v50 = vrot.slane %v23916_v41, %v32973_v45  ;;  %v27470_v60 = vld [vmem:[%s34957_s9 + $0x3bc] ss:$8 sps:$4 sm:$0xff]   ;;  %v27477_v41 = vld [vmem:[%s34957_s9 + $0x3a0] ss:$8 sps:$4 sm:$0xff]  }
0x1033   : > { %23896 = vmatmul.mubr.msk.bf16.vlgmr.msra.gmra.mrb[96].mxu1 %vm14491_vm5, %v15266_v24  ;;  %15403 = vmatprep.subr.bf16.mxu0 %v27407_v18  ;;  %v15669_v18 = vand.u32 %v23933_v11, %v29093_v28  ;;  %v27445_v24 = vld [vmem:[%s34957_s9 + $0x314] ss:$8 sps:$4 sm:$0xff]  }
0x1034   : > { %15492 = vmatpush1.bf16.msra.mxu1 %v27402_v21  ;;  %15523 = vmatprep.mubr.bf16.mxu1 %v28055_v0  ;;  %v15576_v21 = vand.u32 %v23923_v56, %v29093_v28  ;;  %v27471_v56 = vld [vmem:[%s34957_s9 + $0x390] ss:$8 sps:$4 sm:$0xff]  }
0x1035   : > { %15493 = vmatprep.subr.bf16.mxu1 %v27410_v32  ;;  %v15666_v32 = vand.u32 %v23932_v48, %v29093_v28 }
0x1036   : > { %15404 = vmatpush1.bf16.msra.mxu0 %v27405_v26  ;;  %v15622_v26 = vpack.i.b16 %v13952_v8, %v13952_v8  ;;  %v27474_v8 = vld [vmem:[%s34957_s9 + $0x3c8] ss:$8 sps:$4 sm:$0xff]  }
0x1037   : > { %15405 = vmatprep.subr.bf16.mxu0 %v27413_v49  ;;  %v27443_v49 = vld [vmem:[%s34957_s9 + $0x310] ss:$8 sps:$4 sm:$0xff]  }
0x1038   : > { %15494 = vmatpush1.bf16.msra.mxu1 %v27408_v51  ;;  %v27451_v51 = vld [vmem:[%s34957_s9 + $0x324] ss:$8 sps:$4 sm:$0xff]  }
0x1039   : > { %15495 = vmatprep.subr.bf16.mxu1 %v27416_v33  ;;  %v27446_v33 = vld [vmem:[%s34957_s9 + $0x348] ss:$8 sps:$4 sm:$0xff]  }
0x103a   : > { %15406 = vmatpush1.bf16.msra.mxu0 %v27411_v59  ;;  %v15626_v59 = vrot.slane %v15622_v26, %v32973_v45  ;;  %v27480_v26 = vld [vmem:[%s34957_s9 + $0x3d8] ss:$8 sps:$4 sm:$0xff]  }
0x103b   : > { %15407 = vmatprep.subr.bf16.mxu0 %v15399_v12  ;;  %v27449_v12 = vld [vmem:[%s34957_s9 + $0x320] ss:$8 sps:$4 sm:$0xff]  }
0x103c   : > { %15496 = vmatpush1.bf16.msra.mxu1 %v27414_v31  ;;  %v14114_v31 = vld [vmem:[%s34957_s9 + $0x378] sm:$0x11] }
0x103d   : > { %15497 = vmatprep.subr.bf16.mxu1 %v15489_v7  ;;  %v27452_v7 = vld [vmem:[%s34957_s9 + $0x358] ss:$8 sps:$4 sm:$0xff]  }
0x103e   : > { %15408 = vmatpush1.bf16.msra.mxu0 %v15396_v23  ;;  %v13791_v23 = vcombine.high %v32976_v46, %v32976_v46  ;;  %v27458_v46 = vld [vmem:[%s34957_s9 + $0x368] ss:$8 sps:$4 sm:$0xff]  }
0x103f   : > { %15581 = vmatprep.subr.bf16.mxu0 %v27423_v20  ;;  %v23952_v20 = vcombine.high %v14114_v31, %v14114_v31 }
0x1040   : > { %15498 = vmatpush1.bf16.msra.mxu1 %v15486_v22  ;;  %v27455_v22 = vld [vmem:[%s34957_s9 + $0x330] ss:$8 sps:$4 sm:$0xff]   ;;  %v23935_v13 = vpack.i.b16 %v13791_v23, %v13791_v23 }
0x1041   : > { %23906 = vmatmul.mubr.msk.bf16.vlgmr.msra.gmra.mrb[84].mxu0 %vm14491_vm5, %v15356_v10  ;;  %15671 = vmatprep.subr.bf16.mxu1 %v27426_v35  ;;  %v15759_v35 = vand.u32 %v23943_v5, %v29093_v28  ;;  %v15849_v10 = vand.u32 %v23952_v20, %v29093_v28  ;;  %v27495_v5 = vld [vmem:[%s34957_s9 + $0x404] ss:$8 sps:$4 sm:$0xff]  }
0x1042   : > { %15582 = vmatpush1.bf16.msra.mxu0 %v27421_v9  ;;  %15613 = vmatprep.mubr.bf16.mxu0 %v28055_v0  ;;  %v23951_v9 = vcombine.low %v14114_v31, %v14114_v31  ;;  %v15716_v30 = vrot.slane %v23935_v13, %v32973_v45  ;;  %v27487_v31 = vld [vmem:[%s34957_s9 + $0x3f0] ss:$8 sps:$4 sm:$0xff]   ;;  %v27498_v20 = vld [vmem:[%s34957_s9 + $0x43c] ss:$8 sps:$4 sm:$0xff]  }
0x1043   : > { %23915 = vmatmul.mubr.msk.bf16.vlgmr.msra.gmra.mrb[100].mxu1 %vm14491_vm5, %v15446_v16  ;;  %15583 = vmatprep.subr.bf16.mxu0 %v27429_v54  ;;  %v13954_v54 = vunpack.i.h.s16 %v13791_v23  ;;  %v27467_v16 = vld [vmem:[%s34957_s9 + $0x384] ss:$8 sps:$4 sm:$0xff]  }
0x1044   : > { %15672 = vmatpush1.bf16.msra.mxu1 %v27424_v15  ;;  %15703 = vmatprep.mubr.bf16.mxu1 %v28055_v0  ;;  %v15756_v15 = vand.u32 %v23942_v4, %v29093_v28  ;;  %v14135_v23 = vld [vmem:[%s34957_s9 + $0x420] sm:$0x11]  ;;  %v14142_v4 = vld [vmem:[%s34957_s9 + $0x458] sm:$0x11] }
0x1045   : > { %15673 = vmatprep.subr.bf16.mxu1 %v27432_v14  ;;  %v15846_v14 = vand.u32 %v23951_v9, %v29093_v28  ;;  %v27496_v9 = vld [vmem:[%s34957_s9 + $0x438] ss:$8 sps:$4 sm:$0xff]   ;;  %v23980_v13 = vcombine.low %v14135_v23, %v14135_v23 }
0x1046   : > { %15584 = vmatpush1.bf16.msra.mxu0 %v27427_v29  ;;  %v15802_v29 = vpack.i.b16 %v13954_v54, %v13954_v54  ;;  %v23990_v54 = vcombine.high %v14142_v4, %v14142_v4 }
0x1047   : > { %15585 = vmatprep.subr.bf16.mxu0 %v27435_v63  ;;  %v27465_v63 = vld [vmem:[%s34957_s9 + $0x380] ss:$8 sps:$4 sm:$0xff]  }
0x1048   : > { %15674 = vmatpush1.bf16.msra.mxu1 %v27430_v36  ;;  %v27473_v36 = vld [vmem:[%s34957_s9 + $0x394] ss:$8 sps:$4 sm:$0xff]   ;;  %v15806_v11 = vrot.slane %v15802_v29, %v32973_v45  ;;  %v23989_v29 = vcombine.low %v14142_v4, %v14142_v4 }
0x1049   : > { %15675 = vmatprep.subr.bf16.mxu1 %v27438_v37  ;;  %v14121_v37 = vld [vmem:[%s34957_s9 + $0x3b0] sm:$0x11] }
0x104a   : > { %15586 = vmatpush1.bf16.msra.mxu0 %v27433_v40  ;;  %v27476_v40 = vld [vmem:[%s34957_s9 + $0x3cc] ss:$8 sps:$4 sm:$0xff]   ;;  %v23962_v48 = vcombine.high %v14121_v37, %v14121_v37 }
0x104b   : > { %15587 = vmatprep.subr.bf16.mxu0 %v15579_v3  ;;  %v14128_v3 = vld [vmem:[%s34957_s9 + $0x3e8] sm:$0x11] }
0x104c   : > { %15676 = vmatpush1.bf16.msra.mxu1 %v27436_v58  ;;  %v27479_v58 = vld [vmem:[%s34957_s9 + $0x3a4] ss:$8 sps:$4 sm:$0xff]  }
0x104d   : > { %15677 = vmatprep.subr.bf16.mxu1 %v15669_v18  ;;  %v27482_v18 = vld [vmem:[%s34957_s9 + $0x3dc] ss:$8 sps:$4 sm:$0xff]  }
0x104e   : > { %15588 = vmatpush1.bf16.msra.mxu0 %v15576_v21  ;;  %v23971_v21 = vcombine.high %v14128_v3, %v14128_v3 }
0x104f   : > { %15761 = vmatprep.subr.bf16.mxu0 %v27445_v24  ;;  %v23961_v24 = vcombine.low %v14121_v37, %v14121_v37  ;;  %v16206_v37 = vand.u32 %v23989_v29, %v29093_v28  ;;  %v27540_v29 = vld [vmem:[%s34957_s9 + $0x518] ss:$8 sps:$4 sm:$0xff]  }
0x1050   : > { %15678 = vmatpush1.bf16.msra.mxu1 %v15666_v32  ;;  %v15939_v32 = vand.u32 %v23962_v48, %v29093_v28  ;;  %v27512_v48 = vld [vmem:[%s34957_s9 + $0x498] ss:$8 sps:$4 sm:$0xff]  }
0x1051   : > { %23925 = vmatmul.mubr.msk.bf16.vlgmr.msra.gmra.mrb[88].mxu0 %vm14491_vm5, %v15536_v50  ;;  %15851 = vmatprep.subr.bf16.mxu1 %v27448_v17  ;;  %v23970_v17 = vcombine.low %v14128_v3, %v14128_v3  ;;  %v16029_v50 = vand.u32 %v23971_v21, %v29093_v28  ;;  %v27520_v21 = vld [vmem:[%s34957_s9 + $0x4ac] ss:$8 sps:$4 sm:$0xff]  }
0x1052   : > { %15762 = vmatpush1.bf16.msra.mxu0 %v27443_v49  ;;  %15793 = vmatprep.mubr.bf16.mxu0 %v28055_v0  ;;  %v13956_v49 = vunpack.i.h.s16 %v32955_v42 }
0x1053   : > { %23934 = vmatmul.mubr.msk.bf16.vlgmr.msra.gmra.mrb[104].mxu1 %vm14491_vm5, %v15626_v59  ;;  %15763 = vmatprep.subr.bf16.mxu0 %v27451_v51  ;;  %v15936_v51 = vand.u32 %v23961_v24, %v29093_v28  ;;  %v16026_v59 = vand.u32 %v23970_v17, %v29093_v28  ;;  %v14156_v24 = vld [vmem:[%s34957_s9 + $0x4c8] sm:$0x11] }
0x1054   : > { %15852 = vmatpush1.bf16.msra.mxu1 %v27446_v33  ;;  %15883 = vmatprep.mubr.bf16.mxu1 %v28055_v0  ;;  %v23954_v33 = vpack.i.b16 %v32955_v42, %v32955_v42  ;;  %v27518_v17 = vld [vmem:[%s34957_s9 + $0x4a8] ss:$8 sps:$4 sm:$0xff]  }
0x1055   : > { %15853 = vmatprep.subr.bf16.mxu1 %v27454_v61  ;;  %v15982_v61 = vpack.i.b16 %v13956_v49, %v13956_v49  ;;  %v13837_v49 = vcombine.high %v32955_v42, %v32955_v42  ;;  %v27524_v42 = vld [vmem:[%s34957_s9 + $0x4b8] ss:$8 sps:$4 sm:$0xff]  }
0x1056   : > { %15764 = vmatpush1.bf16.msra.mxu0 %v27449_v12  ;;  %v27492_v12 = vld [vmem:[%s34957_s9 + $0x42c] ss:$8 sps:$4 sm:$0xff]  }
0x1057   : > { %15765 = vmatprep.subr.bf16.mxu0 %v27457_v38  ;;  %v15896_v38 = vrot.slane %v23954_v33, %v32973_v45  ;;  %v27521_v33 = vld [vmem:[%s34957_s9 + $0x480] ss:$8 sps:$4 sm:$0xff]  }
0x1058   : > { %15854 = vmatpush1.bf16.msra.mxu1 %v27452_v7  ;;  %v27490_v7 = vld [vmem:[%s34957_s9 + $0x428] ss:$8 sps:$4 sm:$0xff]  }
0x1059   : > { %15855 = vmatprep.subr.bf16.mxu1 %v27460_v27  ;;  %v15986_v27 = vrot.slane %v15982_v61, %v32973_v45  ;;  %v24008_v61 = vcombine.low %v14156_v24, %v14156_v24 }
0x105a   : > { %15766 = vmatpush1.bf16.msra.mxu0 %v27455_v22  ;;  %v27493_v22 = vld [vmem:[%s34957_s9 + $0x400] ss:$8 sps:$4 sm:$0xff]  }
0x105b   : > { %15767 = vmatprep.subr.bf16.mxu0 %v15759_v35  ;;  %v27501_v35 = vld [vmem:[%s34957_s9 + $0x414] ss:$8 sps:$4 sm:$0xff]  }
0x105c   : > { %15856 = vmatpush1.bf16.msra.mxu1 %v27458_v46  ;;  %v23981_v46 = vcombine.high %v14135_v23, %v14135_v23  ;;  %v16386_v23 = vand.u32 %v24008_v61, %v29093_v28  ;;  %v27570_v61 = vld [vmem:[%s34957_s9 + $0x59c] ss:$8 sps:$4 sm:$0xff]  }
0x105d   : > { %15857 = vmatprep.subr.bf16.mxu1 %v15849_v10  ;;  %v27504_v10 = vld [vmem:[%s34957_s9 + $0x44c] ss:$8 sps:$4 sm:$0xff]  }
0x105e   : > { %15768 = vmatpush1.bf16.msra.mxu0 %v15756_v15  ;;  %v27499_v15 = vld [vmem:[%s34957_s9 + $0x410] ss:$8 sps:$4 sm:$0xff]  }
0x105f   : > { %15941 = vmatprep.subr.bf16.mxu0 %v27467_v16  ;;  %v16119_v16 = vand.u32 %v23981_v46, %v29093_v28  ;;  %v27534_v46 = vld [vmem:[%s34957_s9 + $0x508] ss:$8 sps:$4 sm:$0xff]  }
0x1060   : > { %15858 = vmatpush1.bf16.msra.mxu1 %v15846_v14  ;;  %v27502_v14 = vld [vmem:[%s34957_s9 + $0x448] ss:$8 sps:$4 sm:$0xff]  }
0x1061   : > { %23944 = vmatmul.mubr.msk.bf16.vlgmr.msra.gmra.mrb[92].mxu0 %vm14491_vm5, %v15716_v30  ;;  %16031 = vmatprep.subr.bf16.mxu1 %v27470_v60  ;;  %v13958_v60 = vunpack.i.h.s16 %v32964_v1  ;;  %v16116_v30 = vand.u32 %v23980_v13, %v29093_v28  ;;  %v14170_v13 = vld [vmem:[%s34957_s9 + $0x538] sm:$0x11] }
0x1062   : > { %15942 = vmatpush1.bf16.msra.mxu0 %v27465_v63  ;;  %15973 = vmatprep.mubr.bf16.mxu0 %v28055_v0  ;;  %v16209_v63 = vand.u32 %v23990_v54, %v29093_v28  ;;  %v27542_v54 = vld [vmem:[%s34957_s9 + $0x51c] ss:$8 sps:$4 sm:$0xff]  }
0x1063   : > { %23953 = vmatmul.mubr.msk.bf16.vlgmr.msra.gmra.mrb[108].mxu1 %vm14491_vm5, %v15806_v11  ;;  %15943 = vmatprep.subr.bf16.mxu0 %v27473_v36  ;;  %v23973_v36 = vpack.i.b16 %v32964_v1, %v32964_v1  ;;  %v16162_v11 = vpack.i.b16 %v13958_v60, %v13958_v60  ;;  %v13839_v60 = vcombine.high %v32964_v1, %v32964_v1  ;;  %v27546_v1 = vld [vmem:[%s34957_s9 + $0x528] ss:$8 sps:$4 sm:$0xff]  }
0x1064   : > { %16032 = vmatpush1.bf16.msra.mxu1 %v27468_v2  ;;  %16063 = vmatprep.mubr.bf16.mxu1 %v28055_v0  ;;  %v27511_v2 = vld [vmem:[%s34957_s9 + $0x464] ss:$8 sps:$4 sm:$0xff]  }
0x1065   : > { %16033 = vmatprep.subr.bf16.mxu1 %v27476_v40  ;;  %v27514_v40 = vld [vmem:[%s34957_s9 + $0x49c] ss:$8 sps:$4 sm:$0xff]   ;;  %v16076_v3 = vrot.slane %v23973_v36, %v32973_v45  ;;  %v27543_v36 = vld [vmem:[%s34957_s9 + $0x4f0] ss:$8 sps:$4 sm:$0xff]  }
0x1066   : > { %15944 = vmatpush1.bf16.msra.mxu0 %v27471_v56  ;;  %v27509_v56 = vld [vmem:[%s34957_s9 + $0x460] ss:$8 sps:$4 sm:$0xff]  }
0x1067   : > { %15945 = vmatprep.subr.bf16.mxu0 %v27479_v58  ;;  %v27517_v58 = vld [vmem:[%s34957_s9 + $0x474] ss:$8 sps:$4 sm:$0xff]  }
0x1068   : > { %16034 = vmatpush1.bf16.msra.mxu1 %v27474_v8  ;;  %v14149_v8 = vld [vmem:[%s34957_s9 + $0x490] sm:$0x11] }
0x1069   : > { %16035 = vmatprep.subr.bf16.mxu1 %v27482_v18  ;;  %v16166_v18 = vrot.slane %v16162_v11, %v32973_v45  ;;  %v24027_v11 = vcombine.low %v14170_v13, %v14170_v13 }
0x106a   : > { %15946 = vmatpush1.bf16.msra.mxu0 %v27477_v41  ;;  %v27515_v41 = vld [vmem:[%s34957_s9 + $0x470] ss:$8 sps:$4 sm:$0xff]  }
0x106b   : > { %15947 = vmatprep.subr.bf16.mxu0 %v15939_v32  ;;  %v27523_v32 = vld [vmem:[%s34957_s9 + $0x484] ss:$8 sps:$4 sm:$0xff]  }
0x106c   : > { %16036 = vmatpush1.bf16.msra.mxu1 %v27480_v26  ;;  %v24000_v26 = vcombine.high %v14149_v8, %v14149_v8 }
0x106d   : > { %16037 = vmatprep.subr.bf16.mxu1 %v16029_v50  ;;  %v27526_v50 = vld [vmem:[%s34957_s9 + $0x4bc] ss:$8 sps:$4 sm:$0xff]  }
0x106e   : > { %15948 = vmatpush1.bf16.msra.mxu0 %v15936_v51  ;;  %v24009_v51 = vcombine.high %v14156_v24, %v14156_v24 }
0x106f   : > { %16121 = vmatprep.subr.bf16.mxu0 %v27489_v55  ;;  %v23999_v55 = vcombine.low %v14149_v8, %v14149_v8  ;;  %v16566_v8 = vand.u32 %v24027_v11, %v29093_v28 }
0x1070   : > { %16038 = vmatpush1.bf16.msra.mxu1 %v16026_v59  ;;  %v16299_v59 = vand.u32 %v24000_v26, %v29093_v28  ;;  %v27556_v26 = vld [vmem:[%s34957_s9 + $0x578] ss:$8 sps:$4 sm:$0xff]  }
0x1071   : > { %23963 = vmatmul.mubr.msk.bf16.vlgmr.msra.gmra.mrb[96].mxu0 %vm14491_vm5, %v15896_v38  ;;  %16211 = vmatprep.subr.bf16.mxu1 %v27492_v12  ;;  %v13960_v12 = vunpack.i.h.s16 %v13837_v49  ;;  %v16296_v38 = vand.u32 %v23999_v55, %v29093_v28  ;;  %v27567_v55 = vld [vmem:[%s34957_s9 + $0x564] ss:$8 sps:$4 sm:$0xff]  }
0x1072   : > { %16122 = vmatpush1.bf16.msra.mxu0 %v27487_v31  ;;  %16153 = vmatprep.mubr.bf16.mxu0 %v28055_v0  ;;  %v16389_v31 = vand.u32 %v24009_v51, %v29093_v28  ;;  %v27559_v51 = vld [vmem:[%s34957_s9 + $0x550] ss:$8 sps:$4 sm:$0xff]  }
0x1073   : > { %23972 = vmatmul.mubr.msk.bf16.vlgmr.msra.gmra.mrb[112].mxu1 %vm14491_vm5, %v15986_v27  ;;  %16123 = vmatprep.subr.bf16.mxu0 %v27495_v5  ;;  %v23992_v5 = vpack.i.b16 %v13837_v49, %v13837_v49  ;;  %v16342_v27 = vpack.i.b16 %v13960_v12, %v13960_v12 }
0x1074   : > { %16212 = vmatpush1.bf16.msra.mxu1 %v27490_v7  ;;  %16243 = vmatprep.mubr.bf16.mxu1 %v28055_v0  ;;  %v27533_v7 = vld [vmem:[%s34957_s9 + $0x4d4] ss:$8 sps:$4 sm:$0xff]  }
0x1075   : > { %16213 = vmatprep.subr.bf16.mxu1 %v27498_v20  ;;  %v27536_v20 = vld [vmem:[%s34957_s9 + $0x50c] ss:$8 sps:$4 sm:$0xff]   ;;  %v16256_v4 = vrot.slane %v23992_v5, %v32973_v45 }
0x1076   : > { %16124 = vmatpush1.bf16.msra.mxu0 %v27493_v22  ;;  %v27531_v22 = vld [vmem:[%s34957_s9 + $0x4d0] ss:$8 sps:$4 sm:$0xff]  }
0x1077   : > { %16125 = vmatprep.subr.bf16.mxu0 %v27501_v35  ;;  %v27539_v35 = vld [vmem:[%s34957_s9 + $0x4e4] ss:$8 sps:$4 sm:$0xff]  }
0x1078   : > { %16214 = vmatpush1.bf16.msra.mxu1 %v27496_v9  ;;  %v14163_v9 = vld [vmem:[%s34957_s9 + $0x500] sm:$0x11] }
0x1079   : > { %16215 = vmatprep.subr.bf16.mxu1 %v27504_v10  ;;  %v16346_v10 = vrot.slane %v16342_v27, %v32973_v45  ;;  %v13964_v27 = vunpack.i.h.s16 %v32958_v44 }
0x107a   : > { %16126 = vmatpush1.bf16.msra.mxu0 %v27499_v15  ;;  %v27537_v15 = vld [vmem:[%s34957_s9 + $0x4e0] ss:$8 sps:$4 sm:$0xff]  }
0x107b   : > { %16127 = vmatprep.subr.bf16.mxu0 %v16119_v16  ;;  %v27545_v16 = vld [vmem:[%s34957_s9 + $0x4f4] ss:$8 sps:$4 sm:$0xff]  }
0x107c   : > { %16216 = vmatpush1.bf16.msra.mxu1 %v27502_v14  ;;  %v24019_v14 = vcombine.high %v14163_v9, %v14163_v9 }
0x107d   : > { %16217 = vmatprep.subr.bf16.mxu1 %v16209_v63  ;;  %v27548_v63 = vld [vmem:[%s34957_s9 + $0x52c] ss:$8 sps:$4 sm:$0xff]  }
0x107e   : > { %16128 = vmatpush1.bf16.msra.mxu0 %v16116_v30  ;;  %v24028_v30 = vcombine.high %v14170_v13, %v14170_v13  ;;  %v27583_v13 = vld [vmem:[%s34957_s9 + $0x5c4] ss:$8 sps:$4 sm:$0xff]  }
0x107f   : > { %16301 = vmatprep.subr.bf16.mxu0 %v27511_v2  ;;  %v24018_v2 = vcombine.low %v14163_v9, %v14163_v9  ;;  %v16702_v9 = vpack.i.b16 %v13964_v27, %v13964_v27 }
0x1080   : > { %16218 = vmatpush1.bf16.msra.mxu1 %v16206_v37  ;;  %v16479_v37 = vand.u32 %v24019_v14, %v29093_v28  ;;  %v14191_v14 = vld [vmem:[%s34957_s9 + $0x5e0] sm:$0x11] }
0x1081   : > { %23982 = vmatmul.mubr.msk.bf16.vlgmr.msra.gmra.mrb[100].mxu0 %vm14491_vm5, %v16076_v3  ;;  %16391 = vmatprep.subr.bf16.mxu1 %v27514_v40  ;;  %v16569_v40 = vand.u32 %v24028_v30, %v29093_v28  ;;  %v16476_v3 = vand.u32 %v24018_v2, %v29093_v28  ;;  %v14198_v30 = vld [vmem:[%s34957_s9 + $0x618] sm:$0x11]  ;;  %v24057_v2 = vcombine.high %v14191_v14, %v14191_v14 }
0x1082   : > { %16302 = vmatpush1.bf16.msra.mxu0 %v27509_v56  ;;  %16333 = vmatprep.mubr.bf16.mxu0 %v28055_v0  ;;  %v13962_v56 = vunpack.i.h.s16 %v13839_v60  ;;  %v24066_v11 = vcombine.high %v14198_v30, %v14198_v30 }
0x1083   : > { %23991 = vmatmul.mubr.msk.bf16.vlgmr.msra.gmra.mrb[116].mxu1 %vm14491_vm5, %v16166_v18  ;;  %16303 = vmatprep.subr.bf16.mxu0 %v27517_v58  ;;  %v24011_v58 = vpack.i.b16 %v13839_v60, %v13839_v60  ;;  %v27586_v60 = vld [vmem:[%s34957_s9 + $0x5fc] ss:$8 sps:$4 sm:$0xff]  }
0x1084   : > { %16392 = vmatpush1.bf16.msra.mxu1 %v27512_v48  ;;  %16423 = vmatprep.mubr.bf16.mxu1 %v28055_v0  ;;  %v27555_v48 = vld [vmem:[%s34957_s9 + $0x544] ss:$8 sps:$4 sm:$0xff]   ;;  %v16522_v18 = vpack.i.b16 %v13962_v56, %v13962_v56  ;;  %v24056_v56 = vcombine.low %v14191_v14, %v14191_v14 }
0x1085   : > { %16393 = vmatprep.subr.bf16.mxu1 %v27520_v21  ;;  %v27558_v21 = vld [vmem:[%s34957_s9 + $0x57c] ss:$8 sps:$4 sm:$0xff]   ;;  %v16436_v24 = vrot.slane %v24011_v58, %v32973_v45  ;;  %v27590_v58 = vld [vmem:[%s34957_s9 + $0x608] ss:$8 sps:$4 sm:$0xff]  }
0x1086   : > { %16304 = vmatpush1.bf16.msra.mxu0 %v27515_v41  ;;  %v27553_v41 = vld [vmem:[%s34957_s9 + $0x540] ss:$8 sps:$4 sm:$0xff]   ;;  %v16526_v49 = vrot.slane %v16522_v18, %v32973_v45  ;;  %v16929_v18 = vand.u32 %v24066_v11, %v29093_v28 }
0x1087   : > { %16305 = vmatprep.subr.bf16.mxu0 %v27523_v32  ;;  %v27561_v32 = vld [vmem:[%s34957_s9 + $0x554] ss:$8 sps:$4 sm:$0xff]  }
0x1088   : > { %16394 = vmatpush1.bf16.msra.mxu1 %v27518_v17  ;;  %v14177_v17 = vld [vmem:[%s34957_s9 + $0x570] sm:$0x11] }
0x1089   : > { %16395 = vmatprep.subr.bf16.mxu1 %v27526_v50  ;;  %v27564_v50 = vld [vmem:[%s34957_s9 + $0x58c] ss:$8 sps:$4 sm:$0xff]  }
0x108a   : > { %16306 = vmatpush1.bf16.msra.mxu0 %v27521_v33  ;;  %v14184_v33 = vld [vmem:[%s34957_s9 + $0x5a8] sm:$0x11] }
0x108b   : > { %16307 = vmatprep.subr.bf16.mxu0 %v16299_v59  ;;  %v24038_v59 = vcombine.high %v14177_v17, %v14177_v17  ;;  %v24047_v12 = vcombine.high %v14184_v33, %v14184_v33 }
0x108c   : > { %16396 = vmatpush1.bf16.msra.mxu1 %v27524_v42  ;;  %v27562_v42 = vld [vmem:[%s34957_s9 + $0x588] ss:$8 sps:$4 sm:$0xff]  }
0x108d   : > { %16397 = vmatprep.subr.bf16.mxu1 %v16389_v31  ;;  %v27565_v31 = vld [vmem:[%s34957_s9 + $0x560] ss:$8 sps:$4 sm:$0xff]   ;;  %v16659_v5 = vand.u32 %v24038_v59, %v29093_v28 }
0x108e   : > { %16308 = vmatpush1.bf16.msra.mxu0 %v16296_v38  ;;  %v24037_v38 = vcombine.low %v14177_v17, %v14177_v17  ;;  %v27602_v17 = vld [vmem:[%s34957_s9 + $0x65c] ss:$8 sps:$4 sm:$0xff]  }
0x108f   : > { %16481 = vmatprep.subr.bf16.mxu0 %v27533_v7  ;;  %v27568_v7 = vld [vmem:[%s34957_s9 + $0x598] ss:$8 sps:$4 sm:$0xff]  }
0x1090   : > { %16398 = vmatpush1.bf16.msra.mxu1 %v16386_v23  ;;  %v24046_v23 = vcombine.low %v14184_v33, %v14184_v33  ;;  %v27600_v33 = vld [vmem:[%s34957_s9 + $0x658] ss:$8 sps:$4 sm:$0xff]  }
0x1091   : > { %24001 = vmatmul.mubr.msk.bf16.vlgmr.msra.gmra.mrb[104].mxu0 %vm14491_vm5, %v16256_v4  ;;  %16571 = vmatprep.subr.bf16.mxu1 %v27536_v20  ;;  %v16749_v20 = vand.u32 %v24047_v12, %v29093_v28  ;;  %v24030_v4 = vpack.i.b16 %v32958_v44, %v32958_v44  ;;  %v14212_v12 = vld [vmem:[%s34957_s9 + $0x688] sm:$0x11] }
0x1092   : > { %16482 = vmatpush1.bf16.msra.mxu0 %v27531_v22  ;;  %16513 = vmatprep.mubr.bf16.mxu0 %v28055_v0  ;;  %v16656_v22 = vand.u32 %v24037_v38, %v29093_v28 }
0x1093   : > { %24010 = vmatmul.mubr.msk.bf16.vlgmr.msra.gmra.mrb[120].mxu1 %vm14491_vm5, %v16346_v10  ;;  %16483 = vmatprep.subr.bf16.mxu0 %v27539_v35  ;;  %v27577_v35 = vld [vmem:[%s34957_s9 + $0x5b4] ss:$8 sps:$4 sm:$0xff]  }
0x1094   : > { %16572 = vmatpush1.bf16.msra.mxu1 %v27534_v46  ;;  %16603 = vmatprep.mubr.bf16.mxu1 %v28055_v0  ;;  %v16746_v46 = vand.u32 %v24046_v23, %v29093_v28  ;;  %v27580_v10 = vld [vmem:[%s34957_s9 + $0x5ec] ss:$8 sps:$4 sm:$0xff]   ;;  %v13838_v23 = vcombine.high %v32958_v44, %v32958_v44 }
0x1095   : > { %16573 = vmatprep.subr.bf16.mxu1 %v27542_v54  ;;  %v27575_v54 = vld [vmem:[%s34957_s9 + $0x5b0] ss:$8 sps:$4 sm:$0xff]  }
0x1096   : > { %16484 = vmatpush1.bf16.msra.mxu0 %v27537_v15  ;;  %v16616_v15 = vrot.slane %v24030_v4, %v32973_v45 }
0x1097   : > { %16485 = vmatprep.subr.bf16.mxu0 %v27545_v16  ;;  %v27578_v16 = vld [vmem:[%s34957_s9 + $0x5e8] ss:$8 sps:$4 sm:$0xff]  }
0x1098   : > { %16574 = vmatpush1.bf16.msra.mxu1 %v27540_v29  ;;  %v16706_v29 = vrot.slane %v16702_v9, %v32973_v45 }
0x1099   : > { %16575 = vmatprep.subr.bf16.mxu1 %v27548_v63  ;;  %v27581_v63 = vld [vmem:[%s34957_s9 + $0x5c0] ss:$8 sps:$4 sm:$0xff]  }
0x109a   : > { %16486 = vmatpush1.bf16.msra.mxu0 %v27543_v36  ;;  %v27589_v36 = vld [vmem:[%s34957_s9 + $0x5d4] ss:$8 sps:$4 sm:$0xff]  }
0x109b   : > { %16487 = vmatprep.subr.bf16.mxu0 %v16479_v37  ;;  %v27584_v37 = vld [vmem:[%s34957_s9 + $0x5f8] ss:$8 sps:$4 sm:$0xff]  }
0x109c   : > { %16576 = vmatpush1.bf16.msra.mxu1 %v27546_v1  ;;  %v27592_v1 = vld [vmem:[%s34957_s9 + $0x60c] ss:$8 sps:$4 sm:$0xff]  }
0x109d   : > { %16577 = vmatprep.subr.bf16.mxu1 %v16569_v40  ;;  %v27587_v40 = vld [vmem:[%s34957_s9 + $0x5d0] ss:$8 sps:$4 sm:$0xff]  }
0x109e   : > { %16488 = vmatpush1.bf16.msra.mxu0 %v16476_v3  ;;  %v16839_v3 = vand.u32 %v24057_v2, %v29093_v28 }
0x109f   : > { %16661 = vmatprep.subr.bf16.mxu0 %v27555_v48  ;;  %v24065_v48 = vcombine.low %v14198_v30, %v14198_v30  ;;  %v24084_v30 = vcombine.low %v14212_v12, %v14212_v12 }
0x10a0   : > { %16578 = vmatpush1.bf16.msra.mxu1 %v16566_v8  ;;  %v13966_v8 = vunpack.i.h.s16 %v32967_v34 }
0x10a1   : > { %24020 = vmatmul.mubr.msk.bf16.vlgmr.msra.gmra.mrb[108].mxu0 %vm14491_vm5, %v16436_v24  ;;  %16751 = vmatprep.subr.bf16.mxu1 %v27558_v21  ;;  %v16836_v21 = vand.u32 %v24056_v56, %v29093_v28  ;;  %v27599_v24 = vld [vmem:[%s34957_s9 + $0x624] ss:$8 sps:$4 sm:$0xff]   ;;  %v27621_v56 = vld [vmem:[%s34957_s9 + $0x694] ss:$8 sps:$4 sm:$0xff]  }
0x10a2   : > { %16662 = vmatpush1.bf16.msra.mxu0 %v27553_v41  ;;  %16693 = vmatprep.mubr.bf16.mxu0 %v28055_v0  ;;  %v24049_v41 = vpack.i.b16 %v32967_v34, %v32967_v34 }
0x10a3   : > { %24029 = vmatmul.mubr.msk.bf16.vlgmr.msra.gmra.mrb[124].mxu1 %vm14491_vm5, %v16526_v49  ;;  %16663 = vmatprep.subr.bf16.mxu0 %v27561_v32  ;;  %v16926_v32 = vand.u32 %v24065_v48, %v29093_v28  ;;  %v27597_v49 = vld [vmem:[%s34957_s9 + $0x620] ss:$8 sps:$4 sm:$0xff]   ;;  %v27624_v48 = vld [vmem:[%s34957_s9 + $0x6cc] ss:$8 sps:$4 sm:$0xff]  }
0x10a4   : > { %16752 = vmatpush1.bf16.msra.mxu1 %v27556_v26  ;;  %16783 = vmatprep.mubr.bf16.mxu1 %v28055_v0  ;;  %v16882_v26 = vpack.i.b16 %v13966_v8, %v13966_v8  ;;  %v27619_v8 = vld [vmem:[%s34957_s9 + $0x690] ss:$8 sps:$4 sm:$0xff]  }
0x10a5   : > { %16753 = vmatprep.subr.bf16.mxu1 %v27564_v50  ;;  %v16796_v50 = vrot.slane %v24049_v41, %v32973_v45  ;;  %v27622_v41 = vld [vmem:[%s34957_s9 + $0x6c8] ss:$8 sps:$4 sm:$0xff]  }
0x10a6   : > { %16664 = vmatpush1.bf16.msra.mxu0 %v27559_v51  ;;  %v27605_v51 = vld [vmem:[%s34957_s9 + $0x634] ss:$8 sps:$4 sm:$0xff]   ;;  %v16886_v59 = vrot.slane %v16882_v26, %v32973_v45 }
0x10a7   : > { %16665 = vmatprep.subr.bf16.mxu0 %v27567_v55  ;;  %v14205_v55 = vld [vmem:[%s34957_s9 + $0x650] sm:$0x11]  ;;  %v27630_v26 = vld [vmem:[%s34957_s9 + $0x6dc] ss:$8 sps:$4 sm:$0xff]  }
0x10a8   : > { %16754 = vmatpush1.bf16.msra.mxu1 %v27562_v42  ;;  %v27608_v42 = vld [vmem:[%s34957_s9 + $0x66c] ss:$8 sps:$4 sm:$0xff]   ;;  %v24076_v38 = vcombine.high %v14205_v55, %v14205_v55  ;;  %v24075_v9 = vcombine.low %v14205_v55, %v14205_v55  ;;  %v27628_v55 = vld [vmem:[%s34957_s9 + $0x6d8] ss:$8 sps:$4 sm:$0xff]  }
0x10a9   : > { %16755 = vmatprep.subr.bf16.mxu1 %v27570_v61  ;;  %v27603_v61 = vld [vmem:[%s34957_s9 + $0x630] ss:$8 sps:$4 sm:$0xff]  }
0x10aa   : > { %16666 = vmatpush1.bf16.msra.mxu0 %v27565_v31  ;;  %v27611_v31 = vld [vmem:[%s34957_s9 + $0x644] ss:$8 sps:$4 sm:$0xff]   ;;  %v17016_v11 = vand.u32 %v24075_v9, %v29093_v28 }
0x10ab   : > { %16667 = vmatprep.subr.bf16.mxu0 %v16659_v5 }
0x10ac   : > { %16756 = vmatpush1.bf16.msra.mxu1 %v27568_v7  ;;  %v27606_v7 = vld [vmem:[%s34957_s9 + $0x668] ss:$8 sps:$4 sm:$0xff]  }
0x10ad   : > { %16757 = vmatprep.subr.bf16.mxu1 %v16749_v20  ;;  %v27614_v20 = vld [vmem:[%s34957_s9 + $0x67c] ss:$8 sps:$4 sm:$0xff]  }
0x10ae   : > { %16668 = vmatpush1.bf16.msra.mxu0 %v16656_v22  ;;  %v24085_v22 = vcombine.high %v14212_v12, %v14212_v12  ;;  %v27636_v12 = vld [vmem:[%s34957_s9 + $0x6ec] ss:$8 sps:$4 sm:$0xff]  }
0x10af   : > { %16841 = vmatprep.subr.bf16.mxu0 %v27577_v35 }
0x10b0   : > { %16758 = vmatpush1.bf16.msra.mxu1 %v16746_v46  ;;  %v27609_v46 = vld [vmem:[%s34957_s9 + $0x640] ss:$8 sps:$4 sm:$0xff]  }
0x10b1   : > { %24039 = vmatmul.mubr.msk.bf16.vlgmr.msra.gmra.mrb[112].mxu0 %vm14491_vm5, %v16616_v15  ;;  %16931 = vmatprep.subr.bf16.mxu1 %v27580_v10 }
0x10b2   : > { %16842 = vmatpush1.bf16.msra.mxu0 %v27575_v54  ;;  %16873 = vmatprep.mubr.bf16.mxu0 %v28055_v0 }
0x10b3   : > { %24048 = vmatmul.mubr.msk.bf16.vlgmr.msra.gmra.mrb[128].mxu1 %vm14491_vm5, %v16706_v29  ;;  %16843 = vmatprep.subr.bf16.mxu0 %v27583_v13  ;;  %v17019_v13 = vand.u32 %v24076_v38, %v29093_v28 }
0x10b4   : > { %16932 = vmatpush1.bf16.msra.mxu1 %v27578_v16  ;;  %16963 = vmatprep.mubr.bf16.mxu1 %v28055_v0 }
0x10b5   : > { %16933 = vmatprep.subr.bf16.mxu1 %v27586_v60 }
0x10b6   : > { %16844 = vmatpush1.bf16.msra.mxu0 %v27581_v63  ;;  %v27612_v63 = vld [vmem:[%s34957_s9 + $0x678] ss:$8 sps:$4 sm:$0xff]  }
0x10b7   : > { %16845 = vmatprep.subr.bf16.mxu0 %v27589_v36  ;;  %v13968_v36 = vunpack.i.h.s16 %v13838_v23 }
0x10b8   : > { %16934 = vmatpush1.bf16.msra.mxu1 %v27584_v37 }
0x10b9   : > { %16935 = vmatprep.subr.bf16.mxu1 %v27592_v1  ;;  %v17109_v1 = vand.u32 %v24085_v22, %v29093_v28 }
0x10ba   : > { %16846 = vmatpush1.bf16.msra.mxu0 %v27587_v40  ;;  %v24068_v40 = vpack.i.b16 %v13838_v23, %v13838_v23 }
0x10bb   : > { %16847 = vmatprep.subr.bf16.mxu0 %v16839_v3  ;;  %v17106_v3 = vand.u32 %v24084_v30, %v29093_v28  ;;  %v27643_v30 = vld [vmem:[%s34957_s9 + $0x704] ss:$8 sps:$4 sm:$0xff]  }
0x10bc   : > { %16936 = vmatpush1.bf16.msra.mxu1 %v27590_v58  ;;  %v17062_v58 = vpack.i.b16 %v13968_v36, %v13968_v36 }
0x10bd   : > { %16937 = vmatprep.subr.bf16.mxu1 %v16929_v18  ;;  %v16976_v18 = vrot.slane %v24068_v40, %v32973_v45  ;;  %v27649_v40 = vld [vmem:[%s34957_s9 + $0x714] ss:$8 sps:$4 sm:$0xff]  }
0x10be   : > { %16848 = vmatpush1.bf16.msra.mxu0 %v16836_v21  ;;  %v27627_v21 = vld [vmem:[%s34957_s9 + $0x6a4] ss:$8 sps:$4 sm:$0xff]  }
0x10bf   : > { %17021 = vmatprep.subr.bf16.mxu0 %v27599_v24  ;;  %v14219_v24 = vld [vmem:[%s34957_s9 + $0x6c0] sm:$0x11] }
0x10c0   : > { %16938 = vmatpush1.bf16.msra.mxu1 %v16926_v32  ;;  %v17066_v32 = vrot.slane %v17062_v58, %v32973_v45 }
0x10c1   : > { %24058 = vmatmul.mubr.msk.bf16.vlgmr.msra.gmra.mrb[116].mxu0 %vm14491_vm5, %v16796_v50  ;;  %17111 = vmatprep.subr.bf16.mxu1 %v27602_v17  ;;  %v27625_v17 = vld [vmem:[%s34957_s9 + $0x6a0] ss:$8 sps:$4 sm:$0xff]   ;;  %v27633_v50 = vld [vmem:[%s34957_s9 + $0x6b4] ss:$8 sps:$4 sm:$0xff]  }
0x10c2   : > { %17022 = vmatpush1.bf16.msra.mxu0 %v27597_v49  ;;  %17053 = vmatprep.mubr.bf16.mxu0 %v28055_v0  ;;  %v14226_v49 = vld [vmem:[%s34957_s9 + $0x6f8] sm:$0x11] }
0x10c3   : > { %24067 = vmatmul.mubr.msk.bf16.vlgmr.msra.gmra.mrb[132].mxu1 %vm14491_vm5, %v16886_v59  ;;  %17023 = vmatprep.subr.bf16.mxu0 %v27605_v51  ;;  %v24095_v51 = vcombine.high %v14219_v24, %v14219_v24  ;;  %v13840_v59 = vcombine.high %v32967_v34, %v32967_v34  ;;  %v24094_v34 = vcombine.low %v14219_v24, %v14219_v24 }
0x10c4   : > { %17112 = vmatpush1.bf16.msra.mxu1 %v27600_v33  ;;  %v14535_v5 = vpop.f32.mrb[64].mxu0  ;;  %17143 = vmatprep.mubr.bf16.mxu1 %v28055_v0 }
0x10c5   : > { %v14537_v27 = vpop.f32.mrb[65].mxu0  ;;  %17113 = vmatprep.subr.bf16.mxu1 %v27608_v42  ;;  %v20212_v10 = vsel %vm1683_vm2, %v14535_v5, 0.0 }
0x10c6   : > { %17024 = vmatpush1.bf16.msra.mxu0 %v27603_v61  ;;  %v14539_v4 = vpop.f32.mrb[66].mxu0  ;;  %v14625_v35 = vpop.f32.mrb[80].mxu1  ;;  %v20339_v16 = vsel %vm1683_vm2, %v14537_v27, 0.0  ;;  %v27631_v27 = vld [vmem:[%s34957_s9 + $0x6b0] ss:$8 sps:$4 sm:$0xff]  }
0x10c7   : > { %v20213_v54 = vsel %vm1683_vm2, %v14625_v35, 0.0  ;;  %v14540_v44 = vpop.f32.mrb[67].mxu0  ;;  %v14627_v15 = vpop.f32.mrb[81].mxu1  ;;  %17025 = vmatprep.subr.bf16.mxu0 %v27611_v31  ;;  %v24104_v31 = vcombine.high %v14226_v49, %v14226_v49 }
0x10c8   : > { %v20214_v14 = vadd.f32 %v20213_v54, %v20212_v10  ;;  %v20340_v29 = vsel %vm1683_vm2, %v14627_v15, 0.0  ;;  %17114 = vmatpush1.bf16.msra.mxu1 %v27606_v7  ;;  %v14629_v60 = vpop.f32.mrb[82].mxu1  ;;  %v27634_v44 = vld [vmem:[%s34957_s9 + $0x6e8] ss:$8 sps:$4 sm:$0xff]   ;;  %v24103_v15 = vcombine.low %v14226_v49, %v14226_v49  ;;  %v27658_v49 = vld [vmem:[%s34957_s9 + $0x75c] ss:$8 sps:$4 sm:$0xff]  }
0x10c9   : > { %v20341_v2 = vadd.f32 %v20340_v29, %v20339_v16  ;;  %v14630_v37 = vpop.f32.mrb[83].mxu1  ;;  %17115 = vmatprep.subr.bf16.mxu1 %v27614_v20  ;;  %v13970_v29 = vunpack.i.h.s16 %v13840_v59  ;;  %v17196_v60 = vand.u32 %v24094_v34, %v29093_v28 }
0x10ca   : > { %17026 = vmatpush1.bf16.msra.mxu0 %v27609_v46  ;;  %v17199_v46 = vand.u32 %v24095_v51, %v29093_v28  ;;  %v17286_v36 = vand.u32 %v24103_v15, %v29093_v28  ;;  %v27646_v37 = vld [vmem:[%s34957_s9 + $0x73c] ss:$8 sps:$4 sm:$0xff]  }
0x10cb   : > { %17027 = vmatprep.subr.bf16.mxu0 %v17019_v13 }
0x10cc   : > { %17116 = vmatpush1.bf16.msra.mxu1 %v27612_v63  ;;  %v24087_v63 = vpack.i.b16 %v13840_v59, %v13840_v59 }
0x10cd   : > { %17117 = vmatprep.subr.bf16.mxu1 %v17109_v1  ;;  %v27641_v1 = vld [vmem:[%s34957_s9 + $0x700] ss:$8 sps:$4 sm:$0xff]  }
0x10ce   : > { %17028 = vmatpush1.bf16.msra.mxu0 %v17016_v11  ;;  %v17156_v11 = vrot.slane %v24087_v63, %v32973_v45  ;;  %v27666_v63 = vld [vmem:[%s34957_s9 + $0x7a8] ss:$8 sps:$4 sm:$0xff]  }
0x10cf   : > { %17201 = vmatprep.subr.bf16.mxu0 %v27621_v56  ;;  %v27644_v56 = vld [vmem:[%s34957_s9 + $0x738] ss:$8 sps:$4 sm:$0xff]  }
0x10d0   : > { %17118 = vmatpush1.bf16.msra.mxu1 %v17106_v3  ;;  %v14233_v3 = vld [vmem:[%s34957_s9 + $0x730] sm:$0x11] }
0x10d1   : > { %24077 = vmatmul.mubr.msk.bf16.vlgmr.msra.gmra.mrb[120].mxu0 %vm14491_vm5, %v16976_v18  ;;  %17291 = vmatprep.subr.bf16.mxu1 %v27624_v48  ;;  %v27652_v48 = vld [vmem:[%s34957_s9 + $0x74c] ss:$8 sps:$4 sm:$0xff]  }
0x10d2   : > { %17202 = vmatpush1.bf16.msra.mxu0 %v27619_v8  ;;  %17233 = vmatprep.mubr.bf16.mxu0 %v28055_v0  ;;  %v27647_v8 = vld [vmem:[%s34957_s9 + $0x710] ss:$8 sps:$4 sm:$0xff]   ;;  %v14240_v18 = vld [vmem:[%s34957_s9 + $0x768] sm:$0x11] }
0x10d3   : > { %24086 = vmatmul.mubr.msk.bf16.vlgmr.msra.gmra.mrb[136].mxu1 %vm14491_vm5, %v17066_v32  ;;  %17203 = vmatprep.subr.bf16.mxu0 %v27627_v21  ;;  %v27655_v21 = vld [vmem:[%s34957_s9 + $0x724] ss:$8 sps:$4 sm:$0xff]   ;;  %v27650_v32 = vld [vmem:[%s34957_s9 + $0x748] ss:$8 sps:$4 sm:$0xff]  }
0x10d4   : > { %v14715_v33 = vpop.f32.mrb[68].mxu0  ;;  %17292 = vmatpush1.bf16.msra.mxu1 %v27622_v41  ;;  %17323 = vmatprep.mubr.bf16.mxu1 %v28055_v0  ;;  %v24114_v41 = vcombine.high %v14233_v3, %v14233_v3 }
0x10d5   : > { %v20215_v42 = vsel %vm1683_vm2, %v14715_v33, 0.0  ;;  %v14717_v61 = vpop.f32.mrb[69].mxu0  ;;  %17293 = vmatprep.subr.bf16.mxu1 %v27630_v26 }
0x10d6   : > { %v20216_v38 = vadd.f32 %v20215_v42, %v20214_v14  ;;  %v20342_v5 = vsel %vm1683_vm2, %v14717_v61, 0.0  ;;  %v14719_v7 = vpop.f32.mrb[70].mxu0  ;;  %v14805_v23 = vpop.f32.mrb[84].mxu1  ;;  %17204 = vmatpush1.bf16.msra.mxu0 %v27625_v17  ;;  %v17289_v14 = vand.u32 %v24104_v31, %v29093_v28  ;;  %v27653_v42 = vld [vmem:[%s34957_s9 + $0x720] ss:$8 sps:$4 sm:$0xff]   ;;  %v24113_v61 = vcombine.low %v14233_v3, %v14233_v3 }
0x10d7   : > { %v20343_v20 = vadd.f32 %v20342_v5, %v20341_v2  ;;  %v20217_v22 = vsel %vm1683_vm2, %v14805_v23, 0.0  ;;  %v14720_v4 = vpop.f32.mrb[71].mxu0  ;;  %v14807_v35 = vpop.f32.mrb[85].mxu1  ;;  %17205 = vmatprep.subr.bf16.mxu0 %v27633_v50  ;;  %v17242_v2 = vpack.i.b16 %v13970_v29, %v13970_v29  ;;  %v24123_v50 = vcombine.high %v14240_v18, %v14240_v18  ;;  %v27672_v3 = vld [vmem:[%s34957_s9 + $0x7b8] ss:$8 sps:$4 sm:$0xff]  }
0x10d8   : > { %v20218_v9 = vadd.f32 %v20217_v22, %v20216_v38  ;;  %v20344_v10 = vsel %vm1683_vm2, %v14807_v35, 0.0  ;;  %v14809_v54 = vpop.f32.mrb[86].mxu1  ;;  %17294 = vmatpush1.bf16.msra.mxu1 %v27628_v55  ;;  %v17379_v7 = vand.u32 %v24114_v41, %v29093_v28  ;;  %v24122_v22 = vcombine.low %v14240_v18, %v14240_v18 }
0x10d9   : > { %v20345_v13 = vadd.f32 %v20344_v10, %v20343_v20  ;;  %v14810_v16 = vpop.f32.mrb[87].mxu1  ;;  %17295 = vmatprep.subr.bf16.mxu1 %v27636_v12  ;;  %v17246_v58 = vrot.slane %v17242_v2, %v32973_v45  ;;  %v27656_v20 = vld [vmem:[%s34957_s9 + $0x758] ss:$8 sps:$4 sm:$0xff]   ;;  %v13972_v4 = vunpack.i.h.s16 %v33043_v6  ;;  %v17376_v10 = vand.u32 %v24113_v61, %v29093_v28  ;;  %v27674_v2 = vld [vmem:[%s34957_s9 + $0x7bc] ss:$8 sps:$4 sm:$0xff]  }
0x10da   : > { %17206 = vmatpush1.bf16.msra.mxu0 %v27631_v27  ;;  %v24106_v54 = vpack.i.b16 %v33043_v6, %v33043_v6  ;;  %v17466_v15 = vand.u32 %v24122_v22, %v29093_v28  ;;  %v27668_v16 = vld [vmem:[%s34957_s9 + $0x7ac] ss:$8 sps:$4 sm:$0xff]  }
0x10db   : > { %17207 = vmatprep.subr.bf16.mxu0 %v17199_v46 }
0x10dc   : > { %17296 = vmatpush1.bf16.msra.mxu1 %v27634_v44  ;;  %v27665_v44 = vld [vmem:[%s34957_s9 + $0x774] ss:$8 sps:$4 sm:$0xff]   ;;  %v17336_v29 = vrot.slane %v24106_v54, %v32973_v45  ;;  %v27688_v54 = vld [vmem:[%s34957_s9 + $0x818] ss:$8 sps:$4 sm:$0xff]  }
0x10dd   : > { %17297 = vmatprep.subr.bf16.mxu1 %v17289_v14  ;;  %v27663_v14 = vld [vmem:[%s34957_s9 + $0x770] ss:$8 sps:$4 sm:$0xff]  }
0x10de   : > { %17208 = vmatpush1.bf16.msra.mxu0 %v17196_v60  ;;  %v27671_v60 = vld [vmem:[%s34957_s9 + $0x784] ss:$8 sps:$4 sm:$0xff]  }
0x10df   : > { %17381 = vmatprep.subr.bf16.mxu0 %v27643_v30  ;;  %v14247_v30 = vld [vmem:[%s34957_s9 + $0x7a0] sm:$0x11] }
0x10e0   : > { %17298 = vmatpush1.bf16.msra.mxu1 %v17286_v36 }
0x10e1   : > { %24096 = vmatmul.mubr.msk.bf16.vlgmr.msra.gmra.mrb[124].mxu0 %vm14491_vm5, %v17156_v11  ;;  %17471 = vmatprep.subr.bf16.mxu1 %v27646_v37  ;;  %v27669_v37 = vld [vmem:[%s34957_s9 + $0x780] ss:$8 sps:$4 sm:$0xff]   ;;  %v27677_v11 = vld [vmem:[%s34957_s9 + $0x794] ss:$8 sps:$4 sm:$0xff]  }
0x10e2   : > { %17382 = vmatpush1.bf16.msra.mxu0 %v27641_v1  ;;  %17413 = vmatprep.mubr.bf16.mxu0 %v28055_v0  ;;  %v14254_v1 = vld [vmem:[%s34957_s9 + $0x7d8] sm:$0x11] }
0x10e3   : > { %24105 = vmatmul.mubr.msk.bf16.vlgmr.msra.gmra.mrb[140].mxu1 %vm14491_vm5, %v17246_v58  ;;  %17383 = vmatprep.subr.bf16.mxu0 %v27649_v40  ;;  %v24133_v40 = vcombine.high %v14247_v30, %v14247_v30  ;;  %v24142_v18 = vcombine.high %v14254_v1, %v14254_v1 }
0x10e4   : > { %v14895_v24 = vpop.f32.mrb[72].mxu0  ;;  %17472 = vmatpush1.bf16.msra.mxu1 %v27644_v56  ;;  %17503 = vmatprep.mubr.bf16.mxu1 %v28055_v0 }
0x10e5   : > { %v20219_v26 = vsel %vm1683_vm2, %v14895_v24, 0.0  ;;  %v14897_v17 = vpop.f32.mrb[73].mxu0  ;;  %17473 = vmatprep.subr.bf16.mxu1 %v27652_v48 }
0x10e6   : > { %v20220_v51 = vadd.f32 %v20219_v26, %v20218_v9  ;;  %v20346_v33 = vsel %vm1683_vm2, %v14897_v17, 0.0  ;;  %v14899_v55 = vpop.f32.mrb[74].mxu0  ;;  %v14985_v59 = vpop.f32.mrb[88].mxu1  ;;  %17384 = vmatpush1.bf16.msra.mxu0 %v27647_v8  ;;  %v17469_v9 = vand.u32 %v24123_v50, %v29093_v28  ;;  %v27680_v8 = vld [vmem:[%s34957_s9 + $0x7cc] ss:$8 sps:$4 sm:$0xff]   ;;  %v24132_v17 = vcombine.low %v14247_v30, %v14247_v30 }
0x10e7   : > { %v20347_v12 = vadd.f32 %v20346_v33, %v20345_v13  ;;  %v20221_v31 = vsel %vm1683_vm2, %v14985_v59, 0.0  ;;  %v14900_v38 = vpop.f32.mrb[75].mxu0  ;;  %v14987_v5 = vpop.f32.mrb[89].mxu1  ;;  %17385 = vmatprep.subr.bf16.mxu0 %v27655_v21  ;;  %v17422_v13 = vpack.i.b16 %v13972_v4, %v13972_v4  ;;  %v27675_v26 = vld [vmem:[%s34957_s9 + $0x790] ss:$8 sps:$4 sm:$0xff]   ;;  %v17559_v55 = vand.u32 %v24133_v40, %v29093_v28 }
0x10e8   : > { %v20222_v23 = vadd.f32 %v20221_v31, %v20220_v51  ;;  %v20348_v27 = vsel %vm1683_vm2, %v14987_v5, 0.0  ;;  %v14989_v34 = vpop.f32.mrb[90].mxu1  ;;  %17474 = vmatpush1.bf16.msra.mxu1 %v27650_v32  ;;  %v24141_v31 = vcombine.low %v14254_v1, %v14254_v1  ;;  %v13974_v38 = vunpack.i.h.s16 %v33075_v52  ;;  %v27694_v30 = vld [vmem:[%s34957_s9 + $0x828] ss:$8 sps:$4 sm:$0xff]   ;;  %v27702_v1 = vld [vmem:[%s34957_s9 + $0x83c] ss:$8 sps:$4 sm:$0xff]  }
0x10e9   : > { %v20349_v35 = vadd.f32 %v20348_v27, %v20347_v12  ;;  %v14990_v46 = vpop.f32.mrb[91].mxu1  ;;  %17475 = vmatprep.subr.bf16.mxu1 %v27658_v49  ;;  %v17426_v36 = vrot.slane %v17422_v13, %v32973_v45  ;;  %v27678_v12 = vld [vmem:[%s34957_s9 + $0x7c8] ss:$8 sps:$4 sm:$0xff]   ;;  %v17556_v27 = vand.u32 %v24132_v17, %v29093_v28  ;;  %v24125_v34 = vpack.i.b16 %v33075_v52, %v33075_v52  ;;  %v27696_v13 = vld [vmem:[%s34957_s9 + $0x82c] ss:$8 sps:$4 sm:$0xff]  }
0x10ea   : > { %17386 = vmatpush1.bf16.msra.mxu0 %v27653_v42  ;;  %v17646_v22 = vand.u32 %v24141_v31, %v29093_v28  ;;  %v17602_v4 = vpack.i.b16 %v13974_v38, %v13974_v38  ;;  %v27685_v46 = vld [vmem:[%s34957_s9 + $0x7e0] ss:$8 sps:$4 sm:$0xff]  }
0x10eb   : > { %17387 = vmatprep.subr.bf16.mxu0 %v17379_v7 }
0x10ec   : > { %17476 = vmatpush1.bf16.msra.mxu1 %v27656_v20  ;;  %v27687_v20 = vld [vmem:[%s34957_s9 + $0x7e4] ss:$8 sps:$4 sm:$0xff]  }
0x10ed   : > { %17477 = vmatprep.subr.bf16.mxu1 %v17469_v9  ;;  %v17516_v9 = vrot.slane %v24125_v34, %v32973_v45  ;;  %v27710_v34 = vld [vmem:[%s34957_s9 + $0x888] ss:$8 sps:$4 sm:$0xff]  }
0x10ee   : > { %17388 = vmatpush1.bf16.msra.mxu0 %v17376_v10  ;;  %v27693_v10 = vld [vmem:[%s34957_s9 + $0x7f4] ss:$8 sps:$4 sm:$0xff]  }
0x10ef   : > { %17561 = vmatprep.subr.bf16.mxu0 %v27665_v44  ;;  %v14261_v44 = vld [vmem:[%s34957_s9 + $0x810] sm:$0x11] }
0x10f0   : > { %17478 = vmatpush1.bf16.msra.mxu1 %v17466_v15  ;;  %v17606_v15 = vrot.slane %v17602_v4, %v32973_v45  ;;  %v27718_v4 = vld [vmem:[%s34957_s9 + $0x89c] ss:$8 sps:$4 sm:$0xff]  }
0x10f1   : > { %24115 = vmatmul.mubr.msk.bf16.vlgmr.msra.gmra.mrb[128].mxu0 %vm14491_vm5, %v17336_v29  ;;  %17651 = vmatprep.subr.bf16.mxu1 %v27668_v16  ;;  %v27691_v16 = vld [vmem:[%s34957_s9 + $0x7f0] ss:$8 sps:$4 sm:$0xff]   ;;  %v27699_v29 = vld [vmem:[%s34957_s9 + $0x804] ss:$8 sps:$4 sm:$0xff]  }
0x10f2   : > { %17562 = vmatpush1.bf16.msra.mxu0 %v27663_v14  ;;  %17593 = vmatprep.mubr.bf16.mxu0 %v28055_v0  ;;  %v14268_v14 = vld [vmem:[%s34957_s9 + $0x848] sm:$0x11] }
0x10f3   : > { %24124 = vmatmul.mubr.msk.bf16.vlgmr.msra.gmra.mrb[144].mxu1 %vm14491_vm5, %v17426_v36  ;;  %17563 = vmatprep.subr.bf16.mxu0 %v27671_v60  ;;  %v24152_v60 = vcombine.high %v14261_v44, %v14261_v44  ;;  %v13886_v36 = vcombine.high %v33043_v6, %v33043_v6  ;;  %v24151_v6 = vcombine.low %v14261_v44, %v14261_v44  ;;  %v27716_v44 = vld [vmem:[%s34957_s9 + $0x898] ss:$8 sps:$4 sm:$0xff]  }
0x10f4   : > { %v15075_v56 = vpop.f32.mrb[76].mxu0  ;;  %17652 = vmatpush1.bf16.msra.mxu1 %v27666_v63  ;;  %17683 = vmatprep.mubr.bf16.mxu1 %v28055_v0 }
0x10f5   : > { %v20223_v58 = vsel %vm1683_vm2, %v15075_v56, 0.0  ;;  %v15077_v48 = vpop.f32.mrb[77].mxu0  ;;  %17653 = vmatprep.subr.bf16.mxu1 %v27674_v2 }
0x10f6   : > { %v20224_v21 = vadd.f32 %v20223_v58, %v20222_v23  ;;  %v20350_v41 = vsel %vm1683_vm2, %v15077_v48, 0.0  ;;  %v15079_v24 = vpop.f32.mrb[78].mxu0  ;;  %v15165_v32 = vpop.f32.mrb[92].mxu1  ;;  %17564 = vmatpush1.bf16.msra.mxu0 %v27669_v37  ;;  %v17649_v23 = vand.u32 %v24142_v18, %v29093_v28  ;;  %v27697_v48 = vld [vmem:[%s34957_s9 + $0x800] ss:$8 sps:$4 sm:$0xff]  }
0x10f7   : > { %v20351_v49 = vadd.f32 %v20350_v41, %v20349_v35  ;;  %v20225_v50 = vsel %vm1683_vm2, %v15165_v32, 0.0  ;;  %v15080_v51 = vpop.f32.mrb[79].mxu0  ;;  %v15167_v33 = vpop.f32.mrb[93].mxu1  ;;  %17565 = vmatprep.subr.bf16.mxu0 %v27677_v11  ;;  %v27690_v35 = vld [vmem:[%s34957_s9 + $0x81c] ss:$8 sps:$4 sm:$0xff]   ;;  %v24161_v11 = vcombine.high %v14268_v14, %v14268_v14  ;;  %v17739_v24 = vand.u32 %v24152_v60, %v29093_v28 }
0x10f8   : > { %v20226_v59 = vadd.f32 %v20225_v50, %v20224_v21  ;;  %v20352_v42 = vsel %vm1683_vm2, %v15167_v33, 0.0  ;;  %v15169_v61 = vpop.f32.mrb[94].mxu1  ;;  %17654 = vmatpush1.bf16.msra.mxu1 %v27672_v3  ;;  %v24160_v50 = vcombine.low %v14268_v14, %v14268_v14  ;;  %v13976_v51 = vunpack.i.h.s16 %v13886_v36  ;;  %v27724_v14 = vld [vmem:[%s34957_s9 + $0x8ac] ss:$8 sps:$4 sm:$0xff]  }
0x10f9   : > { %v20353_v5 = vadd.f32 %v20352_v42, %v20351_v49  ;;  %v15170_v7 = vpop.f32.mrb[95].mxu1  ;;  %17655 = vmatprep.subr.bf16.mxu1 %v27680_v8  ;;  %v27700_v49 = vld [vmem:[%s34957_s9 + $0x838] ss:$8 sps:$4 sm:$0xff]   ;;  %v17736_v42 = vand.u32 %v24151_v6, %v29093_v28  ;;  %v24144_v61 = vpack.i.b16 %v13886_v36, %v13886_v36  ;;  %v27722_v6 = vld [vmem:[%s34957_s9 + $0x8a8] ss:$8 sps:$4 sm:$0xff]  }
0x10fa   : > { %17566 = vmatpush1.bf16.msra.mxu0 %v27675_v26  ;;  %v17826_v31 = vand.u32 %v24160_v50, %v29093_v28  ;;  %v17782_v38 = vpack.i.b16 %v13976_v51, %v13976_v51  ;;  %v27707_v7 = vld [vmem:[%s34957_s9 + $0x850] ss:$8 sps:$4 sm:$0xff]   ;;  %v27734_v51 = vld [vmem:[%s34957_s9 + $0x8fc] ss:$8 sps:$4 sm:$0xff]  }
0x10fb   : > { %17567 = vmatprep.subr.bf16.mxu0 %v17559_v55 }
0x10fc   : > { %17656 = vmatpush1.bf16.msra.mxu1 %v27678_v12  ;;  %v27709_v12 = vld [vmem:[%s34957_s9 + $0x854] ss:$8 sps:$4 sm:$0xff]  }
0x10fd   : > { %17657 = vmatprep.subr.bf16.mxu1 %v17649_v23  ;;  %v17696_v23 = vrot.slane %v24144_v61, %v32973_v45  ;;  %v14289_v61 = vld [vmem:[%s34957_s9 + $0x8f0] sm:$0x11] }
0x10fe   : > { %17568 = vmatpush1.bf16.msra.mxu0 %v17556_v27  ;;  %v27715_v27 = vld [vmem:[%s34957_s9 + $0x864] ss:$8 sps:$4 sm:$0xff]  }
0x10ff   : > { %17741 = vmatprep.subr.bf16.mxu0 %v27687_v20  ;;  %v14275_v20 = vld [vmem:[%s34957_s9 + $0x880] sm:$0x11] }
0x1100   : > { %17658 = vmatpush1.bf16.msra.mxu1 %v17646_v22  ;;  %v17786_v22 = vrot.slane %v17782_v38, %v32973_v45  ;;  %v27735_v38 = vld [vmem:[%s34957_s9 + $0x8d0] ss:$8 sps:$4 sm:$0xff]  }
0x1101   : > { %24134 = vmatmul.mubr.msk.bf16.vlgmr.msra.gmra.mrb[132].mxu0 %vm14491_vm5, %v17516_v9  ;;  %17831 = vmatprep.subr.bf16.mxu1 %v27690_v35  ;;  %v27713_v35 = vld [vmem:[%s34957_s9 + $0x860] ss:$8 sps:$4 sm:$0xff]   ;;  %v27721_v9 = vld [vmem:[%s34957_s9 + $0x874] ss:$8 sps:$4 sm:$0xff]  }
0x1102   : > { %17742 = vmatpush1.bf16.msra.mxu0 %v27685_v46  ;;  %17773 = vmatprep.mubr.bf16.mxu0 %v28055_v0  ;;  %v14282_v46 = vld [vmem:[%s34957_s9 + $0x8b8] sm:$0x11] }
0x1103   : > { %24143 = vmatmul.mubr.msk.bf16.vlgmr.msra.gmra.mrb[148].mxu1 %vm14491_vm5, %v17606_v15  ;;  %17743 = vmatprep.subr.bf16.mxu0 %v27693_v10  ;;  %v24171_v10 = vcombine.high %v14275_v20, %v14275_v20  ;;  %v13888_v15 = vcombine.high %v33075_v52, %v33075_v52  ;;  %v24170_v52 = vcombine.low %v14275_v20, %v14275_v20 }
0x1104   : > { %v15255_v63 = vpop.f32.mrb[80].mxu0  ;;  %17832 = vmatpush1.bf16.msra.mxu1 %v27688_v54  ;;  %17863 = vmatprep.mubr.bf16.mxu1 %v28055_v0 }
0x1105   : > { %v20227_v2 = vsel %vm1683_vm2, %v15255_v63, 0.0  ;;  %v15257_v37 = vpop.f32.mrb[81].mxu0  ;;  %17833 = vmatprep.subr.bf16.mxu1 %v27696_v13 }
0x1106   : > { %v20228_v40 = vadd.f32 %v20227_v2, %v20226_v59  ;;  %v20354_v56 = vsel %vm1683_vm2, %v15257_v37, 0.0  ;;  %v15259_v3 = vpop.f32.mrb[82].mxu0  ;;  %v15345_v58 = vpop.f32.mrb[96].mxu1  ;;  %17744 = vmatpush1.bf16.msra.mxu0 %v27691_v16  ;;  %v17829_v59 = vand.u32 %v24161_v11, %v29093_v28  ;;  %v27719_v2 = vld [vmem:[%s34957_s9 + $0x870] ss:$8 sps:$4 sm:$0xff]  }
0x1107   : > { %v20355_v8 = vadd.f32 %v20354_v56, %v20353_v5  ;;  %v20229_v18 = vsel %vm1683_vm2, %v15345_v58, 0.0  ;;  %v15260_v21 = vpop.f32.mrb[83].mxu0  ;;  %v15347_v41 = vpop.f32.mrb[97].mxu1  ;;  %17745 = vmatprep.subr.bf16.mxu0 %v27699_v29  ;;  %v27712_v5 = vld [vmem:[%s34957_s9 + $0x88c] ss:$8 sps:$4 sm:$0xff]   ;;  %v24180_v29 = vcombine.high %v14282_v46, %v14282_v46  ;;  %v17919_v56 = vand.u32 %v24171_v10, %v29093_v28 }
0x1108   : > { %v20230_v32 = vadd.f32 %v20229_v18, %v20228_v40  ;;  %v20356_v26 = vsel %vm1683_vm2, %v15347_v41, 0.0  ;;  %v15349_v17 = vpop.f32.mrb[98].mxu1  ;;  %17834 = vmatpush1.bf16.msra.mxu1 %v27694_v30 }
0x1109   : > { %v20357_v33 = vadd.f32 %v20356_v26, %v20355_v8  ;;  %v15350_v55 = vpop.f32.mrb[99].mxu1  ;;  %17835 = vmatprep.subr.bf16.mxu1 %v27702_v1  ;;  %v24179_v8 = vcombine.low %v14282_v46, %v14282_v46  ;;  %v18009_v41 = vand.u32 %v24180_v29, %v29093_v28  ;;  %v24163_v26 = vpack.i.b16 %v13888_v15, %v13888_v15  ;;  %v27731_v17 = vld [vmem:[%s34957_s9 + $0x8c4] ss:$8 sps:$4 sm:$0xff]  }
0x110a   : > { %17746 = vmatpush1.bf16.msra.mxu0 %v27697_v48 }
0x110b   : > { %17747 = vmatprep.subr.bf16.mxu0 %v17739_v24  ;;  %v13978_v24 = vunpack.i.h.s16 %v13888_v15  ;;  %v17876_v55 = vrot.slane %v24163_v26, %v32973_v45  ;;  %v24189_v15 = vcombine.low %v14289_v61, %v14289_v61 }
0x110c   : > { %17836 = vmatpush1.bf16.msra.mxu1 %v27700_v49  ;;  %v18006_v49 = vand.u32 %v24179_v8, %v29093_v28  ;;  %v27756_v8 = vld [vmem:[%s34957_s9 + $0x96c] ss:$8 sps:$4 sm:$0xff]  }
0x110d   : > { %17837 = vmatprep.subr.bf16.mxu1 %v17829_v59  ;;  %v17962_v50 = vpack.i.b16 %v13978_v24, %v13978_v24  ;;  %v27737_v59 = vld [vmem:[%s34957_s9 + $0x8d4] ss:$8 sps:$4 sm:$0xff]   ;;  %v27754_v24 = vld [vmem:[%s34957_s9 + $0x968] ss:$8 sps:$4 sm:$0xff]  }
0x110e   : > { %17748 = vmatpush1.bf16.msra.mxu0 %v17736_v42  ;;  %v27732_v42 = vld [vmem:[%s34957_s9 + $0x8f8] ss:$8 sps:$4 sm:$0xff]  }
0x110f   : > { %17921 = vmatprep.subr.bf16.mxu0 %v27709_v12  ;;  %v17966_v12 = vrot.slane %v17962_v50, %v32973_v45  ;;  %v14310_v50 = vld [vmem:[%s34957_s9 + $0x998] sm:$0x11] }
0x1110   : > { %17838 = vmatpush1.bf16.msra.mxu1 %v17826_v31  ;;  %v27740_v31 = vld [vmem:[%s34957_s9 + $0x90c] ss:$8 sps:$4 sm:$0xff]  }
0x1111   : > { %24153 = vmatmul.mubr.msk.bf16.vlgmr.msra.gmra.mrb[136].mxu0 %vm14491_vm5, %v17696_v23  ;;  %18011 = vmatprep.subr.bf16.mxu1 %v27712_v5  ;;  %v14296_v5 = vld [vmem:[%s34957_s9 + $0x928] sm:$0x11]  ;;  %v24190_v23 = vcombine.high %v14289_v61, %v14289_v61 }
0x1112   : > { %17922 = vmatpush1.bf16.msra.mxu0 %v27707_v7  ;;  %17953 = vmatprep.mubr.bf16.mxu0 %v28055_v0  ;;  %v27743_v7 = vld [vmem:[%s34957_s9 + $0x8e4] ss:$8 sps:$4 sm:$0xff]  }
0x1113   : > { %24162 = vmatmul.mubr.msk.bf16.vlgmr.msra.gmra.mrb[152].mxu1 %vm14491_vm5, %v17786_v22  ;;  %17923 = vmatprep.subr.bf16.mxu0 %v27715_v27 }
0x1114   : > { %v15435_v54 = vpop.f32.mrb[84].mxu0  ;;  %18012 = vmatpush1.bf16.msra.mxu1 %v27710_v34  ;;  %18043 = vmatprep.mubr.bf16.mxu1 %v28055_v0  ;;  %v27738_v34 = vld [vmem:[%s34957_s9 + $0x908] ss:$8 sps:$4 sm:$0xff]  }
0x1115   : > { %v20231_v13 = vsel %vm1683_vm2, %v15435_v54, 0.0  ;;  %v15437_v16 = vpop.f32.mrb[85].mxu0  ;;  %18013 = vmatprep.subr.bf16.mxu1 %v27718_v4  ;;  %v27746_v4 = vld [vmem:[%s34957_s9 + $0x91c] ss:$8 sps:$4 sm:$0xff]  }
0x1116   : > { %v20232_v60 = vadd.f32 %v20231_v13, %v20230_v32  ;;  %v20358_v63 = vsel %vm1683_vm2, %v15437_v16, 0.0  ;;  %v15439_v30 = vpop.f32.mrb[86].mxu0  ;;  %v15525_v36 = vpop.f32.mrb[100].mxu1  ;;  %17924 = vmatpush1.bf16.msra.mxu0 %v27713_v35  ;;  %v17916_v32 = vand.u32 %v24170_v52, %v29093_v28  ;;  %v24199_v35 = vcombine.high %v14296_v5, %v14296_v5 }
0x1117   : > { %v20359_v37 = vadd.f32 %v20358_v63, %v20357_v33  ;;  %v20233_v1 = vsel %vm1683_vm2, %v15525_v36, 0.0  ;;  %v15440_v11 = vpop.f32.mrb[87].mxu0  ;;  %v15527_v40 = vpop.f32.mrb[101].mxu1  ;;  %17925 = vmatprep.subr.bf16.mxu0 %v27721_v9  ;;  %v27729_v33 = vld [vmem:[%s34957_s9 + $0x8c0] ss:$8 sps:$4 sm:$0xff]   ;;  %v24198_v52 = vcombine.low %v14296_v5, %v14296_v5 }
0x1118   : > { %v20234_v3 = vadd.f32 %v20233_v1, %v20232_v60  ;;  %v20360_v58 = vsel %vm1683_vm2, %v15527_v40, 0.0  ;;  %v15529_v48 = vpop.f32.mrb[102].mxu1  ;;  %18014 = vmatpush1.bf16.msra.mxu1 %v27716_v44  ;;  %v27741_v44 = vld [vmem:[%s34957_s9 + $0x8e0] ss:$8 sps:$4 sm:$0xff]   ;;  %v18099_v60 = vand.u32 %v24190_v23, %v29093_v28  ;;  %v18189_v40 = vand.u32 %v24199_v35, %v29093_v28 }
0x1119   : > { %v20361_v18 = vadd.f32 %v20360_v58, %v20359_v37  ;;  %v15530_v21 = vpop.f32.mrb[103].mxu1  ;;  %18015 = vmatprep.subr.bf16.mxu1 %v27724_v14  ;;  %v13980_v37 = vunpack.i.h.s16 %v33046_v47  ;;  %v27753_v58 = vld [vmem:[%s34957_s9 + $0x934] ss:$8 sps:$4 sm:$0xff]   ;;  %v18186_v48 = vand.u32 %v24198_v52, %v29093_v28 }
0x111a   : > { %17926 = vmatpush1.bf16.msra.mxu0 %v27719_v2  ;;  %v27744_v2 = vld [vmem:[%s34957_s9 + $0x918] ss:$8 sps:$4 sm:$0xff]   ;;  %v27778_v52 = vld [vmem:[%s34957_s9 + $0x9dc] ss:$8 sps:$4 sm:$0xff]  }
0x111b   : > { %17927 = vmatprep.subr.bf16.mxu0 %v17919_v56  ;;  %v18096_v56 = vand.u32 %v24189_v15, %v29093_v28  ;;  %v24217_v15 = vcombine.low %v14310_v50, %v14310_v50 }
0x111c   : > { %18016 = vmatpush1.bf16.msra.mxu1 %v27722_v6  ;;  %v18142_v6 = vpack.i.b16 %v13980_v37, %v13980_v37  ;;  %v27773_v37 = vld [vmem:[%s34957_s9 + $0x9a0] ss:$8 sps:$4 sm:$0xff]  }
0x111d   : > { %18017 = vmatprep.subr.bf16.mxu1 %v18009_v41  ;;  %v27759_v41 = vld [vmem:[%s34957_s9 + $0x944] ss:$8 sps:$4 sm:$0xff]  }
0x111e   : > { %17928 = vmatpush1.bf16.msra.mxu0 %v17916_v32  ;;  %v14303_v32 = vld [vmem:[%s34957_s9 + $0x960] sm:$0x11]  ;;  %v18146_v26 = vrot.slane %v18142_v6, %v32973_v45  ;;  %v14324_v6 = vld [vmem:[%s34957_s9 + $0xa08] sm:$0x11] }
0x111f   : > { %18101 = vmatprep.subr.bf16.mxu0 %v27731_v17  ;;  %v27762_v17 = vld [vmem:[%s34957_s9 + $0x97c] ss:$8 sps:$4 sm:$0xff]  }
0x1120   : > { %18018 = vmatpush1.bf16.msra.mxu1 %v18006_v49  ;;  %v27757_v49 = vld [vmem:[%s34957_s9 + $0x940] ss:$8 sps:$4 sm:$0xff]  }
0x1121   : > { %24172 = vmatmul.mubr.msk.bf16.vlgmr.msra.gmra.mrb[140].mxu0 %vm14491_vm5, %v17876_v55  ;;  %18191 = vmatprep.subr.bf16.mxu1 %v27734_v51  ;;  %v27765_v51 = vld [vmem:[%s34957_s9 + $0x954] ss:$8 sps:$4 sm:$0xff]  }
0x1122   : > { %18102 = vmatpush1.bf16.msra.mxu0 %v27729_v33  ;;  %18133 = vmatprep.mubr.bf16.mxu0 %v28055_v0  ;;  %v24209_v33 = vcombine.high %v14303_v32, %v14303_v32 }
0x1123   : > { %24181 = vmatmul.mubr.msk.bf16.vlgmr.msra.gmra.mrb[156].mxu1 %vm14491_vm5, %v17966_v12  ;;  %18103 = vmatprep.subr.bf16.mxu0 %v27737_v59  ;;  %v27760_v59 = vld [vmem:[%s34957_s9 + $0x978] ss:$8 sps:$4 sm:$0xff]   ;;  %v27768_v12 = vld [vmem:[%s34957_s9 + $0x98c] ss:$8 sps:$4 sm:$0xff]  }
0x1124   : > { %v15615_v27 = vpop.f32.mrb[88].mxu0  ;;  %18192 = vmatpush1.bf16.msra.mxu1 %v27732_v42  ;;  %18223 = vmatprep.mubr.bf16.mxu1 %v28055_v0 }
0x1125   : > { %v20235_v20 = vsel %vm1683_vm2, %v15615_v27, 0.0  ;;  %v15617_v22 = vpop.f32.mrb[89].mxu0  ;;  %18193 = vmatprep.subr.bf16.mxu1 %v27740_v31  ;;  %v24218_v31 = vcombine.high %v14310_v50, %v14310_v50  ;;  %v27763_v27 = vld [vmem:[%s34957_s9 + $0x950] ss:$8 sps:$4 sm:$0xff]  }
0x1126   : > { %v20236_v46 = vadd.f32 %v20235_v20, %v20234_v3  ;;  %v20362_v9 = vsel %vm1683_vm2, %v15617_v22, 0.0  ;;  %v15619_v10 = vpop.f32.mrb[90].mxu0  ;;  %v15705_v54 = vpop.f32.mrb[104].mxu1  ;;  %18104 = vmatpush1.bf16.msra.mxu0 %v27735_v38  ;;  %v24182_v3 = vpack.i.b16 %v33046_v47, %v33046_v47 }
0x1127   : > { %v20363_v13 = vadd.f32 %v20362_v9, %v20361_v18  ;;  %v20237_v16 = vsel %vm1683_vm2, %v15705_v54, 0.0  ;;  %v15620_v14 = vpop.f32.mrb[91].mxu0  ;;  %v15707_v29 = vpop.f32.mrb[105].mxu1  ;;  %18105 = vmatprep.subr.bf16.mxu0 %v27743_v7  ;;  %v27751_v18 = vld [vmem:[%s34957_s9 + $0x930] ss:$8 sps:$4 sm:$0xff]  }
0x1128   : > { %v20238_v63 = vadd.f32 %v20237_v16, %v20236_v46  ;;  %v20364_v30 = vsel %vm1683_vm2, %v15707_v29, 0.0  ;;  %v15709_v36 = vpop.f32.mrb[106].mxu1  ;;  %18194 = vmatpush1.bf16.msra.mxu1 %v27738_v34  ;;  %v18056_v21 = vrot.slane %v24182_v3, %v32973_v45  ;;  %v24208_v34 = vcombine.low %v14303_v32, %v14303_v32 }
0x1129   : > { %v20365_v1 = vadd.f32 %v20364_v30, %v20363_v13  ;;  %v15710_v11 = vpop.f32.mrb[107].mxu1  ;;  %18195 = vmatprep.subr.bf16.mxu1 %v27746_v4  ;;  %v18279_v46 = vand.u32 %v24209_v33, %v29093_v28  ;;  %v13982_v13 = vunpack.i.h.s16 %v33078_v53  ;;  %v18369_v29 = vand.u32 %v24218_v31, %v29093_v28  ;;  %v27775_v30 = vld [vmem:[%s34957_s9 + $0x9a4] ss:$8 sps:$4 sm:$0xff]  }
0x112a   : > { %18106 = vmatpush1.bf16.msra.mxu0 %v27741_v44  ;;  %v27766_v44 = vld [vmem:[%s34957_s9 + $0x988] ss:$8 sps:$4 sm:$0xff]   ;;  %v18366_v36 = vand.u32 %v24217_v15, %v29093_v28  ;;  %v27781_v11 = vld [vmem:[%s34957_s9 + $0x9b4] ss:$8 sps:$4 sm:$0xff]  }
0x112b   : > { %18107 = vmatprep.subr.bf16.mxu0 %v18099_v60  ;;  %v18276_v60 = vand.u32 %v24208_v34, %v29093_v28  ;;  %v24236_v34 = vcombine.low %v14324_v6, %v14324_v6  ;;  %v27800_v15 = vld [vmem:[%s34957_s9 + $0xa4c] ss:$8 sps:$4 sm:$0xff]  }
0x112c   : > { %18196 = vmatpush1.bf16.msra.mxu1 %v27744_v2  ;;  %v18322_v2 = vpack.i.b16 %v13982_v13, %v13982_v13  ;;  %v27795_v13 = vld [vmem:[%s34957_s9 + $0xa10] ss:$8 sps:$4 sm:$0xff]  }
0x112d   : > { %18197 = vmatprep.subr.bf16.mxu1 %v18189_v40  ;;  %v27776_v40 = vld [vmem:[%s34957_s9 + $0x9d8] ss:$8 sps:$4 sm:$0xff]  }
0x112e   : > { %18108 = vmatpush1.bf16.msra.mxu0 %v18096_v56  ;;  %v14317_v56 = vld [vmem:[%s34957_s9 + $0x9d0] sm:$0x11]  ;;  %v18326_v3 = vrot.slane %v18322_v2, %v32973_v45  ;;  %v14338_v2 = vld [vmem:[%s34957_s9 + $0xa78] sm:$0x11] }
0x112f   : > { %18281 = vmatprep.subr.bf16.mxu0 %v27753_v58  ;;  %v27784_v58 = vld [vmem:[%s34957_s9 + $0x9ec] ss:$8 sps:$4 sm:$0xff]  }
0x1130   : > { %18198 = vmatpush1.bf16.msra.mxu1 %v18186_v48  ;;  %v27779_v48 = vld [vmem:[%s34957_s9 + $0x9b0] ss:$8 sps:$4 sm:$0xff]  }
0x1131   : > { %24191 = vmatmul.mubr.msk.bf16.vlgmr.msra.gmra.mrb[144].mxu0 %vm14491_vm5, %v18056_v21  ;;  %18371 = vmatprep.subr.bf16.mxu1 %v27756_v8  ;;  %v27787_v8 = vld [vmem:[%s34957_s9 + $0x9c4] ss:$8 sps:$4 sm:$0xff]  }
0x1132   : > { %18282 = vmatpush1.bf16.msra.mxu0 %v27751_v18  ;;  %18313 = vmatprep.mubr.bf16.mxu0 %v28055_v0  ;;  %v24228_v18 = vcombine.high %v14317_v56, %v14317_v56 }
0x1133   : > { %24200 = vmatmul.mubr.msk.bf16.vlgmr.msra.gmra.mrb[160].mxu1 %vm14491_vm5, %v18146_v26  ;;  %18283 = vmatprep.subr.bf16.mxu0 %v27759_v41  ;;  %v27782_v41 = vld [vmem:[%s34957_s9 + $0x9e8] ss:$8 sps:$4 sm:$0xff]  }
0x1134   : > { %v15795_v55 = vpop.f32.mrb[92].mxu0  ;;  %18372 = vmatpush1.bf16.msra.mxu1 %v27754_v24  ;;  %18403 = vmatprep.mubr.bf16.mxu1 %v28055_v0  ;;  %v13887_v24 = vcombine.high %v33046_v47, %v33046_v47  ;;  %v24227_v47 = vcombine.low %v14317_v56, %v14317_v56 }
0x1135   : > { %v20239_v42 = vsel %vm1683_vm2, %v15795_v55, 0.0  ;;  %v15797_v61 = vpop.f32.mrb[93].mxu0  ;;  %18373 = vmatprep.subr.bf16.mxu1 %v27762_v17  ;;  %v27790_v17 = vld [vmem:[%s34957_s9 + $0x9fc] ss:$8 sps:$4 sm:$0xff]  }
0x1136   : > { %v20240_v38 = vadd.f32 %v20239_v42, %v20238_v63  ;;  %v20366_v5 = vsel %vm1683_vm2, %v15797_v61, 0.0  ;;  %v15799_v7 = vpop.f32.mrb[94].mxu0  ;;  %v15885_v23 = vpop.f32.mrb[108].mxu1  ;;  %18284 = vmatpush1.bf16.msra.mxu0 %v27757_v49  ;;  %v24201_v63 = vpack.i.b16 %v33078_v53, %v33078_v53  ;;  %v24237_v49 = vcombine.high %v14324_v6, %v14324_v6 }
0x1137   : > { %v20367_v20 = vadd.f32 %v20366_v5, %v20365_v1  ;;  %v20241_v22 = vsel %vm1683_vm2, %v15885_v23, 0.0  ;;  %v15800_v4 = vpop.f32.mrb[95].mxu0  ;;  %v15887_v35 = vpop.f32.mrb[109].mxu1  ;;  %18285 = vmatprep.subr.bf16.mxu0 %v27765_v51 }
0x1138   : > { %v20242_v9 = vadd.f32 %v20241_v22, %v20240_v38  ;;  %v20368_v10 = vsel %vm1683_vm2, %v15887_v35, 0.0  ;;  %v15889_v54 = vpop.f32.mrb[110].mxu1  ;;  %18374 = vmatpush1.bf16.msra.mxu1 %v27760_v59  ;;  %v18236_v1 = vrot.slane %v24201_v63, %v32973_v45  ;;  %v27785_v59 = vld [vmem:[%s34957_s9 + $0x9c0] ss:$8 sps:$4 sm:$0xff]   ;;  %v18459_v38 = vand.u32 %v24228_v18, %v29093_v28 }
0x1139   : > { %v20369_v16 = vadd.f32 %v20368_v10, %v20367_v20  ;;  %v15890_v14 = vpop.f32.mrb[111].mxu1  ;;  %18375 = vmatprep.subr.bf16.mxu1 %v27768_v12  ;;  %v13984_v20 = vunpack.i.h.s16 %v13887_v24  ;;  %v18549_v35 = vand.u32 %v24237_v49, %v29093_v28  ;;  %v27797_v10 = vld [vmem:[%s34957_s9 + $0xa14] ss:$8 sps:$4 sm:$0xff]   ;;  %v18546_v54 = vand.u32 %v24236_v34, %v29093_v28  ;;  %v27817_v34 = vld [vmem:[%s34957_s9 + $0xa80] ss:$8 sps:$4 sm:$0xff]  }
0x113a   : > { %18286 = vmatpush1.bf16.msra.mxu0 %v27763_v27  ;;  %v27788_v27 = vld [vmem:[%s34957_s9 + $0x9f8] ss:$8 sps:$4 sm:$0xff]   ;;  %v27803_v14 = vld [vmem:[%s34957_s9 + $0xa24] ss:$8 sps:$4 sm:$0xff]  }
0x113b   : > { %18287 = vmatprep.subr.bf16.mxu0 %v18279_v46  ;;  %v18456_v46 = vand.u32 %v24227_v47, %v29093_v28 }
0x113c   : > { %18376 = vmatpush1.bf16.msra.mxu1 %v27766_v44  ;;  %v18502_v44 = vpack.i.b16 %v13984_v20, %v13984_v20 }
0x113d   : > { %18377 = vmatprep.subr.bf16.mxu1 %v18369_v29  ;;  %v27798_v29 = vld [vmem:[%s34957_s9 + $0xa48] ss:$8 sps:$4 sm:$0xff]  }
0x113e   : > { %18288 = vmatpush1.bf16.msra.mxu0 %v18276_v60  ;;  %v14331_v60 = vld [vmem:[%s34957_s9 + $0xa40] sm:$0x11]  ;;  %v18506_v63 = vrot.slane %v18502_v44, %v32973_v45 }
0x113f   : > { %18461 = vmatprep.subr.bf16.mxu0 %v27775_v30  ;;  %v27806_v30 = vld [vmem:[%s34957_s9 + $0xa5c] ss:$8 sps:$4 sm:$0xff]  }
0x1140   : > { %18378 = vmatpush1.bf16.msra.mxu1 %v18366_v36  ;;  %v27801_v36 = vld [vmem:[%s34957_s9 + $0xa20] ss:$8 sps:$4 sm:$0xff]   ;;  %v27831_v44 = vld [vmem:[%s34957_s9 + $0xaa4] ss:$8 sps:$4 sm:$0xff]  }
0x1141   : > { %24210 = vmatmul.mubr.msk.bf16.vlgmr.msra.gmra.mrb[148].mxu0 %vm14491_vm5, %v18236_v1  ;;  %18551 = vmatprep.subr.bf16.mxu1 %v27778_v52  ;;  %v27809_v52 = vld [vmem:[%s34957_s9 + $0xa34] ss:$8 sps:$4 sm:$0xff]  }
0x1142   : > { %18462 = vmatpush1.bf16.msra.mxu0 %v27773_v37  ;;  %18493 = vmatprep.mubr.bf16.mxu0 %v28055_v0  ;;  %v24247_v37 = vcombine.high %v14331_v60, %v14331_v60 }
0x1143   : > { %24219 = vmatmul.mubr.msk.bf16.vlgmr.msra.gmra.mrb[164].mxu1 %vm14491_vm5, %v18326_v3  ;;  %18463 = vmatprep.subr.bf16.mxu0 %v27781_v11  ;;  %v27804_v11 = vld [vmem:[%s34957_s9 + $0xa58] ss:$8 sps:$4 sm:$0xff]  }
0x1144   : > { %v15975_v21 = vpop.f32.mrb[96].mxu0  ;;  %18552 = vmatpush1.bf16.msra.mxu1 %v27776_v40  ;;  %18583 = vmatprep.mubr.bf16.mxu1 %v28055_v0  ;;  %v13889_v40 = vcombine.high %v33078_v53, %v33078_v53  ;;  %v24246_v53 = vcombine.low %v14331_v60, %v14331_v60  ;;  %v18639_v49 = vand.u32 %v24247_v37, %v29093_v28  ;;  %v27834_v60 = vld [vmem:[%s34957_s9 + $0xadc] ss:$8 sps:$4 sm:$0xff]   ;;  %v27829_v37 = vld [vmem:[%s34957_s9 + $0xaa0] ss:$8 sps:$4 sm:$0xff]  }
0x1145   : > { %v20243_v32 = vsel %vm1683_vm2, %v15975_v21, 0.0  ;;  %v15977_v26 = vpop.f32.mrb[97].mxu0  ;;  %18553 = vmatprep.subr.bf16.mxu1 %v27784_v58  ;;  %v27812_v58 = vld [vmem:[%s34957_s9 + $0xa6c] ss:$8 sps:$4 sm:$0xff]  }
0x1146   : > { %v20244_v50 = vadd.f32 %v20243_v32, %v20242_v9  ;;  %v20370_v51 = vsel %vm1683_vm2, %v15977_v26, 0.0  ;;  %v15979_v33 = vpop.f32.mrb[98].mxu0  ;;  %v16065_v55 = vpop.f32.mrb[112].mxu1  ;;  %18464 = vmatpush1.bf16.msra.mxu0 %v27779_v48  ;;  %v24220_v9 = vpack.i.b16 %v13887_v24, %v13887_v24  ;;  %v24256_v48 = vcombine.high %v14338_v2, %v14338_v2 }
0x1147   : > { %v20371_v42 = vadd.f32 %v20370_v51, %v20369_v16  ;;  %v20245_v61 = vsel %vm1683_vm2, %v16065_v55, 0.0  ;;  %v15980_v12 = vpop.f32.mrb[99].mxu0  ;;  %v16067_v31 = vpop.f32.mrb[113].mxu1  ;;  %18465 = vmatprep.subr.bf16.mxu0 %v27787_v8  ;;  %v27810_v55 = vld [vmem:[%s34957_s9 + $0xa68] ss:$8 sps:$4 sm:$0xff]  }
0x1148   : > { %v20246_v5 = vadd.f32 %v20245_v61, %v20244_v50  ;;  %v20372_v7 = vsel %vm1683_vm2, %v16067_v31, 0.0  ;;  %v16069_v23 = vpop.f32.mrb[114].mxu1  ;;  %18554 = vmatpush1.bf16.msra.mxu1 %v27782_v41  ;;  %v18416_v16 = vrot.slane %v24220_v9, %v32973_v45  ;;  %v27807_v41 = vld [vmem:[%s34957_s9 + $0xa30] ss:$8 sps:$4 sm:$0xff]   ;;  %v18729_v61 = vand.u32 %v24256_v48, %v29093_v28  ;;  %v27828_v9 = vld [vmem:[%s34957_s9 + $0xacc] ss:$8 sps:$4 sm:$0xff]  }
0x1149   : > { %v20373_v22 = vadd.f32 %v20372_v7, %v20371_v42  ;;  %v16070_v4 = vpop.f32.mrb[115].mxu1  ;;  %18555 = vmatprep.subr.bf16.mxu1 %v27790_v17  ;;  %v13986_v12 = vunpack.i.h.s16 %v13889_v40  ;;  %v18636_v31 = vand.u32 %v24246_v53, %v29093_v28 }
0x114a   : > { %18466 = vmatpush1.bf16.msra.mxu0 %v27785_v59  ;;  %v24255_v59 = vcombine.low %v14338_v2, %v14338_v2  ;;  %v27820_v4 = vld [vmem:[%s34957_s9 + $0xab8] ss:$8 sps:$4 sm:$0xff]  }
0x114b   : > { %18467 = vmatprep.subr.bf16.mxu0 %v18459_v38  ;;  %v24239_v38 = vpack.i.b16 %v13889_v40, %v13889_v40  ;;  %v18682_v23 = vpack.i.b16 %v13986_v12, %v13986_v12 }
0x114c   : > { %18556 = vmatpush1.bf16.msra.mxu1 %v27788_v27  ;;  %v18726_v7 = vand.u32 %v24255_v59, %v29093_v28  ;;  %v27822_v27 = vld [vmem:[%s34957_s9 + $0xabc] ss:$8 sps:$4 sm:$0xff]  }
0x114d   : > { %18557 = vmatprep.subr.bf16.mxu1 %v18549_v35  ;;  %v18596_v20 = vrot.slane %v24239_v38, %v32973_v45  ;;  %v14345_v35 = vld [vmem:[%s34957_s9 + $0xab0] sm:$0x11]  ;;  %v27845_v38 = vld [vmem:[%s34957_s9 + $0xb00] ss:$8 sps:$4 sm:$0xff]  }
0x114e   : > { %18468 = vmatpush1.bf16.msra.mxu0 %v18456_v46  ;;  %v18686_v46 = vrot.slane %v18682_v23, %v32973_v45 }
0x114f   : > { %18641 = vmatprep.subr.bf16.mxu0 %v27797_v10  ;;  %v27823_v10 = vld [vmem:[%s34957_s9 + $0xa90] ss:$8 sps:$4 sm:$0xff]  }
0x1150   : > { %18558 = vmatpush1.bf16.msra.mxu1 %v18546_v54  ;;  %v14352_v54 = vld [vmem:[%s34957_s9 + $0xae8] sm:$0x11] }
0x1151   : > { %24229 = vmatmul.mubr.msk.bf16.vlgmr.msra.gmra.mrb[152].mxu0 %vm14491_vm5, %v18416_v16  ;;  %18731 = vmatprep.subr.bf16.mxu1 %v27800_v15  ;;  %v24266_v15 = vcombine.high %v14345_v35, %v14345_v35  ;;  %v27826_v16 = vld [vmem:[%s34957_s9 + $0xac8] ss:$8 sps:$4 sm:$0xff]  }
0x1152   : > { %18642 = vmatpush1.bf16.msra.mxu0 %v27795_v13  ;;  %18673 = vmatprep.mubr.bf16.mxu0 %v28055_v0 }
0x1153   : > { %24238 = vmatmul.mubr.msk.bf16.vlgmr.msra.gmra.mrb[168].mxu1 %vm14491_vm5, %v18506_v63  ;;  %18643 = vmatprep.subr.bf16.mxu0 %v27803_v14  ;;  %v24275_v63 = vcombine.high %v14352_v54, %v14352_v54 }
0x1154   : > { %v16155_v1 = vpop.f32.mrb[100].mxu0  ;;  %18732 = vmatpush1.bf16.msra.mxu1 %v27798_v29  ;;  %18763 = vmatprep.mubr.bf16.mxu1 %v28055_v0 }
0x1155   : > { %v20247_v56 = vsel %vm1683_vm2, %v16155_v1, 0.0  ;;  %v16157_v3 = vpop.f32.mrb[101].mxu0  ;;  %18733 = vmatprep.subr.bf16.mxu1 %v27806_v30  ;;  %v24265_v1 = vcombine.low %v14345_v35, %v14345_v35 }
0x1156   : > { %v20248_v6 = vadd.f32 %v20247_v56, %v20246_v5  ;;  %v20374_v8 = vsel %vm1683_vm2, %v16157_v3, 0.0  ;;  %v16159_v18 = vpop.f32.mrb[102].mxu0  ;;  %v16245_v21 = vpop.f32.mrb[116].mxu1  ;;  %18644 = vmatpush1.bf16.msra.mxu0 %v27801_v36  ;;  %v27819_v5 = vld [vmem:[%s34957_s9 + $0xa84] ss:$8 sps:$4 sm:$0xff]  }
0x1157   : > { %v20375_v24 = vadd.f32 %v20374_v8, %v20373_v22  ;;  %v20249_v32 = vsel %vm1683_vm2, %v16245_v21, 0.0  ;;  %v16160_v26 = vpop.f32.mrb[103].mxu0  ;;  %v16247_v17 = vpop.f32.mrb[117].mxu1  ;;  %18645 = vmatprep.subr.bf16.mxu0 %v27809_v52  ;;  %v27825_v22 = vld [vmem:[%s34957_s9 + $0xa94] ss:$8 sps:$4 sm:$0xff]   ;;  %v24274_v21 = vcombine.low %v14352_v54, %v14352_v54 }
0x1158   : > { %v20250_v50 = vadd.f32 %v20249_v32, %v20248_v6  ;;  %v20376_v51 = vsel %vm1683_vm2, %v16247_v17, 0.0  ;;  %v16249_v33 = vpop.f32.mrb[118].mxu1  ;;  %18734 = vmatpush1.bf16.msra.mxu1 %v27804_v11  ;;  %v27832_v18 = vld [vmem:[%s34957_s9 + $0xad8] ss:$8 sps:$4 sm:$0xff]   ;;  %v18909_v32 = vand.u32 %v24275_v63, %v29093_v28  ;;  %v18816_v26 = vand.u32 %v24265_v1, %v29093_v28 }
0x1159   : > { %v20377_v47 = vadd.f32 %v20376_v51, %v20375_v24  ;;  %v16250_v42 = vpop.f32.mrb[119].mxu1  ;;  %18735 = vmatprep.subr.bf16.mxu1 %v27812_v58  ;;  %v18819_v58 = vand.u32 %v24266_v15, %v29093_v28  ;;  %v24258_v17 = vpack.i.b16 %v33035_v43, %v33035_v43  ;;  %v27844_v33 = vld [vmem:[%s34957_s9 + $0xb2c] ss:$8 sps:$4 sm:$0xff]  }
0x115a   : > { %18646 = vmatpush1.bf16.msra.mxu0 %v27807_v41  ;;  %v13988_v41 = vunpack.i.h.s16 %v33035_v43  ;;  %v27842_v42 = vld [vmem:[%s34957_s9 + $0xb28] ss:$8 sps:$4 sm:$0xff]  }
0x115b   : > { %18647 = vmatprep.subr.bf16.mxu0 %v18639_v49  ;;  %v27841_v49 = vld [vmem:[%s34957_s9 + $0xaf4] ss:$8 sps:$4 sm:$0xff]   ;;  %v18776_v59 = vrot.slane %v24258_v17, %v32973_v45  ;;  %v27867_v17 = vld [vmem:[%s34957_s9 + $0xb70] ss:$8 sps:$4 sm:$0xff]  }
0x115c   : > { %18736 = vmatpush1.bf16.msra.mxu1 %v27810_v55  ;;  %v18862_v51 = vpack.i.b16 %v13988_v41, %v13988_v41  ;;  %v27839_v55 = vld [vmem:[%s34957_s9 + $0xaf0] ss:$8 sps:$4 sm:$0xff]   ;;  %v27869_v41 = vld [vmem:[%s34957_s9 + $0xb74] ss:$8 sps:$4 sm:$0xff]  }
0x115d   : > { %18737 = vmatprep.subr.bf16.mxu1 %v18729_v61  ;;  %v14359_v61 = vld [vmem:[%s34957_s9 + $0xb20] sm:$0x11] }
0x115e   : > { %18648 = vmatpush1.bf16.msra.mxu0 %v18636_v31  ;;  %v18866_v12 = vrot.slane %v18862_v51, %v32973_v45  ;;  %v27850_v31 = vld [vmem:[%s34957_s9 + $0xb3c] ss:$8 sps:$4 sm:$0xff]   ;;  %v24285_v23 = vcombine.high %v14359_v61, %v14359_v61  ;;  %v24284_v15 = vcombine.low %v14359_v61, %v14359_v61 }
0x115f   : > { %18821 = vmatprep.subr.bf16.mxu0 %v27819_v5  ;;  %v14366_v5 = vld [vmem:[%s34957_s9 + $0xb58] sm:$0x11] }
0x1160   : > { %18738 = vmatpush1.bf16.msra.mxu1 %v18726_v7  ;;  %v27853_v7 = vld [vmem:[%s34957_s9 + $0xb14] ss:$8 sps:$4 sm:$0xff]   ;;  %v24294_v35 = vcombine.high %v14366_v5, %v14366_v5 }
0x1161   : > { %24248 = vmatmul.mubr.msk.bf16.vlgmr.msra.gmra.mrb[156].mxu0 %vm14491_vm5, %v18596_v20  ;;  %18911 = vmatprep.subr.bf16.mxu1 %v27822_v27  ;;  %v27878_v61 = vld [vmem:[%s34957_s9 + $0xbbc] ss:$8 sps:$4 sm:$0xff]  }
0x1162   : > { %18822 = vmatpush1.bf16.msra.mxu0 %v27817_v34  ;;  %18853 = vmatprep.mubr.bf16.mxu0 %v28055_v0  ;;  %v27848_v34 = vld [vmem:[%s34957_s9 + $0xb38] ss:$8 sps:$4 sm:$0xff]  }
0x1163   : > { %24257 = vmatmul.mubr.msk.bf16.vlgmr.msra.gmra.mrb[172].mxu1 %vm14491_vm5, %v18686_v46  ;;  %18823 = vmatprep.subr.bf16.mxu0 %v27825_v22 }
0x1164   : > { %v16335_v13 = vpop.f32.mrb[104].mxu0  ;;  %18912 = vmatpush1.bf16.msra.mxu1 %v27820_v4  ;;  %18943 = vmatprep.mubr.bf16.mxu1 %v28055_v0  ;;  %v27856_v4 = vld [vmem:[%s34957_s9 + $0xb4c] ss:$8 sps:$4 sm:$0xff]  }
0x1165   : > { %v20251_v14 = vsel %vm1683_vm2, %v16335_v13, 0.0  ;;  %v16337_v29 = vpop.f32.mrb[105].mxu0  ;;  %18913 = vmatprep.subr.bf16.mxu1 %v27828_v9 }
0x1166   : > { %v20252_v30 = vadd.f32 %v20251_v14, %v20250_v50  ;;  %v20378_v36 = vsel %vm1683_vm2, %v16337_v29, 0.0  ;;  %v16339_v2 = vpop.f32.mrb[106].mxu0  ;;  %v16425_v52 = vpop.f32.mrb[120].mxu1  ;;  %18824 = vmatpush1.bf16.msra.mxu0 %v27823_v10  ;;  %v18906_v50 = vand.u32 %v24274_v21, %v29093_v28 }
0x1167   : > { %v20379_v11 = vadd.f32 %v20378_v36, %v20377_v47  ;;  %v20253_v40 = vsel %vm1683_vm2, %v16425_v52, 0.0  ;;  %v16340_v56 = vpop.f32.mrb[107].mxu0  ;;  %v16427_v3 = vpop.f32.mrb[121].mxu1  ;;  %18825 = vmatprep.subr.bf16.mxu0 %v27831_v44  ;;  %v27847_v47 = vld [vmem:[%s34957_s9 + $0xb04] ss:$8 sps:$4 sm:$0xff]   ;;  %v24293_v52 = vcombine.low %v14366_v5, %v14366_v5 }
0x1168   : > { %v20254_v48 = vadd.f32 %v20253_v40, %v20252_v30  ;;  %v20380_v6 = vsel %vm1683_vm2, %v16427_v3, 0.0  ;;  %v16429_v8 = vpop.f32.mrb[122].mxu1  ;;  %18914 = vmatpush1.bf16.msra.mxu1 %v27826_v16  ;;  %v27851_v44 = vld [vmem:[%s34957_s9 + $0xb10] ss:$8 sps:$4 sm:$0xff]   ;;  %v19089_v40 = vand.u32 %v24294_v35, %v29093_v28  ;;  %v18996_v56 = vand.u32 %v24284_v15, %v29093_v28 }
0x1169   : > { %v20381_v53 = vadd.f32 %v20380_v6, %v20379_v11  ;;  %v16430_v24 = vpop.f32.mrb[123].mxu1  ;;  %18915 = vmatprep.subr.bf16.mxu1 %v27834_v60  ;;  %v18999_v60 = vand.u32 %v24285_v23, %v29093_v28  ;;  %v27854_v2 = vld [vmem:[%s34957_s9 + $0xb48] ss:$8 sps:$4 sm:$0xff]   ;;  %v24277_v3 = vpack.i.b16 %v33052_v57, %v33052_v57  ;;  %v27866_v8 = vld [vmem:[%s34957_s9 + $0xb9c] ss:$8 sps:$4 sm:$0xff]  }
0x116a   : > { %18826 = vmatpush1.bf16.msra.mxu0 %v27829_v37  ;;  %v13990_v37 = vunpack.i.h.s16 %v33052_v57  ;;  %v14373_v24 = vld [vmem:[%s34957_s9 + $0xb90] sm:$0x11]  ;;  %v27873_v23 = vld [vmem:[%s34957_s9 + $0xb80] ss:$8 sps:$4 sm:$0xff]  }
0x116b   : > { %18827 = vmatprep.subr.bf16.mxu0 %v18819_v58  ;;  %v27863_v58 = vld [vmem:[%s34957_s9 + $0xb64] ss:$8 sps:$4 sm:$0xff]   ;;  %v18956_v21 = vrot.slane %v24277_v3, %v32973_v45  ;;  %v24304_v51 = vcombine.high %v14373_v24, %v14373_v24  ;;  %v27889_v3 = vld [vmem:[%s34957_s9 + $0xbe0] ss:$8 sps:$4 sm:$0xff]  }
0x116c   : > { %18916 = vmatpush1.bf16.msra.mxu1 %v27832_v18  ;;  %v19042_v6 = vpack.i.b16 %v13990_v37, %v13990_v37  ;;  %v27861_v18 = vld [vmem:[%s34957_s9 + $0xb60] ss:$8 sps:$4 sm:$0xff]   ;;  %v27891_v37 = vld [vmem:[%s34957_s9 + $0xbe4] ss:$8 sps:$4 sm:$0xff]  }
0x116d   : > { %18917 = vmatprep.subr.bf16.mxu1 %v18909_v32 }
0x116e   : > { %18828 = vmatpush1.bf16.msra.mxu0 %v18816_v26  ;;  %v19046_v32 = vrot.slane %v19042_v6, %v32973_v45  ;;  %v27872_v26 = vld [vmem:[%s34957_s9 + $0xbac] ss:$8 sps:$4 sm:$0xff]  }
0x116f   : > { %19001 = vmatprep.subr.bf16.mxu0 %v27841_v49  ;;  %v14380_v49 = vld [vmem:[%s34957_s9 + $0xbc8] sm:$0x11] }
0x1170   : > { %18918 = vmatpush1.bf16.msra.mxu1 %v18906_v50  ;;  %v27875_v50 = vld [vmem:[%s34957_s9 + $0xb84] ss:$8 sps:$4 sm:$0xff]  }
0x1171   : > { %24267 = vmatmul.mubr.msk.bf16.vlgmr.msra.gmra.mrb[160].mxu0 %vm14491_vm5, %v18776_v59  ;;  %19091 = vmatprep.subr.bf16.mxu1 %v27844_v33  ;;  %v13935_v59 = vcombine.high %v33035_v43, %v33035_v43  ;;  %v24303_v43 = vcombine.low %v14373_v24, %v14373_v24  ;;  %v27900_v24 = vld [vmem:[%s34957_s9 + $0xc2c] ss:$8 sps:$4 sm:$0xff]  }
0x1172   : > { %19002 = vmatpush1.bf16.msra.mxu0 %v27839_v55  ;;  %19033 = vmatprep.mubr.bf16.mxu0 %v28055_v0  ;;  %v27870_v55 = vld [vmem:[%s34957_s9 + $0xba8] ss:$8 sps:$4 sm:$0xff]  }
0x1173   : > { %24276 = vmatmul.mubr.msk.bf16.vlgmr.msra.gmra.mrb[176].mxu1 %vm14491_vm5, %v18866_v12  ;;  %19003 = vmatprep.subr.bf16.mxu0 %v27847_v47  ;;  %v24313_v12 = vcombine.high %v14380_v49, %v14380_v49 }
0x1174   : > { %v16515_v27 = vpop.f32.mrb[108].mxu0  ;;  %19092 = vmatpush1.bf16.msra.mxu1 %v27842_v42  ;;  %19123 = vmatprep.mubr.bf16.mxu1 %v28055_v0 }
0x1175   : > { %v20255_v20 = vsel %vm1683_vm2, %v16515_v27, 0.0  ;;  %v16517_v22 = vpop.f32.mrb[109].mxu0  ;;  %19093 = vmatprep.subr.bf16.mxu1 %v27850_v31 }
0x1176   : > { %v20256_v46 = vadd.f32 %v20255_v20, %v20254_v48  ;;  %v20382_v9 = vsel %vm1683_vm2, %v16517_v22, 0.0  ;;  %v16519_v10 = vpop.f32.mrb[110].mxu0  ;;  %v16605_v54 = vpop.f32.mrb[124].mxu1  ;;  %19004 = vmatpush1.bf16.msra.mxu0 %v27845_v38  ;;  %v19086_v48 = vand.u32 %v24293_v52, %v29093_v28 }
0x1177   : > { %v20383_v13 = vadd.f32 %v20382_v9, %v20381_v53  ;;  %v20257_v16 = vsel %vm1683_vm2, %v16605_v54, 0.0  ;;  %v16520_v14 = vpop.f32.mrb[111].mxu0  ;;  %v16607_v29 = vpop.f32.mrb[125].mxu1  ;;  %19005 = vmatprep.subr.bf16.mxu0 %v27853_v7  ;;  %v27864_v53 = vld [vmem:[%s34957_s9 + $0xb98] ss:$8 sps:$4 sm:$0xff]   ;;  %v24312_v54 = vcombine.low %v14380_v49, %v14380_v49 }
0x1178   : > { %v20258_v63 = vadd.f32 %v20257_v16, %v20256_v46  ;;  %v20384_v30 = vsel %vm1683_vm2, %v16607_v29, 0.0  ;;  %v16609_v36 = vpop.f32.mrb[126].mxu1  ;;  %19094 = vmatpush1.bf16.msra.mxu1 %v27848_v34  ;;  %v27876_v10 = vld [vmem:[%s34957_s9 + $0xbb8] ss:$8 sps:$4 sm:$0xff]   ;;  %v19269_v16 = vand.u32 %v24313_v12, %v29093_v28  ;;  %v19176_v14 = vand.u32 %v24303_v43, %v29093_v28 }
0x1179   : > { %v20385_v1 = vadd.f32 %v20384_v30, %v20383_v13  ;;  %v16610_v11 = vpop.f32.mrb[127].mxu1  ;;  %19095 = vmatprep.subr.bf16.mxu1 %v27856_v4  ;;  %v19179_v4 = vand.u32 %v24304_v51, %v29093_v28  ;;  %v24296_v29 = vpack.i.b16 %v13935_v59, %v13935_v59  ;;  %v27888_v36 = vld [vmem:[%s34957_s9 + $0xc0c] ss:$8 sps:$4 sm:$0xff]   ;;  %v27895_v51 = vld [vmem:[%s34957_s9 + $0xbf0] ss:$8 sps:$4 sm:$0xff]  }
0x117a   : > { %19006 = vmatpush1.bf16.msra.mxu0 %v27851_v44  ;;  %v13992_v44 = vunpack.i.h.s16 %v13935_v59  ;;  %v14387_v11 = vld [vmem:[%s34957_s9 + $0xc00] sm:$0x11] }
0x117b   : > { %19007 = vmatprep.subr.bf16.mxu0 %v18999_v60  ;;  %v27885_v60 = vld [vmem:[%s34957_s9 + $0xbd4] ss:$8 sps:$4 sm:$0xff]   ;;  %v19136_v52 = vrot.slane %v24296_v29, %v32973_v45  ;;  %v24323_v6 = vcombine.high %v14387_v11, %v14387_v11  ;;  %v14408_v29 = vld [vmem:[%s34957_s9 + $0xca8] sm:$0x11] }
0x117c   : > { %19096 = vmatpush1.bf16.msra.mxu1 %v27854_v2  ;;  %v19222_v30 = vpack.i.b16 %v13992_v44, %v13992_v44  ;;  %v27883_v2 = vld [vmem:[%s34957_s9 + $0xbd0] ss:$8 sps:$4 sm:$0xff]  }
0x117d   : > { %19097 = vmatprep.subr.bf16.mxu1 %v19089_v40  ;;  %v27908_v44 = vld [vmem:[%s34957_s9 + $0xc78] ss:$8 sps:$4 sm:$0xff]  }
0x117e   : > { %19008 = vmatpush1.bf16.msra.mxu0 %v18996_v56  ;;  %v19226_v40 = vrot.slane %v19222_v30, %v32973_v45  ;;  %v27894_v56 = vld [vmem:[%s34957_s9 + $0xc1c] ss:$8 sps:$4 sm:$0xff]  }
0x117f   : > { %19181 = vmatprep.subr.bf16.mxu0 %v27863_v58  ;;  %v14394_v58 = vld [vmem:[%s34957_s9 + $0xc38] sm:$0x11] }
0x1180   : > { %19098 = vmatpush1.bf16.msra.mxu1 %v19086_v48  ;;  %v27897_v48 = vld [vmem:[%s34957_s9 + $0xbf4] ss:$8 sps:$4 sm:$0xff]  }
0x1181   : > { %24286 = vmatmul.mubr.msk.bf16.vlgmr.msra.gmra.mrb[164].mxu0 %vm14491_vm5, %v18956_v21  ;;  %19271 = vmatprep.subr.bf16.mxu1 %v27866_v8  ;;  %v13937_v21 = vcombine.high %v33052_v57, %v33052_v57  ;;  %v24322_v57 = vcombine.low %v14387_v11, %v14387_v11 }
0x1182   : > { %19182 = vmatpush1.bf16.msra.mxu0 %v27861_v18  ;;  %19213 = vmatprep.mubr.bf16.mxu0 %v28055_v0  ;;  %v27892_v18 = vld [vmem:[%s34957_s9 + $0xc18] ss:$8 sps:$4 sm:$0xff]  }
0x1183   : > { %24295 = vmatmul.mubr.msk.bf16.vlgmr.msra.gmra.mrb[180].mxu1 %vm14491_vm5, %v19046_v32  ;;  %19183 = vmatprep.subr.bf16.mxu0 %v27869_v41  ;;  %v24332_v32 = vcombine.high %v14394_v58, %v14394_v58 }
0x1184   : > { %v16695_v33 = vpop.f32.mrb[112].mxu0  ;;  %19272 = vmatpush1.bf16.msra.mxu1 %v27864_v53  ;;  %19303 = vmatprep.mubr.bf16.mxu1 %v28055_v0 }
0x1185   : > { %v20259_v47 = vsel %vm1683_vm2, %v16695_v33, 0.0  ;;  %v16697_v42 = vpop.f32.mrb[113].mxu0  ;;  %19273 = vmatprep.subr.bf16.mxu1 %v27872_v26  ;;  %v19449_v43 = vand.u32 %v24332_v32, %v29093_v28 }
0x1186   : > { %v20260_v31 = vadd.f32 %v20259_v47, %v20258_v63  ;;  %v20386_v38 = vsel %vm1683_vm2, %v16697_v42, 0.0  ;;  %v16699_v5 = vpop.f32.mrb[114].mxu0  ;;  %v16785_v7 = vpop.f32.mrb[128].mxu1  ;;  %19184 = vmatpush1.bf16.msra.mxu0 %v27867_v17  ;;  %v19266_v63 = vand.u32 %v24312_v54, %v29093_v28  ;;  %v19359_v42 = vand.u32 %v24323_v6, %v29093_v28  ;;  %v27913_v54 = vld [vmem:[%s34957_s9 + $0xc54] ss:$8 sps:$4 sm:$0xff]  }
0x1187   : > { %v20387_v27 = vadd.f32 %v20386_v38, %v20385_v1  ;;  %v20261_v34 = vsel %vm1683_vm2, %v16785_v7, 0.0  ;;  %v16700_v20 = vpop.f32.mrb[115].mxu0  ;;  %v16787_v22 = vpop.f32.mrb[129].mxu1  ;;  %19185 = vmatprep.subr.bf16.mxu0 %v27875_v50  ;;  %v27886_v1 = vld [vmem:[%s34957_s9 + $0xc08] ss:$8 sps:$4 sm:$0xff]   ;;  %v24331_v5 = vcombine.low %v14394_v58, %v14394_v58 }
0x1188   : > { %v20262_v35 = vadd.f32 %v20261_v34, %v20260_v31  ;;  %v20388_v46 = vsel %vm1683_vm2, %v16787_v22, 0.0  ;;  %v16789_v9 = vpop.f32.mrb[130].mxu1  ;;  %19274 = vmatpush1.bf16.msra.mxu1 %v27870_v55  ;;  %v27898_v38 = vld [vmem:[%s34957_s9 + $0xc28] ss:$8 sps:$4 sm:$0xff]   ;;  %v19356_v34 = vand.u32 %v24322_v57, %v29093_v28  ;;  %v24315_v20 = vpack.i.b16 %v13937_v21, %v13937_v21  ;;  %v27907_v22 = vld [vmem:[%s34957_s9 + $0xc44] ss:$8 sps:$4 sm:$0xff]  }
0x1189   : > { %v20389_v15 = vadd.f32 %v20388_v46, %v20387_v27  ;;  %v16790_v13 = vpop.f32.mrb[131].mxu1  ;;  %19275 = vmatprep.subr.bf16.mxu1 %v27878_v61  ;;  %v13994_v27 = vunpack.i.h.s16 %v13937_v21  ;;  %v27910_v46 = vld [vmem:[%s34957_s9 + $0xc7c] ss:$8 sps:$4 sm:$0xff]   ;;  %v27905_v9 = vld [vmem:[%s34957_s9 + $0xc40] ss:$8 sps:$4 sm:$0xff]  }
0x118a   : > { %19186 = vmatpush1.bf16.msra.mxu0 %v27873_v23  ;;  %v27917_v58 = vld [vmem:[%s34957_s9 + $0xc60] ss:$8 sps:$4 sm:$0xff]  }
0x118b   : > { %19187 = vmatprep.subr.bf16.mxu0 %v19179_v4  ;;  %v19446_v4 = vand.u32 %v24331_v5, %v29093_v28  ;;  %v27930_v5 = vld [vmem:[%s34957_s9 + $0xce8] ss:$8 sps:$4 sm:$0xff]  }
0x118c   : > { %19276 = vmatpush1.bf16.msra.mxu1 %v27876_v10  ;;  %v19316_v10 = vrot.slane %v24315_v20, %v32973_v45  ;;  %v27941_v20 = vld [vmem:[%s34957_s9 + $0xcd4] ss:$8 sps:$4 sm:$0xff]  }
0x118d   : > { %19277 = vmatprep.subr.bf16.mxu1 %v19269_v16  ;;  %v27916_v16 = vld [vmem:[%s34957_s9 + $0xc8c] ss:$8 sps:$4 sm:$0xff]  }
0x118e   : > { %19188 = vmatpush1.bf16.msra.mxu0 %v19176_v14  ;;  %v27911_v14 = vld [vmem:[%s34957_s9 + $0xc50] ss:$8 sps:$4 sm:$0xff]  }
0x118f   : > { %19361 = vmatprep.subr.bf16.mxu0 %v27885_v60  ;;  %v27919_v60 = vld [vmem:[%s34957_s9 + $0xc64] ss:$8 sps:$4 sm:$0xff]  }
0x1190   : > { %19278 = vmatpush1.bf16.msra.mxu1 %v19266_v63 }
0x1191   : > { %24305 = vmatmul.mubr.msk.bf16.vlgmr.msra.gmra.mrb[168].mxu0 %vm14491_vm5, %v19136_v52  ;;  %19451 = vmatprep.subr.bf16.mxu1 %v27888_v36  ;;  %v27914_v36 = vld [vmem:[%s34957_s9 + $0xc88] ss:$8 sps:$4 sm:$0xff]  }
0x1192   : > { %19362 = vmatpush1.bf16.msra.mxu0 %v27883_v2  ;;  %19393 = vmatprep.mubr.bf16.mxu0 %v28055_v0 }
0x1193   : > { %24314 = vmatmul.mubr.msk.bf16.vlgmr.msra.gmra.mrb[184].mxu1 %vm14491_vm5, %v19226_v40  ;;  %19363 = vmatprep.subr.bf16.mxu0 %v27891_v37  ;;  %v27922_v37 = vld [vmem:[%s34957_s9 + $0xc9c] ss:$8 sps:$4 sm:$0xff]  }
0x1194   : > { %v16875_v8 = vpop.f32.mrb[116].mxu0  ;;  %19452 = vmatpush1.bf16.msra.mxu1 %v27886_v1  ;;  %19483 = vmatprep.mubr.bf16.mxu1 %v28055_v0  ;;  %v24351_v1 = vcombine.high %v14408_v29, %v14408_v29 }
0x1195   : > { %v20263_v41 = vsel %vm1683_vm2, %v16875_v8, 0.0  ;;  %v16877_v53 = vpop.f32.mrb[117].mxu0  ;;  %19453 = vmatprep.subr.bf16.mxu1 %v27894_v56 }
0x1196   : > { %v20264_v26 = vadd.f32 %v20263_v41, %v20262_v35  ;;  %v20390_v17 = vsel %vm1683_vm2, %v16877_v53, 0.0  ;;  %v16879_v49 = vpop.f32.mrb[118].mxu0  ;;  %v16965_v50 = vpop.f32.mrb[132].mxu1  ;;  %19364 = vmatpush1.bf16.msra.mxu0 %v27889_v3  ;;  %v19402_v35 = vpack.i.b16 %v13994_v27, %v13994_v27  ;;  %v19629_v57 = vand.u32 %v24351_v1, %v29093_v28  ;;  %v27933_v27 = vld [vmem:[%s34957_s9 + $0xcc0] ss:$8 sps:$4 sm:$0xff]  }
0x1197   : > { %v20391_v33 = vadd.f32 %v20390_v17, %v20389_v15  ;;  %v20265_v55 = vsel %vm1683_vm2, %v16965_v50, 0.0  ;;  %v16880_v59 = vpop.f32.mrb[119].mxu0  ;;  %v16967_v47 = vpop.f32.mrb[133].mxu1  ;;  %19365 = vmatprep.subr.bf16.mxu0 %v27897_v48  ;;  %v14401_v15 = vld [vmem:[%s34957_s9 + $0xc70] sm:$0x11]  ;;  %v24350_v17 = vcombine.low %v14408_v29, %v14408_v29  ;;  %v13996_v49 = vunpack.i.h.s16 %v33038_v39 }
0x1198   : > { %v20266_v61 = vadd.f32 %v20265_v55, %v20264_v26  ;;  %v20392_v12 = vsel %vm1683_vm2, %v16967_v47, 0.0  ;;  %v16969_v31 = vpop.f32.mrb[134].mxu1  ;;  %19454 = vmatpush1.bf16.msra.mxu1 %v27892_v18  ;;  %v19406_v13 = vrot.slane %v19402_v35, %v32973_v45  ;;  %v24342_v63 = vcombine.high %v14401_v15, %v14401_v15  ;;  %v27920_v26 = vld [vmem:[%s34957_s9 + $0xc98] ss:$8 sps:$4 sm:$0xff]   ;;  %v27929_v59 = vld [vmem:[%s34957_s9 + $0xcb4] ss:$8 sps:$4 sm:$0xff]  }
0x1199   : > { %v20393_v7 = vadd.f32 %v20392_v12, %v20391_v33  ;;  %v16970_v23 = vpop.f32.mrb[135].mxu1  ;;  %19455 = vmatprep.subr.bf16.mxu1 %v27900_v24  ;;  %v24341_v48 = vcombine.low %v14401_v15, %v14401_v15  ;;  %v24334_v55 = vpack.i.b16 %v33038_v39, %v33038_v39  ;;  %v19626_v47 = vand.u32 %v24350_v17, %v29093_v28  ;;  %v27927_v12 = vld [vmem:[%s34957_s9 + $0xcb0] ss:$8 sps:$4 sm:$0xff]  }
0x119a   : > { %19366 = vmatpush1.bf16.msra.mxu0 %v27895_v51  ;;  %v19539_v41 = vand.u32 %v24342_v63, %v29093_v28  ;;  %v27936_v35 = vld [vmem:[%s34957_s9 + $0xcf8] ss:$8 sps:$4 sm:$0xff]  }
0x119b   : > { %19367 = vmatprep.subr.bf16.mxu0 %v19359_v42  ;;  %v19536_v33 = vand.u32 %v24341_v48, %v29093_v28  ;;  %v19582_v42 = vpack.i.b16 %v13996_v49, %v13996_v49  ;;  %v19496_v31 = vrot.slane %v24334_v55, %v32973_v45  ;;  %v27952_v17 = vld [vmem:[%s34957_s9 + $0xd58] ss:$8 sps:$4 sm:$0xff]   ;;  %v14429_v49 = vld [vmem:[%s34957_s9 + $0xd50] sm:$0x11]  ;;  %v27963_v55 = vld [vmem:[%s34957_s9 + $0xd44] ss:$8 sps:$4 sm:$0xff]  }
0x119c   : > { %19456 = vmatpush1.bf16.msra.mxu1 %v27898_v38  ;;  %v27935_v38 = vld [vmem:[%s34957_s9 + $0xcc4] ss:$8 sps:$4 sm:$0xff]  }
0x119d   : > { %19457 = vmatprep.subr.bf16.mxu1 %v19449_v43  ;;  %v19586_v23 = vrot.slane %v19582_v42, %v32973_v45  ;;  %v27938_v43 = vld [vmem:[%s34957_s9 + $0xcfc] ss:$8 sps:$4 sm:$0xff]   ;;  %v27958_v42 = vld [vmem:[%s34957_s9 + $0xd68] ss:$8 sps:$4 sm:$0xff]  }
0x119e   : > { %19368 = vmatpush1.bf16.msra.mxu0 %v19356_v34  ;;  %v14422_v34 = vld [vmem:[%s34957_s9 + $0xd18] sm:$0x11] }
0x119f   : > { %19541 = vmatprep.subr.bf16.mxu0 %v27907_v22 }
0x11a0   : > { %19458 = vmatpush1.bf16.msra.mxu1 %v19446_v4 }
0x11a1   : > { %24324 = vmatmul.mubr.msk.bf16.vlgmr.msra.gmra.mrb[172].mxu0 %vm14491_vm5, %v19316_v10  ;;  %19631 = vmatprep.subr.bf16.mxu1 %v27910_v46  ;;  %v27944_v10 = vld [vmem:[%s34957_s9 + $0xd0c] ss:$8 sps:$4 sm:$0xff]  }
0x11a2   : > { %19542 = vmatpush1.bf16.msra.mxu0 %v27905_v9  ;;  %19573 = vmatprep.mubr.bf16.mxu0 %v28055_v0 }
0x11a3   : > { %24333 = vmatmul.mubr.msk.bf16.vlgmr.msra.gmra.mrb[188].mxu1 %vm14491_vm5, %v19406_v13  ;;  %19543 = vmatprep.subr.bf16.mxu0 %v27913_v54  ;;  %v24370_v54 = vcombine.high %v14422_v34, %v14422_v34 }
0x11a4   : > { %v17055_v30 = vpop.f32.mrb[120].mxu0  ;;  %19632 = vmatpush1.bf16.msra.mxu1 %v27908_v44  ;;  %19663 = vmatprep.mubr.bf16.mxu1 %v28055_v0 }
0x11a5   : > { %v20267_v2 = vsel %vm1683_vm2, %v17055_v30, 0.0  ;;  %v17057_v52 = vpop.f32.mrb[121].mxu0  ;;  %19633 = vmatprep.subr.bf16.mxu1 %v27916_v16  ;;  %v19809_v48 = vand.u32 %v24370_v54, %v29093_v28 }
0x11a6   : > { %v20268_v11 = vadd.f32 %v20267_v2, %v20266_v61  ;;  %v20394_v40 = vsel %vm1683_vm2, %v17057_v52, 0.0  ;;  %v17059_v56 = vpop.f32.mrb[122].mxu0  ;;  %v17145_v3 = vpop.f32.mrb[136].mxu1  ;;  %19544 = vmatpush1.bf16.msra.mxu0 %v27911_v14  ;;  %v27932_v61 = vld [vmem:[%s34957_s9 + $0xcec] ss:$8 sps:$4 sm:$0xff]  }
0x11a7   : > { %v20395_v6 = vadd.f32 %v20394_v40, %v20393_v7  ;;  %v20269_v8 = vsel %vm1683_vm2, %v17145_v3, 0.0  ;;  %v17060_v18 = vpop.f32.mrb[123].mxu0  ;;  %v17147_v21 = vpop.f32.mrb[137].mxu1  ;;  %19545 = vmatprep.subr.bf16.mxu0 %v27919_v60  ;;  %v14415_v7 = vld [vmem:[%s34957_s9 + $0xce0] sm:$0x11]  ;;  %v24369_v40 = vcombine.low %v14422_v34, %v14422_v34  ;;  %v13998_v56 = vunpack.i.h.s16 %v33055_v62 }
0x11a8   : > { %v20270_v53 = vadd.f32 %v20269_v8, %v20268_v11  ;;  %v20396_v24 = vsel %vm1683_vm2, %v17147_v21, 0.0  ;;  %v17149_v32 = vpop.f32.mrb[138].mxu1  ;;  %19634 = vmatpush1.bf16.msra.mxu1 %v27914_v36  ;;  %v24361_v22 = vcombine.high %v14415_v7, %v14415_v7  ;;  %v27939_v14 = vld [vmem:[%s34957_s9 + $0xcd0] ss:$8 sps:$4 sm:$0xff]   ;;  %v24360_v29 = vcombine.low %v14415_v7, %v14415_v7  ;;  %v27951_v18 = vld [vmem:[%s34957_s9 + $0xd24] ss:$8 sps:$4 sm:$0xff]  }
0x11a9   : > { %v20397_v50 = vadd.f32 %v20396_v24, %v20395_v6  ;;  %v17150_v51 = vpop.f32.mrb[139].mxu1  ;;  %19635 = vmatprep.subr.bf16.mxu1 %v27922_v37  ;;  %v27942_v11 = vld [vmem:[%s34957_s9 + $0xd08] ss:$8 sps:$4 sm:$0xff]   ;;  %v24353_v8 = vpack.i.b16 %v33055_v62, %v33055_v62  ;;  %v19806_v21 = vand.u32 %v24369_v40, %v29093_v28 }
0x11aa   : > { %19546 = vmatpush1.bf16.msra.mxu0 %v27917_v58  ;;  %v19719_v2 = vand.u32 %v24361_v22, %v29093_v28  ;;  %v19716_v6 = vand.u32 %v24360_v29, %v29093_v28  ;;  %v27949_v24 = vld [vmem:[%s34957_s9 + $0xd20] ss:$8 sps:$4 sm:$0xff]   ;;  %v27960_v51 = vld [vmem:[%s34957_s9 + $0xd6c] ss:$8 sps:$4 sm:$0xff]  }
0x11ab   : > { %19547 = vmatprep.subr.bf16.mxu0 %v19539_v41  ;;  %v19762_v41 = vpack.i.b16 %v13998_v56, %v13998_v56  ;;  %v19676_v32 = vrot.slane %v24353_v8, %v32973_v45  ;;  %v27961_v34 = vld [vmem:[%s34957_s9 + $0xd40] ss:$8 sps:$4 sm:$0xff]   ;;  %v27985_v8 = vld [vmem:[%s34957_s9 + $0xdb4] ss:$8 sps:$4 sm:$0xff]  }
0x11ac   : > { %19636 = vmatpush1.bf16.msra.mxu1 %v27920_v26  ;;  %v27957_v26 = vld [vmem:[%s34957_s9 + $0xd34] ss:$8 sps:$4 sm:$0xff]   ;;  %v27974_v40 = vld [vmem:[%s34957_s9 + $0xdc8] ss:$8 sps:$4 sm:$0xff]   ;;  %v14443_v56 = vld [vmem:[%s34957_s9 + $0xdc0] sm:$0x11] }
0x11ad   : > { %19637 = vmatprep.subr.bf16.mxu1 %v19629_v57  ;;  %v27955_v57 = vld [vmem:[%s34957_s9 + $0xd30] ss:$8 sps:$4 sm:$0xff]  }
0x11ae   : > { %19548 = vmatpush1.bf16.msra.mxu0 %v19536_v33  ;;  %v14436_v33 = vld [vmem:[%s34957_s9 + $0xd88] sm:$0x11] }
0x11af   : > { %19721 = vmatprep.subr.bf16.mxu0 %v27929_v59  ;;  %v24380_v59 = vcombine.high %v14429_v49, %v14429_v49 }
0x11b0   : > { %19638 = vmatpush1.bf16.msra.mxu1 %v19626_v47 }
0x11b1   : > { %24343 = vmatmul.mubr.msk.bf16.vlgmr.msra.gmra.mrb[176].mxu0 %vm14491_vm5, %v19496_v31  ;;  %19811 = vmatprep.subr.bf16.mxu1 %v27932_v61  ;;  %v13936_v61 = vcombine.high %v33038_v39, %v33038_v39  ;;  %v24379_v39 = vcombine.low %v14429_v49, %v14429_v49 }
0x11b2   : > { %19722 = vmatpush1.bf16.msra.mxu0 %v27927_v12  ;;  %19753 = vmatprep.mubr.bf16.mxu0 %v28055_v0 }
0x11b3   : > { %24352 = vmatmul.mubr.msk.bf16.vlgmr.msra.gmra.mrb[192].mxu1 %vm14491_vm5, %v19586_v23  ;;  %19723 = vmatprep.subr.bf16.mxu0 %v27935_v38  ;;  %v27966_v38 = vld [vmem:[%s34957_s9 + $0xd7c] ss:$8 sps:$4 sm:$0xff]  }
0x11b4   : > { %v17235_v4 = vpop.f32.mrb[124].mxu0  ;;  %19812 = vmatpush1.bf16.msra.mxu1 %v27930_v5  ;;  %19843 = vmatprep.mubr.bf16.mxu1 %v28055_v0  ;;  %v24389_v5 = vcombine.high %v14436_v33, %v14436_v33 }
0x11b5   : > { %v20271_v46 = vsel %vm1683_vm2, %v17235_v4, 0.0  ;;  %v17237_v9 = vpop.f32.mrb[125].mxu0  ;;  %19813 = vmatprep.subr.bf16.mxu1 %v27938_v43 }
0x11b6   : > { %v20272_v44 = vadd.f32 %v20271_v46, %v20270_v53  ;;  %v20398_v15 = vsel %vm1683_vm2, %v17237_v9, 0.0  ;;  %v17239_v13 = vpop.f32.mrb[126].mxu0  ;;  %v17325_v16 = vpop.f32.mrb[140].mxu1  ;;  %19724 = vmatpush1.bf16.msra.mxu0 %v27933_v27  ;;  %v27954_v53 = vld [vmem:[%s34957_s9 + $0xd5c] ss:$8 sps:$4 sm:$0xff]   ;;  %v19899_v46 = vand.u32 %v24380_v59, %v29093_v28  ;;  %v19989_v29 = vand.u32 %v24389_v5, %v29093_v28 }
0x11b7   : > { %v20399_v60 = vadd.f32 %v20398_v15, %v20397_v50  ;;  %v20273_v63 = vsel %vm1683_vm2, %v17325_v16, 0.0  ;;  %v17240_v30 = vpop.f32.mrb[127].mxu0  ;;  %v17327_v36 = vpop.f32.mrb[141].mxu1  ;;  %19725 = vmatprep.subr.bf16.mxu0 %v27941_v20  ;;  %v19766_v50 = vrot.slane %v19762_v41, %v32973_v45  ;;  %v24388_v15 = vcombine.low %v14436_v33, %v14436_v33  ;;  %v27980_v41 = vld [vmem:[%s34957_s9 + $0xdd8] ss:$8 sps:$4 sm:$0xff]  }
0x11b8   : > { %v20274_v52 = vadd.f32 %v20273_v63, %v20272_v44  ;;  %v20400_v37 = vsel %vm1683_vm2, %v17327_v36, 0.0  ;;  %v17329_v1 = vpop.f32.mrb[142].mxu1  ;;  %19814 = vmatpush1.bf16.msra.mxu1 %v27936_v35  ;;  %v27964_v44 = vld [vmem:[%s34957_s9 + $0xd78] ss:$8 sps:$4 sm:$0xff]   ;;  %v14000_v13 = vunpack.i.h.s16 %v13936_v61  ;;  %v24372_v63 = vpack.i.b16 %v13936_v61, %v13936_v61  ;;  %v27973_v30 = vld [vmem:[%s34957_s9 + $0xd94] ss:$8 sps:$4 sm:$0xff]  }
0x11b9   : > { %v20401_v3 = vadd.f32 %v20400_v37, %v20399_v60  ;;  %v17330_v58 = vpop.f32.mrb[143].mxu1  ;;  %19815 = vmatprep.subr.bf16.mxu1 %v27944_v10  ;;  %v19896_v60 = vand.u32 %v24379_v39, %v29093_v28  ;;  %v19986_v36 = vand.u32 %v24388_v15, %v29093_v28  ;;  %v27971_v37 = vld [vmem:[%s34957_s9 + $0xd90] ss:$8 sps:$4 sm:$0xff]  }
0x11ba   : > { %19726 = vmatpush1.bf16.msra.mxu0 %v27939_v14  ;;  %v19856_v1 = vrot.slane %v24372_v63, %v32973_v45  ;;  %v27982_v58 = vld [vmem:[%s34957_s9 + $0xddc] ss:$8 sps:$4 sm:$0xff]  }
0x11bb   : > { %19727 = vmatprep.subr.bf16.mxu0 %v19719_v2  ;;  %v19942_v2 = vpack.i.b16 %v14000_v13, %v14000_v13 }
0x11bc   : > { %19816 = vmatpush1.bf16.msra.mxu1 %v27942_v11  ;;  %v27979_v11 = vld [vmem:[%s34957_s9 + $0xda4] ss:$8 sps:$4 sm:$0xff]  }
0x11bd   : > { %19817 = vmatprep.subr.bf16.mxu1 %v19809_v48  ;;  %v27977_v48 = vld [vmem:[%s34957_s9 + $0xda0] ss:$8 sps:$4 sm:$0xff]  }
0x11be   : > { %19728 = vmatpush1.bf16.msra.mxu0 %v19716_v6  ;;  %v14450_v6 = vld [vmem:[%s34957_s9 + $0xdf8] sm:$0x11] }
0x11bf   : > { %19901 = vmatprep.subr.bf16.mxu0 %v27951_v18  ;;  %v24399_v18 = vcombine.high %v14443_v56, %v14443_v56  ;;  %v24407_v5 = vcombine.low %v14450_v6, %v14450_v6 }
0x11c0   : > { %19818 = vmatpush1.bf16.msra.mxu1 %v19806_v21 }
0x11c1   : > { %24362 = vmatmul.mubr.msk.bf16.vlgmr.msra.gmra.mrb[180].mxu0 %vm14491_vm5, %v19676_v32  ;;  %19991 = vmatprep.subr.bf16.mxu1 %v27954_v53  ;;  %v13938_v53 = vcombine.high %v33055_v62, %v33055_v62  ;;  %v24398_v62 = vcombine.low %v14443_v56, %v14443_v56 }
0x11c2   : > { %19902 = vmatpush1.bf16.msra.mxu0 %v27949_v24  ;;  %19933 = vmatprep.mubr.bf16.mxu0 %v28055_v0 }
0x11c3   : > { %24371 = vmatmul.mubr.msk.bf16.vlgmr.msra.gmra.mrb[196].mxu1 %vm14491_vm5, %v19766_v50  ;;  %19903 = vmatprep.subr.bf16.mxu0 %v27957_v26  ;;  %v27988_v26 = vld [vmem:[%s34957_s9 + $0xdec] ss:$8 sps:$4 sm:$0xff]   ;;  %v24391_v39 = vpack.i.b16 %v13938_v53, %v13938_v53 }
0x11c4   : > { %v17415_v47 = vpop.f32.mrb[128].mxu0  ;;  %19992 = vmatpush1.bf16.msra.mxu1 %v27952_v17  ;;  %20023 = vmatprep.mubr.bf16.mxu1 %v28055_v0  ;;  %v24408_v17 = vcombine.high %v14450_v6, %v14450_v6 }
0x11c5   : > { %v20275_v12 = vsel %vm1683_vm2, %v17415_v47, 0.0  ;;  %v17417_v31 = vpop.f32.mrb[129].mxu0  ;;  %19993 = vmatprep.subr.bf16.mxu1 %v27960_v51 }
0x11c6   : > { %v20276_v7 = vadd.f32 %v20275_v12, %v20274_v52  ;;  %v20402_v23 = vsel %vm1683_vm2, %v17417_v31, 0.0  ;;  %v17419_v43 = vpop.f32.mrb[130].mxu0  ;;  %v17505_v27 = vpop.f32.mrb[144].mxu1  ;;  %19904 = vmatpush1.bf16.msra.mxu0 %v27955_v57  ;;  %v27976_v52 = vld [vmem:[%s34957_s9 + $0xdcc] ss:$8 sps:$4 sm:$0xff]  }
0x11c7   : > { %v20403_v20 = vadd.f32 %v20402_v23, %v20401_v3  ;;  %v20277_v22 = vsel %vm1683_vm2, %v17505_v27, 0.0  ;;  %v17420_v4 = vpop.f32.mrb[131].mxu0  ;;  %v17507_v35 = vpop.f32.mrb[145].mxu1  ;;  %19905 = vmatprep.subr.bf16.mxu0 %v27963_v55  ;;  %v19946_v3 = vrot.slane %v19942_v2, %v32973_v45  ;;  %v20169_v43 = vand.u32 %v24408_v17, %v29093_v28 }
0x11c8   : > { %v20278_v9 = vadd.f32 %v20277_v22, %v20276_v7  ;;  %v20404_v10 = vsel %vm1683_vm2, %v17507_v35, 0.0  ;;  %v17509_v54 = vpop.f32.mrb[146].mxu1  ;;  %19994 = vmatpush1.bf16.msra.mxu1 %v27958_v42  ;;  %v20079_v42 = vand.u32 %v24399_v18, %v29093_v28  ;;  %v14002_v27 = vunpack.i.h.s16 %v13938_v53 }
0x11c9   : > { %v20405_v16 = vadd.f32 %v20404_v10, %v20403_v20  ;;  %v17510_v14 = vpop.f32.mrb[147].mxu1  ;;  %19995 = vmatprep.subr.bf16.mxu1 %v27966_v38  ;;  %v27986_v38 = vld [vmem:[%s34957_s9 + $0xde8] ss:$8 sps:$4 sm:$0xff]   ;;  %v20166_v20 = vand.u32 %v24407_v5, %v29093_v28  ;;  %v20036_v4 = vrot.slane %v24391_v39, %v32973_v45 }
0x11ca   : > { %19906 = vmatpush1.bf16.msra.mxu0 %v27961_v34  ;;  %v20076_v34 = vand.u32 %v24398_v62, %v29093_v28  ;;  %v20122_v22 = vpack.i.b16 %v14002_v27, %v14002_v27 }
0x11cb   : > { %19907 = vmatprep.subr.bf16.mxu0 %v19899_v46 }
0x11cc   : > { %19996 = vmatpush1.bf16.msra.mxu1 %v27964_v44  ;;  %v20126_v35 = vrot.slane %v20122_v22, %v32973_v45 }
0x11cd   : > { %19997 = vmatprep.subr.bf16.mxu1 %v19989_v29 }
0x11ce   : > { %19908 = vmatpush1.bf16.msra.mxu0 %v19896_v60 }
0x11cf   : > { %20081 = vmatprep.subr.bf16.mxu0 %v27973_v30 }
0x11d0   : > { %19998 = vmatpush1.bf16.msra.mxu1 %v19986_v36 }
0x11d1   : > { %24381 = vmatmul.mubr.msk.bf16.vlgmr.msra.gmra.mrb[184].mxu0 %vm14491_vm5, %v19856_v1  ;;  %20171 = vmatprep.subr.bf16.mxu1 %v27976_v52 }
0x11d2   : > { %20082 = vmatpush1.bf16.msra.mxu0 %v27971_v37  ;;  %20113 = vmatprep.mubr.bf16.mxu0 %v28055_v0 }
0x11d3   : > { %24390 = vmatmul.mubr.msk.bf16.vlgmr.msra.gmra.mrb[200].mxu1 %vm14491_vm5, %v19946_v3  ;;  %20083 = vmatprep.subr.bf16.mxu0 %v27979_v11 }
0x11d4   : > { %v17595_v21 = vpop.f32.mrb[132].mxu0  ;;  %20172 = vmatpush1.bf16.msra.mxu1 %v27974_v40  ;;  %20203 = vmatprep.mubr.bf16.mxu1 %v28055_v0  ;;  %v27983_v0 = vld [vmem:[%s34957_s9 + $0xdb0] ss:$8 sps:$4 sm:$0xff]  }
0x11d5   : > { %v20279_v24 = vsel %vm1683_vm2, %v17595_v21, 0.0  ;;  %v17597_v32 = vpop.f32.mrb[133].mxu0  ;;  %20173 = vmatprep.subr.bf16.mxu1 %v27982_v58 }
0x11d6   : > { %v20280_v49 = vadd.f32 %v20279_v24, %v20278_v9  ;;  %v20406_v50 = vsel %vm1683_vm2, %v17597_v32, 0.0  ;;  %v17599_v51 = vpop.f32.mrb[134].mxu0  ;;  %v17685_v57 = vpop.f32.mrb[148].mxu1  ;;  %20084 = vmatpush1.bf16.msra.mxu0 %v27977_v48 }
0x11d7   : > { %v20407_v33 = vadd.f32 %v20406_v50, %v20405_v16  ;;  %v20281_v55 = vsel %vm1683_vm2, %v17685_v57, 0.0  ;;  %v17600_v59 = vpop.f32.mrb[135].mxu0  ;;  %v17687_v47 = vpop.f32.mrb[149].mxu1  ;;  %20085 = vmatprep.subr.bf16.mxu0 %v27985_v8 }
0x11d8   : > { %v20282_v61 = vadd.f32 %v20281_v55, %v20280_v49  ;;  %v20408_v12 = vsel %vm1683_vm2, %v17687_v47, 0.0  ;;  %v17689_v31 = vpop.f32.mrb[150].mxu1  ;;  %20174 = vmatpush1.bf16.msra.mxu1 %v27980_v41 }
0x11d9   : > { %v20409_v7 = vadd.f32 %v20408_v12, %v20407_v33  ;;  %v17690_v23 = vpop.f32.mrb[151].mxu1  ;;  %20175 = vmatprep.subr.bf16.mxu1 %v27988_v26 }
0x11da   : > { %20086 = vmatpush1.bf16.msra.mxu0 %v27983_v0 }
0x11db   : > { %20087 = vmatprep.subr.bf16.mxu0 %v20079_v42 }
0x11dc   : > { %20176 = vmatpush1.bf16.msra.mxu1 %v27986_v38 }
0x11dd   : > { %20177 = vmatprep.subr.bf16.mxu1 %v20169_v43 }
0x11de   : > { %20088 = vmatpush1.bf16.msra.mxu0 %v20076_v34 }
0x11e0   : > { %20178 = vmatpush1.bf16.msra.mxu1 %v20166_v20 }
0x11e1   : > { %24400 = vmatmul.mubr.msk.bf16.vlgmr.msra.gmra.mrb[188].mxu0 %vm14491_vm5, %v20036_v4  ;;  %24896 = vmatprep.subr.bf16.mxu1 %v28056_v25 }
0x11e3   : > { %24409 = vmatmul.mubr.msk.bf16.vlgmr.msra.gmra.mrb[204].mxu1 %vm14491_vm5, %v20126_v35 }
0x11e4   : > { %v17775_v46 = vpop.f32.mrb[136].mxu0  ;;  %24912 = vmatprep.mubr.msk.bf16.mxu1 %vm28057_vm1, %v28056_v25 }
0x11e5   : > { %v20283_v28 = vsel %vm1683_vm2, %v17775_v46, 0.0  ;;  %v17777_v9 = vpop.f32.mrb[137].mxu0 }
0x11e6   : > { %v20284_v10 = vadd.f32 %v20283_v28, %v20282_v61  ;;  %v20410_v54 = vsel %vm1683_vm2, %v17777_v9, 0.0  ;;  %v17779_v44 = vpop.f32.mrb[138].mxu0  ;;  %v17865_v15 = vpop.f32.mrb[152].mxu1 }
0x11e7   : > { %v20411_v13 = vadd.f32 %v20410_v54, %v20409_v7  ;;  %v20285_v16 = vsel %vm1683_vm2, %v17865_v15, 0.0  ;;  %v17780_v14 = vpop.f32.mrb[139].mxu0  ;;  %v17867_v29 = vpop.f32.mrb[153].mxu1  ;;  %v27994_v54 = vld [vmem:[%s34959_s11] sm:$0xff]  }
0x11e8   : > { %v20286_v60 = vadd.f32 %v20285_v16, %v20284_v10  ;;  %v20412_v63 = vsel %vm1683_vm2, %v17867_v29, 0.0  ;;  %v17869_v30 = vpop.f32.mrb[154].mxu1  ;;  %v27993_v10 = vld [vmem:[%s34959_s11 + $0x40] sm:$0xff]  }
0x11e9   : > { %v20413_v36 = vadd.f32 %v20412_v63, %v20411_v13  ;;  %v17870_v2 = vpop.f32.mrb[155].mxu1  ;;  %24749 = vmatprep.subr.bf16.mxu0 %v27993_v10 }
0x11ea   : > { %24750 = vmatpush3.bf16.msra.mxu0 %v27994_v54 }
0x11f4   : > { %v17955_v52 = vpop.f32.mrb[140].mxu0 }
0x11f5   : > { %v20287_v37 = vsel %vm1683_vm2, %v17955_v52, 0.0  ;;  %v17957_v1 = vpop.f32.mrb[141].mxu0 }
0x11f6   : > { %v20288_v11 = vadd.f32 %v20287_v37, %v20286_v60  ;;  %v20414_v40 = vsel %vm1683_vm2, %v17957_v1, 0.0  ;;  %v17959_v56 = vpop.f32.mrb[142].mxu0  ;;  %v18045_v3 = vpop.f32.mrb[156].mxu1 }
0x11f7   : > { %v20415_v58 = vadd.f32 %v20414_v40, %v20413_v36  ;;  %v20289_v48 = vsel %vm1683_vm2, %v18045_v3, 0.0  ;;  %v17960_v6 = vpop.f32.mrb[143].mxu0  ;;  %v18047_v8 = vpop.f32.mrb[157].mxu1  ;;  %v27996_v3 = vld [vmem:[%s34959_s11 + $0x8] sm:$0xff]  }
0x11f8   : > { %v20290_v18 = vadd.f32 %v20289_v48, %v20288_v11  ;;  %v20416_v21 = vsel %vm1683_vm2, %v18047_v8, 0.0  ;;  %v18049_v41 = vpop.f32.mrb[158].mxu1  ;;  %v27995_v11 = vld [vmem:[%s34959_s11 + $0x48] sm:$0xff]   ;;  %v27998_v48 = vld [vmem:[%s34959_s11 + $0x10] sm:$0xff]   ;;  %v27999_v6 = vld [vmem:[%s34959_s11 + $0x58] sm:$0xff]  }
0x11f9   : > { %v20417_v53 = vadd.f32 %v20416_v21, %v20415_v58  ;;  %v18050_v24 = vpop.f32.mrb[159].mxu1  ;;  %v27997_v58 = vld [vmem:[%s34959_s11 + $0x50] sm:$0xff]   ;;  %24751 = vmatprep.subr.bf16.mxu0 %v27995_v11  ;;  %v28000_v8 = vld [vmem:[%s34959_s11 + $0x18] sm:$0xff]   ;;  %v28002_v21 = vld [vmem:[%s34959_s11 + $0x20] sm:$0xff]  }
0x11fa   : > { %24752 = vmatpush3.bf16.msra.mxu0 %v27996_v3 }
0x11fb   : > { %24753 = vmatprep.subr.bf16.mxu0 %v27997_v58 }
0x11fe   : > { %24754 = vmatpush3.bf16.msra.mxu0 %v27998_v48 }
0x11ff   : > { %24755 = vmatprep.subr.bf16.mxu0 %v27999_v6 }
0x1202   : > { %24756 = vmatpush3.bf16.msra.mxu0 %v28000_v8 }
0x1204   : > { %v18135_v32 = vpop.f32.mrb[144].mxu0 }
0x1205   : > { %v20291_v26 = vsel %vm1683_vm2, %v18135_v32, 0.0  ;;  %v18137_v17 = vpop.f32.mrb[145].mxu0 }
0x1206   : > { %v20292_v49 = vadd.f32 %v20291_v26, %v20290_v18  ;;  %v20418_v50 = vsel %vm1683_vm2, %v18137_v17, 0.0  ;;  %v18139_v51 = vpop.f32.mrb[146].mxu0  ;;  %v18225_v57 = vpop.f32.mrb[160].mxu1  ;;  %v28001_v18 = vld [vmem:[%s34959_s11 + $0x60] sm:$0xff]  }
0x1207   : > { %v20419_v0 = vadd.f32 %v20418_v50, %v20417_v53  ;;  %v20293_v62 = vsel %vm1683_vm2, %v18225_v57, 0.0  ;;  %v18140_v33 = vpop.f32.mrb[147].mxu0  ;;  %v18227_v55 = vpop.f32.mrb[161].mxu1  ;;  %24757 = vmatprep.subr.bf16.mxu0 %v28001_v18 }
0x1208   : > { %v20294_v59 = vadd.f32 %v20293_v62, %v20292_v49  ;;  %v20420_v47 = vsel %vm1683_vm2, %v18227_v55, 0.0  ;;  %v18229_v42 = vpop.f32.mrb[162].mxu1  ;;  %24758 = vmatpush3.bf16.msra.mxu0 %v28002_v21 }
0x1209   : > { %v20421_v61 = vadd.f32 %v20420_v47, %v20419_v0  ;;  %v18230_v12 = vpop.f32.mrb[163].mxu1  ;;  %v28003_v42 = vld [vmem:[%s34959_s11 + $0x68] sm:$0xff]  }
0x120a   : > { %v28005_v12 = vld [vmem:[%s34959_s11 + $0x70] sm:$0xff]   ;;  %24759 = vmatprep.subr.bf16.mxu0 %v28003_v42 }
0x1214   : > { %v18315_v31 = vpop.f32.mrb[148].mxu0 }
0x1215   : > { %v20295_v38 = vsel %vm1683_vm2, %v18315_v31, 0.0  ;;  %v18317_v5 = vpop.f32.mrb[149].mxu0  ;;  %v28006_v31 = vld [vmem:[%s34959_s11 + $0x30] sm:$0xff]  }
0x1216   : > { %v20296_v7 = vadd.f32 %v20295_v38, %v20294_v59  ;;  %v20422_v23 = vsel %vm1683_vm2, %v18317_v5, 0.0  ;;  %v18319_v43 = vpop.f32.mrb[150].mxu0  ;;  %v18405_v27 = vpop.f32.mrb[164].mxu1  ;;  %v28007_v38 = vld [vmem:[%s34959_s11 + $0x78] sm:$0xff]   ;;  %v28009_v5 = vld [vmem:[%s34961_s13] sm:$0xff]  }
0x1217   : > { %v20423_v34 = vadd.f32 %v20422_v23, %v20421_v61  ;;  %v20297_v39 = vsel %vm1683_vm2, %v18405_v27, 0.0  ;;  %v18320_v20 = vpop.f32.mrb[151].mxu0  ;;  %v18407_v22 = vpop.f32.mrb[165].mxu1  ;;  %v28004_v61 = vld [vmem:[%s34959_s11 + $0x28] sm:$0xff]   ;;  %24897 = vmatpush3.bf16.msra.mxu1 %v28009_v5 }
0x1218   : > { %v20298_v4 = vadd.f32 %v20297_v39, %v20296_v7  ;;  %v20424_v35 = vsel %vm1683_vm2, %v18407_v22, 0.0  ;;  %v18409_v46 = vpop.f32.mrb[166].mxu1  ;;  %24760 = vmatpush3.bf16.msra.mxu0 %v28004_v61  ;;  %v28010_v23 = vld [vmem:[%s34961_s13 + $0x8] sm:$0xff]   ;;  %24898 = vmatprep.subr.bf16.mxu1 %v28056_v25 }
0x1219   : > { %v20425_v28 = vadd.f32 %v20424_v35, %v20423_v34  ;;  %v18410_v9 = vpop.f32.mrb[167].mxu1  ;;  %24761 = vmatprep.subr.bf16.mxu0 %v28005_v12  ;;  %v28008_v34 = vld [vmem:[%s34959_s11 + $0x38] sm:$0xff]  }
0x121b   : > { %24899 = vmatpush3.bf16.msra.mxu1 %v28010_v23 }
0x121c   : > { %24762 = vmatpush3.bf16.msra.mxu0 %v28006_v31  ;;  %24900 = vmatprep.subr.bf16.mxu1 %v28056_v25 }
0x121d   : > { %24763 = vmatprep.subr.bf16.mxu0 %v28007_v38 }
0x1220   : > { %24764 = vmatpush3.bf16.msra.mxu0 %v28008_v34 }
0x1224   : > { %v18495_v44 = vpop.f32.mrb[152].mxu0 }
0x1225   : > { %v20299_v15 = vsel %vm1683_vm2, %v18495_v44, 0.0  ;;  %v18497_v13 = vpop.f32.mrb[153].mxu0 }
0x1226   : > { %v20300_v16 = vadd.f32 %v20299_v15, %v20298_v4  ;;  %v20426_v14 = vsel %vm1683_vm2, %v18497_v13, 0.0  ;;  %v18499_v29 = vpop.f32.mrb[154].mxu0  ;;  %v18585_v60 = vpop.f32.mrb[168].mxu1  ;;  %v28011_v15 = vld [vmem:[%s34961_s13 + $0x10] sm:$0xff]  }
0x1227   : > { %v20427_v63 = vadd.f32 %v20426_v14, %v20425_v28  ;;  %v20301_v30 = vsel %vm1683_vm2, %v18585_v60, 0.0  ;;  %v18500_v36 = vpop.f32.mrb[155].mxu0  ;;  %v18587_v2 = vpop.f32.mrb[169].mxu1  ;;  %24901 = vmatpush3.bf16.msra.mxu1 %v28011_v15  ;;  %v28012_v14 = vld [vmem:[%s34961_s13 + $0x18] sm:$0xff]   ;;  %v28013_v29 = vld [vmem:[%s34961_s13 + $0x20] sm:$0xff]  }
0x1228   : > { %v20302_v52 = vadd.f32 %v20301_v30, %v20300_v16  ;;  %v20428_v37 = vsel %vm1683_vm2, %v18587_v2, 0.0  ;;  %v18589_v1 = vpop.f32.mrb[170].mxu1  ;;  %24902 = vmatprep.subr.bf16.mxu1 %v28056_v25 }
0x1229   : > { %v20429_v40 = vadd.f32 %v20428_v37, %v20427_v63  ;;  %v18590_v56 = vpop.f32.mrb[171].mxu1  ;;  %v28014_v63 = vld [vmem:[%s34961_s13 + $0x28] sm:$0xff]  }
0x122b   : > { %24903 = vmatpush3.bf16.msra.mxu1 %v28012_v14 }
0x122c   : > { %24904 = vmatprep.subr.bf16.mxu1 %v28056_v25 }
0x122f   : > { %24905 = vmatpush3.bf16.msra.mxu1 %v28013_v29 }
0x1230   : > { %24906 = vmatprep.subr.bf16.mxu1 %v28056_v25 }
0x1233   : > { %24907 = vmatpush3.bf16.msra.mxu1 %v28014_v63 }
0x1234   : > { %v18675_v41 = vpop.f32.mrb[156].mxu0  ;;  %24908 = vmatprep.subr.bf16.mxu1 %v28056_v25 }
0x1235   : > { %v20303_v53 = vsel %vm1683_vm2, %v18675_v41, 0.0  ;;  %v18677_v24 = vpop.f32.mrb[157].mxu0 }
0x1236   : > { %v20304_v32 = vadd.f32 %v20303_v53, %v20302_v52  ;;  %v20430_v26 = vsel %vm1683_vm2, %v18677_v24, 0.0  ;;  %v18679_v17 = vpop.f32.mrb[158].mxu0  ;;  %v18765_v49 = vpop.f32.mrb[172].mxu1 }
0x1237   : > { %v20431_v50 = vadd.f32 %v20430_v26, %v20429_v40  ;;  %v20305_v51 = vsel %vm1683_vm2, %v18765_v49, 0.0  ;;  %v18680_v57 = vpop.f32.mrb[159].mxu0  ;;  %v18767_v0 = vpop.f32.mrb[173].mxu1 }
0x1238   : > { %v20306_v62 = vadd.f32 %v20305_v51, %v20304_v32  ;;  %v20432_v33 = vsel %vm1683_vm2, %v18767_v0, 0.0  ;;  %v18769_v55 = vpop.f32.mrb[174].mxu1 }
0x1239   : > { %v20433_v59 = vadd.f32 %v20432_v33, %v20431_v50  ;;  %v18770_v47 = vpop.f32.mrb[175].mxu1 }
0x1244   : > { %v18855_v7 = vpop.f32.mrb[160].mxu0 }
0x1245   : > { %v20307_v43 = vsel %vm1683_vm2, %v18855_v7, 0.0  ;;  %v18857_v27 = vpop.f32.mrb[161].mxu0 }
0x1246   : > { %v20308_v39 = vadd.f32 %v20307_v43, %v20306_v62  ;;  %v20434_v20 = vsel %vm1683_vm2, %v18857_v27, 0.0  ;;  %v18859_v22 = vpop.f32.mrb[162].mxu0  ;;  %v18945_v4 = vpop.f32.mrb[176].mxu1 }
0x1247   : > { %v20435_v35 = vadd.f32 %v20434_v20, %v20433_v59  ;;  %v20309_v46 = vsel %vm1683_vm2, %v18945_v4, 0.0  ;;  %v18860_v28 = vpop.f32.mrb[163].mxu0  ;;  %v18947_v9 = vpop.f32.mrb[177].mxu1 }
0x1248   : > { %v20310_v10 = vadd.f32 %v20309_v46, %v20308_v39  ;;  %v20436_v54 = vsel %vm1683_vm2, %v18947_v9, 0.0  ;;  %v18949_v44 = vpop.f32.mrb[178].mxu1 }
0x1249   : > { %v20437_v13 = vadd.f32 %v20436_v54, %v20435_v35  ;;  %v18950_v16 = vpop.f32.mrb[179].mxu1 }
0x1254   : > { %v19035_v60 = vpop.f32.mrb[164].mxu0 }
0x1255   : > { %v20311_v30 = vsel %vm1683_vm2, %v19035_v60, 0.0  ;;  %v19037_v36 = vpop.f32.mrb[165].mxu0 }
0x1256   : > { %v20312_v2 = vadd.f32 %v20311_v30, %v20310_v10  ;;  %v20438_v52 = vsel %vm1683_vm2, %v19037_v36, 0.0  ;;  %v19039_v37 = vpop.f32.mrb[166].mxu0  ;;  %v19125_v1 = vpop.f32.mrb[180].mxu1 }
0x1257   : > { %v20439_v11 = vadd.f32 %v20438_v52, %v20437_v13  ;;  %v20313_v40 = vsel %vm1683_vm2, %v19125_v1, 0.0  ;;  %v19040_v56 = vpop.f32.mrb[167].mxu0  ;;  %v19127_v3 = vpop.f32.mrb[181].mxu1 }
0x1258   : > { %v20314_v58 = vadd.f32 %v20313_v40, %v20312_v2  ;;  %v20440_v48 = vsel %vm1683_vm2, %v19127_v3, 0.0  ;;  %v19129_v6 = vpop.f32.mrb[182].mxu1 }
0x1259   : > { %v20441_v8 = vadd.f32 %v20440_v48, %v20439_v11  ;;  %v19130_v18 = vpop.f32.mrb[183].mxu1 }
0x1264   : > { %v19215_v21 = vpop.f32.mrb[168].mxu0 }
0x1265   : > { %v20315_v41 = vsel %vm1683_vm2, %v19215_v21, 0.0  ;;  %v19217_v53 = vpop.f32.mrb[169].mxu0 }
0x1266   : > { %v20316_v24 = vadd.f32 %v20315_v41, %v20314_v58  ;;  %v20442_v32 = vsel %vm1683_vm2, %v19217_v53, 0.0  ;;  %v19219_v26 = vpop.f32.mrb[170].mxu0  ;;  %v19305_v17 = vpop.f32.mrb[184].mxu1 }
0x1267   : > { %v20443_v49 = vadd.f32 %v20442_v32, %v20441_v8  ;;  %v20317_v50 = vsel %vm1683_vm2, %v19305_v17, 0.0  ;;  %v19220_v51 = vpop.f32.mrb[171].mxu0  ;;  %v19307_v57 = vpop.f32.mrb[185].mxu1 }
0x1268   : > { %v20318_v0 = vadd.f32 %v20317_v50, %v20316_v24  ;;  %v20444_v62 = vsel %vm1683_vm2, %v19307_v57, 0.0  ;;  %v19309_v33 = vpop.f32.mrb[186].mxu1 }
0x1269   : > { %v20445_v55 = vadd.f32 %v20444_v62, %v20443_v49  ;;  %v19310_v59 = vpop.f32.mrb[187].mxu1 }
0x1274   : > { %v19395_v47 = vpop.f32.mrb[172].mxu0 }
0x1275   : > { %v20319_v42 = vsel %vm1683_vm2, %v19395_v47, 0.0  ;;  %v19397_v61 = vpop.f32.mrb[173].mxu0 }
0x1276   : > { %v20320_v12 = vadd.f32 %v20319_v42, %v20318_v0  ;;  %v20446_v31 = vsel %vm1683_vm2, %v19397_v61, 0.0  ;;  %v19399_v38 = vpop.f32.mrb[174].mxu0  ;;  %v19485_v5 = vpop.f32.mrb[188].mxu1 }
0x1277   : > { %v20447_v7 = vadd.f32 %v20446_v31, %v20445_v55  ;;  %v20321_v23 = vsel %vm1683_vm2, %v19485_v5, 0.0  ;;  %v19400_v43 = vpop.f32.mrb[175].mxu0  ;;  %v19487_v27 = vpop.f32.mrb[189].mxu1  ;;  %v20474_v31 = vsub.s32 1, %v32945_v19 }
0x1278   : > { %v20322_v34 = vadd.f32 %v20321_v23, %v20320_v12  ;;  %v20448_v39 = vsel %vm1683_vm2, %v19487_v27, 0.0  ;;  %v19489_v20 = vpop.f32.mrb[190].mxu1  ;;  %v20466_v12 = vld [vmem:[%s34958_s10] sm:$0x3] }
0x1279   : > { %v20449_v22 = vadd.f32 %v20448_v39, %v20447_v7  ;;  %v19490_v4 = vpop.f32.mrb[191].mxu1  ;;  %v20471_v39 = vrot.slane %v20466_v12, %v32973_v45  ;;  %v28015_v45 = vld [vmem:[%s34961_s13 + $0x30] sm:$0xff]  }
0x127a   : > { %24909 = vmatpush3.bf16.msra.mxu1 %v28015_v45 }
0x127b   : > { %24910 = vmatprep.subr.bf16.mxu1 %v28056_v25 }
0x1284   : > { %v19575_v35 = vpop.f32.mrb[176].mxu0 }
0x1285   : > { %v20323_v46 = vsel %vm1683_vm2, %v19575_v35, 0.0  ;;  %v19577_v28 = vpop.f32.mrb[177].mxu0 }
0x1286   : > { %v20324_v9 = vadd.f32 %v20323_v46, %v20322_v34  ;;  %v20450_v10 = vsel %vm1683_vm2, %v19577_v28, 0.0  ;;  %v19579_v54 = vpop.f32.mrb[178].mxu0  ;;  %v19665_v44 = vpop.f32.mrb[192].mxu1  ;;  %v20475_v46 = vrot.slane %v20466_v12, %v20474_v31 }
0x1287   : > { %v20451_v15 = vadd.f32 %v20450_v10, %v20449_v22  ;;  %v20325_v13 = vsel %vm1683_vm2, %v19665_v44, 0.0  ;;  %v19580_v16 = vpop.f32.mrb[179].mxu0  ;;  %v19667_v14 = vpop.f32.mrb[193].mxu1 }
0x1288   : > { %v20326_v29 = vadd.f32 %v20325_v13, %v20324_v9  ;;  %v20452_v60 = vsel %vm1683_vm2, %v19667_v14, 0.0  ;;  %v19669_v63 = vpop.f32.mrb[194].mxu1 }
0x1289   : > { %v20453_v30 = vadd.f32 %v20452_v60, %v20451_v15  ;;  %v19670_v36 = vpop.f32.mrb[195].mxu1  ;;  %v28016_v60 = vld [vmem:[%s34961_s13 + $0x38] sm:$0xff]  }
0x128a   : > { %24911 = vmatpush3.bf16.msra.mxu1 %v28016_v60 }
0x1294   : > { %v19755_v2 = vpop.f32.mrb[180].mxu0 }
0x1295   : > { %v20327_v52 = vsel %vm1683_vm2, %v19755_v2, 0.0  ;;  %v19757_v37 = vpop.f32.mrb[181].mxu0 }
0x1296   : > { %v20328_v1 = vadd.f32 %v20327_v52, %v20326_v29  ;;  %v20454_v11 = vsel %vm1683_vm2, %v19757_v37, 0.0  ;;  %v19759_v40 = vpop.f32.mrb[182].mxu0  ;;  %v19845_v56 = vpop.f32.mrb[196].mxu1 }
0x1297   : > { %v20455_v3 = vadd.f32 %v20454_v11, %v20453_v30  ;;  %v20329_v58 = vsel %vm1683_vm2, %v19845_v56, 0.0  ;;  %v19760_v48 = vpop.f32.mrb[183].mxu0  ;;  %v19847_v6 = vpop.f32.mrb[197].mxu1  ;;  %v20516_v30 = vld [vmem:[%s34960_s12] sm:$0x1] }
0x1298   : > { %v20330_v8 = vadd.f32 %v20329_v58, %v20328_v1  ;;  %v20456_v18 = vsel %vm1683_vm2, %v19847_v6, 0.0  ;;  %v19849_v21 = vpop.f32.mrb[198].mxu1  ;;  %v20671_v56 = vld [vmem:[%s34962_s14] sm:$0x1] }
0x1299   : > { %v20457_v41 = vadd.f32 %v20456_v18, %v20455_v3  ;;  %v19850_v53 = vpop.f32.mrb[199].mxu1 }
0x12a4   : > { %v19935_v24 = vpop.f32.mrb[184].mxu0 }
0x12a5   : > { %v20331_v32 = vsel %vm1683_vm2, %v19935_v24, 0.0  ;;  %v19937_v26 = vpop.f32.mrb[185].mxu0 }
0x12a6   : > { %v20332_v17 = vadd.f32 %v20331_v32, %v20330_v8  ;;  %v20458_v49 = vsel %vm1683_vm2, %v19937_v26, 0.0  ;;  %v19939_v50 = vpop.f32.mrb[186].mxu0  ;;  %v20025_v51 = vpop.f32.mrb[200].mxu1 }
0x12a7   : > { %v20459_v57 = vadd.f32 %v20458_v49, %v20457_v41  ;;  %v20333_v0 = vsel %vm1683_vm2, %v20025_v51, 0.0  ;;  %v19940_v62 = vpop.f32.mrb[187].mxu0  ;;  %v20027_v33 = vpop.f32.mrb[201].mxu1 }
0x12a8   : > { %v20334_v55 = vadd.f32 %v20333_v0, %v20332_v17  ;;  %v20460_v59 = vsel %vm1683_vm2, %v20027_v33, 0.0  ;;  %v20029_v47 = vpop.f32.mrb[202].mxu1 }
0x12a9   : > { %v20461_v42 = vadd.f32 %v20460_v59, %v20459_v57  ;;  %v20030_v61 = vpop.f32.mrb[203].mxu1 }
0x12b4   : > { %v20115_v38 = vpop.f32.mrb[188].mxu0 }
0x12b5   : > { %v20335_v5 = vsel %vm1683_vm2, %v20115_v38, 0.0  ;;  %v20117_v7 = vpop.f32.mrb[189].mxu0 }
0x12b6   : > { %v20336_v23 = vadd.f32 %v20335_v5, %v20334_v55  ;;  %v20462_v43 = vsel %vm1683_vm2, %v20117_v7, 0.0  ;;  %v20119_v27 = vpop.f32.mrb[190].mxu0  ;;  %v20205_v34 = vpop.f32.mrb[204].mxu1 }
0x12b7   : > { %v20463_v20 = vadd.f32 %v20462_v43, %v20461_v42  ;;  %v20337_v22 = vsel %vm1683_vm2, %v20205_v34, 0.0  ;;  %v20120_v4 = vpop.f32.mrb[191].mxu0  ;;  %v20207_v35 = vpop.f32.mrb[205].mxu1 }
0x12b8   : > { %v20338_v28 = vadd.f32 %v20337_v22, %v20336_v23  ;;  %v20464_v19 = vsel %vm1683_vm2, %v20207_v35, 0.0  ;;  %v20209_v9 = vpop.f32.mrb[206].mxu1 }
0x12b9   : > { %v20465_v10 = vadd.f32 %v20464_v19, %v20463_v20  ;;  %v20210_v54 = vpop.f32.mrb[207].mxu1 }
0x12ba   : > { %v20478_v44 = vadd.f32 %v20471_v39, %v20338_v28 }
0x12bb   : > { %v20479_v15 = vadd.f32 %v20475_v46, %v20465_v10 }
0x12bc   : > { %v20480_v13 = vmax.f32 %v20478_v44, 0.0 }
0x12bd   : > { %v20481_v16 = vmax.f32 %v20479_v15, 0.0 }
0x12be   : > { %v20482_v29 = vpack.c.bf16 %v20480_v13, %v20480_v13 }
0x12bf   : > { %v20483_v14 = vpack.c.bf16 %v20481_v16, %v20481_v16 }
0x12c1   : > { %20645 = vmatprep.mubr.bf16.mxu0 %v20483_v14 }
0x12c2   : > { %20646 = vmatmul.mubr.bf16.vlgmr.msra.gmra.mrb[192].mxu0 %v20482_v29 }
0x1395   : > { %v24765_v63 = vpop.f32.mrb[192].mxu0 }
0x1396   : > { %v24766_v36 = vpop.f32.mrb[193].mxu0 }
0x1397   : > { %v24767_v2 = vadd.f32 %v24766_v36, %v24765_v63  ;;  %v24768_v52 = vpop.f32.mrb[194].mxu0 }
0x1398   : > { %v24769_v37 = vpop.f32.mrb[195].mxu0 }
0x1399   : > { %v20648_v1 = vadd.f32 %v24767_v2, %v20516_v30 }
0x139b   : > { %v20653_v11 = vmax.f32 %v20648_v1, 0.0 }
0x139d   : > { %v20654_v40 = vpack.c.bf16 %v20653_v11, %v20653_v11 }
0x139f   : > { %24913 = vmatmul.mubr.bf16.vlgmr.msra.gmra.mrb[208].mxu1 %v20654_v40 }
0x146f   : > { %20763 = sbr.rel (%p24434_p4) target bundleno = 5238 (0x1476), region = 84 }
0x1472   : > { %v20754_v3 = vpop.f32.mrb[208].mxu1 }
0x1473   : > { %v20755_v25 = vadd.f32 %v20754_v3, %v20671_v56  ;;  %v24914_v58 = vpop.f32.mrb[209].mxu1 }
0x1474   : > { %v20757_v48 = vpop.f32.mrb[210].mxu1 }
0x1475   : > { %v24915_v6 = vpop.f32.mrb[211].mxu1  ;;  %20765 = vst.msk [vmem:[#allocation2] sm:$0x1] (!%p24434_p4), %vm20764_vm6, %v20755_v25 }
0x1476 PF: > { %p24435_p5 = scmp.ne.s32.totalorder %s28146_s19, 1 }
0x1477   : > { %vm20770_vm7 = vcmask (!%p24435_p5), 24576  }
0x1478   : > { %20769 = sbr.rel (%p24435_p5) target bundleno = 5247 (0x147f), region = 88  ;;  %20771 = vst.msk [vmem:[#allocation2 + $0x1] sm:$0x1] (!%p24435_p5), %vm20770_vm7, %v20755_v25 }
0x147f PF: > { %p25193_p6 = scmp.eq.s32.totalorder %s28146_s19, 1  ;;  %s28059_s20 = smov [#allocation2]  }
0x1480   : > { %s20779_s21 = sshll.u32 %s28059_s20, 4  ;;  %s20780_s21 = int_to_ptr.vmem [resolvable:$true] %s20779_s21 }
0x1481   : > { %s28017_s22 = scalar_lea.vmem %s20780_s21, 32  ;;  %p28024_p10 = scmp.lt.s32.totalorder %s20780_s21, %s20780_s21 }
0x1482   : > { %p28018_p7 = scmp.ne.s32.totalorder %s20780_s21, %s28017_s22  ;;  %p28025_p11 = scmp.lt.s32.totalorder %s28017_s22, %s28017_s22 }
0x1484   : > { %p28019_p8 = pnand %p28018_p7, %p25193_p6  ;;  %p28026_p12 = por %p28025_p11, %p28024_p10 }
0x1486   : > { %p28020_p9 = pneg %p28019_p8 }
0x1488   : > { %p28027_p13 = pnand %p28026_p12, %p28020_p9 }
0x148a   : > { %28030 = shalt.err (!%p28027_p13)
}
0x148b   : > { %s28031_s25 = scalar_lea.hbm %s34963_s15, 32 }
0x148c   : > { %p28032_p0 = scmp.ne.s32.totalorder %s34963_s15, %s28031_s25  ;;  %p28037_p3 = scmp.lt.u32.totalorder %s28031_s25, %s34963_s15 }
0x148e   : > { %p28033_p1 = pnand %p28032_p0, %p25193_p6 }
0x1490   : > { %p28034_p2 = pneg %p28033_p1 }
0x1492   : > { %p28039_p4 = pnand %p28037_p3, %p28034_p2 }
0x1494   : > { %28042 = shalt.err (!%p28039_p4)
}
0x1495   : > { %25190 = dma.vmem_to_hbm [thread:$0]  (%p25193_p6), %s20780_s21, 32, %s34963_s15, [#allocation3]  }
0x1496   : > { %28048 = dma.done.wait (%p25193_p6), [#allocation3], 32  }
0x1497   : > { %28050 = vsyncadd (%p25193_p6), [#allocation3], 4294967264 }
0x1498 PF: > { %s26_s18 = sadd.s32 1, %s28053_s18  }
0x1499   : > { %p23_p5 = scmp.ge.s32.totalorder %s26_s18, 4  }
0x149b   :  { %25 = sbr.rel (!%p23_p5) target bundleno = 1 (0x1), region = 147 }
0x14a2   :  { %20792 = vsyncpa [#allocation3], 1 }
0x14a3   :  { %20794 = vsyncpa [#allocation3 + $0x1], 1 }

</bundles_post_ra>
